<compile_context>
chip_gen: v7x
topology: tpu7x:2x2x1
jax: 0.10.0
libtpu: 0.0.40
codegen_flags: <defaults>
</compile_context>

<pallas_src>
import functools
import math

import jax
import jax.numpy as jnp
from jax.experimental import pallas as pl
from jax.experimental.pallas import tpu as pltpu

MATMUL_DTYPE = jnp.bfloat16   # set to jnp.float32 for exact-f32 matmul parity checks
APPROX_RECIP = True           # set False for exact softmax denominator (parity tests)
# NOTE: -1e9 additive mask assumes no batch row is fully padded (else uniform avg).
NEG_INF = -1e9


def _decoder_stack_kernel(
    radar_ref, tgt0_ref, smask_ref, mmask_ref,
    wp_ref, bp_ref,
    wqkv_ref, bqkv_ref, wso_ref, bso_ref,
    wcq_ref, bcq_ref, wckv_ref, bckv_ref, wco_ref, bco_ref,
    wf1_ref, bf1_ref, wf2_ref, bf2_ref,
    lnp_ref, w2p_ref, b2p_ref,
    out_ref,
    qkvT_scr, kvT_scr, attT_scr,
    *, nhead,
):
    f32 = jnp.float32
    T, D = tgt0_ref.shape[1], tgt0_ref.shape[2]
    dh = D // nhead
    n_layers = wqkv_ref.shape[0]

    smask = smask_ref[0]              # (1, T)  additive self-attn key mask
    mmask = mmask_ref[0]              # (1, N)  additive memory key-padding mask

    # Radar -> memory projection: once per batch element, kept live as a value.
    mem = (jnp.dot(radar_ref[0].astype(MATMUL_DTYPE), wp_ref[...],
                   preferred_element_type=f32) + bp_ref[...])           # (N, D)
    mem_bf = mem.astype(MATMUL_DTYPE)

    def layer_norm(v, g, b):
        mu = jnp.mean(v, axis=-1, keepdims=True)
        var = jnp.mean((v - mu) ** 2, axis=-1, keepdims=True)
        return (v - mu) * jax.lax.rsqrt(var + 1e-5) * g + b

    def mha_heads(q_scr, kv_scr, k_base, v_base, add_mask, out_scr):
        # All operands live in a transposed (feature, token) layout, so per-head
        # splits are aligned 8-row sublane slices (no lane-width-dh shuffles or
        # concatenates).  The fori_loop bounds live ranges to ONE head's score
        # matrix at a time (avoids spilling 8 x 64-vreg (T, T) tiles).
        def head(h, carry):
            o = pl.multiple_of(h * dh, dh)
            qh = q_scr[pl.ds(o, dh), :].astype(MATMUL_DTYPE)             # (dh, Tq)
            kh = kv_scr[pl.ds(k_base + o, dh), :].astype(MATMUL_DTYPE)   # (dh, Tk)
            vh = kv_scr[pl.ds(v_base + o, dh), :].astype(MATMUL_DTYPE)   # (dh, Tk)
            # scores = Qh^T Kh ; softmax scale already folded into Q weights.
            s = jax.lax.dot_general(qh, kh, (((0,), (0,)), ((), ())),
                                    preferred_element_type=f32)          # (Tq, Tk)
            s = s + add_mask
            m = jnp.max(s, axis=-1, keepdims=True)
            p = jnp.exp(s - m)
            p = p * pl.reciprocal(jnp.sum(p, axis=-1, keepdims=True),
                                  approx=APPROX_RECIP)
            ohT = jax.lax.dot_general(vh, p.astype(MATMUL_DTYPE),
                                      (((1,), (1,)), ((), ())),
                                      preferred_element_type=f32)        # (dh, Tq)
            out_scr[pl.ds(o, dh), :] = ohT
            return carry
        jax.lax.fori_loop(0, nhead, head, 0)

    def layer_body(l, x):
        lnp = lnp_ref[l]                         # (6, D): [g1, b1, g2, b2, g3, b3]
        x_bf = x.astype(MATMUL_DTYPE)            # one cast per LayerNorm output

        # ---- self attention: fused Q/K/V projection, emitted transposed ----
        qkvT_scr[...] = (jax.lax.dot_general(
            wqkv_ref[l], x_bf, (((1,), (1,)), ((), ())),
            preferred_element_type=f32) + bqkv_ref[l])                   # (3D, T)
        mha_heads(qkvT_scr, qkvT_scr, D, 2 * D, smask, attT_scr)
        sa = (jax.lax.dot_general(attT_scr[...].astype(MATMUL_DTYPE), wso_ref[l],
                                  (((0,), (0,)), ((), ())),
                                  preferred_element_type=f32)
              + bso_ref[l])                                              # (T, D)
        x = layer_norm(x + sa, lnp[0:1], lnp[1:2])

        # ---- cross attention over the projected radar memory ----
        x_bf = x.astype(MATMUL_DTYPE)
        qkvT_scr[0:D, :] = (jax.lax.dot_general(
            wcq_ref[l], x_bf, (((1,), (1,)), ((), ())),
            preferred_element_type=f32) + bcq_ref[l])                    # (D, T)
        kvT_scr[...] = (jax.lax.dot_general(
            wckv_ref[l], mem_bf, (((1,), (1,)), ((), ())),
            preferred_element_type=f32) + bckv_ref[l])                   # (2D, N)
        mha_heads(qkvT_scr, kvT_scr, 0, D, mmask, attT_scr)
        ca = (jax.lax.dot_general(attT_scr[...].astype(MATMUL_DTYPE), wco_ref[l],
                                  (((0,), (0,)), ((), ())),
                                  preferred_element_type=f32)
              + bco_ref[l])                                              # (T, D)
        x = layer_norm(x + ca, lnp[2:3], lnp[3:4])

        # ---- feed-forward (relu) ----
        x_bf = x.astype(MATMUL_DTYPE)
        h1 = jnp.maximum(
            jnp.dot(x_bf, wf1_ref[l], preferred_element_type=f32) + bf1_ref[l],
            0.0)                                                         # (T, Fff)
        ff = (jnp.dot(h1.astype(MATMUL_DTYPE), wf2_ref[l],
                      preferred_element_type=f32) + bf2_ref[l])          # (T, D)
        x = layer_norm(x + ff, lnp[4:5], lnp[5:6])
        return x

    x = jax.lax.fori_loop(0, n_layers, layer_body, tgt0_ref[0])

    # ---- fused linear2patch head; lane-dense (1, T) output row ----
    row = (jax.lax.dot_general(w2p_ref[...], x.astype(MATMUL_DTYPE),
                               (((1,), (1,)), ((), ())),
                               preferred_element_type=f32) + b2p_ref[...])
    out_ref[0] = row


@functools.partial(jax.jit, static_argnames=("nhead", "patch_size"))
def discriminator_transform_forward(radar, pad_mask, laser, params, *,
                                    nhead, patch_size):
    """radar: (N, B, F) seq-first; pad_mask: (B, N) bool (True = pad);
    laser: (B, laser_len)."""
    N, B, F = radar.shape
    D = params["wp"].shape[1]
    L = params["wqkv"].shape[0]
    Fff = params["wf1"].shape[2]
    laser_len = laser.shape[1]
    t_valid = patch_size + laser_len
    t_pad = ((t_valid + 127) // 128) * 128

    f32 = jnp.float32
    radar_b = jnp.transpose(radar, (1, 0, 2)).astype(f32)               # (B, N, F)

    # Tiny one-time preamble: decoder input sequence in batch-first layout.
    # Laser linear has in_features=1 -> just a broadcast scale+shift.
    laser_proj = (laser.astype(f32)[..., None] * params["wl"].reshape(1, 1, D)
                  + params["bl"].reshape(1, 1, D))                       # (B, Tl, D)
    cls_b = jnp.broadcast_to(
        jnp.transpose(params["cls"], (1, 0, 2)), (B, patch_size, D))     # (B, P, D)
    tgt0 = jnp.concatenate([cls_b, laser_proj], axis=1)                  # (B, Tv, D)
    tgt0 = tgt0 + jnp.transpose(params["pos"], (1, 0, 2))                # + pos emb
    tgt0 = jnp.pad(tgt0, ((0, 0), (0, t_pad - t_valid), (0, 0))).astype(f32)

    # Additive masks: the padded target key column and the memory key padding.
    smask = jnp.where(jnp.arange(t_pad) < t_valid, 0.0, NEG_INF)
    smask = smask.astype(f32).reshape(1, 1, t_pad)
    mmask = jnp.where(pad_mask, NEG_INF, 0.0).astype(f32).reshape(B, 1, N)

    # Weight prep (tiny, outside the kernel): transpose the Q/K/V-producing
    # weights to (out, in) so the kernel emits transposed activations directly,
    # and fold the 1/sqrt(dh) softmax scale into Q weights/biases (zero kernel
    # cost).  Fused wqkv layout: rows [q; k; v], each with contiguous dh-sized
    # head chunks (must match torch in_proj conventions when porting weights).
    scale = 1.0 / math.sqrt(D // nhead)
    qsf = jnp.concatenate([jnp.full((D,), scale, f32),
                           jnp.ones((2 * D,), f32)]).reshape(1, 3 * D, 1)
    wqkvT = jnp.swapaxes(params["wqkv"], 1, 2) * qsf        # (L, 3D, D)
    bqkvT = jnp.swapaxes(params["bqkv"], 1, 2) * qsf        # (L, 3D, 1)
    wcqT = jnp.swapaxes(params["wcq"], 1, 2) * scale        # (L, D, D)
    bcqT = jnp.swapaxes(params["bcq"], 1, 2) * scale        # (L, D, 1)
    wckvT = jnp.swapaxes(params["wckv"], 1, 2)              # (L, 2D, D)
    bckvT = jnp.swapaxes(params["bckv"], 1, 2)              # (L, 2D, 1)

    cast = lambda a: a.astype(MATMUL_DTYPE)
    c2 = lambda b: (0, 0)
    c3 = lambda b: (0, 0, 0)
    pb3 = lambda b: (b, 0, 0)

    in_specs = [
        pl.BlockSpec((1, N, F), pb3),            # radar (per batch element)
        pl.BlockSpec((1, t_pad, D), pb3),        # tgt0  (per batch element)
        pl.BlockSpec((1, 1, t_pad), c3),         # self-attn additive key mask
        pl.BlockSpec((1, 1, N), pb3),            # memory additive key mask
        # --- VMEM-resident weights: full stacked blocks, constant index map ---
        pl.BlockSpec((F, D), c2),                # wp
        pl.BlockSpec((1, D), c2),                # bp
        pl.BlockSpec((L, 3 * D, D), c3),         # wqkvT
        pl.BlockSpec((L, 3 * D, 1), c3),         # bqkvT
        pl.BlockSpec((L, D, D), c3),             # wso
        pl.BlockSpec((L, 1, D), c3),             # bso
        pl.BlockSpec((L, D, D), c3),             # wcqT
        pl.BlockSpec((L, D, 1), c3),             # bcqT
        pl.BlockSpec((L, 2 * D, D), c3),         # wckvT
        pl.BlockSpec((L, 2 * D, 1), c3),         # bckvT
        pl.BlockSpec((L, D, D), c3),             # wco
        pl.BlockSpec((L, 1, D), c3),             # bco
        pl.BlockSpec((L, D, Fff), c3),           # wf1
        pl.BlockSpec((L, 1, Fff), c3),           # bf1
        pl.BlockSpec((L, Fff, D), c3),           # wf2
        pl.BlockSpec((L, 1, D), c3),             # bf2
        pl.BlockSpec((L, 6, D), c3),             # layernorm params
        pl.BlockSpec((1, D), c2),                # w2p (linear2patch)
        pl.BlockSpec((1, 1), c2),                # b2p
    ]

    out = pl.pallas_call(
        functools.partial(_decoder_stack_kernel, nhead=nhead),
        out_shape=jax.ShapeDtypeStruct((B, 1, t_pad), f32),
        grid=(B,),
        in_specs=in_specs,
        out_specs=pl.BlockSpec((1, 1, t_pad), pb3),
        scratch_shapes=[
            pltpu.VMEM((3 * D, t_pad), f32),     # Q^T/K^T/V^T (self); Q^T (cross)
            pltpu.VMEM((2 * D, N), f32),         # K^T/V^T over radar memory (cross)
            pltpu.VMEM((D, t_pad), f32),         # transposed multi-head attn output
        ],
        compiler_params=pltpu.CompilerParams(
            dimension_semantics=("parallel",)),  # batch across TCs (v7x megacore)
    )(
        radar_b, tgt0, smask, mmask,
        cast(params["wp"]), params["bp"].reshape(1, D),
        cast(wqkvT), bqkvT,
        cast(params["wso"]), params["bso"],
        cast(wcqT), bcqT,
        cast(wckvT), bckvT,
        cast(params["wco"]), params["bco"],
        cast(params["wf1"]), params["bf1"],
        cast(params["wf2"]), params["bf2"],
        params["lnp"],
        cast(params["w2p"]), params["b2p"],
    )

    cls_heads = out[:, 0, :patch_size]                       # (B, patch_size)
    # torch: linear2patch -> transpose(0,1) -> squeeze() of a (B, P, 1) tensor.
    return jnp.squeeze(cls_heads[..., None])


def init_params(key, *, features, embed_dim, nhead, layers, dim_ff,
                patch_size, laser_len):
    D, L = embed_dim, layers
    del nhead  # head count only affects the kernel, not parameter shapes

    def dense(k, shape, fan_in):
        return (fan_in ** -0.5) * jax.random.normal(k, shape, jnp.float32)

    keys = iter(jax.random.split(key, 16))
    return dict(
        wp=dense(next(keys), (features, D), features),
        bp=jnp.zeros((D,), jnp.float32),
        wl=dense(next(keys), (1, D), 1),
        bl=jnp.zeros((D,), jnp.float32),
        cls=jax.random.normal(next(keys), (patch_size, 1, D), jnp.float32),
        pos=jax.random.normal(next(keys), (patch_size + laser_len, 1, D),
                              jnp.float32),
        # Fused QKV: columns [q | k | v], contiguous dh head chunks within each.
        wqkv=dense(next(keys), (L, D, 3 * D), D),
        bqkv=jnp.zeros((L, 1, 3 * D), jnp.float32),
        wso=dense(next(keys), (L, D, D), D),
        bso=jnp.zeros((L, 1, D), jnp.float32),
        wcq=dense(next(keys), (L, D, D), D),
        bcq=jnp.zeros((L, 1, D), jnp.float32),
        wckv=dense(next(keys), (L, D, 2 * D), D),
        bckv=jnp.zeros((L, 1, 2 * D), jnp.float32),
        wco=dense(next(keys), (L, D, D), D),
        bco=jnp.zeros((L, 1, D), jnp.float32),
        wf1=dense(next(keys), (L, D, dim_ff), D),
        bf1=jnp.zeros((L, 1, dim_ff), jnp.float32),
        wf2=dense(next(keys), (L, dim_ff, D), dim_ff),
        bf2=jnp.zeros((L, 1, D), jnp.float32),
        # LayerNorm params per layer, rows [g1, b1, g2, b2, g3, b3].
        lnp=jnp.zeros((L, 6, D), jnp.float32).at[:, 0::2, :].set(1.0),
        w2p=dense(next(keys), (1, D), D),      # linear2patch weight (out=1)
        b2p=jnp.zeros((1, 1), jnp.float32),
    )


if __name__ == "__main__":
    FEATURES = 7
    EMBED_DIM = 64
    NHEAD = 8
    LAYERS = 6          # module default; resident stacked weights are < 2 MB
    DIM_FF = 128        # TODO(synk): true dim_feedforward unknown (custom layer class not given)
    PATCH_SIZE = 14
    LASER_LEN = 241     # fixed by pos_embedding shape = patch_size + 241
    RADAR_SEQ = 8
    BATCH = 2           # keep per-chip batch even so both v7x TCs are busy

    root = jax.random.PRNGKey(0)
    k_r, k_l, k_p = jax.random.split(root, 3)

    radar = jax.random.normal(k_r, (RADAR_SEQ, BATCH, FEATURES), jnp.float32)
    laser = jax.random.normal(k_l, (BATCH, LASER_LEN), jnp.float32)
    # True = padded radar timestep (last two padded for every batch element).
    pad_mask = jnp.zeros((BATCH, RADAR_SEQ), dtype=bool).at[:, -2:].set(True)

    params = init_params(k_p, features=FEATURES, embed_dim=EMBED_DIM,
                         nhead=NHEAD, layers=LAYERS, dim_ff=DIM_FF,
                         patch_size=PATCH_SIZE, laser_len=LASER_LEN)

    out = discriminator_transform_forward(
        radar, pad_mask, laser, params, nhead=NHEAD, patch_size=PATCH_SIZE)
    out = jax.block_until_ready(out)

    assert out.shape == (BATCH, PATCH_SIZE), out.shape
    assert bool(jnp.all(jnp.isfinite(out)))
    print("KERNEL_OK")
</pallas_src>

<mosaic_0001>
module attributes {stable_mosaic.version = 11 : i64} {
  func.func @_decoder_stack_kernel(%arg0: i32, %arg1: memref<1x8x7xf32, #tpu.memory_space<vmem>>, %arg2: memref<1x256x64xf32, #tpu.memory_space<vmem>>, %arg3: memref<1x1x256xf32, #tpu.memory_space<vmem>>, %arg4: memref<1x1x8xf32, #tpu.memory_space<vmem>>, %arg5: memref<7x64xbf16, #tpu.memory_space<vmem>>, %arg6: memref<1x64xf32, #tpu.memory_space<vmem>>, %arg7: memref<6x192x64xbf16, #tpu.memory_space<vmem>>, %arg8: memref<6x192x1xf32, #tpu.memory_space<vmem>>, %arg9: memref<6x64x64xbf16, #tpu.memory_space<vmem>>, %arg10: memref<6x1x64xf32, #tpu.memory_space<vmem>>, %arg11: memref<6x64x64xbf16, #tpu.memory_space<vmem>>, %arg12: memref<6x64x1xf32, #tpu.memory_space<vmem>>, %arg13: memref<6x128x64xbf16, #tpu.memory_space<vmem>>, %arg14: memref<6x128x1xf32, #tpu.memory_space<vmem>>, %arg15: memref<6x64x64xbf16, #tpu.memory_space<vmem>>, %arg16: memref<6x1x64xf32, #tpu.memory_space<vmem>>, %arg17: memref<6x64x128xbf16, #tpu.memory_space<vmem>>, %arg18: memref<6x1x128xf32, #tpu.memory_space<vmem>>, %arg19: memref<6x128x64xbf16, #tpu.memory_space<vmem>>, %arg20: memref<6x1x64xf32, #tpu.memory_space<vmem>>, %arg21: memref<6x6x64xf32, #tpu.memory_space<vmem>>, %arg22: memref<1x64xbf16, #tpu.memory_space<vmem>>, %arg23: memref<1x1xf32, #tpu.memory_space<vmem>>, %arg24: memref<1x1x256xf32, #tpu.memory_space<vmem>>, %arg25: memref<192x256xf32, #tpu.memory_space<vmem>>, %arg26: memref<128x8xf32, #tpu.memory_space<vmem>>, %arg27: memref<64x256xf32, #tpu.memory_space<vmem>>) attributes {dimension_semantics = [#tpu.dimension_semantics<parallel>], iteration_bounds = array<i64: 2>, scalar_prefetch = 0 : i64, scratch_operands = 3 : i64, tpu.core_type = #tpu.core_type<tc>, window_params = [{transform_indices = @transform_0, window_bounds = array<i64: 1, 8, 7>}, {transform_indices = @transform_1, window_bounds = array<i64: 1, 256, 64>}, {pipeline_mode = #tpu.pipeline_mode<synchronous>, transform_indices = @transform_2, window_bounds = array<i64: 1, 1, 256>}, {transform_indices = @transform_3, window_bounds = array<i64: 1, 1, 8>}, {pipeline_mode = #tpu.pipeline_mode<synchronous>, transform_indices = @transform_4, window_bounds = array<i64: 7, 64>}, {pipeline_mode = #tpu.pipeline_mode<synchronous>, transform_indices = @transform_5, window_bounds = array<i64: 1, 64>}, {pipeline_mode = #tpu.pipeline_mode<synchronous>, transform_indices = @transform_6, window_bounds = array<i64: 6, 192, 64>}, {pipeline_mode = #tpu.pipeline_mode<synchronous>, transform_indices = @transform_7, window_bounds = array<i64: 6, 192, 1>}, {pipeline_mode = #tpu.pipeline_mode<synchronous>, transform_indices = @transform_8, window_bounds = array<i64: 6, 64, 64>}, {pipeline_mode = #tpu.pipeline_mode<synchronous>, transform_indices = @transform_9, window_bounds = array<i64: 6, 1, 64>}, {pipeline_mode = #tpu.pipeline_mode<synchronous>, transform_indices = @transform_10, window_bounds = array<i64: 6, 64, 64>}, {pipeline_mode = #tpu.pipeline_mode<synchronous>, transform_indices = @transform_11, window_bounds = array<i64: 6, 64, 1>}, {pipeline_mode = #tpu.pipeline_mode<synchronous>, transform_indices = @transform_12, window_bounds = array<i64: 6, 128, 64>}, {pipeline_mode = #tpu.pipeline_mode<synchronous>, transform_indices = @transform_13, window_bounds = array<i64: 6, 128, 1>}, {pipeline_mode = #tpu.pipeline_mode<synchronous>, transform_indices = @transform_14, window_bounds = array<i64: 6, 64, 64>}, {pipeline_mode = #tpu.pipeline_mode<synchronous>, transform_indices = @transform_15, window_bounds = array<i64: 6, 1, 64>}, {pipeline_mode = #tpu.pipeline_mode<synchronous>, transform_indices = @transform_16, window_bounds = array<i64: 6, 64, 128>}, {pipeline_mode = #tpu.pipeline_mode<synchronous>, transform_indices = @transform_17, window_bounds = array<i64: 6, 1, 128>}, {pipeline_mode = #tpu.pipeline_mode<synchronous>, transform_indices = @transform_18, window_bounds = array<i64: 6, 128, 64>}, {pipeline_mode = #tpu.pipeline_mode<synchronous>, transform_indices = @transform_19, window_bounds = array<i64: 6, 1, 64>}, {pipeline_mode = #tpu.pipeline_mode<synchronous>, transform_indices = @transform_20, window_bounds = array<i64: 6, 6, 64>}, {pipeline_mode = #tpu.pipeline_mode<synchronous>, transform_indices = @transform_21, window_bounds = array<i64: 1, 64>}, {pipeline_mode = #tpu.pipeline_mode<synchronous>, transform_indices = @transform_22, window_bounds = array<i64: 1, 1>}, {transform_indices = @transform_23, window_bounds = array<i64: 1, 1, 256>}]} {
    %c0 = arith.constant 0 : index
    %c0_0 = arith.constant 0 : index
    %c0_1 = arith.constant 0 : index
    %0 = vector.load %arg3[%c0, %c0_0, %c0_1] : memref<1x1x256xf32, #tpu.memory_space<vmem>>, vector<1x1x256xf32>
    %1 = vector.shape_cast %0 : vector<1x1x256xf32> to vector<1x256xf32>
    %c0_2 = arith.constant 0 : index
    %c0_3 = arith.constant 0 : index
    %c0_4 = arith.constant 0 : index
    %2 = vector.load %arg4[%c0_2, %c0_3, %c0_4] : memref<1x1x8xf32, #tpu.memory_space<vmem>>, vector<1x1x8xf32>
    %3 = vector.shape_cast %2 : vector<1x1x8xf32> to vector<1x8xf32>
    %c0_5 = arith.constant 0 : index
    %c0_6 = arith.constant 0 : index
    %c0_7 = arith.constant 0 : index
    %4 = vector.load %arg1[%c0_5, %c0_6, %c0_7] : memref<1x8x7xf32, #tpu.memory_space<vmem>>, vector<1x8x7xf32>
    %5 = vector.shape_cast %4 : vector<1x8x7xf32> to vector<8x7xf32>
    %6 = arith.truncf %5 : vector<8x7xf32> to vector<8x7xbf16>
    %c0_8 = arith.constant 0 : index
    %c0_9 = arith.constant 0 : index
    %7 = vector.load %arg5[%c0_8, %c0_9] : memref<7x64xbf16, #tpu.memory_space<vmem>>, vector<7x64xbf16>
    %cst = arith.constant dense<0.000000e+00> : vector<8x64xf32>
    %8 = tpu.matmul %6, %7, %cst {dimension_numbers = #tpu.dot_dimension_numbers<[1], [0], [0], [1], [0, 0, 1, 1], [], []>} : vector<8x7xbf16>, vector<7x64xbf16>, vector<8x64xf32> -> vector<8x64xf32>
    %c0_10 = arith.constant 0 : index
    %c0_11 = arith.constant 0 : index
    %9 = vector.load %arg6[%c0_10, %c0_11] : memref<1x64xf32, #tpu.memory_space<vmem>>, vector<1x64xf32>
    %10 = vector.broadcast %9 : vector<1x64xf32> to vector<8x64xf32>
    %11 = arith.addf %8, %10 : vector<8x64xf32>
    %12 = arith.truncf %11 : vector<8x64xf32> to vector<8x64xbf16>
    %c0_12 = arith.constant 0 : index
    %c0_13 = arith.constant 0 : index
    %c0_14 = arith.constant 0 : index
    %13 = vector.load %arg2[%c0_12, %c0_13, %c0_14] : memref<1x256x64xf32, #tpu.memory_space<vmem>>, vector<1x256x64xf32>
    %14 = vector.shape_cast %13 : vector<1x256x64xf32> to vector<256x64xf32>
    %c0_i32 = arith.constant 0 : i32
    %c6_i32 = arith.constant 6 : i32
    %15 = arith.addi %c0_i32, %c6_i32 : i32
    %c1_i32 = arith.constant 1 : i32
    %16 = scf.for %arg28 = %c0_i32 to %15 step %c1_i32 iter_args(%arg29 = %14) -> (vector<256x64xf32>)  : i32 {
      %26 = arith.index_cast %arg28 : i32 to index
      %c0_24 = arith.constant 0 : index
      %c0_25 = arith.constant 0 : index
      %27 = vector.load %arg21[%26, %c0_24, %c0_25] : memref<6x6x64xf32, #tpu.memory_space<vmem>>, vector<1x6x64xf32>
      %28 = vector.shape_cast %27 : vector<1x6x64xf32> to vector<6x64xf32>
      %29 = arith.truncf %arg29 : vector<256x64xf32> to vector<256x64xbf16>
      %30 = arith.index_cast %arg28 : i32 to index
      %c0_26 = arith.constant 0 : index
      %c0_27 = arith.constant 0 : index
      %31 = vector.load %arg7[%30, %c0_26, %c0_27] : memref<6x192x64xbf16, #tpu.memory_space<vmem>>, vector<1x192x64xbf16>
      %32 = vector.shape_cast %31 : vector<1x192x64xbf16> to vector<192x64xbf16>
      %cst_28 = arith.constant dense<0.000000e+00> : vector<192x256xf32>
      %33 = tpu.matmul %32, %29, %cst_28 {dimension_numbers = #tpu.dot_dimension_numbers<[1], [1], [0], [0], [0, 0, 1, 0], [], []>} : vector<192x64xbf16>, vector<256x64xbf16>, vector<192x256xf32> -> vector<192x256xf32>
      %34 = arith.index_cast %arg28 : i32 to index
      %c0_29 = arith.constant 0 : index
      %c0_30 = arith.constant 0 : index
      %35 = vector.load %arg8[%34, %c0_29, %c0_30] : memref<6x192x1xf32, #tpu.memory_space<vmem>>, vector<1x192x1xf32>
      %36 = vector.shape_cast %35 : vector<1x192x1xf32> to vector<192x1xf32>
      %37 = vector.broadcast %36 : vector<192x1xf32> to vector<192x256xf32>
      %38 = arith.addf %33, %37 : vector<192x256xf32>
      %c0_31 = arith.constant 0 : index
      %c0_32 = arith.constant 0 : index
      %39 = vector.load %arg25[%c0_31, %c0_32] : memref<192x256xf32, #tpu.memory_space<vmem>>, vector<192x256xf32>
      tpu.vector_store %arg25[%c0_31, %c0_32], %38 {strides = array<i32>} : memref<192x256xf32, #tpu.memory_space<vmem>>, vector<192x256xf32>,
      %c0_i32_33 = arith.constant 0 : i32
      %c8_i32 = arith.constant 8 : i32
      %40 = arith.addi %c0_i32_33, %c8_i32 : i32
      %c1_i32_34 = arith.constant 1 : i32
      scf.for %arg30 = %c0_i32_33 to %40 step %c1_i32_34  : i32 {
        %c8_i32_94 = arith.constant 8 : i32
        %182 = arith.muli %arg30, %c8_i32_94 : i32
        %183 = tpu.assume_multiple %182, 8 : i32
        %184 = arith.index_cast %183 : i32 to index
        %c0_95 = arith.constant 0 : index
        %185 = vector.load %arg25[%184, %c0_95] : memref<192x256xf32, #tpu.memory_space<vmem>>, vector<8x256xf32>
        %186 = arith.truncf %185 : vector<8x256xf32> to vector<8x256xbf16>
        %c64_i32 = arith.constant 64 : i32
        %187 = arith.addi %c64_i32, %183 : i32
        %188 = arith.index_cast %187 : i32 to index
        %c0_96 = arith.constant 0 : index
        %189 = vector.load %arg25[%188, %c0_96] : memref<192x256xf32, #tpu.memory_space<vmem>>, vector<8x256xf32>
        %190 = arith.truncf %189 : vector<8x256xf32> to vector<8x256xbf16>
        %c128_i32 = arith.constant 128 : i32
        %191 = arith.addi %c128_i32, %183 : i32
        %192 = arith.index_cast %191 : i32 to index
        %c0_97 = arith.constant 0 : index
        %193 = vector.load %arg25[%192, %c0_97] : memref<192x256xf32, #tpu.memory_space<vmem>>, vector<8x256xf32>
        %194 = arith.truncf %193 : vector<8x256xf32> to vector<8x256xbf16>
        %cst_98 = arith.constant dense<0.000000e+00> : vector<256x256xf32>
        %195 = tpu.matmul %186, %190, %cst_98 {dimension_numbers = #tpu.dot_dimension_numbers<[0], [0], [1], [1], [0, 1, 1, 1], [], []>} : vector<8x256xbf16>, vector<8x256xbf16>, vector<256x256xf32> -> vector<256x256xf32>
        %196 = vector.broadcast %1 : vector<1x256xf32> to vector<256x256xf32>
        %197 = arith.addf %195, %196 : vector<256x256xf32>
        %cst_99 = arith.constant dense<0xFF800000> : vector<256xf32>
        %198 = vector.multi_reduction <maximumf>, %197, %cst_99 [1] : vector<256x256xf32> to vector<256xf32>
        %199 = vector.shape_cast %198 : vector<256xf32> to vector<256x1xf32>
        %200 = vector.broadcast %199 : vector<256x1xf32> to vector<256x256xf32>
        %201 = arith.subf %197, %200 : vector<256x256xf32>
        %202 = math.exp %201 : vector<256x256xf32>
        %cst_100 = arith.constant dense<0.000000e+00> : vector<256xf32>
        %203 = vector.multi_reduction <add>, %202, %cst_100 [1] : vector<256x256xf32> to vector<256xf32>
        %204 = vector.shape_cast %203 : vector<256xf32> to vector<256x1xf32>
        %205 = tpu.reciprocal %204 {approx = true} : vector<256x1xf32> -> vector<256x1xf32>
        %206 = vector.broadcast %205 : vector<256x1xf32> to vector<256x256xf32>
        %207 = arith.mulf %202, %206 : vector<256x256xf32>
        %208 = arith.truncf %207 : vector<256x256xf32> to vector<256x256xbf16>
        %cst_101 = arith.constant dense<0.000000e+00> : vector<8x256xf32>
        %209 = tpu.matmul %194, %208, %cst_101 {dimension_numbers = #tpu.dot_dimension_numbers<[1], [1], [0], [0], [0, 0, 1, 0], [], []>} : vector<8x256xbf16>, vector<256x256xbf16>, vector<8x256xf32> -> vector<8x256xf32>
        %210 = arith.index_cast %183 : i32 to index
        %c0_102 = arith.constant 0 : index
        %211 = vector.load %arg27[%210, %c0_102] : memref<64x256xf32, #tpu.memory_space<vmem>>, vector<8x256xf32>
        tpu.vector_store %arg27[%210, %c0_102], %209 {strides = array<i32>} : memref<64x256xf32, #tpu.memory_space<vmem>>, vector<8x256xf32>,
      }
      %c8_i32_35 = arith.constant 8 : i32
      %c0_36 = arith.constant 0 : index
      %c0_37 = arith.constant 0 : index
      %41 = vector.load %arg27[%c0_36, %c0_37] : memref<64x256xf32, #tpu.memory_space<vmem>>, vector<64x256xf32>
      %42 = arith.truncf %41 : vector<64x256xf32> to vector<64x256xbf16>
      %43 = arith.index_cast %arg28 : i32 to index
      %c0_38 = arith.constant 0 : index
      %c0_39 = arith.constant 0 : index
      %44 = vector.load %arg9[%43, %c0_38, %c0_39] : memref<6x64x64xbf16, #tpu.memory_space<vmem>>, vector<1x64x64xbf16>
      %45 = vector.shape_cast %44 : vector<1x64x64xbf16> to vector<64x64xbf16>
      %cst_40 = arith.constant dense<0.000000e+00> : vector<256x64xf32>
      %46 = tpu.matmul %42, %45, %cst_40 {dimension_numbers = #tpu.dot_dimension_numbers<[0], [0], [1], [1], [0, 1, 1, 1], [], []>} : vector<64x256xbf16>, vector<64x64xbf16>, vector<256x64xf32> -> vector<256x64xf32>
      %47 = arith.index_cast %arg28 : i32 to index
      %c0_41 = arith.constant 0 : index
      %c0_42 = arith.constant 0 : index
      %48 = vector.load %arg10[%47, %c0_41, %c0_42] : memref<6x1x64xf32, #tpu.memory_space<vmem>>, vector<1x1x64xf32>
      %49 = vector.shape_cast %48 : vector<1x1x64xf32> to vector<1x64xf32>
      %50 = vector.broadcast %49 : vector<1x64xf32> to vector<256x64xf32>
      %51 = arith.addf %46, %50 : vector<256x64xf32>
      %52 = arith.addf %arg29, %51 : vector<256x64xf32>
      %53 = vector.extract_strided_slice %28 {offsets = [0, 0], sizes = [1, 64], strides = [1, 1]} : vector<6x64xf32> to vector<1x64xf32>
      %54 = vector.extract_strided_slice %28 {offsets = [1, 0], sizes = [1, 64], strides = [1, 1]} : vector<6x64xf32> to vector<1x64xf32>
      %cst_43 = arith.constant dense<0.000000e+00> : vector<256xf32>
      %55 = vector.multi_reduction <add>, %52, %cst_43 [1] : vector<256x64xf32> to vector<256xf32>
      %56 = vector.shape_cast %55 : vector<256xf32> to vector<256x1xf32>
      %cst_44 = arith.constant 6.400000e+01 : f32
      %57 = vector.broadcast %cst_44 : f32 to vector<256x1xf32>
      %58 = arith.divf %56, %57 : vector<256x1xf32>
      %59 = vector.broadcast %58 : vector<256x1xf32> to vector<256x64xf32>
      %60 = arith.subf %52, %59 : vector<256x64xf32>
      %61 = arith.mulf %60, %60 : vector<256x64xf32>
      %cst_45 = arith.constant dense<0.000000e+00> : vector<256xf32>
      %62 = vector.multi_reduction <add>, %61, %cst_45 [1] : vector<256x64xf32> to vector<256xf32>
      %63 = vector.shape_cast %62 : vector<256xf32> to vector<256x1xf32>
      %cst_46 = arith.constant 6.400000e+01 : f32
      %64 = vector.broadcast %cst_46 : f32 to vector<256x1xf32>
      %65 = arith.divf %63, %64 : vector<256x1xf32>
      %66 = vector.broadcast %58 : vector<256x1xf32> to vector<256x64xf32>
      %67 = arith.subf %52, %66 : vector<256x64xf32>
      %cst_47 = arith.constant 9.99999974E-6 : f32
      %68 = vector.broadcast %cst_47 : f32 to vector<256x1xf32>
      %69 = arith.addf %65, %68 : vector<256x1xf32>
      %70 = math.rsqrt %69 : vector<256x1xf32>
      %71 = vector.broadcast %70 : vector<256x1xf32> to vector<256x64xf32>
      %72 = arith.mulf %67, %71 : vector<256x64xf32>
      %73 = vector.broadcast %53 : vector<1x64xf32> to vector<256x64xf32>
      %74 = arith.mulf %72, %73 : vector<256x64xf32>
      %75 = vector.broadcast %54 : vector<1x64xf32> to vector<256x64xf32>
      %76 = arith.addf %74, %75 : vector<256x64xf32>
      %77 = arith.truncf %76 : vector<256x64xf32> to vector<256x64xbf16>
      %78 = arith.index_cast %arg28 : i32 to index
      %c0_48 = arith.constant 0 : index
      %c0_49 = arith.constant 0 : index
      %79 = vector.load %arg11[%78, %c0_48, %c0_49] : memref<6x64x64xbf16, #tpu.memory_space<vmem>>, vector<1x64x64xbf16>
      %80 = vector.shape_cast %79 : vector<1x64x64xbf16> to vector<64x64xbf16>
      %cst_50 = arith.constant dense<0.000000e+00> : vector<64x256xf32>
      %81 = tpu.matmul %80, %77, %cst_50 {dimension_numbers = #tpu.dot_dimension_numbers<[1], [1], [0], [0], [0, 0, 1, 0], [], []>} : vector<64x64xbf16>, vector<256x64xbf16>, vector<64x256xf32> -> vector<64x256xf32>
      %82 = arith.index_cast %arg28 : i32 to index
      %c0_51 = arith.constant 0 : index
      %c0_52 = arith.constant 0 : index
      %83 = vector.load %arg12[%82, %c0_51, %c0_52] : memref<6x64x1xf32, #tpu.memory_space<vmem>>, vector<1x64x1xf32>
      %84 = vector.shape_cast %83 : vector<1x64x1xf32> to vector<64x1xf32>
      %85 = vector.broadcast %84 : vector<64x1xf32> to vector<64x256xf32>
      %86 = arith.addf %81, %85 : vector<64x256xf32>
      %c0_53 = arith.constant 0 : index
      %c0_54 = arith.constant 0 : index
      %87 = vector.load %arg25[%c0_53, %c0_54] : memref<192x256xf32, #tpu.memory_space<vmem>>, vector<64x256xf32>
      tpu.vector_store %arg25[%c0_53, %c0_54], %86 {strides = array<i32>} : memref<192x256xf32, #tpu.memory_space<vmem>>, vector<64x256xf32>,
      %88 = arith.index_cast %arg28 : i32 to index
      %c0_55 = arith.constant 0 : index
      %c0_56 = arith.constant 0 : index
      %89 = vector.load %arg13[%88, %c0_55, %c0_56] : memref<6x128x64xbf16, #tpu.memory_space<vmem>>, vector<1x128x64xbf16>
      %90 = vector.shape_cast %89 : vector<1x128x64xbf16> to vector<128x64xbf16>
      %cst_57 = arith.constant dense<0.000000e+00> : vector<128x8xf32>
      %91 = tpu.matmul %90, %12, %cst_57 {dimension_numbers = #tpu.dot_dimension_numbers<[1], [1], [0], [0], [0, 0, 1, 0], [], []>} : vector<128x64xbf16>, vector<8x64xbf16>, vector<128x8xf32> -> vector<128x8xf32>
      %92 = arith.index_cast %arg28 : i32 to index
      %c0_58 = arith.constant 0 : index
      %c0_59 = arith.constant 0 : index
      %93 = vector.load %arg14[%92, %c0_58, %c0_59] : memref<6x128x1xf32, #tpu.memory_space<vmem>>, vector<1x128x1xf32>
      %94 = vector.shape_cast %93 : vector<1x128x1xf32> to vector<128x1xf32>
      %95 = vector.broadcast %94 : vector<128x1xf32> to vector<128x8xf32>
      %96 = arith.addf %91, %95 : vector<128x8xf32>
      %c0_60 = arith.constant 0 : index
      %c0_61 = arith.constant 0 : index
      %97 = vector.load %arg26[%c0_60, %c0_61] : memref<128x8xf32, #tpu.memory_space<vmem>>, vector<128x8xf32>
      tpu.vector_store %arg26[%c0_60, %c0_61], %96 {strides = array<i32>} : memref<128x8xf32, #tpu.memory_space<vmem>>, vector<128x8xf32>,
      %c0_i32_62 = arith.constant 0 : i32
      %c8_i32_63 = arith.constant 8 : i32
      %98 = arith.addi %c0_i32_62, %c8_i32_63 : i32
      %c1_i32_64 = arith.constant 1 : i32
      scf.for %arg30 = %c0_i32_62 to %98 step %c1_i32_64  : i32 {
        %c8_i32_94 = arith.constant 8 : i32
        %182 = arith.muli %arg30, %c8_i32_94 : i32
        %183 = tpu.assume_multiple %182, 8 : i32
        %184 = arith.index_cast %183 : i32 to index
        %c0_95 = arith.constant 0 : index
        %185 = vector.load %arg25[%184, %c0_95] : memref<192x256xf32, #tpu.memory_space<vmem>>, vector<8x256xf32>
        %186 = arith.truncf %185 : vector<8x256xf32> to vector<8x256xbf16>
        %c0_i32_96 = arith.constant 0 : i32
        %187 = arith.addi %c0_i32_96, %183 : i32
        %188 = arith.index_cast %187 : i32 to index
        %c0_97 = arith.constant 0 : index
        %189 = vector.load %arg26[%188, %c0_97] : memref<128x8xf32, #tpu.memory_space<vmem>>, vector<8x8xf32>
        %190 = arith.truncf %189 : vector<8x8xf32> to vector<8x8xbf16>
        %c64_i32 = arith.constant 64 : i32
        %191 = arith.addi %c64_i32, %183 : i32
        %192 = arith.index_cast %191 : i32 to index
        %c0_98 = arith.constant 0 : index
        %193 = vector.load %arg26[%192, %c0_98] : memref<128x8xf32, #tpu.memory_space<vmem>>, vector<8x8xf32>
        %194 = arith.truncf %193 : vector<8x8xf32> to vector<8x8xbf16>
        %cst_99 = arith.constant dense<0.000000e+00> : vector<256x8xf32>
        %195 = tpu.matmul %186, %190, %cst_99 {dimension_numbers = #tpu.dot_dimension_numbers<[0], [0], [1], [1], [0, 1, 1, 1], [], []>} : vector<8x256xbf16>, vector<8x8xbf16>, vector<256x8xf32> -> vector<256x8xf32>
        %196 = vector.broadcast %3 : vector<1x8xf32> to vector<256x8xf32>
        %197 = arith.addf %195, %196 : vector<256x8xf32>
        %cst_100 = arith.constant dense<0xFF800000> : vector<256xf32>
        %198 = vector.multi_reduction <maximumf>, %197, %cst_100 [1] : vector<256x8xf32> to vector<256xf32>
        %199 = vector.shape_cast %198 : vector<256xf32> to vector<256x1xf32>
        %200 = vector.broadcast %199 : vector<256x1xf32> to vector<256x8xf32>
        %201 = arith.subf %197, %200 : vector<256x8xf32>
        %202 = math.exp %201 : vector<256x8xf32>
        %cst_101 = arith.constant dense<0.000000e+00> : vector<256xf32>
        %203 = vector.multi_reduction <add>, %202, %cst_101 [1] : vector<256x8xf32> to vector<256xf32>
        %204 = vector.shape_cast %203 : vector<256xf32> to vector<256x1xf32>
        %205 = tpu.reciprocal %204 {approx = true} : vector<256x1xf32> -> vector<256x1xf32>
        %206 = vector.broadcast %205 : vector<256x1xf32> to vector<256x8xf32>
        %207 = arith.mulf %202, %206 : vector<256x8xf32>
        %208 = arith.truncf %207 : vector<256x8xf32> to vector<256x8xbf16>
        %cst_102 = arith.constant dense<0.000000e+00> : vector<8x256xf32>
        %209 = tpu.matmul %194, %208, %cst_102 {dimension_numbers = #tpu.dot_dimension_numbers<[1], [1], [0], [0], [0, 0, 1, 0], [], []>} : vector<8x8xbf16>, vector<256x8xbf16>, vector<8x256xf32> -> vector<8x256xf32>
        %210 = arith.index_cast %183 : i32 to index
        %c0_103 = arith.constant 0 : index
        %211 = vector.load %arg27[%210, %c0_103] : memref<64x256xf32, #tpu.memory_space<vmem>>, vector<8x256xf32>
        tpu.vector_store %arg27[%210, %c0_103], %209 {strides = array<i32>} : memref<64x256xf32, #tpu.memory_space<vmem>>, vector<8x256xf32>,
      }
      %c8_i32_65 = arith.constant 8 : i32
      %c0_66 = arith.constant 0 : index
      %c0_67 = arith.constant 0 : index
      %99 = vector.load %arg27[%c0_66, %c0_67] : memref<64x256xf32, #tpu.memory_space<vmem>>, vector<64x256xf32>
      %100 = arith.truncf %99 : vector<64x256xf32> to vector<64x256xbf16>
      %101 = arith.index_cast %arg28 : i32 to index
      %c0_68 = arith.constant 0 : index
      %c0_69 = arith.constant 0 : index
      %102 = vector.load %arg15[%101, %c0_68, %c0_69] : memref<6x64x64xbf16, #tpu.memory_space<vmem>>, vector<1x64x64xbf16>
      %103 = vector.shape_cast %102 : vector<1x64x64xbf16> to vector<64x64xbf16>
      %cst_70 = arith.constant dense<0.000000e+00> : vector<256x64xf32>
      %104 = tpu.matmul %100, %103, %cst_70 {dimension_numbers = #tpu.dot_dimension_numbers<[0], [0], [1], [1], [0, 1, 1, 1], [], []>} : vector<64x256xbf16>, vector<64x64xbf16>, vector<256x64xf32> -> vector<256x64xf32>
      %105 = arith.index_cast %arg28 : i32 to index
      %c0_71 = arith.constant 0 : index
      %c0_72 = arith.constant 0 : index
      %106 = vector.load %arg16[%105, %c0_71, %c0_72] : memref<6x1x64xf32, #tpu.memory_space<vmem>>, vector<1x1x64xf32>
      %107 = vector.shape_cast %106 : vector<1x1x64xf32> to vector<1x64xf32>
      %108 = vector.broadcast %107 : vector<1x64xf32> to vector<256x64xf32>
      %109 = arith.addf %104, %108 : vector<256x64xf32>
      %110 = arith.addf %76, %109 : vector<256x64xf32>
      %111 = vector.extract_strided_slice %28 {offsets = [2, 0], sizes = [1, 64], strides = [1, 1]} : vector<6x64xf32> to vector<1x64xf32>
      %112 = vector.extract_strided_slice %28 {offsets = [3, 0], sizes = [1, 64], strides = [1, 1]} : vector<6x64xf32> to vector<1x64xf32>
      %cst_73 = arith.constant dense<0.000000e+00> : vector<256xf32>
      %113 = vector.multi_reduction <add>, %110, %cst_73 [1] : vector<256x64xf32> to vector<256xf32>
      %114 = vector.shape_cast %113 : vector<256xf32> to vector<256x1xf32>
      %cst_74 = arith.constant 6.400000e+01 : f32
      %115 = vector.broadcast %cst_74 : f32 to vector<256x1xf32>
      %116 = arith.divf %114, %115 : vector<256x1xf32>
      %117 = vector.broadcast %116 : vector<256x1xf32> to vector<256x64xf32>
      %118 = arith.subf %110, %117 : vector<256x64xf32>
      %119 = arith.mulf %118, %118 : vector<256x64xf32>
      %cst_75 = arith.constant dense<0.000000e+00> : vector<256xf32>
      %120 = vector.multi_reduction <add>, %119, %cst_75 [1] : vector<256x64xf32> to vector<256xf32>
      %121 = vector.shape_cast %120 : vector<256xf32> to vector<256x1xf32>
      %cst_76 = arith.constant 6.400000e+01 : f32
      %122 = vector.broadcast %cst_76 : f32 to vector<256x1xf32>
      %123 = arith.divf %121, %122 : vector<256x1xf32>
      %124 = vector.broadcast %116 : vector<256x1xf32> to vector<256x64xf32>
      %125 = arith.subf %110, %124 : vector<256x64xf32>
      %cst_77 = arith.constant 9.99999974E-6 : f32
      %126 = vector.broadcast %cst_77 : f32 to vector<256x1xf32>
      %127 = arith.addf %123, %126 : vector<256x1xf32>
      %128 = math.rsqrt %127 : vector<256x1xf32>
      %129 = vector.broadcast %128 : vector<256x1xf32> to vector<256x64xf32>
      %130 = arith.mulf %125, %129 : vector<256x64xf32>
      %131 = vector.broadcast %111 : vector<1x64xf32> to vector<256x64xf32>
      %132 = arith.mulf %130, %131 : vector<256x64xf32>
      %133 = vector.broadcast %112 : vector<1x64xf32> to vector<256x64xf32>
      %134 = arith.addf %132, %133 : vector<256x64xf32>
      %135 = arith.truncf %134 : vector<256x64xf32> to vector<256x64xbf16>
      %136 = arith.index_cast %arg28 : i32 to index
      %c0_78 = arith.constant 0 : index
      %c0_79 = arith.constant 0 : index
      %137 = vector.load %arg17[%136, %c0_78, %c0_79] : memref<6x64x128xbf16, #tpu.memory_space<vmem>>, vector<1x64x128xbf16>
      %138 = vector.shape_cast %137 : vector<1x64x128xbf16> to vector<64x128xbf16>
      %cst_80 = arith.constant dense<0.000000e+00> : vector<256x128xf32>
      %139 = tpu.matmul %135, %138, %cst_80 {dimension_numbers = #tpu.dot_dimension_numbers<[1], [0], [0], [1], [0, 0, 1, 1], [], []>} : vector<256x64xbf16>, vector<64x128xbf16>, vector<256x128xf32> -> vector<256x128xf32>
      %140 = arith.index_cast %arg28 : i32 to index
      %c0_81 = arith.constant 0 : index
      %c0_82 = arith.constant 0 : index
      %141 = vector.load %arg18[%140, %c0_81, %c0_82] : memref<6x1x128xf32, #tpu.memory_space<vmem>>, vector<1x1x128xf32>
      %142 = vector.shape_cast %141 : vector<1x1x128xf32> to vector<1x128xf32>
      %143 = vector.broadcast %142 : vector<1x128xf32> to vector<256x128xf32>
      %144 = arith.addf %139, %143 : vector<256x128xf32>
      %cst_83 = arith.constant 0.000000e+00 : f32
      %145 = vector.broadcast %cst_83 : f32 to vector<256x128xf32>
      %146 = arith.maximumf %144, %145 : vector<256x128xf32>
      %147 = arith.truncf %146 : vector<256x128xf32> to vector<256x128xbf16>
      %148 = arith.index_cast %arg28 : i32 to index
      %c0_84 = arith.constant 0 : index
      %c0_85 = arith.constant 0 : index
      %149 = vector.load %arg19[%148, %c0_84, %c0_85] : memref<6x128x64xbf16, #tpu.memory_space<vmem>>, vector<1x128x64xbf16>
      %150 = vector.shape_cast %149 : vector<1x128x64xbf16> to vector<128x64xbf16>
      %cst_86 = arith.constant dense<0.000000e+00> : vector<256x64xf32>
      %151 = tpu.matmul %147, %150, %cst_86 {dimension_numbers = #tpu.dot_dimension_numbers<[1], [0], [0], [1], [0, 0, 1, 1], [], []>} : vector<256x128xbf16>, vector<128x64xbf16>, vector<256x64xf32> -> vector<256x64xf32>
      %152 = arith.index_cast %arg28 : i32 to index
      %c0_87 = arith.constant 0 : index
      %c0_88 = arith.constant 0 : index
      %153 = vector.load %arg20[%152, %c0_87, %c0_88] : memref<6x1x64xf32, #tpu.memory_space<vmem>>, vector<1x1x64xf32>
      %154 = vector.shape_cast %153 : vector<1x1x64xf32> to vector<1x64xf32>
      %155 = vector.broadcast %154 : vector<1x64xf32> to vector<256x64xf32>
      %156 = arith.addf %151, %155 : vector<256x64xf32>
      %157 = arith.addf %134, %156 : vector<256x64xf32>
      %158 = vector.extract_strided_slice %28 {offsets = [4, 0], sizes = [1, 64], strides = [1, 1]} : vector<6x64xf32> to vector<1x64xf32>
      %159 = vector.extract_strided_slice %28 {offsets = [5, 0], sizes = [1, 64], strides = [1, 1]} : vector<6x64xf32> to vector<1x64xf32>
      %cst_89 = arith.constant dense<0.000000e+00> : vector<256xf32>
      %160 = vector.multi_reduction <add>, %157, %cst_89 [1] : vector<256x64xf32> to vector<256xf32>
      %161 = vector.shape_cast %160 : vector<256xf32> to vector<256x1xf32>
      %cst_90 = arith.constant 6.400000e+01 : f32
      %162 = vector.broadcast %cst_90 : f32 to vector<256x1xf32>
      %163 = arith.divf %161, %162 : vector<256x1xf32>
      %164 = vector.broadcast %163 : vector<256x1xf32> to vector<256x64xf32>
      %165 = arith.subf %157, %164 : vector<256x64xf32>
      %166 = arith.mulf %165, %165 : vector<256x64xf32>
      %cst_91 = arith.constant dense<0.000000e+00> : vector<256xf32>
      %167 = vector.multi_reduction <add>, %166, %cst_91 [1] : vector<256x64xf32> to vector<256xf32>
      %168 = vector.shape_cast %167 : vector<256xf32> to vector<256x1xf32>
      %cst_92 = arith.constant 6.400000e+01 : f32
      %169 = vector.broadcast %cst_92 : f32 to vector<256x1xf32>
      %170 = arith.divf %168, %169 : vector<256x1xf32>
      %171 = vector.broadcast %163 : vector<256x1xf32> to vector<256x64xf32>
      %172 = arith.subf %157, %171 : vector<256x64xf32>
      %cst_93 = arith.constant 9.99999974E-6 : f32
      %173 = vector.broadcast %cst_93 : f32 to vector<256x1xf32>
      %174 = arith.addf %170, %173 : vector<256x1xf32>
      %175 = math.rsqrt %174 : vector<256x1xf32>
      %176 = vector.broadcast %175 : vector<256x1xf32> to vector<256x64xf32>
      %177 = arith.mulf %172, %176 : vector<256x64xf32>
      %178 = vector.broadcast %158 : vector<1x64xf32> to vector<256x64xf32>
      %179 = arith.mulf %177, %178 : vector<256x64xf32>
      %180 = vector.broadcast %159 : vector<1x64xf32> to vector<256x64xf32>
      %181 = arith.addf %179, %180 : vector<256x64xf32>
      scf.yield %181 : vector<256x64xf32>
    }
    %c6_i32_15 = arith.constant 6 : i32
    %c0_16 = arith.constant 0 : index
    %c0_17 = arith.constant 0 : index
    %17 = vector.load %arg22[%c0_16, %c0_17] : memref<1x64xbf16, #tpu.memory_space<vmem>>, vector<1x64xbf16>
    %18 = arith.truncf %16 : vector<256x64xf32> to vector<256x64xbf16>
    %cst_18 = arith.constant dense<0.000000e+00> : vector<1x256xf32>
    %19 = tpu.matmul %17, %18, %cst_18 {dimension_numbers = #tpu.dot_dimension_numbers<[1], [1], [0], [0], [0, 0, 1, 0], [], []>} : vector<1x64xbf16>, vector<256x64xbf16>, vector<1x256xf32> -> vector<1x256xf32>
    %c0_19 = arith.constant 0 : index
    %c0_20 = arith.constant 0 : index
    %20 = vector.load %arg23[%c0_19, %c0_20] : memref<1x1xf32, #tpu.memory_space<vmem>>, vector<1x1xf32>
    %21 = vector.broadcast %20 : vector<1x1xf32> to vector<1x256xf32>
    %22 = arith.addf %19, %21 : vector<1x256xf32>
    %c0_21 = arith.constant 0 : index
    %c0_22 = arith.constant 0 : index
    %c0_23 = arith.constant 0 : index
    %23 = vector.load %arg24[%c0_21, %c0_22, %c0_23] : memref<1x1x256xf32, #tpu.memory_space<vmem>>, vector<1x1x256xf32>
    %24 = vector.shape_cast %23 : vector<1x1x256xf32> to vector<1x256xf32>
    %25 = vector.shape_cast %22 : vector<1x256xf32> to vector<1x1x256xf32>
    tpu.vector_store %arg24[%c0_21, %c0_22, %c0_23], %25 {strides = array<i32>} : memref<1x1x256xf32, #tpu.memory_space<vmem>>, vector<1x1x256xf32>,
    return
  }
  func.func @transform_0(%arg0: i32) -> (i32, i32, i32) {
    %c0_i32 = arith.constant 0 : i32
    %c0_i32_0 = arith.constant 0 : i32
    %c0_i32_1 = arith.constant 0 : i32
    return %arg0, %c0_i32, %c0_i32_0 : i32, i32, i32
  }
  func.func @transform_1(%arg0: i32) -> (i32, i32, i32) {
    %c0_i32 = arith.constant 0 : i32
    %c0_i32_0 = arith.constant 0 : i32
    %c0_i32_1 = arith.constant 0 : i32
    return %arg0, %c0_i32, %c0_i32_0 : i32, i32, i32
  }
  func.func @transform_2(%arg0: i32) -> (i32, i32, i32) {
    %c0_i32 = arith.constant 0 : i32
    %c0_i32_0 = arith.constant 0 : i32
    %c0_i32_1 = arith.constant 0 : i32
    %c0_i32_2 = arith.constant 0 : i32
    return %c0_i32, %c0_i32_0, %c0_i32_1 : i32, i32, i32
  }
  func.func @transform_3(%arg0: i32) -> (i32, i32, i32) {
    %c0_i32 = arith.constant 0 : i32
    %c0_i32_0 = arith.constant 0 : i32
    %c0_i32_1 = arith.constant 0 : i32
    return %arg0, %c0_i32, %c0_i32_0 : i32, i32, i32
  }
  func.func @transform_4(%arg0: i32) -> (i32, i32) {
    %c0_i32 = arith.constant 0 : i32
    %c0_i32_0 = arith.constant 0 : i32
    %c0_i32_1 = arith.constant 0 : i32
    return %c0_i32, %c0_i32_0 : i32, i32
  }
  func.func @transform_5(%arg0: i32) -> (i32, i32) {
    %c0_i32 = arith.constant 0 : i32
    %c0_i32_0 = arith.constant 0 : i32
    %c0_i32_1 = arith.constant 0 : i32
    return %c0_i32, %c0_i32_0 : i32, i32
  }
  func.func @transform_6(%arg0: i32) -> (i32, i32, i32) {
    %c0_i32 = arith.constant 0 : i32
    %c0_i32_0 = arith.constant 0 : i32
    %c0_i32_1 = arith.constant 0 : i32
    %c0_i32_2 = arith.constant 0 : i32
    return %c0_i32, %c0_i32_0, %c0_i32_1 : i32, i32, i32
  }
  func.func @transform_7(%arg0: i32) -> (i32, i32, i32) {
    %c0_i32 = arith.constant 0 : i32
    %c0_i32_0 = arith.constant 0 : i32
    %c0_i32_1 = arith.constant 0 : i32
    %c0_i32_2 = arith.constant 0 : i32
    return %c0_i32, %c0_i32_0, %c0_i32_1 : i32, i32, i32
  }
  func.func @transform_8(%arg0: i32) -> (i32, i32, i32) {
    %c0_i32 = arith.constant 0 : i32
    %c0_i32_0 = arith.constant 0 : i32
    %c0_i32_1 = arith.constant 0 : i32
    %c0_i32_2 = arith.constant 0 : i32
    return %c0_i32, %c0_i32_0, %c0_i32_1 : i32, i32, i32
  }
  func.func @transform_9(%arg0: i32) -> (i32, i32, i32) {
    %c0_i32 = arith.constant 0 : i32
    %c0_i32_0 = arith.constant 0 : i32
    %c0_i32_1 = arith.constant 0 : i32
    %c0_i32_2 = arith.constant 0 : i32
    return %c0_i32, %c0_i32_0, %c0_i32_1 : i32, i32, i32
  }
  func.func @transform_10(%arg0: i32) -> (i32, i32, i32) {
    %c0_i32 = arith.constant 0 : i32
    %c0_i32_0 = arith.constant 0 : i32
    %c0_i32_1 = arith.constant 0 : i32
    %c0_i32_2 = arith.constant 0 : i32
    return %c0_i32, %c0_i32_0, %c0_i32_1 : i32, i32, i32
  }
  func.func @transform_11(%arg0: i32) -> (i32, i32, i32) {
    %c0_i32 = arith.constant 0 : i32
    %c0_i32_0 = arith.constant 0 : i32
    %c0_i32_1 = arith.constant 0 : i32
    %c0_i32_2 = arith.constant 0 : i32
    return %c0_i32, %c0_i32_0, %c0_i32_1 : i32, i32, i32
  }
  func.func @transform_12(%arg0: i32) -> (i32, i32, i32) {
    %c0_i32 = arith.constant 0 : i32
    %c0_i32_0 = arith.constant 0 : i32
    %c0_i32_1 = arith.constant 0 : i32
    %c0_i32_2 = arith.constant 0 : i32
    return %c0_i32, %c0_i32_0, %c0_i32_1 : i32, i32, i32
  }
  func.func @transform_13(%arg0: i32) -> (i32, i32, i32) {
    %c0_i32 = arith.constant 0 : i32
    %c0_i32_0 = arith.constant 0 : i32
    %c0_i32_1 = arith.constant 0 : i32
    %c0_i32_2 = arith.constant 0 : i32
    return %c0_i32, %c0_i32_0, %c0_i32_1 : i32, i32, i32
  }
  func.func @transform_14(%arg0: i32) -> (i32, i32, i32) {
    %c0_i32 = arith.constant 0 : i32
    %c0_i32_0 = arith.constant 0 : i32
    %c0_i32_1 = arith.constant 0 : i32
    %c0_i32_2 = arith.constant 0 : i32
    return %c0_i32, %c0_i32_0, %c0_i32_1 : i32, i32, i32
  }
  func.func @transform_15(%arg0: i32) -> (i32, i32, i32) {
    %c0_i32 = arith.constant 0 : i32
    %c0_i32_0 = arith.constant 0 : i32
    %c0_i32_1 = arith.constant 0 : i32
    %c0_i32_2 = arith.constant 0 : i32
    return %c0_i32, %c0_i32_0, %c0_i32_1 : i32, i32, i32
  }
  func.func @transform_16(%arg0: i32) -> (i32, i32, i32) {
    %c0_i32 = arith.constant 0 : i32
    %c0_i32_0 = arith.constant 0 : i32
    %c0_i32_1 = arith.constant 0 : i32
    %c0_i32_2 = arith.constant 0 : i32
    return %c0_i32, %c0_i32_0, %c0_i32_1 : i32, i32, i32
  }
  func.func @transform_17(%arg0: i32) -> (i32, i32, i32) {
    %c0_i32 = arith.constant 0 : i32
    %c0_i32_0 = arith.constant 0 : i32
    %c0_i32_1 = arith.constant 0 : i32
    %c0_i32_2 = arith.constant 0 : i32
    return %c0_i32, %c0_i32_0, %c0_i32_1 : i32, i32, i32
  }
  func.func @transform_18(%arg0: i32) -> (i32, i32, i32) {
    %c0_i32 = arith.constant 0 : i32
    %c0_i32_0 = arith.constant 0 : i32
    %c0_i32_1 = arith.constant 0 : i32
    %c0_i32_2 = arith.constant 0 : i32
    return %c0_i32, %c0_i32_0, %c0_i32_1 : i32, i32, i32
  }
  func.func @transform_19(%arg0: i32) -> (i32, i32, i32) {
    %c0_i32 = arith.constant 0 : i32
    %c0_i32_0 = arith.constant 0 : i32
    %c0_i32_1 = arith.constant 0 : i32
    %c0_i32_2 = arith.constant 0 : i32
    return %c0_i32, %c0_i32_0, %c0_i32_1 : i32, i32, i32
  }
  func.func @transform_20(%arg0: i32) -> (i32, i32, i32) {
    %c0_i32 = arith.constant 0 : i32
    %c0_i32_0 = arith.constant 0 : i32
    %c0_i32_1 = arith.constant 0 : i32
    %c0_i32_2 = arith.constant 0 : i32
    return %c0_i32, %c0_i32_0, %c0_i32_1 : i32, i32, i32
  }
  func.func @transform_21(%arg0: i32) -> (i32, i32) {
    %c0_i32 = arith.constant 0 : i32
    %c0_i32_0 = arith.constant 0 : i32
    %c0_i32_1 = arith.constant 0 : i32
    return %c0_i32, %c0_i32_0 : i32, i32
  }
  func.func @transform_22(%arg0: i32) -> (i32, i32) {
    %c0_i32 = arith.constant 0 : i32
    %c0_i32_0 = arith.constant 0 : i32
    %c0_i32_1 = arith.constant 0 : i32
    return %c0_i32, %c0_i32_0 : i32, i32
  }
  func.func @transform_23(%arg0: i32) -> (i32, i32, i32) {
    %c0_i32 = arith.constant 0 : i32
    %c0_i32_0 = arith.constant 0 : i32
    %c0_i32_1 = arith.constant 0 : i32
    return %arg0, %c0_i32, %c0_i32_0 : i32, i32, i32
  }
}

</mosaic_0001>

<bundles_post_ra>
// kernel: discriminator_transform_forward.1
= control target key start
LH: loop header
LB: loop body
LE: loop exit
PB: predicated region body
PF: predicated region fallthrough
CT: control target
= control target key end

     0   :  { %s8665_s24 = smov 0   ;;  %s12438_s0 = inlined_call_operand.vmem [shape: f32[2,8,7], index: 0, kind: input, shape index: {}]   ;;  %s12439_s1 = inlined_call_operand.vmem [shape: f32[2,256,64], index: 1, kind: input, shape index: {}]   ;;  %s12440_s2 = inlined_call_operand.vmem [shape: f32[1,1,256], index: 2, kind: input, shape index: {}]   ;;  %s12441_s3 = inlined_call_operand.vmem [shape: f32[2,1,8], index: 3, kind: input, shape index: {}]   ;;  %s12442_s4 = inlined_call_operand.vmem [shape: bf16[7,64], index: 4, kind: input, shape index: {}]   ;;  %s12443_s5 = inlined_call_operand.vmem [shape: f32[1,64], index: 5, kind: input, shape index: {}]   ;;  %s12444_s6 = inlined_call_operand.vmem [shape: bf16[6,192,64], index: 6, kind: input, shape index: {}]   ;;  %s12445_s7 = inlined_call_operand.vmem [shape: f32[6,192,1], index: 7, kind: input, shape index: {}]   ;;  %s12446_s8 = inlined_call_operand.vmem [shape: bf16[6,64,64], index: 8, kind: input, shape index: {}]   ;;  %s12447_s9 = inlined_call_operand.vmem [shape: f32[6,1,64], index: 9, kind: input, shape index: {}]   ;;  %s12448_s10 = inlined_call_operand.vmem [shape: bf16[6,64,64], index: 10, kind: input, shape index: {}]   ;;  %s12449_s11 = inlined_call_operand.vmem [shape: f32[6,64,1], index: 11, kind: input, shape index: {}]   ;;  %s12450_s12 = inlined_call_operand.vmem [shape: bf16[6,128,64], index: 12, kind: input, shape index: {}]   ;;  %s12451_s13 = inlined_call_operand.vmem [shape: f32[6,128,1], index: 13, kind: input, shape index: {}]   ;;  %s12452_s14 = inlined_call_operand.vmem [shape: bf16[6,64,64], index: 14, kind: input, shape index: {}]   ;;  %s12453_s15 = inlined_call_operand.vmem [shape: f32[6,1,64], index: 15, kind: input, shape index: {}]   ;;  %s12454_s16 = inlined_call_operand.vmem [shape: bf16[6,64,128], index: 16, kind: input, shape index: {}]   ;;  %s12455_s17 = inlined_call_operand.vmem [shape: f32[6,1,128], index: 17, kind: input, shape index: {}]   ;;  %s12456_s18 = inlined_call_operand.vmem [shape: bf16[6,128,64], index: 18, kind: input, shape index: {}]   ;;  %s12457_s19 = inlined_call_operand.vmem [shape: f32[6,1,64], index: 19, kind: input, shape index: {}]   ;;  %s12458_s20 = inlined_call_operand.vmem [shape: f32[6,6,64], index: 20, kind: input, shape index: {}]   ;;  %s12459_s21 = inlined_call_operand.vmem [shape: bf16[1,64], index: 21, kind: input, shape index: {}]   ;;  %s12460_s22 = inlined_call_operand.<no memory space> [shape: f32[1,1], index: 22, kind: input, shape index: {}]   ;;  %s12461_s23 = inlined_call_operand.vmem [shape: f32[2,1,256], index: 23, kind: output, shape index: {}]  }
   0x1   :  { %12560 = sst [smem:[#allocation64_spill]] %s12438_s0  ;;  %v28_v0 = vstv %s12460_s22 }
   0x2   :  { %12561 = sst [smem:[#allocation65_spill]] %s12439_s1  ;;  %29 = vst [vmem:[#allocation5] sm:$0x1] %v28_v0 }
   0x3   :  { %12562 = sst [smem:[#allocation66_spill]] %s12440_s2 }
   0x4   :  { %12563 = sst [smem:[#allocation67_spill]] %s12441_s3 }
   0x5   :  { %12564 = sst [smem:[#allocation68_spill]] %s12442_s4 }
   0x6   :  { %12565 = sst [smem:[#allocation69_spill]] %s12443_s5 }
   0x7   :  { %12566 = sst [smem:[#allocation70_spill]] %s12444_s6 }
   0x8   :  { %12567 = sst [smem:[#allocation71_spill]] %s12445_s7 }
   0x9 LB: > { %s6675_s25 = sadd.s32 4294967295, %s8393_s24   ;;  %p6679_p0 = scmp.ge.s32.totalorder %s8393_s24, 1  ;;  %s8393_s24 = sphi %s8665_s24, %s35_s24  }
   0xa   : > { %p656_p1 = scmp.lt.s32.totalorder %s8393_s24, 3 }
   0xc   : > { %p657_p2 = pnand %p6679_p0, %p656_p1 }
   0xe   : > { %660 = sbr.rel (%p657_p2) target bundleno = 5353 (0x14e9), region = 112 }
  0x15   : > { %s12568_s26 = sld [smem:[#allocation66_spill]]  ;;  %vm759_vm0 = vcmask 1042432   ;;  %v8535_v2 = vmov 0.0   ;;  %s12570_s6 = sld [smem:[#allocation68_spill]]  ;;  %vm760_vm1 = vcmask 1043456   ;;  %v8536_v4 = vmov 65535  }
  0x16   : > { %7095 = vmatprep.subr.bf16.mxu0 %v8535_v2  ;;  %p726_p3 = scmp.lt.s32.totalorder %s6675_s25, 1  ;;  %v761_v5 = vsel %vm759_vm0, 4294967295, %v8536_v4  ;;  %vm8537_vm2 = vmmov 0   ;;  %s12571_s3 = sld [smem:[#allocation64_spill]]  ;;  %vm755_vm3 = vcmask 56320  }
  0x17   : > { %7097 = vmatprep.mubr.msk.bf16.mxu0 %vm8537_vm2, %v8535_v2  ;;  %v762_v6 = vsel %vm760_vm1, %v761_v5, 0  ;;  %s12572_s5 = sld [smem:[#allocation65_spill]]  ;;  %s12573_s2 = sld [smem:[#allocation67_spill]] }
  0x18   : > { %s12830_s25 = smov (!%p726_p3, %s6675_s25), 1  ;;  %s8813_s4 = smov 0  }
  0x19   : > { %s6680_s27 = sshll.u32 %s12830_s25, 3  ;;  %s6869_s7 = sshll.u32 %s12830_s25, 8 }
  0x1a   : > { %s6683_s28 = sshll.u32 %s12830_s25, 1 }
  0x1b   : > { %v8676_v1 = vld [vmem:[%s12568_s26] sm:$0x3]  ;;  %s8702_s29 = scalar_lea.vmem %s12461_s23, %s6683_s28 }
  0x1c   : > { %12569 = vst [vmem:[#allocation6_spill] sm:$0xff] %v8676_v1  ;;  %v747_v3 = vld [vmem:[%s12570_s6] sm:$0xf]  ;;  %s729_s0 = scalar_lea.vmem %s12571_s3, %s6680_s27 }
  0x1d   : > { %v764_v7 = vand.u32 %v762_v6, %v747_v3  ;;  %s8688_s1 = scalar_lea.vmem %s12572_s5, %s6869_s7  ;;  %s737_s6 = scalar_lea.vmem %s12573_s2, %s12830_s25  ;;  %v745_v8 = vld [vmem:[%s729_s0] sm:$0xff] }
  0x1e   : > { %v8694_v9 = vld [vmem:[%s8688_s1] sm:$0xff]   ;;  %v8697_v10 = vld [vmem:[%s8688_s1 + $0x8] sm:$0xff]   ;;  %v746_v12 = vpack.c.bf16 %v745_v8, %v745_v8  ;;  %v8707_v13 = vld [vmem:[%s8688_s1 + $0x10] sm:$0xff]   ;;  %s12575_s0 = sld [smem:[#allocation69_spill]] }
  0x1f   : > { %7096 = vmatpush3.bf16.msra.mxu0 %v764_v7  ;;  %v8704_v11 = vld [vmem:[%s737_s6] ss:$0 sm:$0xff]  ;;  %v8710_v14 = vld [vmem:[%s8688_s1 + $0x18] sm:$0xff]   ;;  %v812_v16 = vld [vmem:[%s8688_s1 + $0x28] sm:$0xff]  }
  0x20   : > { %12574 = vst [vmem:[#allocation7_spill] sm:$0xff] %v8704_v11  ;;  %v811_v15 = vld [vmem:[%s8688_s1 + $0x20] sm:$0xff]   ;;  %v813_v17 = vld [vmem:[%s8688_s1 + $0x30] sm:$0xff]   ;;  %v814_v18 = vld [vmem:[%s8688_s1 + $0x38] sm:$0xff]  }
  0x21   : > { %v815_v19 = vld [vmem:[%s8688_s1 + $0x40] sm:$0xff]   ;;  %v816_v20 = vld [vmem:[%s8688_s1 + $0x48] sm:$0xff]   ;;  %v817_v21 = vld [vmem:[%s8688_s1 + $0x50] sm:$0xff]  }
  0x22   : > { %7098 = vmatmul.mubr.msk.bf16.vlgmr.msra.gmra.mrb[0].mxu0 %vm755_vm3, %v746_v12  ;;  %v818_v22 = vld [vmem:[%s8688_s1 + $0x58] sm:$0xff]   ;;  %v819_v23 = vld [vmem:[%s8688_s1 + $0x60] sm:$0xff]   ;;  %v820_v24 = vld [vmem:[%s8688_s1 + $0x68] sm:$0xff]  }
  0x23   : > { %v821_v25 = vld [vmem:[%s8688_s1 + $0x70] sm:$0xff]   ;;  %v822_v26 = vld [vmem:[%s8688_s1 + $0x78] sm:$0xff]   ;;  %v823_v27 = vld [vmem:[%s8688_s1 + $0x80] sm:$0xff]  }
  0x24   : > { %v824_v28 = vld [vmem:[%s8688_s1 + $0x88] sm:$0xff]   ;;  %v825_v29 = vld [vmem:[%s8688_s1 + $0x90] sm:$0xff]   ;;  %v826_v30 = vld [vmem:[%s8688_s1 + $0x98] sm:$0xff]  }
  0x25   : > { %v827_v31 = vld [vmem:[%s8688_s1 + $0xa0] sm:$0xff]   ;;  %v828_v32 = vld [vmem:[%s8688_s1 + $0xa8] sm:$0xff]   ;;  %v829_v33 = vld [vmem:[%s8688_s1 + $0xb0] sm:$0xff]  }
  0x26   : > { %v830_v34 = vld [vmem:[%s8688_s1 + $0xb8] sm:$0xff]   ;;  %v831_v35 = vld [vmem:[%s8688_s1 + $0xc0] sm:$0xff]   ;;  %v832_v36 = vld [vmem:[%s8688_s1 + $0xc8] sm:$0xff]  }
  0x27   : > { %v833_v37 = vld [vmem:[%s8688_s1 + $0xd0] sm:$0xff]   ;;  %v834_v38 = vld [vmem:[%s8688_s1 + $0xd8] sm:$0xff]   ;;  %v835_v39 = vld [vmem:[%s8688_s1 + $0xe0] sm:$0xff]  }
  0x28   : > { %v836_v40 = vld [vmem:[%s8688_s1 + $0xe8] sm:$0xff]   ;;  %v837_v41 = vld [vmem:[%s8688_s1 + $0xf0] sm:$0xff]   ;;  %v838_v42 = vld [vmem:[%s8688_s1 + $0xf8] sm:$0xff]  }
  0x29   : > { %v6684_v43 = vld [vmem:[%s12575_s0] ss:$0 sm:$0xff] }
  0xf5   : > { %v800_v44 = vpop.f32.mrb[0].mxu0 }
  0xf6   : > { %v801_v45 = vadd.f32 %v6684_v43, %v800_v44  ;;  %v7099_v46 = vpop.f32.mrb[1].mxu0 }
  0xf7   : > { %v803_v47 = vpop.f32.mrb[2].mxu0 }
  0xf8   : > { %v8743_v48 = vpack.c.bf16 %v801_v45, %v801_v45  ;;  %v7100_v49 = vpop.f32.mrb[3].mxu0 }
  0xfa   : > { %12576 = vst [vmem:[#allocation8_spill] sm:$0xff] %v8743_v48 }
  0xfb LB: >> { %12577 = vst [vmem:[#allocation9_spill] sm:$0xff] %v8397_v42  ;;  %12578 = vst [vmem:[#allocation10_spill] sm:$0xff] %v8401_v41  ;;  %vm1129_vm4 = vcmask 523264   ;;  %v888_v50 = vpack.c.bf16 %v8453_v28, %v8457_v27  ;;  %s6686_s30 = sshll.u32 %s8525_s4, 3  ;;  %s6870_s5 = smul.u32 96, %s8525_s4  ;;  %v880_v51 = vpack.c.bf16 %v8517_v10, %v8521_v9  ;;  %v889_v52 = vpack.c.bf16 %v8445_v30, %v8449_v29  ;;  %s8525_s4 = sphi %s8813_s4, %s12820_s4   ;;  %v8521_v9 = vphi %v8694_v9, %v12819_v9   ;;  %v8517_v10 = vphi %v8697_v10, %v12818_v10   ;;  %v8513_v13 = vphi %v8707_v13, %v12817_v13   ;;  %v8509_v14 = vphi %v8710_v14, %v12816_v14   ;;  %v8505_v15 = vphi %v811_v15, %v12815_v15   ;;  %v8501_v16 = vphi %v812_v16, %v12814_v16   ;;  %v8497_v17 = vphi %v813_v17, %v12813_v17   ;;  %v8493_v18 = vphi %v814_v18, %v12812_v18   ;;  %v8489_v19 = vphi %v815_v19, %v12811_v19   ;;  %v8485_v20 = vphi %v816_v20, %v12810_v20   ;;  %v8481_v21 = vphi %v817_v21, %v12809_v21   ;;  %v8477_v22 = vphi %v818_v22, %v12808_v22   ;;  %v8473_v23 = vphi %v819_v23, %v12807_v23   ;;  %v8469_v24 = vphi %v820_v24, %v12806_v24   ;;  %v8465_v25 = vphi %v821_v25, %v12805_v25   ;;  %v8461_v26 = vphi %v822_v26, %v12804_v26   ;;  %v8457_v27 = vphi %v823_v27, %v12803_v27   ;;  %v8453_v28 = vphi %v824_v28, %v12802_v28   ;;  %v8449_v29 = vphi %v825_v29, %v12801_v29   ;;  %v8445_v30 = vphi %v826_v30, %v12800_v30   ;;  %v8441_v31 = vphi %v827_v31, %v12799_v31   ;;  %v8437_v32 = vphi %v828_v32, %v12798_v32   ;;  %v8433_v33 = vphi %v829_v33, %v12797_v33   ;;  %v8429_v34 = vphi %v830_v34, %v12796_v34   ;;  %v8425_v35 = vphi %v831_v35, %v12795_v35   ;;  %v8421_v36 = vphi %v832_v36, %v12794_v36   ;;  %v8417_v37 = vphi %v833_v37, %v12793_v37   ;;  %v8413_v38 = vphi %v834_v38, %v12792_v38   ;;  %v8409_v39 = vphi %v835_v39, %v12791_v39   ;;  %v8405_v40 = vphi %v836_v40, %v12790_v40   ;;  %v8401_v41 = vphi %v837_v41, %v12789_v41   ;;  %v8397_v42 = vphi %v838_v42, %v12788_v42  }
  0xfc   : >> { %12579 = vst [vmem:[#allocation11_spill] sm:$0xff] %v8405_v40  ;;  %12580 = vst [vmem:[#allocation12_spill] sm:$0xff] %v8409_v39  ;;  %s878_s22 = scalar_lea.vmem %s12458_s20, %s6686_s30  ;;  %s12610_s28 = sld [smem:[#allocation70_spill]]  ;;  %v881_v57 = vpack.c.bf16 %v8509_v14, %v8513_v13  ;;  %v890_v59 = vpack.c.bf16 %v8437_v32, %v8441_v31  ;;  %v882_v60 = vpack.c.bf16 %v8501_v16, %v8505_v15  ;;  %v12462_v63 = vmov 0  }
  0xfd   : >> { %12581 = vst [vmem:[#allocation13_spill] sm:$0xff] %v8413_v38  ;;  %12582 = vst [vmem:[#allocation14_spill] sm:$0xff] %v8417_v37  ;;  %7347 = vmatprep.subr.msk.bf16.mxu0 %vm1129_vm4, %v888_v50  ;;  %7348 = vmatprep.subr.msk.bf16.mxu1 %vm1129_vm4, %v888_v50  ;;  %v8927_v53 = vld [vmem:[%s878_s22] sm:$0x3f]  ;;  %v1167_v54 = vsel %vm1129_vm4, %v880_v51, 0  ;;  %s923_s7 = smul.u32 192, %s8525_s4  ;;  %v891_v62 = vpack.c.bf16 %v8429_v34, %v8433_v33  ;;  %v883_v3 = vpack.c.bf16 %v8493_v18, %v8497_v17 }
  0xfe   : >> { %12583 = vst [vmem:[#allocation15_spill] sm:$0xff] %v8421_v36  ;;  %12584 = vst [vmem:[#allocation16_spill] sm:$0xff] %v8425_v35  ;;  %6886 = vmatpush3.bf16.xpose.msra.mxu0 %v1167_v54  ;;  %7329 = vmatpush3.bf16.xpose.msra.mxu1 %v1167_v54  ;;  %v1170_v58 = vsel %vm1129_vm4, %v881_v57, 0  ;;  %s12611_s0 = sld [smem:[#allocation71_spill]]  ;;  %v1173_v61 = vsel %vm1129_vm4, %v882_v60, 0  ;;  %v892_v7 = vpack.c.bf16 %v8421_v36, %v8425_v35 }
  0xff   : >> { %12585 = vst [vmem:[#allocation17_spill] sm:$0xff] %v8429_v34  ;;  %12586 = vst [vmem:[#allocation18_spill] sm:$0xff] %v8433_v33  ;;  %7349 = vmatprep.subr.msk.bf16.mxu0 %vm1129_vm4, %v889_v52  ;;  %7350 = vmatprep.subr.msk.bf16.mxu1 %vm1129_vm4, %v889_v52  ;;  %v1176_v6 = vsel %vm1129_vm4, %v883_v3, 0  ;;  %v884_v43 = vpack.c.bf16 %v8485_v20, %v8489_v19  ;;  %v893_v47 = vpack.c.bf16 %v8413_v38, %v8417_v37 }
 0x100   : >> { %12587 = vst [vmem:[#allocation19_spill] sm:$0xff] %v8437_v32  ;;  %12588 = vst [vmem:[#allocation20_spill] sm:$0xff] %v8441_v31  ;;  %7687 = vset.pattern.permute.xlu1 %v12462_v63  ;;  %7686 = vset.pattern.permute.xlu0 %v12462_v63  ;;  %v885_v51 = vpack.c.bf16 %v8477_v22, %v8481_v21  ;;  %v895_v3 = vpack.c.bf16 %v8397_v42, %v8401_v41 }
 0x101   : >> { %12589 = vst [vmem:[#allocation21_spill] sm:$0xff] %v8445_v30  ;;  %12590 = vst [vmem:[#allocation22_spill] sm:$0xff] %v8449_v29  ;;  %v1179_v46 = vsel %vm1129_vm4, %v884_v43, 0 }
 0x102   : >> { %12591 = vst [vmem:[#allocation23_spill] sm:$0xff] %v8453_v28  ;;  %12592 = vst [vmem:[#allocation24_spill] sm:$0xff] %v8457_v27  ;;  %s8932_s27 = scalar_lea.vmem %s12610_s28, %s6870_s5  ;;  %v1182_v57 = vsel %vm1129_vm4, %v885_v51, 0  ;;  %s9090_s5 = smov 0  }
 0x103   : >> { %12593 = vst [vmem:[#allocation25_spill] sm:$0xff] %v8461_v26  ;;  %12594 = vst [vmem:[#allocation26_spill] sm:$0xff] %v8465_v25  ;;  %v8936_v55 = vld [vmem:[%s8932_s27] sm:$0xff]   ;;  %v8939_v56 = vld [vmem:[%s8932_s27 + $0x30] sm:$0xff]  }
 0x104   : >> { %12595 = vst [vmem:[#allocation27_spill] sm:$0xff] %v8469_v24  ;;  %12596 = vst [vmem:[#allocation28_spill] sm:$0xff] %v8473_v23  ;;  %6901 = vmatprep.mubr.msk.bf16.mxu0 %vm1129_vm4, %v8936_v55  ;;  %6913 = vmatprep.mubr.msk.bf16.mxu1 %vm1129_vm4, %v8939_v56  ;;  %s8960_s30 = scalar_lea.vmem %s12611_s0, %s923_s7  ;;  %v7693_v51 = vld [vmem:[%s8932_s27 + $0x40] sm:$0xff]  }
 0x105   : >> { %12597 = vst [vmem:[#allocation29_spill] sm:$0xff] %v8477_v22  ;;  %12598 = vst [vmem:[#allocation30_spill] sm:$0xff] %v8481_v21  ;;  %v927_v0 = vld [vmem:[%s8960_s30 + $0x10] sm:$0xff]  ;;  %v925_v2 = vld [vmem:[%s8960_s30] sm:$0xff] }
 0x106   : >> { %12599 = vst [vmem:[#allocation31_spill] sm:$0xff] %v8485_v20  ;;  %12600 = vst [vmem:[#allocation32_spill] sm:$0xff] %v8489_v19  ;;  %6888 = vmatpush3.bf16.xpose.msra.mxu0 %v1170_v58  ;;  %7330 = vmatpush3.bf16.xpose.msra.mxu1 %v1170_v58  ;;  %v928_v4 = vld [vmem:[%s8960_s30 + $0x18] sm:$0xff]  ;;  %v926_v5 = vld [vmem:[%s8960_s30 + $0x8] sm:$0xff]  ;;  %v894_v58 = vpack.c.bf16 %v8405_v40, %v8409_v39 }
 0x107   : >> { %12601 = vst [vmem:[#allocation33_spill] sm:$0xff] %v8493_v18  ;;  %12602 = vst [vmem:[#allocation34_spill] sm:$0xff] %v8497_v17  ;;  %7351 = vmatprep.subr.msk.bf16.mxu0 %vm1129_vm4, %v890_v59  ;;  %7352 = vmatprep.subr.msk.bf16.mxu1 %vm1129_vm4, %v890_v59  ;;  %v930_v8 = vld [vmem:[%s8960_s30 + $0x28] sm:$0xff]  ;;  %v929_v12 = vld [vmem:[%s8960_s30 + $0x20] sm:$0xff] }
 0x108   : >> { %12603 = vst [vmem:[#allocation35_spill] sm:$0xff] %v8501_v16  ;;  %12604 = vst [vmem:[#allocation36_spill] sm:$0xff] %v8505_v15  ;;  %961 = vperm.xlu1 %7687, %v927_v0   ;;  %951 = vperm.xlu0 %7686, %v925_v2   ;;  %v932_v44 = vld [vmem:[%s8960_s30 + $0x38] sm:$0xff]  ;;  %v931_v45 = vld [vmem:[%s8960_s30 + $0x30] sm:$0xff] }
 0x109   : >> { %12605 = vst [vmem:[#allocation37_spill] sm:$0xff] %v8509_v14  ;;  %12606 = vst [vmem:[#allocation38_spill] sm:$0xff] %v8513_v13  ;;  %v934_v49 = vld [vmem:[%s8960_s30 + $0x48] sm:$0xff]  ;;  %v933_v50 = vld [vmem:[%s8960_s30 + $0x40] sm:$0xff] }
 0x10a   : >> { %12607 = vst [vmem:[#allocation39_spill] sm:$0xff] %v8517_v10  ;;  %12608 = vst [vmem:[#allocation40_spill] sm:$0xff] %v8521_v9  ;;  %v936_v52 = vld [vmem:[%s8960_s30 + $0x58] sm:$0xff]  ;;  %v935_v54 = vld [vmem:[%s8960_s30 + $0x50] sm:$0xff] }
 0x10b   : >> { %12609 = vst [vmem:[#allocation41_spill] sm:$0xff] %v8927_v53  ;;  %v938_v59 = vld [vmem:[%s8960_s30 + $0x68] sm:$0xff]  ;;  %v937_v60 = vld [vmem:[%s8960_s30 + $0x60] sm:$0xff]  ;;  %v939_v0 = vld [vmem:[%s8960_s30 + $0x70] sm:$0xff] }
 0x10c   : >> { %966 = vperm.xlu1 %7687, %v928_v4   ;;  %956 = vperm.xlu0 %7686, %v926_v5   ;;  %v942_v4 = vld [vmem:[%s8960_s30 + $0x88] sm:$0xff]  ;;  %v941_v5 = vld [vmem:[%s8960_s30 + $0x80] sm:$0xff] }
 0x10d   : >> { %v946_v43 = vld [vmem:[%s8960_s30 + $0xa8] sm:$0xff] }
 0x10e   : >> { %6890 = vmatpush3.bf16.xpose.msra.mxu0 %v1173_v61  ;;  %7331 = vmatpush3.bf16.xpose.msra.mxu1 %v1173_v61  ;;  %v886_v61 = vpack.c.bf16 %v8469_v24, %v8473_v23 }
 0x10f   : >> { %7353 = vmatprep.subr.msk.bf16.mxu0 %vm1129_vm4, %v891_v62  ;;  %7354 = vmatprep.subr.msk.bf16.mxu1 %vm1129_vm4, %v891_v62  ;;  %v940_v62 = vld [vmem:[%s8960_s30 + $0x78] sm:$0xff] }
 0x110   : >> { %976 = vperm.xlu1 %7687, %v930_v8   ;;  %971 = vperm.xlu0 %7686, %v929_v12   ;;  %v1185_v2 = vsel %vm1129_vm4, %v886_v61, 0  ;;  %v943_v8 = vld [vmem:[%s8960_s30 + $0x90] sm:$0xff] }
 0x114   : >> { %986 = vperm.xlu1 %7687, %v932_v44   ;;  %981 = vperm.xlu0 %7686, %v931_v45   ;;  %v945_v44 = vld [vmem:[%s8960_s30 + $0xa0] sm:$0xff]  ;;  %v948_v45 = vld [vmem:[%s8960_s30 + $0xb8] sm:$0xff] }
 0x116   : >> { %6892 = vmatpush3.bf16.xpose.msra.mxu0 %v1176_v6  ;;  %7332 = vmatpush3.bf16.xpose.msra.mxu1 %v1176_v6  ;;  %v887_v6 = vpack.c.bf16 %v8461_v26, %v8465_v25 }
 0x117   : >> { %7355 = vmatprep.subr.msk.bf16.mxu0 %vm1129_vm4, %v892_v7  ;;  %7356 = vmatprep.subr.msk.bf16.mxu1 %vm1129_vm4, %v892_v7  ;;  %v944_v7 = vld [vmem:[%s8960_s30 + $0x98] sm:$0xff] }
 0x118   : >> { %996 = vperm.xlu1 %7687, %v934_v49   ;;  %991 = vperm.xlu0 %7686, %v933_v50   ;;  %v1188_v12 = vsel %vm1129_vm4, %v887_v6, 0  ;;  %v7691_v49 = vld [vmem:[%s8932_s27 + $0x38] sm:$0xff]   ;;  %v7692_v50 = vld [vmem:[%s8932_s27 + $0x10] sm:$0xff]  }
 0x11c   : >> { %1006 = vperm.xlu1 %7687, %v936_v52   ;;  %1001 = vperm.xlu0 %7686, %v935_v54   ;;  %v7695_v52 = vld [vmem:[%s8932_s27 + $0x48] sm:$0xff]   ;;  %v7697_v54 = vld [vmem:[%s8932_s27 + $0x50] sm:$0xff]  }
 0x11e   : >> { %6894 = vmatpush3.bf16.xpose.msra.mxu0 %v1179_v46  ;;  %7333 = vmatpush3.bf16.xpose.msra.mxu1 %v1179_v46  ;;  %v947_v46 = vld [vmem:[%s8960_s30 + $0xb0] sm:$0xff] }
 0x11f   : >> { %7357 = vmatprep.subr.msk.bf16.mxu0 %vm1129_vm4, %v893_v47  ;;  %7358 = vmatprep.subr.msk.bf16.mxu1 %vm1129_vm4, %v893_v47  ;;  %v7690_v47 = vld [vmem:[%s8932_s27 + $0x8] sm:$0xff]  }
 0x120   : >> { %1016 = vperm.xlu1 %7687, %v938_v59   ;;  %1011 = vperm.xlu0 %7686, %v937_v60  }
 0x124   : >> { %1026 = vperm.xlu1 %7687, %v940_v62   ;;  %1021 = vperm.xlu0 %7686, %v939_v0  }
 0x126   : >> { %6896 = vmatpush3.bf16.xpose.msra.mxu0 %v1182_v57  ;;  %7334 = vmatpush3.bf16.xpose.msra.mxu1 %v1182_v57  ;;  %v7698_v57 = vld [vmem:[%s8932_s27 + $0x28] sm:$0xff]  }
 0x127   : >> { %7359 = vmatprep.subr.msk.bf16.mxu0 %vm1129_vm4, %v894_v58  ;;  %7360 = vmatprep.subr.msk.bf16.mxu1 %vm1129_vm4, %v894_v58  ;;  %v7699_v58 = vld [vmem:[%s8932_s27 + $0x58] sm:$0xff]  }
 0x128   : >> { %1036 = vperm.xlu1 %7687, %v942_v4   ;;  %1031 = vperm.xlu0 %7686, %v941_v5  }
 0x12c   : >> { %1046 = vperm.xlu1 %7687, %v944_v7   ;;  %1041 = vperm.xlu0 %7686, %v943_v8  }
 0x12e   : >> { %6898 = vmatpush3.bf16.xpose.msra.mxu0 %v1185_v2  ;;  %7335 = vmatpush3.bf16.xpose.msra.mxu1 %v1185_v2 }
 0x12f   : >> { %7361 = vmatprep.subr.msk.bf16.mxu0 %vm1129_vm4, %v895_v3  ;;  %7362 = vmatprep.subr.msk.bf16.mxu1 %vm1129_vm4, %v895_v3 }
 0x130   : >> { %1056 = vperm.xlu1 %7687, %v946_v43   ;;  %1051 = vperm.xlu0 %7686, %v945_v44  }
 0x134   : >> { %1066 = vperm.xlu1 %7687, %v948_v45   ;;  %1061 = vperm.xlu0 %7686, %v947_v46  }
 0x136   : >> { %6900 = vmatpush3.bf16.xpose.msra.mxu0 %v1188_v12  ;;  %7336 = vmatpush3.bf16.xpose.msra.mxu1 %v1188_v12 }
 0x13d   : >> { %6902 = vmatmul.mubr.msk.bf16.vlgmr.msra.gmra.mrb[0].mxu0 %vm1129_vm4, %v8936_v55  ;;  %6914 = vmatmul.mubr.msk.bf16.vlgmr.msra.gmra.mrb[0].mxu1 %vm1129_vm4, %v8939_v56  ;;  %v7694_v55 = vld [vmem:[%s8932_s27 + $0x18] sm:$0xff]   ;;  %v7696_v56 = vld [vmem:[%s8932_s27 + $0x20] sm:$0xff]  }
 0x13e   : >> { %6903 = vmatprep.mubr.msk.bf16.mxu0 %vm1129_vm4, %v7690_v47  ;;  %6915 = vmatprep.mubr.msk.bf16.mxu1 %vm1129_vm4, %v7691_v49 }
 0x145   : >> { %6904 = vmatmul.mubr.msk.bf16.gmra.mrb[4].mxu0 %vm1129_vm4, %v7690_v47  ;;  %6916 = vmatmul.mubr.msk.bf16.gmra.mrb[4].mxu1 %vm1129_vm4, %v7691_v49 }
 0x146   : >> { %6905 = vmatprep.mubr.msk.bf16.mxu0 %vm1129_vm4, %v7692_v50  ;;  %6917 = vmatprep.mubr.msk.bf16.mxu1 %vm1129_vm4, %v7693_v51 }
 0x14d   : >> { %6906 = vmatmul.mubr.msk.bf16.gmra.mrb[8].mxu0 %vm1129_vm4, %v7692_v50  ;;  %6918 = vmatmul.mubr.msk.bf16.gmra.mrb[8].mxu1 %vm1129_vm4, %v7693_v51 }
 0x14e   : >> { %6907 = vmatprep.mubr.msk.bf16.mxu0 %vm1129_vm4, %v7694_v55  ;;  %6919 = vmatprep.mubr.msk.bf16.mxu1 %vm1129_vm4, %v7695_v52 }
 0x155   : >> { %6908 = vmatmul.mubr.msk.bf16.gmra.mrb[12].mxu0 %vm1129_vm4, %v7694_v55  ;;  %6920 = vmatmul.mubr.msk.bf16.gmra.mrb[12].mxu1 %vm1129_vm4, %v7695_v52 }
 0x156   : >> { %6909 = vmatprep.mubr.msk.bf16.mxu0 %vm1129_vm4, %v7696_v56  ;;  %6921 = vmatprep.mubr.msk.bf16.mxu1 %vm1129_vm4, %v7697_v54 }
 0x15d   : >> { %6910 = vmatmul.mubr.msk.bf16.gmra.mrb[16].mxu0 %vm1129_vm4, %v7696_v56  ;;  %6922 = vmatmul.mubr.msk.bf16.gmra.mrb[16].mxu1 %vm1129_vm4, %v7697_v54 }
 0x15e   : >> { %6911 = vmatprep.mubr.msk.bf16.mxu0 %vm1129_vm4, %v7698_v57  ;;  %6923 = vmatprep.mubr.msk.bf16.mxu1 %vm1129_vm4, %v7699_v58 }
 0x165   : >> { %6912 = vmatmul.mubr.msk.bf16.gmra.mrb[20].mxu0 %vm1129_vm4, %v7698_v57  ;;  %6924 = vmatmul.mubr.msk.bf16.gmra.mrb[20].mxu1 %vm1129_vm4, %v7699_v58 }
 0x187   : >> { %v962_v59 = vpop.permute.xlu1 %961  ;;  %v952_v60 = vpop.permute.xlu0 %951 }
 0x18b   : >> { %v967_v61 = vpop.permute.xlu1 %966  ;;  %v957_v62 = vpop.permute.xlu0 %956 }
 0x18f   : >> { %v9058_v0 = vpop.permute.xlu1 %976  ;;  %v9060_v2 = vpop.permute.xlu0 %971 }
 0x193   : >> { %v9062_v3 = vpop.permute.xlu1 %986  ;;  %v9064_v4 = vpop.permute.xlu0 %981 }
 0x197   : >> { %v9066_v5 = vpop.permute.xlu1 %996  ;;  %v9068_v6 = vpop.permute.xlu0 %991 }
 0x19b   : >> { %v9070_v7 = vpop.permute.xlu1 %1006  ;;  %v9072_v8 = vpop.permute.xlu0 %1001 }
 0x19f   : >> { %v1017_v12 = vpop.permute.xlu1 %1016  ;;  %v1012_v43 = vpop.permute.xlu0 %1011 }
 0x210   : >> { %v1248_v44 = vpop.f32.mrb[0].mxu0  ;;  %v1308_v45 = vpop.f32.mrb[0].mxu1 }
 0x211   : >> { %v1249_v46 = vadd.f32 %v1248_v44, %v952_v60  ;;  %v1309_v47 = vadd.f32 %v1308_v45, %v1012_v43  ;;  %v1250_v49 = vpop.f32.mrb[1].mxu0  ;;  %v1310_v50 = vpop.f32.mrb[1].mxu1 }
 0x212   : >> { %v1251_v51 = vadd.f32 %v1250_v49, %v952_v60  ;;  %v1311_v55 = vadd.f32 %v1310_v50, %v1012_v43  ;;  %v1252_v52 = vpop.f32.mrb[2].mxu0  ;;  %v1312_v56 = vpop.f32.mrb[2].mxu1 }
 0x213   : >> { %1367 = vst [vmem:[#allocation2] sm:$0xff] %v1249_v46  ;;  %1391 = vst [vmem:[#allocation2 + $0xc0] sm:$0xff] %v1309_v47  ;;  %v1253_v54 = vadd.f32 %v1252_v52, %v957_v62  ;;  %v1313_v57 = vadd.f32 %v1312_v56, %v1017_v12  ;;  %v1254_v58 = vpop.f32.mrb[3].mxu0  ;;  %v1314_v63 = vpop.f32.mrb[3].mxu1 }
 0x214   : >> { %1368 = vst [vmem:[#allocation2 + $0x8] sm:$0xff] %v1251_v51  ;;  %1392 = vst [vmem:[#allocation2 + $0xc8] sm:$0xff] %v1311_v55  ;;  %v1255_v11 = vadd.f32 %v1254_v58, %v957_v62  ;;  %v1315_v53 = vadd.f32 %v1314_v63, %v1017_v12  ;;  %v1027_v44 = vpop.permute.xlu1 %1026  ;;  %v1022_v45 = vpop.permute.xlu0 %1021 }
 0x215   : >> { %1369 = vst [vmem:[#allocation2 + $0x10] sm:$0xff] %v1253_v54  ;;  %1393 = vst [vmem:[#allocation2 + $0xd0] sm:$0xff] %v1313_v57 }
 0x216   : >> { %1370 = vst [vmem:[#allocation2 + $0x18] sm:$0xff] %v1255_v11  ;;  %1394 = vst [vmem:[#allocation2 + $0xd8] sm:$0xff] %v1315_v53 }
 0x218   : >> { %v1258_v60 = vpop.f32.mrb[4].mxu0  ;;  %v1318_v43 = vpop.f32.mrb[4].mxu1 }
 0x219   : >> { %v1259_v49 = vadd.f32 %v1258_v60, %v962_v59  ;;  %v1319_v50 = vadd.f32 %v1318_v43, %v1022_v45  ;;  %v1260_v46 = vpop.f32.mrb[5].mxu0  ;;  %v1320_v47 = vpop.f32.mrb[5].mxu1 }
 0x21a   : >> { %v1261_v52 = vadd.f32 %v1260_v46, %v962_v59  ;;  %v1321_v56 = vadd.f32 %v1320_v47, %v1022_v45  ;;  %v1262_v42 = vpop.f32.mrb[6].mxu0  ;;  %v1322_v41 = vpop.f32.mrb[6].mxu1 }
 0x21b   : >> { %1371 = vst [vmem:[#allocation2 + $0x20] sm:$0xff] %v1259_v49  ;;  %1395 = vst [vmem:[#allocation2 + $0xe0] sm:$0xff] %v1319_v50  ;;  %v1263_v62 = vadd.f32 %v1262_v42, %v967_v61  ;;  %v1323_v63 = vadd.f32 %v1322_v41, %v1027_v44  ;;  %v1264_v12 = vpop.f32.mrb[7].mxu0  ;;  %v1324_v51 = vpop.f32.mrb[7].mxu1 }
 0x21c   : >> { %1372 = vst [vmem:[#allocation2 + $0x28] sm:$0xff] %v1261_v52  ;;  %1396 = vst [vmem:[#allocation2 + $0xe8] sm:$0xff] %v1321_v56  ;;  %v1265_v11 = vadd.f32 %v1264_v12, %v967_v61  ;;  %v1325_v53 = vadd.f32 %v1324_v51, %v1027_v44  ;;  %v1037_v55 = vpop.permute.xlu1 %1036  ;;  %v1032_v54 = vpop.permute.xlu0 %1031 }
 0x21d   : >> { %1373 = vst [vmem:[#allocation2 + $0x30] sm:$0xff] %v1263_v62  ;;  %1397 = vst [vmem:[#allocation2 + $0xf0] sm:$0xff] %v1323_v63 }
 0x21e   : >> { %1374 = vst [vmem:[#allocation2 + $0x38] sm:$0xff] %v1265_v11  ;;  %1398 = vst [vmem:[#allocation2 + $0xf8] sm:$0xff] %v1325_v53 }
 0x220   : >> { %v1268_v59 = vpop.f32.mrb[8].mxu0  ;;  %v1328_v57 = vpop.f32.mrb[8].mxu1 }
 0x221   : >> { %v1269_v58 = vadd.f32 %v1268_v59, %v9060_v2  ;;  %v1329_v45 = vadd.f32 %v1328_v57, %v1032_v54  ;;  %v1270_v60 = vpop.f32.mrb[9].mxu0  ;;  %v1330_v42 = vpop.f32.mrb[9].mxu1 }
 0x222   : >> { %v1271_v41 = vadd.f32 %v1270_v60, %v9060_v2  ;;  %v1331_v43 = vadd.f32 %v1330_v42, %v1032_v54  ;;  %v1272_v49 = vpop.f32.mrb[10].mxu0  ;;  %v1332_v50 = vpop.f32.mrb[10].mxu1 }
 0x223   : >> { %1375 = vst [vmem:[#allocation2 + $0x40] sm:$0xff] %v1269_v58  ;;  %1399 = vst [vmem:[#allocation2 + $0x100] sm:$0xff] %v1329_v45  ;;  %v1273_v61 = vadd.f32 %v1272_v49, %v9058_v0  ;;  %v1333_v44 = vadd.f32 %v1332_v50, %v1037_v55  ;;  %v1274_v46 = vpop.f32.mrb[11].mxu0  ;;  %v1334_v47 = vpop.f32.mrb[11].mxu1 }
 0x224   : >> { %1376 = vst [vmem:[#allocation2 + $0x48] sm:$0xff] %v1271_v41  ;;  %1400 = vst [vmem:[#allocation2 + $0x108] sm:$0xff] %v1331_v43  ;;  %v1275_v52 = vadd.f32 %v1274_v46, %v9058_v0  ;;  %v1335_v56 = vadd.f32 %v1334_v47, %v1037_v55  ;;  %v1047_v2 = vpop.permute.xlu1 %1046  ;;  %v1042_v62 = vpop.permute.xlu0 %1041 }
 0x225   : >> { %1377 = vst [vmem:[#allocation2 + $0x50] sm:$0xff] %v1273_v61  ;;  %1401 = vst [vmem:[#allocation2 + $0x110] sm:$0xff] %v1333_v44 }
 0x226   : >> { %1378 = vst [vmem:[#allocation2 + $0x58] sm:$0xff] %v1275_v52  ;;  %1402 = vst [vmem:[#allocation2 + $0x118] sm:$0xff] %v1335_v56 }
 0x228   : >> { %v1278_v63 = vpop.f32.mrb[12].mxu0  ;;  %v1338_v12 = vpop.f32.mrb[12].mxu1 }
 0x229   : >> { %v1279_v51 = vadd.f32 %v1278_v63, %v9064_v4  ;;  %v1339_v11 = vadd.f32 %v1338_v12, %v1042_v62  ;;  %v1280_v53 = vpop.f32.mrb[13].mxu0  ;;  %v1340_v54 = vpop.f32.mrb[13].mxu1 }
 0x22a   : >> { %v1281_v59 = vadd.f32 %v1280_v53, %v9064_v4  ;;  %v1341_v57 = vadd.f32 %v1340_v54, %v1042_v62  ;;  %v1282_v58 = vpop.f32.mrb[14].mxu0  ;;  %v1342_v45 = vpop.f32.mrb[14].mxu1 }
 0x22b   : >> { %1379 = vst [vmem:[#allocation2 + $0x60] sm:$0xff] %v1279_v51  ;;  %1403 = vst [vmem:[#allocation2 + $0x120] sm:$0xff] %v1339_v11  ;;  %v1283_v0 = vadd.f32 %v1282_v58, %v9062_v3  ;;  %v1343_v55 = vadd.f32 %v1342_v45, %v1047_v2  ;;  %v1284_v60 = vpop.f32.mrb[15].mxu0  ;;  %v1344_v42 = vpop.f32.mrb[15].mxu1 }
 0x22c   : >> { %1380 = vst [vmem:[#allocation2 + $0x68] sm:$0xff] %v1281_v59  ;;  %1404 = vst [vmem:[#allocation2 + $0x128] sm:$0xff] %v1341_v57  ;;  %v1285_v41 = vadd.f32 %v1284_v60, %v9062_v3  ;;  %v1345_v43 = vadd.f32 %v1344_v42, %v1047_v2  ;;  %v1057_v4 = vpop.permute.xlu1 %1056  ;;  %v1052_v49 = vpop.permute.xlu0 %1051 }
 0x22d   : >> { %1381 = vst [vmem:[#allocation2 + $0x70] sm:$0xff] %v1283_v0  ;;  %1405 = vst [vmem:[#allocation2 + $0x130] sm:$0xff] %v1343_v55 }
 0x22e   : >> { %1382 = vst [vmem:[#allocation2 + $0x78] sm:$0xff] %v1285_v41  ;;  %1406 = vst [vmem:[#allocation2 + $0x138] sm:$0xff] %v1345_v43 }
 0x230   : >> { %v1288_v50 = vpop.f32.mrb[16].mxu0  ;;  %v1348_v61 = vpop.f32.mrb[16].mxu1 }
 0x231   : >> { %v1289_v44 = vadd.f32 %v1288_v50, %v9068_v6  ;;  %v1349_v46 = vadd.f32 %v1348_v61, %v1052_v49  ;;  %v1290_v47 = vpop.f32.mrb[17].mxu0  ;;  %v1350_v52 = vpop.f32.mrb[17].mxu1 }
 0x232   : >> { %v1291_v56 = vadd.f32 %v1290_v47, %v9068_v6  ;;  %v1351_v62 = vadd.f32 %v1350_v52, %v1052_v49  ;;  %v1292_v63 = vpop.f32.mrb[18].mxu0  ;;  %v1352_v12 = vpop.f32.mrb[18].mxu1 }
 0x233   : >> { %1383 = vst [vmem:[#allocation2 + $0x80] sm:$0xff] %v1289_v44  ;;  %1407 = vst [vmem:[#allocation2 + $0x140] sm:$0xff] %v1349_v46  ;;  %v1293_v3 = vadd.f32 %v1292_v63, %v9066_v5  ;;  %v1353_v2 = vadd.f32 %v1352_v12, %v1057_v4  ;;  %v1294_v51 = vpop.f32.mrb[19].mxu0  ;;  %v1354_v11 = vpop.f32.mrb[19].mxu1 }
 0x234   : >> { %1384 = vst [vmem:[#allocation2 + $0x88] sm:$0xff] %v1291_v56  ;;  %1408 = vst [vmem:[#allocation2 + $0x148] sm:$0xff] %v1351_v62  ;;  %v1295_v53 = vadd.f32 %v1294_v51, %v9066_v5  ;;  %v1355_v54 = vadd.f32 %v1354_v11, %v1057_v4  ;;  %v1067_v6 = vpop.permute.xlu1 %1066  ;;  %v1062_v59 = vpop.permute.xlu0 %1061 }
 0x235   : >> { %1385 = vst [vmem:[#allocation2 + $0x90] sm:$0xff] %v1293_v3  ;;  %1409 = vst [vmem:[#allocation2 + $0x150] sm:$0xff] %v1353_v2 }
 0x236   : >> { %1386 = vst [vmem:[#allocation2 + $0x98] sm:$0xff] %v1295_v53  ;;  %1410 = vst [vmem:[#allocation2 + $0x158] sm:$0xff] %v1355_v54 }
 0x238   : >> { %v1298_v57 = vpop.f32.mrb[20].mxu0  ;;  %v1358_v58 = vpop.f32.mrb[20].mxu1 }
 0x239   : >> { %v1299_v45 = vadd.f32 %v1298_v57, %v9072_v8  ;;  %v1359_v0 = vadd.f32 %v1358_v58, %v1062_v59  ;;  %v1300_v55 = vpop.f32.mrb[21].mxu0  ;;  %v1360_v60 = vpop.f32.mrb[21].mxu1 }
 0x23a   : >> { %v1301_v42 = vadd.f32 %v1300_v55, %v9072_v8  ;;  %v1361_v41 = vadd.f32 %v1360_v60, %v1062_v59  ;;  %v1302_v43 = vpop.f32.mrb[22].mxu0  ;;  %v1362_v49 = vpop.f32.mrb[22].mxu1 }
 0x23b   : >> { %1387 = vst [vmem:[#allocation2 + $0xa0] sm:$0xff] %v1299_v45  ;;  %1411 = vst [vmem:[#allocation2 + $0x160] sm:$0xff] %v1359_v0  ;;  %v1303_v5 = vadd.f32 %v1302_v43, %v9070_v7  ;;  %v1363_v4 = vadd.f32 %v1362_v49, %v1067_v6  ;;  %v1304_v50 = vpop.f32.mrb[23].mxu0  ;;  %v1364_v61 = vpop.f32.mrb[23].mxu1 }
 0x23c   : >> { %1388 = vst [vmem:[#allocation2 + $0xa8] sm:$0xff] %v1301_v42  ;;  %1412 = vst [vmem:[#allocation2 + $0x168] sm:$0xff] %v1361_v41  ;;  %v1305_v44 = vadd.f32 %v1304_v50, %v9070_v7  ;;  %v1365_v46 = vadd.f32 %v1364_v61, %v1067_v6 }
 0x23d   : >> { %1389 = vst [vmem:[#allocation2 + $0xb0] sm:$0xff] %v1303_v5  ;;  %1413 = vst [vmem:[#allocation2 + $0x170] sm:$0xff] %v1363_v4 }
 0x23e   : >> { %1390 = vst [vmem:[#allocation2 + $0xb8] sm:$0xff] %v1305_v44  ;;  %1414 = vst [vmem:[#allocation2 + $0x178] sm:$0xff] %v1365_v46 }
 0x23f LB: >>> { %v12612_v1 = vld [vmem:[#allocation6_spill] sm:$0xff]  ;;  %v8539_v8 = vmov 0   ;;  %s9097_s1 = sshll.u32 %s8529_s5, 3  ;;  %vm1494_vm5 = vcmask 64512   ;;  %v12469_v5 = vlaneseq  ;;  %s1420_s5 = sadd.s32 1, %s8529_s5   ;;  %s8529_s5 = sphi %s9090_s5, %s1420_s5  }
 0x240   : >>> { %1581 = vmatprep.mubr.bf16.mxu0 %v8539_v8  ;;  %s1422_s26 = sshra.s32 %s9097_s1, 3  ;;  %s1431_s22 = sadd.s32 64, %s9097_s1 }
 0x241   : >>> { %s9101_s2 = sshll.u32 %s1422_s26, 4  ;;  %s1432_s6 = sshra.s32 %s1431_s22, 3  ;;  %v9138_v4 = vshrl.u32 %v12469_v5, 7 }
 0x242   : >>> { %s6872_s28 = sshll.u32 %s1432_s6, 4  ;;  %s1426_s27 = scalar_lea.vmem [#allocation2], %s9101_s2 }
 0x243   : >>> { %s1436_s7 = scalar_lea.vmem [#allocation2], %s6872_s28  ;;  %12613 = vst [vmem:[#allocation42_spill] sm:$0xff] %v9138_v4  ;;  %v9141_v50 = vsub.s32 0, %v9138_v4  ;;  %v12470_v61 = vsub.s32 1, %v9138_v4  ;;  %s1441_s25 = sadd.s32 128, %s9097_s1 }
 0x244   : >>> { %s1442_s3 = sshra.s32 %s1441_s25, 3  ;;  %s2296_s1 = scalar_lea.vmem [#allocation4], %s9101_s2 }
 0x245   : >>> { %v1427_v7 = vld [vmem:[%s1426_s27] sm:$0xff]  ;;  %v1438_v52 = vld [vmem:[%s1436_s7 + $0x8] sm:$0xff]  ;;  %12614 = vst [vmem:[#allocation43_spill] sm:$0xff] %v9141_v50  ;;  %v9146_v44 = vrot.slane %v12612_v1, %v9141_v50  ;;  %v9151_v46 = vrot.slane %v12612_v1, %v12470_v61  ;;  %s6873_s0 = sshll.u32 %s1442_s3, 4  ;;  %p1417_p4 = scmp.ge.s32.totalorder %s1420_s5, 8  }
 0x246   : >>> { %v1429_v47 = vpack.c.bf16 %v1427_v7, %v1427_v7  ;;  %v1437_v56 = vld [vmem:[%s1436_s7] sm:$0xff]  ;;  %v1440_v62 = vpack.c.bf16 %v1438_v52, %v1438_v52  ;;  %v1428_v3 = vld [vmem:[%s1426_s27 + $0x8] sm:$0xff]  ;;  %s9738_s30 = scalar_lea.vmem [#allocation2], %s6873_s0  ;;  %s9775_s26 = sshll.u32 (%p1417_p4), %s8525_s4, 5 }
 0x247   : >>> { %v1439_v63 = vpack.c.bf16 %v1437_v56, %v1437_v56  ;;  %v1430_v2 = vpack.c.bf16 %v1428_v3, %v1428_v3  ;;  %s2324_s5 = scalar_lea.vmem (%p1417_p4), %s12446_s8, %s9775_s26  ;;  %s2333_s27 = scalar_lea.vmem (%p1417_p4), %s12447_s9, %s8525_s4 }
 0x248   : >>> { %1462 = vxpose.xlu0.c.b16.start.end [1/1] (short) %v1429_v47, 128  ;;  %6719 = vmatprep.subr.msk.bf16.mxu0 %vm760_vm1, %v1440_v62  ;;  %s10221_s7 = sshll.u32 (%p1417_p4), %s8525_s4, 6  ;;  %s10245_s22 = scalar_lea.vmem (%p1417_p4), %s12448_s10, %s9775_s26 }
 0x249   : >>> { %v1544_v12 = vsel %vm760_vm1, %v1439_v63, 0  ;;  %s10227_s0 = scalar_lea.vmem (%p1417_p4), %s12450_s12, %s10221_s7  ;;  %s3154_s6 = scalar_lea.vmem (%p1417_p4), %s12449_s11, %s10221_s7 }
 0x24a   : >>> { %1550 = vmatpush1.bf16.msra.mxu0 %v1544_v12  ;;  %s6771_s28 = sshll.u32 (%p1417_p4), %s8525_s4, 7 }
 0x24b   : >> { %s10260_s3 = scalar_lea.vmem (%p1417_p4), %s12451_s13, %s6771_s28 }
 0x265   : >>> { %1478 = vxpose.xlu0.c.b16.start.end [1/1] (short) %v1430_v2, 128 }
 0x2ae   : >>> { %v1470_v51 = vpop.trf.xlu0 }
 0x2af   : >>> { %6720 = vmatmul.mubr.msk.bf16.vlgmr.msra.gmra.mrb[0].mxu0 %vm1494_vm5, %v1470_v51 }
 0x2b0   : >>> { %1591 = vmatprep.mubr.bf16.mxu0 %v8539_v8 }
 0x2b2   : >>> { %v1471_v11 = vpop.trf.xlu0 }
 0x2b6   : >>> { %v1472_v53 = vpop.trf.xlu0 }
 0x2b7   : >>> { %6721 = vmatmul.mubr.msk.bf16.gmra.mrb[4].mxu0 %vm1494_vm5, %v1471_v11 }
 0x2b8   : >>> { %1601 = vmatprep.mubr.bf16.mxu0 %v8539_v8 }
 0x2ba   : >>> { %v1473_v54 = vpop.trf.xlu0 }
 0x2be   : >>> { %v1474_v6 = vpop.trf.xlu0 }
 0x2bf   : >>> { %6722 = vmatmul.mubr.msk.bf16.gmra.mrb[8].mxu0 %vm1494_vm5, %v1472_v53 }
 0x2c0   : >>> { %1611 = vmatprep.mubr.bf16.mxu0 %v8539_v8 }
 0x2c2   : >>> { %v1475_v59 = vpop.trf.xlu0 }
 0x2c6   : >>> { %v1476_v57 = vpop.trf.xlu0 }
 0x2c7   : >>> { %6723 = vmatmul.mubr.msk.bf16.gmra.mrb[12].mxu0 %vm1494_vm5, %v1473_v54 }
 0x2c8   : >>> { %1621 = vmatprep.mubr.bf16.mxu0 %v8539_v8 }
 0x2ca   : >>> { %v1477_v58 = vpop.trf.xlu0 }
 0x2ce   : >>> { %v1486_v45 = vpop.trf.xlu0 }
 0x2cf   : >>> { %6724 = vmatmul.mubr.msk.bf16.gmra.mrb[16].mxu0 %vm1494_vm5, %v1474_v6 }
 0x2d0   : >>> { %1631 = vmatprep.mubr.bf16.mxu0 %v8539_v8 }
 0x2d2   : >>> { %v1487_v0 = vpop.trf.xlu0 }
 0x2d6   : >>> { %v1488_v55 = vpop.trf.xlu0 }
 0x2d7   : >>> { %6725 = vmatmul.mubr.msk.bf16.gmra.mrb[20].mxu0 %vm1494_vm5, %v1475_v59 }
 0x2d8   : >>> { %1641 = vmatprep.mubr.bf16.mxu0 %v8539_v8 }
 0x2da   : >>> { %v1489_v60 = vpop.trf.xlu0 }
 0x2de   : >>> { %v1490_v42 = vpop.trf.xlu0 }
 0x2df   : >>> { %6726 = vmatmul.mubr.msk.bf16.gmra.mrb[24].mxu0 %vm1494_vm5, %v1476_v57 }
 0x2e0   : >>> { %1651 = vmatprep.mubr.bf16.mxu0 %v8539_v8 }
 0x2e2   : >>> { %v1491_v41 = vpop.trf.xlu0 }
 0x2e6   : >>> { %v1492_v43 = vpop.trf.xlu0 }
 0x2e7   : >>> { %6727 = vmatmul.mubr.msk.bf16.gmra.mrb[28].mxu0 %vm1494_vm5, %v1477_v58 }
 0x2e8   : >>> { %1661 = vmatprep.mubr.bf16.mxu0 %v8539_v8 }
 0x2ea   : >>> { %v1493_v49 = vpop.trf.xlu0 }
 0x2ef   : >>> { %6728 = vmatmul.mubr.msk.bf16.gmra.mrb[32].mxu0 %vm1494_vm5, %v1486_v45 }
 0x2f0   : >>> { %1671 = vmatprep.mubr.bf16.mxu0 %v8539_v8 }
 0x2f7   : >>> { %6729 = vmatmul.mubr.msk.bf16.gmra.mrb[36].mxu0 %vm1494_vm5, %v1487_v0 }
 0x2f8   : >>> { %1681 = vmatprep.mubr.bf16.mxu0 %v8539_v8 }
 0x2ff   : >>> { %6730 = vmatmul.mubr.msk.bf16.gmra.mrb[40].mxu0 %vm1494_vm5, %v1488_v55 }
 0x300   : >>> { %1691 = vmatprep.mubr.bf16.mxu0 %v8539_v8 }
 0x307   : >>> { %6731 = vmatmul.mubr.msk.bf16.gmra.mrb[44].mxu0 %vm1494_vm5, %v1489_v60 }
 0x308   : >>> { %1701 = vmatprep.mubr.bf16.mxu0 %v8539_v8 }
 0x30f   : >>> { %6732 = vmatmul.mubr.msk.bf16.gmra.mrb[48].mxu0 %vm1494_vm5, %v1490_v42 }
 0x310   : >>> { %1711 = vmatprep.mubr.bf16.mxu0 %v8539_v8 }
 0x317   : >>> { %6733 = vmatmul.mubr.msk.bf16.gmra.mrb[52].mxu0 %vm1494_vm5, %v1491_v41 }
 0x318   : >>> { %1721 = vmatprep.mubr.bf16.mxu0 %v8539_v8 }
 0x31f   : >>> { %6734 = vmatmul.mubr.msk.bf16.gmra.mrb[56].mxu0 %vm1494_vm5, %v1492_v43 }
 0x320   : >>> { %1731 = vmatprep.mubr.bf16.mxu0 %v8539_v8 }
 0x327   : >>> { %6735 = vmatmul.mubr.msk.bf16.gmra.mrb[60].mxu0 %vm1494_vm5, %v1493_v49 }
 0x382   : >>> { %v1583_v8 = vpop.f32.mrb[0].mxu0 }
 0x383   : >>> { %v9154_v7 = vadd.f32 %v1583_v8, %v9146_v44  ;;  %v1585_v47 = vpop.f32.mrb[1].mxu0 }
 0x384   : >>> { %v9157_v52 = vadd.f32 %v1585_v47, %v9151_v46  ;;  %v1587_v56 = vpop.f32.mrb[2].mxu0 }
 0x385   : >>> { %v1589_v62 = vpop.f32.mrb[3].mxu0  ;;  %v9160_v63 = vadd.f32 %v1587_v56, %v9146_v44 }
 0x386   : >>> { %v9163_v12 = vadd.f32 %v1589_v62, %v9151_v46  ;;  %v1742_v3 = vmax.f32 %v9154_v7, %v9157_v52 }
 0x388   : >>> { %1743 = vmax.xlane.f32.xlu1 %v1742_v3  ;;  %v1745_v51 = vmax.f32 %v9160_v63, %v9163_v12 }
 0x38a   : >>> { %v1593_v2 = vpop.f32.mrb[4].mxu0 }
 0x38b   : >>> { %v9170_v11 = vadd.f32 %v1593_v2, %v9146_v44  ;;  %v1595_v53 = vpop.f32.mrb[5].mxu0 }
 0x38c   : >>> { %v9173_v54 = vadd.f32 %v1595_v53, %v9151_v46  ;;  %1746 = vmax.xlane.f32.xlu1 %v1745_v51  ;;  %v1597_v6 = vpop.f32.mrb[6].mxu0 }
 0x38d   : >>> { %v1599_v59 = vpop.f32.mrb[7].mxu0  ;;  %v9176_v57 = vadd.f32 %v1597_v6, %v9146_v44 }
 0x38e   : >>> { %v9179_v58 = vadd.f32 %v1599_v59, %v9151_v46  ;;  %v1748_v45 = vmax.f32 %v9170_v11, %v9173_v54 }
 0x390   : >>> { %1749 = vmax.xlane.f32.xlu1 %v1748_v45  ;;  %v1751_v55 = vmax.f32 %v9176_v57, %v9179_v58 }
 0x392   : >>> { %v1603_v0 = vpop.f32.mrb[8].mxu0 }
 0x393   : >>> { %v9186_v60 = vadd.f32 %v1603_v0, %v9146_v44  ;;  %v1605_v42 = vpop.f32.mrb[9].mxu0 }
 0x394   : >>> { %v9189_v41 = vadd.f32 %v1605_v42, %v9151_v46  ;;  %1752 = vmax.xlane.f32.xlu1 %v1751_v55  ;;  %v1607_v43 = vpop.f32.mrb[10].mxu0 }
 0x395   : >>> { %v1609_v49 = vpop.f32.mrb[11].mxu0  ;;  %v9192_v8 = vadd.f32 %v1607_v43, %v9146_v44 }
 0x396   : >>> { %v9195_v47 = vadd.f32 %v1609_v49, %v9151_v46  ;;  %v1754_v56 = vmax.f32 %v9186_v60, %v9189_v41 }
 0x398   : >>> { %1755 = vmax.xlane.f32.xlu1 %v1754_v56  ;;  %v1757_v3 = vmax.f32 %v9192_v8, %v9195_v47 }
 0x39a   : >>> { %v1613_v62 = vpop.f32.mrb[12].mxu0 }
 0x39b   : >>> { %v9202_v2 = vadd.f32 %v1613_v62, %v9146_v44  ;;  %v1615_v51 = vpop.f32.mrb[13].mxu0 }
 0x39c   : >>> { %v9205_v53 = vadd.f32 %v1615_v51, %v9151_v46  ;;  %1758 = vmax.xlane.f32.xlu1 %v1757_v3  ;;  %v1617_v6 = vpop.f32.mrb[14].mxu0 }
 0x39d   : >>> { %v1619_v59 = vpop.f32.mrb[15].mxu0  ;;  %v9208_v45 = vadd.f32 %v1617_v6, %v9146_v44 }
 0x39e   : >>> { %v9211_v0 = vadd.f32 %v1619_v59, %v9151_v46  ;;  %v1760_v55 = vmax.f32 %v9202_v2, %v9205_v53 }
 0x3a0   : >>> { %1761 = vmax.xlane.f32.xlu1 %v1760_v55  ;;  %v1763_v43 = vmax.f32 %v9208_v45, %v9211_v0 }
 0x3a2   : >>> { %v1623_v42 = vpop.f32.mrb[16].mxu0 }
 0x3a3   : >>> { %v9218_v49 = vadd.f32 %v1623_v42, %v9146_v44  ;;  %v1625_v56 = vpop.f32.mrb[17].mxu0 }
 0x3a4   : >>> { %v9221_v62 = vadd.f32 %v1625_v56, %v9151_v46  ;;  %1764 = vmax.xlane.f32.xlu1 %v1763_v43  ;;  %v1627_v3 = vpop.f32.mrb[18].mxu0 }
 0x3a5   : >>> { %v9224_v51 = vadd.f32 %v1627_v3, %v9146_v44  ;;  %v1629_v6 = vpop.f32.mrb[19].mxu0 }
 0x3a6   : >>> { %v9227_v59 = vadd.f32 %v1629_v6, %v9151_v46  ;;  %v1766_v55 = vmax.f32 %v9218_v49, %v9221_v62 }
 0x3a8   : >>> { %1767 = vmax.xlane.f32.xlu1 %v1766_v55  ;;  %v1769_v42 = vmax.f32 %v9224_v51, %v9227_v59 }
 0x3aa   : >>> { %1770 = vmax.xlane.f32.xlu0 %v1769_v42  ;;  %v1633_v5 = vpop.f32.mrb[20].mxu0 }
 0x3ab   : >>> { %v9234_v56 = vadd.f32 %v1633_v5, %v9146_v44  ;;  %v1635_v43 = vpop.f32.mrb[21].mxu0 }
 0x3ac   : >>> { %v9237_v3 = vadd.f32 %v1635_v43, %v9151_v46  ;;  %v1637_v61 = vpop.f32.mrb[22].mxu0 }
 0x3ad   : >>> { %v9240_v6 = vadd.f32 %v1637_v61, %v9146_v44  ;;  %v1639_v1 = vpop.f32.mrb[23].mxu0 }
 0x3ae   : >>> { %v9243_v4 = vadd.f32 %v1639_v1, %v9151_v46  ;;  %v1772_v55 = vmax.f32 %v9234_v56, %v9237_v3 }
 0x3b0   : >>> { %1773 = vmax.xlane.f32.xlu1 %v1772_v55  ;;  %v1775_v5 = vmax.f32 %v9240_v6, %v9243_v4 }
 0x3b2   : >>> { %v1643_v42 = vpop.f32.mrb[24].mxu0 }
 0x3b3   : >>> { %v9250_v50 = vadd.f32 %v1643_v42, %v9146_v44  ;;  %v1645_v43 = vpop.f32.mrb[25].mxu0 }
 0x3b4   : >>> { %v9253_v26 = vadd.f32 %v1645_v43, %v9151_v46  ;;  %1776 = vmax.xlane.f32.xlu1 %v1775_v5  ;;  %v1647_v61 = vpop.f32.mrb[26].mxu0 }
 0x3b5   : >>> { %v9256_v1 = vadd.f32 %v1647_v61, %v9146_v44  ;;  %v1649_v25 = vpop.f32.mrb[27].mxu0 }
 0x3b6   : >>> { %v9259_v40 = vadd.f32 %v1649_v25, %v9151_v46  ;;  %v1778_v55 = vmax.f32 %v9250_v50, %v9253_v26 }
 0x3b8   : >>> { %1779 = vmax.xlane.f32.xlu1 %v1778_v55  ;;  %v1781_v42 = vmax.f32 %v9256_v1, %v9259_v40 }
 0x3ba   : >>> { %v1653_v39 = vpop.f32.mrb[28].mxu0 }
 0x3bb   : >>> { %v9266_v43 = vadd.f32 %v1653_v39, %v9146_v44  ;;  %v1655_v5 = vpop.f32.mrb[29].mxu0 }
 0x3bc   : >>> { %v9269_v24 = vadd.f32 %v1655_v5, %v9151_v46  ;;  %1782 = vmax.xlane.f32.xlu1 %v1781_v42  ;;  %v1657_v61 = vpop.f32.mrb[30].mxu0 }
 0x3bd   : >>> { %v9272_v25 = vadd.f32 %v1657_v61, %v9146_v44  ;;  %v1659_v23 = vpop.f32.mrb[31].mxu0 }
 0x3be   : >>> { %v9275_v38 = vadd.f32 %v1659_v23, %v9151_v46  ;;  %v1784_v55 = vmax.f32 %v9266_v43, %v9269_v24 }
 0x3c0   : >>> { %1785 = vmax.xlane.f32.xlu1 %v1784_v55  ;;  %v1787_v39 = vmax.f32 %v9272_v25, %v9275_v38 }
 0x3c2   : >>> { %v1663_v37 = vpop.f32.mrb[32].mxu0 }
 0x3c3   : >>> { %v9282_v5 = vadd.f32 %v1663_v37, %v9146_v44  ;;  %v1665_v42 = vpop.f32.mrb[33].mxu0 }
 0x3c4   : >>> { %v9285_v22 = vadd.f32 %v1665_v42, %v9151_v46  ;;  %1788 = vmax.xlane.f32.xlu1 %v1787_v39  ;;  %v1667_v61 = vpop.f32.mrb[34].mxu0 }
 0x3c5   : >>> { %v9288_v23 = vadd.f32 %v1667_v61, %v9146_v44  ;;  %v1669_v21 = vpop.f32.mrb[35].mxu0 }
 0x3c6   : >>> { %12615 = vst [vmem:[#allocation44_spill] sm:$0xff] %v9285_v22  ;;  %v9291_v36 = vadd.f32 %v1669_v21, %v9151_v46  ;;  %v1790_v55 = vmax.f32 %v9282_v5, %v9285_v22 }
 0x3c7   : >>> { %12616 = vst [vmem:[#allocation45_spill] sm:$0xff] %v9288_v23 }
 0x3c8   : >>> { %12617 = vst [vmem:[#allocation46_spill] sm:$0xff] %v9291_v36  ;;  %1791 = vmax.xlane.f32.xlu1 %v1790_v55  ;;  %v1793_v37 = vmax.f32 %v9288_v23, %v9291_v36 }
 0x3ca   : >>> { %v1673_v35 = vpop.f32.mrb[36].mxu0 }
 0x3cb   : >>> { %v9298_v42 = vadd.f32 %v1673_v35, %v9146_v44  ;;  %v1675_v39 = vpop.f32.mrb[37].mxu0 }
 0x3cc   : >>> { %v9301_v20 = vadd.f32 %v1675_v39, %v9151_v46  ;;  %1794 = vmax.xlane.f32.xlu1 %v1793_v37  ;;  %v1677_v61 = vpop.f32.mrb[38].mxu0 }
 0x3cd   : >>> { %12618 = vst [vmem:[#allocation47_spill] sm:$0xff] %v9298_v42  ;;  %v9304_v21 = vadd.f32 %v1677_v61, %v9146_v44  ;;  %v1679_v19 = vpop.f32.mrb[39].mxu0 }
 0x3ce   : >>> { %12619 = vst [vmem:[#allocation48_spill] sm:$0xff] %v9301_v20  ;;  %v9307_v34 = vadd.f32 %v1679_v19, %v9151_v46  ;;  %v1796_v55 = vmax.f32 %v9298_v42, %v9301_v20 }
 0x3cf   : >>> { %12620 = vst [vmem:[#allocation49_spill] sm:$0xff] %v9304_v21 }
 0x3d0   : >>> { %12621 = vst [vmem:[#allocation50_spill] sm:$0xff] %v9307_v34  ;;  %1797 = vmax.xlane.f32.xlu1 %v1796_v55  ;;  %v1799_v35 = vmax.f32 %v9304_v21, %v9307_v34 }
 0x3d2   : >>> { %v1683_v33 = vpop.f32.mrb[40].mxu0 }
 0x3d3   : >>> { %v9314_v39 = vadd.f32 %v1683_v33, %v9146_v44  ;;  %v1685_v37 = vpop.f32.mrb[41].mxu0 }
 0x3d4   : >>> { %v9317_v18 = vadd.f32 %v1685_v37, %v9151_v46  ;;  %1800 = vmax.xlane.f32.xlu1 %v1799_v35  ;;  %v1687_v61 = vpop.f32.mrb[42].mxu0 }
 0x3d5   : >>> { %12622 = vst [vmem:[#allocation51_spill] sm:$0xff] %v9314_v39  ;;  %v9320_v19 = vadd.f32 %v1687_v61, %v9146_v44  ;;  %v1689_v17 = vpop.f32.mrb[43].mxu0 }
 0x3d6   : >>> { %12623 = vst [vmem:[#allocation52_spill] sm:$0xff] %v9317_v18  ;;  %v9323_v32 = vadd.f32 %v1689_v17, %v9151_v46  ;;  %v1802_v55 = vmax.f32 %v9314_v39, %v9317_v18 }
 0x3d7   : >>> { %12624 = vst [vmem:[#allocation53_spill] sm:$0xff] %v9320_v19 }
 0x3d8   : >>> { %12625 = vst [vmem:[#allocation54_spill] sm:$0xff] %v9323_v32  ;;  %1803 = vmax.xlane.f32.xlu0 %v1802_v55  ;;  %v1805_v33 = vmax.f32 %v9320_v19, %v9323_v32 }
 0x3da   : >>> { %1806 = vmax.xlane.f32.xlu1 %v1805_v33  ;;  %v1693_v31 = vpop.f32.mrb[44].mxu0 }
 0x3db   : >>> { %v9330_v37 = vadd.f32 %v1693_v31, %v9146_v44  ;;  %v1695_v35 = vpop.f32.mrb[45].mxu0 }
 0x3dc   : >>> { %v9333_v61 = vadd.f32 %v1695_v35, %v9151_v46  ;;  %v1697_v16 = vpop.f32.mrb[46].mxu0 }
 0x3dd   : >>> { %12626 = vst [vmem:[#allocation55_spill] sm:$0xff] %v9330_v37  ;;  %v9336_v17 = vadd.f32 %v1697_v16, %v9146_v44  ;;  %v1699_v15 = vpop.f32.mrb[47].mxu0 }
 0x3de   : >>> { %12627 = vst [vmem:[#allocation56_spill] sm:$0xff] %v9333_v61  ;;  %v9339_v30 = vadd.f32 %v1699_v15, %v9151_v46  ;;  %v1808_v55 = vmax.f32 %v9330_v37, %v9333_v61 }
 0x3df   : >>> { %12628 = vst [vmem:[#allocation57_spill] sm:$0xff] %v9336_v17 }
 0x3e0   : >>> { %12629 = vst [vmem:[#allocation58_spill] sm:$0xff] %v9339_v30  ;;  %1809 = vmax.xlane.f32.xlu0 %v1808_v55  ;;  %v1811_v31 = vmax.f32 %v9336_v17, %v9339_v30 }
 0x3e2   : >>> { %1812 = vmax.xlane.f32.xlu1 %v1811_v31  ;;  %v1703_v33 = vpop.f32.mrb[48].mxu0 }
 0x3e3   : >>> { %v1705_v29 = vpop.f32.mrb[49].mxu0 }
 0x3e4   : >>> { %v1707_v35 = vpop.f32.mrb[50].mxu0 }
 0x3e5   : >>> { %v1709_v14 = vpop.f32.mrb[51].mxu0 }
 0x3ea   : >>> { %v9345_v28 = vpop.f32.mrb[52].mxu0 }
 0x3eb   : >>> { %v9347_v16 = vpop.f32.mrb[53].mxu0 }
 0x3ec   : >>> { %v9349_v13 = vpop.f32.mrb[54].mxu0 }
 0x3ed   : >>> { %v9351_v15 = vpop.f32.mrb[55].mxu0 }
 0x3f2   : >>> { %v9353_v27 = vpop.f32.mrb[56].mxu0 }
 0x3f3   : >>> { %v9355_v10 = vpop.f32.mrb[57].mxu0 }
 0x3f4   : >>> { %v9357_v55 = vpop.f32.mrb[58].mxu0 }
 0x3f5   : >>> { %v9359_v9 = vpop.f32.mrb[59].mxu0 }
 0x3fa   : >>> { %v9361_v31 = vpop.f32.mrb[60].mxu0 }
 0x3fb   : >>> { %v9363_v48 = vpop.f32.mrb[61].mxu0 }
 0x3fc   : >>> { %v9365_v30 = vpop.f32.mrb[62].mxu0 }
 0x3fd   : >>> { %v9367_v17 = vpop.f32.mrb[63].mxu0 }
 0x415   : >>> { %v1744_v61 = vpop.xlane.xlu1 %1743 }
 0x416   : >>> { %v1838_v37 = vsub.f32 %v9154_v7, %v1744_v61  ;;  %v1839_v32 = vsub.f32 %v9157_v52, %v1744_v61 }
 0x418   : >>> { %v1902_v19 = vmul.f32 1.442695, %v1838_v37  ;;  %v1904_v18 = vmul.f32 1.442695, %v1839_v32 }
 0x419   : >>> { %v1747_v39 = vpop.xlane.xlu1 %1746 }
 0x41a   : >>> { %7700 = vpow2.f32 %v1902_v19  ;;  %v1840_v34 = vsub.f32 %v9160_v63, %v1747_v39  ;;  %v1841_v21 = vsub.f32 %v9163_v12, %v1747_v39  ;;  %v9398_v19 = vadd.f32 %v1707_v35, %v9146_v44 }
 0x41b   : >>> { %7702 = vpow2.f32 %v1904_v18  ;;  %v9415_v35 = vadd.f32 %v9347_v16, %v9151_v46 }
 0x41c   : >>> { %v1906_v20 = vmul.f32 1.442695, %v1840_v34  ;;  %v1908_v42 = vmul.f32 1.442695, %v1841_v21 }
 0x41d   : >>> { %v1750_v36 = vpop.xlane.xlu1 %1749 }
 0x41e   : >>> { %7704 = vpow2.f32 %v1906_v20  ;;  %v1842_v23 = vsub.f32 %v9170_v11, %v1750_v36  ;;  %v1843_v22 = vsub.f32 %v9173_v54, %v1750_v36  ;;  %v9380_v20 = vadd.f32 %v1703_v33, %v9146_v44 }
 0x41f   : >>> { %7706 = vpow2.f32 %v1908_v42  ;;  %v9383_v11 = vadd.f32 %v1705_v29, %v9151_v46 }
 0x420   : >>> { %v1910_v7 = vmul.f32 1.442695, %v1842_v23  ;;  %v1912_v52 = vmul.f32 1.442695, %v1843_v22 }
 0x421   : >>> { %v1753_v37 = vpop.xlane.xlu1 %1752  ;;  %v1814_v29 = vmax.f32 %v9380_v20, %v9383_v11 }
 0x422   : >>> { %7708 = vpow2.f32 %v1910_v7  ;;  %v1844_v32 = vsub.f32 %v9176_v57, %v1753_v37  ;;  %v1845_v63 = vsub.f32 %v9179_v58, %v1753_v37 }
 0x423   : >>> { %7710 = vpow2.f32 %v1912_v52 }
 0x424   : >>> { %v9377_v12 = vpop.eup %7700  ;;  %v1914_v18 = vmul.f32 1.442695, %v1844_v32  ;;  %v1916_v34 = vmul.f32 1.442695, %v1845_v63 }
 0x425   : >>> { %v9385_v36 = vpop.eup %7702  ;;  %v1756_v22 = vpop.xlane.xlu1 %1755 }
 0x426   : >>> { %7712 = vpow2.f32 %v1914_v18  ;;  %v1846_v54 = vsub.f32 %v9186_v60, %v1756_v22  ;;  %v1847_v57 = vsub.f32 %v9189_v41, %v1756_v22  ;;  %v2030_v58 = vadd.f32 %v9385_v36, %v9377_v12 }
 0x427   : >>> { %7714 = vpow2.f32 %v1916_v34  ;;  %v9401_v60 = vadd.f32 %v1709_v14, %v9151_v46  ;;  %v9411_v14 = vadd.f32 %v9345_v28, %v9146_v44 }
 0x428   : >>> { %v9391_v23 = vpop.eup %7704  ;;  %v1918_v42 = vmul.f32 1.442695, %v1846_v54  ;;  %v1920_v21 = vmul.f32 1.442695, %v1847_v57  ;;  %2031 = vadd.xlane.f32.xlu0 %v2030_v58 }
 0x429   : >>> { %v9395_v39 = vpop.eup %7706  ;;  %v1759_v41 = vpop.xlane.xlu1 %1758  ;;  %v1817_v63 = vmax.f32 %v9398_v19, %v9401_v60  ;;  %v1820_v57 = vmax.f32 %v9411_v14, %v9415_v35 }
 0x42a   : >>> { %7716 = vpow2.f32 %v1918_v42  ;;  %v1848_v61 = vsub.f32 %v9192_v8, %v1759_v41  ;;  %v1849_v33 = vsub.f32 %v9195_v47, %v1759_v41  ;;  %v2033_v7 = vadd.f32 %v9395_v39, %v9391_v23 }
 0x42b   : >>> { %7718 = vpow2.f32 %v1920_v21 }
 0x42c   : >>> { %v9407_v52 = vpop.eup %7708  ;;  %v1922_v37 = vmul.f32 1.442695, %v1848_v61  ;;  %v1924_v32 = vmul.f32 1.442695, %v1849_v33  ;;  %2034 = vadd.xlane.f32.xlu1 %v2033_v7  ;;  %1815 = vmax.xlane.f32.xlu0 %v1814_v29  ;;  %v9445_v61 = vadd.f32 %v9353_v27, %v9146_v44 }
 0x42d   : >>> { %v9417_v8 = vpop.eup %7710  ;;  %v1762_v47 = vpop.xlane.xlu1 %1761 }
 0x42e   : >>> { %7720 = vpow2.f32 %v1922_v37  ;;  %v1850_v18 = vsub.f32 %v9202_v2, %v1762_v47  ;;  %v1851_v34 = vsub.f32 %v9205_v53, %v1762_v47  ;;  %v2036_v22 = vadd.f32 %v9417_v8, %v9407_v52 }
 0x42f   : >>> { %7722 = vpow2.f32 %v1924_v32  ;;  %v9433_v2 = vadd.f32 %v9349_v13, %v9146_v44  ;;  %v9437_v53 = vadd.f32 %v9351_v15, %v9151_v46  ;;  %v9449_v13 = vadd.f32 %v9355_v10, %v9151_v46 }
 0x430   : >>> { %v9425_v28 = vpop.eup %7712  ;;  %v1926_v54 = vmul.f32 1.442695, %v1850_v18  ;;  %v1928_v16 = vmul.f32 1.442695, %v1851_v34  ;;  %1818 = vmax.xlane.f32.xlu1 %v1817_v63  ;;  %2037 = vadd.xlane.f32.xlu0 %v2036_v22 }
 0x431   : >>> { %v9429_v58 = vpop.eup %7714  ;;  %v1765_v42 = vpop.xlane.xlu1 %1764  ;;  %v1823_v37 = vmax.f32 %v9433_v2, %v9437_v53  ;;  %v1826_v63 = vmax.f32 %v9445_v61, %v9449_v13 }
 0x432   : >>> { %7724 = vpow2.f32 %v1926_v54  ;;  %v1852_v21 = vsub.f32 %v9208_v45, %v1765_v42  ;;  %v1853_v29 = vsub.f32 %v9211_v0, %v1765_v42  ;;  %v2039_v41 = vadd.f32 %v9429_v58, %v9425_v28 }
 0x433   : >>> { %7726 = vpow2.f32 %v1928_v16 }
 0x434   : >>> { %v9451_v15 = vpop.eup %7716  ;;  %v1930_v33 = vmul.f32 1.442695, %v1852_v21  ;;  %v1932_v7 = vmul.f32 1.442695, %v1853_v29  ;;  %2040 = vadd.xlane.f32.xlu1 %v2039_v41  ;;  %1821 = vmax.xlane.f32.xlu0 %v1820_v57  ;;  %v9475_v57 = vadd.f32 %v9359_v9, %v9151_v46  ;;  %v9487_v9 = vadd.f32 %v9363_v48, %v9151_v46 }
 0x435   : >>> { %v9453_v45 = vpop.eup %7718  ;;  %v1768_v0 = vpop.xlane.xlu1 %1767 }
 0x436   : >>> { %7728 = vpow2.f32 %v1930_v33  ;;  %v1854_v27 = vsub.f32 %v9218_v49, %v1768_v0  ;;  %v1855_v32 = vsub.f32 %v9221_v62, %v1768_v0  ;;  %v2042_v10 = vadd.f32 %v9453_v45, %v9451_v15 }
 0x437   : >>> { %7730 = vpow2.f32 %v1932_v7  ;;  %v1771_v47 = vpop.xlane.xlu0 %1770  ;;  %v9471_v62 = vadd.f32 %v9357_v55, %v9146_v44 }
 0x438   : >>> { %v9463_v18 = vpop.eup %7720  ;;  %v1934_v34 = vmul.f32 1.442695, %v1854_v27  ;;  %v1936_v22 = vmul.f32 1.442695, %v1855_v32  ;;  %1824 = vmax.xlane.f32.xlu1 %v1823_v37  ;;  %2043 = vadd.xlane.f32.xlu0 %v2042_v10  ;;  %v1856_v54 = vsub.f32 %v9224_v51, %v1771_v47  ;;  %v1857_v49 = vsub.f32 %v9227_v59, %v1771_v47 }
 0x439   : >>> { %v9467_v16 = vpop.eup %7722  ;;  %v9483_v59 = vadd.f32 %v9361_v31, %v9146_v44  ;;  %v1829_v0 = vmax.f32 %v9471_v62, %v9475_v57 }
 0x43a   : >>> { %7732 = vpow2.f32 %v1934_v34  ;;  %v1938_v42 = vmul.f32 1.442695, %v1856_v54  ;;  %v1940_v21 = vmul.f32 1.442695, %v1857_v49  ;;  %v2045_v29 = vadd.f32 %v9467_v16, %v9463_v18 }
 0x43b   : >>> { %7734 = vpow2.f32 %v1936_v22  ;;  %v1832_v48 = vmax.f32 %v9483_v59, %v9487_v9 }
 0x43c   : >>> { %v9479_v51 = vpop.eup %7724  ;;  %7736 = vpow2.f32 %v1938_v42  ;;  %2046 = vadd.xlane.f32.xlu1 %v2045_v29  ;;  %1827 = vmax.xlane.f32.xlu0 %v1826_v63 }
 0x43d   : >>> { %v9489_v55 = vpop.eup %7726  ;;  %7738 = vpow2.f32 %v1940_v21  ;;  %v1774_v41 = vpop.xlane.xlu1 %1773 }
 0x43e   : >>> { %v1858_v33 = vsub.f32 %v9234_v56, %v1774_v41  ;;  %v1859_v7 = vsub.f32 %v9237_v3, %v1774_v41  ;;  %v2048_v37 = vadd.f32 %v9489_v55, %v9479_v51  ;;  %v9505_v56 = vadd.f32 %v9365_v30, %v9146_v44 }
 0x43f   : >>> { %v9509_v3 = vadd.f32 %v9367_v17, %v9151_v46 }
 0x440   : >>> { %v9497_v31 = vpop.eup %7728  ;;  %v1942_v27 = vmul.f32 1.442695, %v1858_v33  ;;  %v1944_v32 = vmul.f32 1.442695, %v1859_v7  ;;  %1830 = vmax.xlane.f32.xlu1 %v1829_v0  ;;  %2049 = vadd.xlane.f32.xlu0 %v2048_v37 }
 0x441   : >>> { %v9501_v10 = vpop.eup %7730  ;;  %v1777_v47 = vpop.xlane.xlu1 %1776  ;;  %v1835_v46 = vmax.f32 %v9505_v56, %v9509_v3 }
 0x442   : >>> { %7740 = vpow2.f32 %v1942_v27  ;;  %v1860_v63 = vsub.f32 %v9240_v6, %v1777_v47  ;;  %v1861_v34 = vsub.f32 %v9243_v4, %v1777_v47  ;;  %v2051_v22 = vadd.f32 %v9501_v10, %v9497_v31 }
 0x443   : >>> { %7742 = vpow2.f32 %v1944_v32 }
 0x444   : >>> { %v9515_v54 = vpop.eup %7732  ;;  %v1946_v49 = vmul.f32 1.442695, %v1860_v63  ;;  %v1948_v42 = vmul.f32 1.442695, %v1861_v34  ;;  %2052 = vadd.xlane.f32.xlu1 %v2051_v22  ;;  %1833 = vmax.xlane.f32.xlu0 %v1832_v48 }
 0x445   : >>> { %v9517_v30 = vpop.eup %7734  ;;  %v1780_v44 = vpop.xlane.xlu1 %1779 }
 0x446   : >>> { %v9521_v17 = vpop.eup %7736  ;;  %7744 = vpow2.f32 %v1946_v49  ;;  %v1862_v4 = vsub.f32 %v9250_v50, %v1780_v44  ;;  %v1863_v6 = vsub.f32 %v9253_v26, %v1780_v44  ;;  %v2054_v21 = vadd.f32 %v9517_v30, %v9515_v54 }
 0x447   : >>> { %v9527_v29 = vpop.eup %7738  ;;  %7746 = vpow2.f32 %v1948_v42 }
 0x448   : >>> { %v1950_v41 = vmul.f32 1.442695, %v1862_v4  ;;  %v1952_v33 = vmul.f32 1.442695, %v1863_v6  ;;  %1836 = vmax.xlane.f32.xlu1 %v1835_v46  ;;  %2055 = vadd.xlane.f32.xlu0 %v2054_v21  ;;  %v2057_v50 = vadd.f32 %v9527_v29, %v9521_v17 }
 0x449   : >>> { %v1783_v7 = vpop.xlane.xlu1 %1782 }
 0x44a   : >>> { %7748 = vpow2.f32 %v1950_v41  ;;  %v1864_v0 = vsub.f32 %v9256_v1, %v1783_v7  ;;  %v1865_v37 = vsub.f32 %v9259_v40, %v1783_v7 }
 0x44b   : >>> { %7750 = vpow2.f32 %v1952_v33 }
 0x44c   : >>> { %v9533_v26 = vpop.eup %7740  ;;  %v1954_v27 = vmul.f32 1.442695, %v1864_v0  ;;  %v1956_v32 = vmul.f32 1.442695, %v1865_v37  ;;  %2058 = vadd.xlane.f32.xlu1 %v2057_v50  ;;  %v12630_v0 = vld [vmem:[#allocation44_spill] sm:$0xff] }
 0x44d   : >>> { %v9535_v48 = vpop.eup %7742  ;;  %v1786_v47 = vpop.xlane.xlu1 %1785 }
 0x44e   : >>> { %7752 = vpow2.f32 %v1954_v27  ;;  %v1866_v63 = vsub.f32 %v9266_v43, %v1786_v47  ;;  %v1867_v34 = vsub.f32 %v9269_v24, %v1786_v47  ;;  %v2060_v40 = vadd.f32 %v9535_v48, %v9533_v26 }
 0x44f   : >>> { %7754 = vpow2.f32 %v1956_v32 }
 0x450   : >>> { %v9541_v1 = vpop.eup %7744  ;;  %v1958_v22 = vmul.f32 1.442695, %v1866_v63  ;;  %v1960_v49 = vmul.f32 1.442695, %v1867_v34  ;;  %2061 = vadd.xlane.f32.xlu0 %v2060_v40  ;;  %v12631_v63 = vld [vmem:[#allocation45_spill] sm:$0xff]  ;;  %v12632_v40 = vld [vmem:[#allocation46_spill] sm:$0xff] }
 0x451   : >>> { %v9543_v42 = vpop.eup %7746  ;;  %v1789_v44 = vpop.xlane.xlu1 %1788 }
 0x452   : >>> { %7756 = vpow2.f32 %v1958_v22  ;;  %v1868_v46 = vsub.f32 %v9272_v25, %v1789_v44  ;;  %v1869_v4 = vsub.f32 %v9275_v38, %v1789_v44  ;;  %v2063_v24 = vadd.f32 %v9543_v42, %v9541_v1 }
 0x453   : >>> { %7758 = vpow2.f32 %v1960_v49 }
 0x454   : >>> { %v9549_v43 = vpop.eup %7748  ;;  %v1962_v6 = vmul.f32 1.442695, %v1868_v46  ;;  %v1964_v21 = vmul.f32 1.442695, %v1869_v4  ;;  %2064 = vadd.xlane.f32.xlu1 %v2063_v24 }
 0x455   : >>> { %v9551_v41 = vpop.eup %7750  ;;  %v1792_v33 = vpop.xlane.xlu1 %1791 }
 0x456   : >>> { %7760 = vpow2.f32 %v1962_v6  ;;  %v1870_v7 = vsub.f32 %v9282_v5, %v1792_v33  ;;  %v1871_v37 = vsub.f32 %v12630_v0, %v1792_v33  ;;  %v2066_v38 = vadd.f32 %v9551_v41, %v9549_v43  ;;  %v12634_v6 = vld [vmem:[#allocation47_spill] sm:$0xff]  ;;  %v12635_v33 = vld [vmem:[#allocation48_spill] sm:$0xff] }
 0x457   : >>> { %7762 = vpow2.f32 %v1964_v21 }
 0x458   : >>> { %v9557_v25 = vpop.eup %7752  ;;  %v1966_v50 = vmul.f32 1.442695, %v1870_v7  ;;  %v1968_v27 = vmul.f32 1.442695, %v1871_v37  ;;  %2067 = vadd.xlane.f32.xlu0 %v2066_v38 }
 0x459   : >>> { %v9559_v32 = vpop.eup %7754  ;;  %v1795_v47 = vpop.xlane.xlu1 %1794 }
 0x45a   : >>> { %7764 = vpow2.f32 %v1966_v50  ;;  %v1872_v34 = vsub.f32 %v12631_v63, %v1795_v47  ;;  %v1873_v22 = vsub.f32 %v12632_v40, %v1795_v47  ;;  %v2069_v5 = vadd.f32 %v9559_v32, %v9557_v25  ;;  %v12638_v63 = vld [vmem:[#allocation49_spill] sm:$0xff]  ;;  %v12639_v40 = vld [vmem:[#allocation50_spill] sm:$0xff] }
 0x45b   : >>> { %7766 = vpow2.f32 %v1968_v27 }
 0x45c   : >>> { %v9565_v49 = vpop.eup %7756  ;;  %v1970_v44 = vmul.f32 1.442695, %v1872_v34  ;;  %v1972_v46 = vmul.f32 1.442695, %v1873_v22  ;;  %2070 = vadd.xlane.f32.xlu1 %v2069_v5 }
 0x45d   : >>> { %12633 = vst [vmem:[#allocation44_spill] sm:$0xff] %v9565_v49  ;;  %v9567_v4 = vpop.eup %7758  ;;  %v1798_v24 = vpop.xlane.xlu1 %1797 }
 0x45e   : >>> { %7768 = vpow2.f32 %v1970_v44  ;;  %v1874_v21 = vsub.f32 %v12634_v6, %v1798_v24  ;;  %v1875_v7 = vsub.f32 %v12635_v33, %v1798_v24  ;;  %v2072_v0 = vadd.f32 %v9567_v4, %v9565_v49  ;;  %v12641_v33 = vld [vmem:[#allocation51_spill] sm:$0xff] }
 0x45f   : >>> { %7770 = vpow2.f32 %v1972_v46 }
 0x460   : >>> { %v9573_v37 = vpop.eup %7760  ;;  %v1974_v38 = vmul.f32 1.442695, %v1874_v21  ;;  %v1976_v50 = vmul.f32 1.442695, %v1875_v7  ;;  %2073 = vadd.xlane.f32.xlu0 %v2072_v0  ;;  %v12642_v0 = vld [vmem:[#allocation52_spill] sm:$0xff] }
 0x461   : >>> { %12636 = vst [vmem:[#allocation45_spill] sm:$0xff] %v9573_v37  ;;  %v9575_v27 = vpop.eup %7762  ;;  %v1801_v47 = vpop.xlane.xlu1 %1800 }
 0x462   : >>> { %12637 = vst [vmem:[#allocation46_spill] sm:$0xff] %v9575_v27  ;;  %7772 = vpow2.f32 %v1974_v38  ;;  %v1876_v34 = vsub.f32 %v12638_v63, %v1801_v47  ;;  %v1877_v22 = vsub.f32 %v12639_v40, %v1801_v47  ;;  %v2075_v5 = vadd.f32 %v9575_v27, %v9573_v37 }
 0x463   : >>> { %7774 = vpow2.f32 %v1976_v50 }
 0x464   : >>> { %v9581_v44 = vpop.eup %7764  ;;  %v1978_v46 = vmul.f32 1.442695, %v1876_v34  ;;  %v1980_v24 = vmul.f32 1.442695, %v1877_v22  ;;  %2076 = vadd.xlane.f32.xlu1 %v2075_v5  ;;  %v12644_v34 = vld [vmem:[#allocation53_spill] sm:$0xff]  ;;  %v12645_v5 = vld [vmem:[#allocation54_spill] sm:$0xff] }
 0x465   : >>> { %12640 = vst [vmem:[#allocation47_spill] sm:$0xff] %v9581_v44  ;;  %v9583_v6 = vpop.eup %7766  ;;  %v1804_v21 = vpop.xlane.xlu0 %1803 }
 0x466   : >>> { %7776 = vpow2.f32 %v1978_v46  ;;  %v1878_v7 = vsub.f32 %v12641_v33, %v1804_v21  ;;  %v1879_v38 = vsub.f32 %v12642_v0, %v1804_v21  ;;  %v2078_v47 = vadd.f32 %v9583_v6, %v9581_v44  ;;  %v12649_v44 = vld [vmem:[#allocation57_spill] sm:$0xff] }
 0x467   : >>> { %7778 = vpow2.f32 %v1980_v24  ;;  %v1807_v63 = vpop.xlane.xlu1 %1806 }
 0x468   : >>> { %v9589_v40 = vpop.eup %7768  ;;  %v1982_v50 = vmul.f32 1.442695, %v1878_v7  ;;  %v1984_v49 = vmul.f32 1.442695, %v1879_v38  ;;  %v1880_v22 = vsub.f32 %v12644_v34, %v1807_v63  ;;  %v1881_v37 = vsub.f32 %v12645_v5, %v1807_v63  ;;  %2079 = vadd.xlane.f32.xlu0 %v2078_v47  ;;  %v12647_v38 = vld [vmem:[#allocation55_spill] sm:$0xff]  ;;  %v12648_v47 = vld [vmem:[#allocation56_spill] sm:$0xff] }
 0x469   : >>> { %12643 = vst [vmem:[#allocation48_spill] sm:$0xff] %v9589_v40  ;;  %v9593_v27 = vpop.eup %7770 }
 0x46a   : >>> { %12646 = vst [vmem:[#allocation49_spill] sm:$0xff] %v9593_v27  ;;  %7780 = vpow2.f32 %v1982_v50  ;;  %v1986_v46 = vmul.f32 1.442695, %v1880_v22  ;;  %v1988_v33 = vmul.f32 1.442695, %v1881_v37  ;;  %v2081_v21 = vadd.f32 %v9593_v27, %v9589_v40 }
 0x46b   : >>> { %7782 = vpow2.f32 %v1984_v49 }
 0x46c   : >>> { %v9597_v24 = vpop.eup %7772  ;;  %7784 = vpow2.f32 %v1986_v46  ;;  %2082 = vadd.xlane.f32.xlu1 %v2081_v21  ;;  %v12650_v46 = vld [vmem:[#allocation58_spill] sm:$0xff] }
 0x46d   : >>> { %v9599_v7 = vpop.eup %7774  ;;  %7786 = vpow2.f32 %v1988_v33  ;;  %v1810_v0 = vpop.xlane.xlu0 %1809 }
 0x46e   : >>> { %v1882_v63 = vsub.f32 %v12647_v38, %v1810_v0  ;;  %v1883_v34 = vsub.f32 %v12648_v47, %v1810_v0  ;;  %v2084_v50 = vadd.f32 %v9599_v7, %v9597_v24 }
 0x46f   : >>> { %v1813_v37 = vpop.xlane.xlu1 %1812 }
 0x470   : >>> { %v9605_v22 = vpop.eup %7776  ;;  %v1990_v5 = vmul.f32 1.442695, %v1882_v63  ;;  %v1992_v49 = vmul.f32 1.442695, %v1883_v34  ;;  %v1884_v40 = vsub.f32 %v12649_v44, %v1813_v37  ;;  %v1885_v21 = vsub.f32 %v12650_v46, %v1813_v37  ;;  %2085 = vadd.xlane.f32.xlu0 %v2084_v50 }
 0x471   : >>> { %v9609_v27 = vpop.eup %7778 }
 0x472   : >>> { %7788 = vpow2.f32 %v1990_v5  ;;  %v1994_v33 = vmul.f32 1.442695, %v1884_v40  ;;  %v1996_v38 = vmul.f32 1.442695, %v1885_v21  ;;  %v2087_v0 = vadd.f32 %v9609_v27, %v9605_v22 }
 0x473   : >>> { %7790 = vpow2.f32 %v1992_v49 }
 0x474   : >>> { %v9613_v47 = vpop.eup %7780  ;;  %7792 = vpow2.f32 %v1994_v33  ;;  %2088 = vadd.xlane.f32.xlu1 %v2087_v0 }
 0x475   : >>> { %12651 = vst [vmem:[#allocation50_spill] sm:$0xff] %v9613_v47  ;;  %v9615_v63 = vpop.eup %7782  ;;  %7794 = vpow2.f32 %v1996_v38 }
 0x476   : >>> { %12652 = vst [vmem:[#allocation51_spill] sm:$0xff] %v9615_v63  ;;  %v9617_v44 = vpop.eup %7784  ;;  %v2090_v34 = vadd.f32 %v9615_v63, %v9613_v47 }
 0x477   : >>> { %12653 = vst [vmem:[#allocation52_spill] sm:$0xff] %v9617_v44  ;;  %v9621_v50 = vpop.eup %7786 }
 0x478   : >>> { %12654 = vst [vmem:[#allocation53_spill] sm:$0xff] %v9621_v50  ;;  %2091 = vadd.xlane.f32.xlu0 %v2090_v34  ;;  %v2093_v40 = vadd.f32 %v9621_v50, %v9617_v44 }
 0x47a   : >>> { %2094 = vadd.xlane.f32.xlu1 %v2093_v40 }
 0x47c   : >>> { %v9625_v37 = vpop.eup %7788 }
 0x47d   : >>> { %12655 = vst [vmem:[#allocation54_spill] sm:$0xff] %v9625_v37  ;;  %v9627_v5 = vpop.eup %7790 }
 0x47e   : >>> { %12656 = vst [vmem:[#allocation55_spill] sm:$0xff] %v9627_v5  ;;  %v9629_v49 = vpop.eup %7792  ;;  %v2096_v46 = vadd.f32 %v9627_v5, %v9625_v37 }
 0x47f   : >>> { %12657 = vst [vmem:[#allocation56_spill] sm:$0xff] %v9629_v49  ;;  %v9633_v21 = vpop.eup %7794 }
 0x480   : >>> { %12658 = vst [vmem:[#allocation57_spill] sm:$0xff] %v9633_v21  ;;  %2097 = vadd.xlane.f32.xlu0 %v2096_v46  ;;  %v2099_v33 = vadd.f32 %v9633_v21, %v9629_v49 }
 0x482   : >>> { %2100 = vadd.xlane.f32.xlu1 %v2099_v33 }
 0x4b5   : >>> { %v2032_v38 = vpop.xlane.xlu0 %2031 }
 0x4b6   : >>> { %7796 = vrcp.f32 %v2032_v38 }
 0x4b9   : >>> { %v2035_v0 = vpop.xlane.xlu1 %2034  ;;  %v1816_v34 = vpop.xlane.xlu0 %1815 }
 0x4ba   : >>> { %7798 = vrcp.f32 %v2035_v0  ;;  %v1886_v40 = vsub.f32 %v9380_v20, %v1816_v34  ;;  %v1887_v47 = vsub.f32 %v9383_v11, %v1816_v34 }
 0x4bc   : >>> { %v1998_v44 = vmul.f32 1.442695, %v1886_v40  ;;  %v2000_v50 = vmul.f32 1.442695, %v1887_v47 }
 0x4bd   : >>> { %v1819_v63 = vpop.xlane.xlu1 %1818  ;;  %v2038_v37 = vpop.xlane.xlu0 %2037 }
 0x4be   : >>> { %7800 = vpow2.f32 %v1998_v44  ;;  %v1888_v46 = vsub.f32 %v9398_v19, %v1819_v63  ;;  %v1889_v5 = vsub.f32 %v9401_v60, %v1819_v63 }
 0x4bf   : >>> { %7802 = vpow2.f32 %v2000_v50 }
 0x4c0   : >>> { %v2002_v33 = vmul.f32 1.442695, %v1888_v46  ;;  %v2004_v49 = vmul.f32 1.442695, %v1889_v5  ;;  %7804 = vrcp.f32 %v2038_v37  ;;  %v7797_v0 = vpop.eup %7796 }
 0x4c1   : >>> { %v2041_v38 = vpop.xlane.xlu1 %2040  ;;  %v1822_v21 = vpop.xlane.xlu0 %1821  ;;  %v2159_v60 = vmul.f32 %v7797_v0, %v9385_v36  ;;  %v2158_v50 = vmul.f32 %v7797_v0, %v9377_v12 }
 0x4c2   : >>> { %7806 = vpow2.f32 %v2002_v33  ;;  %v1890_v20 = vsub.f32 %v9411_v14, %v1822_v21  ;;  %v1891_v11 = vsub.f32 %v9415_v35, %v1822_v21 }
 0x4c3   : >>> { %7808 = vpow2.f32 %v2004_v49 }
 0x4c4   : >>> { %v7799_v47 = vpop.eup %7798  ;;  %7810 = vrcp.f32 %v2041_v38  ;;  %v2006_v44 = vmul.f32 1.442695, %v1890_v20  ;;  %v2008_v34 = vmul.f32 1.442695, %v1891_v11 }
 0x4c5   : >>> { %v1825_v19 = vpop.xlane.xlu1 %1824  ;;  %v2044_v40 = vpop.xlane.xlu0 %2043  ;;  %v2161_v63 = vmul.f32 %v7799_v47, %v9395_v39  ;;  %v2160_v37 = vmul.f32 %v7799_v47, %v9391_v23 }
 0x4c6   : >>> { %7812 = vpow2.f32 %v2006_v44  ;;  %v1892_v14 = vsub.f32 %v9433_v2, %v1825_v19  ;;  %v1893_v35 = vsub.f32 %v9437_v53, %v1825_v19 }
 0x4c7   : >>> { %7814 = vpow2.f32 %v2008_v34  ;;  %v2223_v5 = vpack.c.bf16 %v2161_v63, %v2159_v60  ;;  %v2222_v49 = vpack.c.bf16 %v2160_v37, %v2158_v50 }
 0x4c8   : >>> { %v9649_v21 = vpop.eup %7800  ;;  %v2010_v46 = vmul.f32 1.442695, %v1892_v14  ;;  %v2012_v33 = vmul.f32 1.442695, %v1893_v35  ;;  %7816 = vrcp.f32 %v2044_v40 }
 0x4c9   : >>> { %v9651_v36 = vpop.eup %7802  ;;  %v2047_v39 = vpop.xlane.xlu1 %2046  ;;  %2254 = vmatprep.subr.bf16.mxu1 %v2223_v5 }
 0x4ca   : >>> { %v1828_v12 = vpop.xlane.xlu0 %1827  ;;  %v7805_v38 = vpop.eup %7804  ;;  %7818 = vpow2.f32 %v2010_v46  ;;  %2255 = vmatpush1.bf16.xpose.msra.mxu1 %v2222_v49  ;;  %v2102_v53 = vadd.f32 %v9651_v36, %v9649_v21 }
 0x4cb   : >>> { %v1894_v23 = vsub.f32 %v9445_v61, %v1828_v12  ;;  %v1895_v2 = vsub.f32 %v9449_v13, %v1828_v12  ;;  %7820 = vpow2.f32 %v2012_v33  ;;  %v2163_v19 = vmul.f32 %v7805_v38, %v9417_v8 }
 0x4cc   : >>> { %v9657_v0 = vpop.eup %7806  ;;  %7822 = vrcp.f32 %v2047_v39  ;;  %2103 = vadd.xlane.f32.xlu0 %v2102_v53  ;;  %v2162_v50 = vmul.f32 %v7805_v38, %v9407_v52 }
 0x4cd   : >>> { %v2014_v20 = vmul.f32 1.442695, %v1894_v23  ;;  %v2016_v11 = vmul.f32 1.442695, %v1895_v2  ;;  %v9659_v47 = vpop.eup %7808  ;;  %v1831_v44 = vpop.xlane.xlu1 %1830 }
 0x4ce   : >>> { %v2050_v34 = vpop.xlane.xlu0 %2049  ;;  %v7811_v61 = vpop.eup %7810  ;;  %v1896_v13 = vsub.f32 %v9471_v62, %v1831_v44  ;;  %v1897_v40 = vsub.f32 %v9475_v57, %v1831_v44  ;;  %v2105_v60 = vadd.f32 %v9659_v47, %v9657_v0 }
 0x4cf   : >>> { %7824 = vpow2.f32 %v2014_v20  ;;  %v2165_v63 = vmul.f32 %v7811_v61, %v9429_v58  ;;  %v2164_v37 = vmul.f32 %v7811_v61, %v9425_v28 }
 0x4d0   : >>> { %7826 = vpow2.f32 %v2016_v11  ;;  %v9669_v14 = vpop.eup %7812  ;;  %v2018_v35 = vmul.f32 1.442695, %v1896_v13  ;;  %v2020_v8 = vmul.f32 1.442695, %v1897_v40  ;;  %2106 = vadd.xlane.f32.xlu1 %v2105_v60 }
 0x4d1   : >>> { %v9671_v5 = vpop.eup %7814  ;;  %7828 = vrcp.f32 %v2050_v34  ;;  %v2053_v62 = vpop.xlane.xlu1 %2052  ;;  %v2225_v57 = vpack.c.bf16 %v2165_v63, %v2163_v19  ;;  %v2224_v46 = vpack.c.bf16 %v2164_v37, %v2162_v50 }
 0x4d2   : >>> { %v1834_v49 = vpop.xlane.xlu0 %1833  ;;  %v7817_v33 = vpop.eup %7816  ;;  %7830 = vpow2.f32 %v2018_v35  ;;  %v2108_v28 = vadd.f32 %v9671_v5, %v9669_v14 }
 0x4d3   : >>> { %v1898_v58 = vsub.f32 %v9483_v59, %v1834_v49  ;;  %v1899_v52 = vsub.f32 %v9487_v9, %v1834_v49  ;;  %7832 = vpow2.f32 %v2020_v8  ;;  %2256 = vmatprep.subr.bf16.mxu1 %v2225_v57  ;;  %v2167_v53 = vmul.f32 %v7817_v33, %v9453_v45 }
 0x4d4   : >>> { %v9677_v39 = vpop.eup %7818  ;;  %7834 = vrcp.f32 %v2053_v62  ;;  %2257 = vmatpush1.bf16.xpose.msra.mxu1 %v2224_v46  ;;  %2109 = vadd.xlane.f32.xlu0 %v2108_v28  ;;  %v2166_v19 = vmul.f32 %v7817_v33, %v9451_v15 }
 0x4d5   : >>> { %v2022_v12 = vmul.f32 1.442695, %v1898_v58  ;;  %v2024_v38 = vmul.f32 1.442695, %v1899_v52  ;;  %v9679_v23 = vpop.eup %7820  ;;  %v1837_v2 = vpop.xlane.xlu1 %1836 }
 0x4d6   : >>> { %v7823_v59 = vpop.eup %7822  ;;  %v1900_v9 = vsub.f32 %v9505_v56, %v1837_v2  ;;  %v1901_v20 = vsub.f32 %v9509_v3, %v1837_v2  ;;  %v2056_v11 = vpop.xlane.xlu0 %2055  ;;  %v2111_v44 = vadd.f32 %v9679_v23, %v9677_v39 }
 0x4d7   : >>> { %7836 = vpow2.f32 %v2022_v12  ;;  %v2169_v34 = vmul.f32 %v7823_v59, %v9467_v16  ;;  %v2168_v61 = vmul.f32 %v7823_v59, %v9463_v18 }
 0x4d8   : >>> { %7838 = vpow2.f32 %v2024_v38  ;;  %v2026_v45 = vmul.f32 1.442695, %v1900_v9  ;;  %v2028_v40 = vmul.f32 1.442695, %v1901_v20  ;;  %2112 = vadd.xlane.f32.xlu1 %v2111_v44 }
 0x4d9   : >>> { %v9689_v13 = vpop.eup %7824  ;;  %7840 = vrcp.f32 %v2056_v11  ;;  %v2059_v56 = vpop.xlane.xlu1 %2058  ;;  %v2227_v3 = vpack.c.bf16 %v2169_v34, %v2167_v53  ;;  %v2226_v63 = vpack.c.bf16 %v2168_v61, %v2166_v19 }
 0x4da   : >>> { %v9691_v60 = vpop.eup %7826  ;;  %7842 = vpow2.f32 %v2026_v45 }
 0x4db   : >>> { %v2114_v50 = vadd.f32 %v9691_v60, %v9689_v13  ;;  %v7829_v16 = vpop.eup %7828  ;;  %7844 = vpow2.f32 %v2028_v40  ;;  %2258 = vmatprep.subr.bf16.mxu1 %v2227_v3 }
 0x4dc   : >>> { %v9695_v15 = vpop.eup %7830  ;;  %7846 = vrcp.f32 %v2059_v56  ;;  %2259 = vmatpush1.bf16.xpose.msra.mxu1 %v2226_v63  ;;  %v2171_v62 = vmul.f32 %v7829_v16, %v9489_v55  ;;  %v2170_v49 = vmul.f32 %v7829_v16, %v9479_v51 }
 0x4dd   : >>> { %2115 = vadd.xlane.f32.xlu0 %v2114_v50  ;;  %v9697_v18 = vpop.eup %7832  ;;  %v2062_v37 = vpop.xlane.xlu0 %2061 }
 0x4de   : >>> { %v7835_v35 = vpop.eup %7834  ;;  %v2117_v8 = vadd.f32 %v9697_v18, %v9695_v15  ;;  %7848 = vrcp.f32 %v2062_v37 }
 0x4df   : >>> { %v2173_v57 = vmul.f32 %v7835_v35, %v9501_v10  ;;  %v2172_v46 = vmul.f32 %v7835_v35, %v9497_v31 }
 0x4e0   : >>> { %2118 = vadd.xlane.f32.xlu1 %v2117_v8 }
 0x4e1   : >>> { %v9705_v33 = vpop.eup %7836  ;;  %v2065_v52 = vpop.xlane.xlu1 %2064  ;;  %v2229_v28 = vpack.c.bf16 %v2173_v57, %v2171_v62  ;;  %v2228_v12 = vpack.c.bf16 %v2172_v46, %v2170_v49 }
 0x4e2   : >>> { %v9707_v58 = vpop.eup %7838  ;;  %7850 = vrcp.f32 %v2065_v52 }
 0x4e3   : >>> { %v2120_v38 = vadd.f32 %v9707_v58, %v9705_v33  ;;  %v7841_v55 = vpop.eup %7840  ;;  %2260 = vmatprep.subr.bf16.mxu1 %v2229_v28  ;;  %v12659_v28 = vld [vmem:[#allocation46_spill] sm:$0xff] }
 0x4e4   : >>> { %v9711_v10 = vpop.eup %7842  ;;  %2261 = vmatpush1.bf16.xpose.msra.mxu1 %v2228_v12  ;;  %v2175_v59 = vmul.f32 %v7841_v55, %v9517_v30  ;;  %v2174_v20 = vmul.f32 %v7841_v55, %v9515_v54  ;;  %v12660_v12 = vld [vmem:[#allocation45_spill] sm:$0xff] }
 0x4e5   : >>> { %2121 = vadd.xlane.f32.xlu0 %v2120_v38  ;;  %v9713_v51 = vpop.eup %7844  ;;  %v2068_v31 = vpop.xlane.xlu0 %2067  ;;  %v12661_v38 = vld [vmem:[#allocation44_spill] sm:$0xff] }
 0x4e6   : >>> { %v7847_v2 = vpop.eup %7846  ;;  %v2123_v53 = vadd.f32 %v9713_v51, %v9711_v10  ;;  %7852 = vrcp.f32 %v2068_v31 }
 0x4e7   : >>> { %v2177_v9 = vmul.f32 %v7847_v2, %v9527_v29  ;;  %v2176_v11 = vmul.f32 %v7847_v2, %v9521_v17 }
 0x4e8   : >>> { %2124 = vadd.xlane.f32.xlu1 %v2123_v53  ;;  %v7849_v61 = vpop.eup %7848 }
 0x4e9   : >>> { %v2071_v44 = vpop.xlane.xlu1 %2070  ;;  %v2231_v34 = vpack.c.bf16 %v2177_v9, %v2175_v59  ;;  %v2230_v19 = vpack.c.bf16 %v2176_v11, %v2174_v20  ;;  %v2179_v56 = vmul.f32 %v7849_v61, %v9535_v48  ;;  %v2178_v54 = vmul.f32 %v7849_v61, %v9533_v26  ;;  %v12663_v11 = vld [vmem:[#allocation48_spill] sm:$0xff] }
 0x4ea   : >>> { %7854 = vrcp.f32 %v2071_v44 }
 0x4eb   : >>> { %2262 = vmatprep.subr.bf16.mxu1 %v2231_v34  ;;  %v12664_v34 = vld [vmem:[#allocation47_spill] sm:$0xff] }
 0x4ec   : >>> { %v7851_v45 = vpop.eup %7850  ;;  %2263 = vmatpush1.bf16.xpose.msra.mxu1 %v2230_v19 }
 0x4ed   : >>> { %v2074_v40 = vpop.xlane.xlu0 %2073  ;;  %v2181_v30 = vmul.f32 %v7851_v45, %v9543_v42  ;;  %v2180_v29 = vmul.f32 %v7851_v45, %v9541_v1 }
 0x4ee   : >>> { %7856 = vrcp.f32 %v2074_v40 }
 0x4ef   : >>> { %v2233_v17 = vpack.c.bf16 %v2181_v30, %v2179_v56  ;;  %v2232_v3 = vpack.c.bf16 %v2180_v29, %v2178_v54 }
 0x4f0   : >>> { %v7853_v50 = vpop.eup %7852 }
 0x4f1   : >>> { %v2077_v63 = vpop.xlane.xlu1 %2076  ;;  %2264 = vmatprep.subr.bf16.mxu1 %v2233_v17  ;;  %v2183_v35 = vmul.f32 %v7853_v50, %v9551_v41  ;;  %v2182_v1 = vmul.f32 %v7853_v50, %v9549_v43 }
 0x4f2   : >>> { %7858 = vrcp.f32 %v2077_v63 }
 0x4f4   : >>> { %v7855_v16 = vpop.eup %7854  ;;  %2265 = vmatpush1.bf16.xpose.msra.mxu1 %v2232_v3 }
 0x4f5   : >>> { %v2080_v37 = vpop.xlane.xlu0 %2079  ;;  %v2185_v48 = vmul.f32 %v7855_v16, %v9559_v32  ;;  %v2184_v42 = vmul.f32 %v7855_v16, %v9557_v25 }
 0x4f6   : >>> { %7860 = vrcp.f32 %v2080_v37 }
 0x4f7   : >>> { %v2235_v8 = vpack.c.bf16 %v2185_v48, %v2183_v35  ;;  %v2234_v26 = vpack.c.bf16 %v2184_v42, %v2182_v1  ;;  %v12665_v1 = vld [vmem:[#allocation51_spill] sm:$0xff] }
 0x4f8   : >>> { %v7857_v57 = vpop.eup %7856 }
 0x4f9   : >>> { %v2083_v62 = vpop.xlane.xlu1 %2082  ;;  %2266 = vmatprep.subr.bf16.mxu1 %v2235_v8  ;;  %v2187_v52 = vmul.f32 %v7857_v57, %v9567_v4  ;;  %v2186_v25 = vmul.f32 %v7857_v57, %v12661_v38  ;;  %v12662_v4 = vld [vmem:[#allocation49_spill] sm:$0xff] }
 0x4fa   : >>> { %7862 = vrcp.f32 %v2083_v62 }
 0x4fc   : >>> { %v7859_v49 = vpop.eup %7858  ;;  %2267 = vmatpush1.bf16.xpose.msra.mxu1 %v2234_v26  ;;  %v12666_v26 = vld [vmem:[#allocation53_spill] sm:$0xff] }
 0x4fd   : >>> { %v2086_v46 = vpop.xlane.xlu0 %2085  ;;  %v2189_v41 = vmul.f32 %v7859_v49, %v12659_v28  ;;  %v2188_v32 = vmul.f32 %v7859_v49, %v12660_v12  ;;  %v12668_v49 = vld [vmem:[#allocation50_spill] sm:$0xff]  ;;  %v12669_v28 = vld [vmem:[#allocation55_spill] sm:$0xff]  ;;  %v12670_v12 = vld [vmem:[#allocation57_spill] sm:$0xff] }
 0x4fe   : >>> { %7864 = vrcp.f32 %v2086_v46 }
 0x4ff   : >>> { %v2237_v43 = vpack.c.bf16 %v2189_v41, %v2187_v52  ;;  %v2236_v55 = vpack.c.bf16 %v2188_v32, %v2186_v25  ;;  %v12671_v25 = vld [vmem:[#allocation56_spill] sm:$0xff] }
 0x500   : >>> { %v7861_v2 = vpop.eup %7860 }
 0x501   : >>> { %v2089_v31 = vpop.xlane.xlu1 %2088  ;;  %2268 = vmatprep.subr.bf16.mxu1 %v2237_v43  ;;  %v2191_v9 = vmul.f32 %v7861_v2, %v9583_v6  ;;  %v2190_v19 = vmul.f32 %v7861_v2, %v12664_v34  ;;  %v1448_v6 = vld [vmem:[%s9738_s30 + $0x8] sm:$0xff] }
 0x502   : >>> { %7866 = vrcp.f32 %v2089_v31  ;;  %v1450_v30 = vpack.c.bf16 %v1448_v6, %v1448_v6 }
 0x504   : >>> { %v7863_v53 = vpop.eup %7862  ;;  %2269 = vmatpush1.bf16.xpose.msra.mxu1 %v2236_v55  ;;  %2286 = vmatprep.mubr.bf16.mxu1 %v1450_v30  ;;  %v12672_v55 = vld [vmem:[#allocation54_spill] sm:$0xff] }
 0x505   : >>> { %v2092_v59 = vpop.xlane.xlu0 %2091  ;;  %v2193_v20 = vmul.f32 %v7863_v53, %v12662_v4  ;;  %v2192_v44 = vmul.f32 %v7863_v53, %v12663_v11 }
 0x506   : >>> { %7868 = vrcp.f32 %v2092_v59 }
 0x507   : >>> { %v2095_v61 = vpop.xlane.xlu1 %2094  ;;  %v2239_v45 = vpack.c.bf16 %v2193_v20, %v2191_v9  ;;  %v2238_v40 = vpack.c.bf16 %v2192_v44, %v2190_v19 }
 0x508   : >>> { %7870 = vrcp.f32 %v2095_v61  ;;  %v7865_v56 = vpop.eup %7864 }
 0x509   : >>> { %2270 = vmatprep.subr.bf16.mxu1 %v2239_v45  ;;  %v2195_v17 = vmul.f32 %v7865_v56, %v9599_v7  ;;  %v2194_v50 = vmul.f32 %v7865_v56, %v9597_v24 }
 0x50c   : >>> { %v7867_v29 = vpop.eup %7866  ;;  %2271 = vmatpush1.bf16.xpose.msra.mxu1 %v2238_v40 }
 0x50d   : >>> { %v2098_v54 = vpop.xlane.xlu0 %2097  ;;  %v2197_v3 = vmul.f32 %v7867_v29, %v9609_v27  ;;  %v2196_v63 = vmul.f32 %v7867_v29, %v9605_v22  ;;  %v12667_v27 = vld [vmem:[#allocation52_spill] sm:$0xff] }
 0x50e   : >>> { %7872 = vrcp.f32 %v2098_v54 }
 0x50f   : >>> { %v2101_v16 = vpop.xlane.xlu1 %2100  ;;  %v2241_v37 = vpack.c.bf16 %v2197_v3, %v2195_v17  ;;  %v2240_v48 = vpack.c.bf16 %v2196_v63, %v2194_v50 }
 0x510   : >>> { %v7869_v35 = vpop.eup %7868  ;;  %7874 = vrcp.f32 %v2101_v16 }
 0x511   : >>> { %2272 = vmatprep.subr.bf16.mxu1 %v2241_v37  ;;  %v2199_v8 = vmul.f32 %v7869_v35, %v12665_v1  ;;  %v2198_v46 = vmul.f32 %v7869_v35, %v12668_v49 }
 0x512   : >>> { %v7871_v42 = vpop.eup %7870 }
 0x513   : >>> { %v2201_v62 = vmul.f32 %v7871_v42, %v12666_v26  ;;  %v2200_v57 = vmul.f32 %v7871_v42, %v12667_v27 }
 0x514   : >>> { %2273 = vmatpush1.bf16.xpose.msra.mxu1 %v2240_v48 }
 0x515   : >>> { %v2243_v7 = vpack.c.bf16 %v2201_v62, %v2199_v8  ;;  %v2242_v52 = vpack.c.bf16 %v2200_v57, %v2198_v46 }
 0x517   : >>> { %2274 = vmatprep.subr.bf16.mxu1 %v2243_v7 }
 0x518   : >>> { %v7873_v22 = vpop.eup %7872 }
 0x519   : >>> { %v2203_v41 = vmul.f32 %v7873_v22, %v12669_v28  ;;  %v2202_v31 = vmul.f32 %v7873_v22, %v12672_v55 }
 0x51a   : >>> { %v7875_v24 = vpop.eup %7874 }
 0x51b   : >>> { %v2205_v32 = vmul.f32 %v7875_v24, %v12670_v12  ;;  %v2204_v43 = vmul.f32 %v7875_v24, %v12671_v25 }
 0x51c   : >>> { %2275 = vmatpush1.bf16.xpose.msra.mxu1 %v2242_v52 }
 0x51d   : >>> { %v2245_v38 = vpack.c.bf16 %v2205_v32, %v2203_v41  ;;  %v2244_v2 = vpack.c.bf16 %v2204_v43, %v2202_v31 }
 0x51f   : >>> { %2276 = vmatprep.subr.bf16.mxu1 %v2245_v38 }
 0x524   : >>> { %2277 = vmatpush1.bf16.xpose.msra.mxu1 %v2244_v2  ;;  %v7894_v2 = vld [vmem:[%s2324_s5] sm:$0xff] (%p1417_p4)  }
 0x525   : >> { %7101 = vmatprep.subr.bf16.mxu0 (%p1417_p4), %v7894_v2 }
 0x526   : >> { %7102 = vmatpush3.bf16.msra.mxu0 (%p1417_p4), %v7894_v2 }
 0x559   : >>> { %v2104_v53 = vpop.xlane.xlu0 %2103 }
 0x55a   : >>> { %7876 = vrcp.f32 %v2104_v53 }
 0x55d   : >>> { %v2107_v59 = vpop.xlane.xlu1 %2106 }
 0x55e   : >>> { %7878 = vrcp.f32 %v2107_v59  ;;  %v7895_v59 = vld [vmem:[%s2324_s5 + $0x8] sm:$0xff] (%p1417_p4)  }
 0x55f   : >> { %7103 = vmatprep.subr.bf16.mxu0 (%p1417_p4), %v7895_v59 }
 0x560   : >> { %7104 = vmatpush3.bf16.msra.mxu0 (%p1417_p4), %v7895_v59 }
 0x561   : >>> { %v2110_v9 = vpop.xlane.xlu0 %2109 }
 0x562   : >>> { %7880 = vrcp.f32 %v2110_v9 }
 0x564   : >>> { %v7877_v20 = vpop.eup %7876 }
 0x565   : >>> { %v2113_v4 = vpop.xlane.xlu1 %2112  ;;  %v2207_v34 = vmul.f32 %v7877_v20, %v9651_v36  ;;  %v2206_v61 = vmul.f32 %v7877_v20, %v9649_v21  ;;  %v7896_v20 = vld [vmem:[%s2324_s5 + $0x10] sm:$0xff] (%p1417_p4)  }
 0x566   : >>> { %7882 = vrcp.f32 %v2113_v4  ;;  %7105 = vmatprep.subr.bf16.mxu0 (%p1417_p4), %v7896_v20 }
 0x567   : >> { %7106 = vmatpush3.bf16.msra.mxu0 (%p1417_p4), %v7896_v20 }
 0x568   : >>> { %v7879_v11 = vpop.eup %7878 }
 0x569   : >>> { %v2209_v19 = vmul.f32 %v7879_v11, %v9659_v47  ;;  %v2208_v45 = vmul.f32 %v7879_v11, %v9657_v0 }
 0x56a   : >>> { %v2116_v44 = vpop.xlane.xlu0 %2115 }
 0x56b   : >>> { %v2247_v40 = vpack.c.bf16 %v2209_v19, %v2207_v34  ;;  %v2246_v56 = vpack.c.bf16 %v2208_v45, %v2206_v61  ;;  %7884 = vrcp.f32 %v2116_v44  ;;  %v7897_v61 = vld [vmem:[%s2324_s5 + $0x18] sm:$0xff] (%p1417_p4)  }
 0x56c   : >>> { %v7881_v30 = vpop.eup %7880  ;;  %7107 = vmatprep.subr.bf16.mxu0 (%p1417_p4), %v7897_v61  ;;  %v12673_v45 = vld [vmem:[#allocation8_spill] sm:$0xff] (%p1417_p4) }
 0x56d   : >>> { %v2119_v6 = vpop.xlane.xlu1 %2118  ;;  %2278 = vmatprep.subr.bf16.mxu1 %v2247_v40  ;;  %v2211_v17 = vmul.f32 %v7881_v30, %v9671_v5  ;;  %v2210_v47 = vmul.f32 %v7881_v30, %v9669_v14  ;;  %7108 = vmatpush3.bf16.msra.mxu0 (%p1417_p4), %v7897_v61  ;;  %v12674_v40 = vmov (%p1417_p4), 0  }
 0x56e   : >>> { %7886 = vrcp.f32 %v2119_v6  ;;  %2279 = vmatpush1.bf16.xpose.msra.mxu1 %v2246_v56  ;;  %7371 = vmatprep.subr.msk.bf16.mxu0 (%p1417_p4), %vm1129_vm4, %v12673_v45 }
 0x570   : >>> { %v7883_v29 = vpop.eup %7882 }
 0x571   : >>> { %v2213_v36 = vmul.f32 %v7883_v29, %v9679_v23  ;;  %v2212_v21 = vmul.f32 %v7883_v29, %v9677_v39 }
 0x572   : >>> { %v2122_v54 = vpop.xlane.xlu0 %2121 }
 0x573   : >>> { %v2249_v3 = vpack.c.bf16 %v2213_v36, %v2211_v17  ;;  %v2248_v0 = vpack.c.bf16 %v2212_v21, %v2210_v47  ;;  %7888 = vrcp.f32 %v2122_v54 }
 0x575   : >>> { %v2125_v63 = vpop.xlane.xlu1 %2124  ;;  %2280 = vmatprep.subr.bf16.mxu1 %v2249_v3  ;;  %v7885_v50 = vpop.eup %7884 }
 0x576   : >>> { %7890 = vrcp.f32 %v2125_v63  ;;  %2281 = vmatpush1.bf16.xpose.msra.mxu1 %v2248_v0  ;;  %v2215_v37 = vmul.f32 %v7885_v50, %v9691_v60  ;;  %v2214_v5 = vmul.f32 %v7885_v50, %v9689_v13 }
 0x578   : >>> { %v7887_v16 = vpop.eup %7886 }
 0x579   : >>> { %v2217_v35 = vmul.f32 %v7887_v16, %v9697_v18  ;;  %v2216_v14 = vmul.f32 %v7887_v16, %v9695_v15  ;;  %v1447_v15 = vld [vmem:[%s9738_s30] sm:$0xff] }
 0x57a   : >>> { %v1449_v62 = vpack.c.bf16 %v1447_v15, %v1447_v15 }
 0x57b   : >>> { %v2251_v23 = vpack.c.bf16 %v2217_v35, %v2215_v37  ;;  %v2250_v39 = vpack.c.bf16 %v2216_v14, %v2214_v5  ;;  %v9805_v5 = vld [vmem:[%s2333_s27] ss:$0 sm:$0xff] (%p1417_p4) }
 0x57d   : >>> { %2282 = vmatprep.subr.bf16.mxu1 %v2251_v23  ;;  %v7889_v48 = vpop.eup %7888 }
 0x57e   : >>> { %2283 = vmatpush1.bf16.xpose.msra.mxu1 %v2250_v39  ;;  %v2219_v1 = vmul.f32 %v7889_v48, %v9707_v58  ;;  %v2218_v60 = vmul.f32 %v7889_v48, %v9705_v33 }
 0x580   : >>> { %v7891_v42 = vpop.eup %7890 }
 0x581   : >>> { %v2221_v8 = vmul.f32 %v7891_v42, %v9713_v51  ;;  %v2220_v18 = vmul.f32 %v7891_v42, %v9711_v10 }
 0x583   : >>> { %v2253_v26 = vpack.c.bf16 %v2221_v8, %v2219_v1  ;;  %v2252_v13 = vpack.c.bf16 %v2220_v18, %v2218_v60  ;;  %v12675_v1 = vld [vmem:[#allocation40_spill] sm:$0xff] (%p1417_p4)  ;;  %v12676_v18 = vld [vmem:[#allocation39_spill] sm:$0xff] (%p1417_p4) }
 0x585   : >>> { %2284 = vmatprep.subr.bf16.mxu1 %v2253_v26 }
 0x586   : >>> { %2285 = vmatpush1.bf16.xpose.msra.mxu1 %v2252_v13 }
 0x58d   : >>> { %2287 = vmatmul.mubr.bf16.vlgmr.msra.gmra.mrb[0].mxu1 %v1449_v62 }
 0x65d   : >> { %1419 = sbr.rel (!%p1417_p4) target bundleno = 575 (0x23f), region = 192 }
 0x660   : >>> { %v2288_v7 = vpop.f32.mrb[0].mxu1 }
 0x661   : >>> { %2297 = vst [vmem:[%s2296_s1] sm:$0xff] %v2288_v7  ;;  %v2290_v27 = vpop.f32.mrb[1].mxu1 }
 0x662   : >>> { %2298 = vst [vmem:[%s2296_s1 + $0x8] sm:$0xff] %v2290_v27  ;;  %v2292_v57 = vpop.f32.mrb[2].mxu1 }
 0x663   : >>> { %v2293_v58 = vpop.f32.mrb[3].mxu1 }
 0x669   : >> { %v2299_v33 = vld [vmem:[#allocation4] sm:$0xff]  ;;  %v2301_v10 = vld [vmem:[#allocation4 + $0x10] sm:$0xff]  ;;  %v2300_v46 = vld [vmem:[#allocation4 + $0x8] sm:$0xff] }
 0x66a   : >> { %v2303_v51 = vld [vmem:[#allocation4 + $0x20] sm:$0xff]  ;;  %v2315_v22 = vpack.c.bf16 %v2301_v10, %v2299_v33  ;;  %v2305_v49 = vld [vmem:[#allocation4 + $0x30] sm:$0xff]  ;;  %v2302_v52 = vld [vmem:[#allocation4 + $0x18] sm:$0xff] }
 0x66b   : >> { %v2317_v24 = vpack.c.bf16 %v2305_v49, %v2303_v51  ;;  %v2304_v28 = vld [vmem:[#allocation4 + $0x28] sm:$0xff]  ;;  %v2306_v41 = vld [vmem:[#allocation4 + $0x38] sm:$0xff]  ;;  %v2307_v12 = vld [vmem:[#allocation4 + $0x40] sm:$0xff]  ;;  %v2316_v38 = vpack.c.bf16 %v2302_v52, %v2300_v46 }
 0x66c   : >> { %2341 = vxpose.xlu0.c.b16.start [1/4] (short) %v2315_v22, 128  ;;  %v2309_v32 = vld [vmem:[#allocation4 + $0x50] sm:$0xff]  ;;  %v2308_v25 = vld [vmem:[#allocation4 + $0x48] sm:$0xff]  ;;  %v2310_v43 = vld [vmem:[#allocation4 + $0x58] sm:$0xff]  ;;  %v2318_v31 = vpack.c.bf16 %v2306_v41, %v2304_v28 }
 0x66d   : >> { %v2311_v55 = vld [vmem:[#allocation4 + $0x60] sm:$0xff]  ;;  %2357 = vxpose.xlu1.c.b16.start [1/4] (short) %v2316_v38, 128  ;;  %v2319_v53 = vpack.c.bf16 %v2309_v32, %v2307_v12  ;;  %v2313_v9 = vld [vmem:[#allocation4 + $0x70] sm:$0xff]  ;;  %v2320_v4 = vpack.c.bf16 %v2310_v43, %v2308_v25  ;;  %v2312_v44 = vld [vmem:[#allocation4 + $0x68] sm:$0xff] }
 0x66e   : >> { %v2321_v11 = vpack.c.bf16 %v2313_v9, %v2311_v55  ;;  %v2314_v34 = vld [vmem:[#allocation4 + $0x78] sm:$0xff]  ;;  %v12677_v9 = vld [vmem:[#allocation24_spill] sm:$0xff] }
 0x66f   : >> { %v2322_v19 = vpack.c.bf16 %v2314_v34, %v2312_v44 }
 0x670   : >> { %2342 = vxpose.xlu0.c.b16.cont [2/4] (short) %v2317_v24, 128 }
 0x671   : >> { %2358 = vxpose.xlu1.c.b16.cont [2/4] (short) %v2318_v31, 128 }
 0x674   : >> { %2343 = vxpose.xlu0.c.b16.cont [3/4] (short) %v2319_v53, 128 }
 0x675   : >> { %2359 = vxpose.xlu1.c.b16.cont [3/4] (short) %v2320_v4, 128 }
 0x678   : >> { %2344 = vxpose.xlu0.c.b16.end [4/4] (short) %v2321_v11, 128  ;;  %v12678_v11 = vld [vmem:[#allocation38_spill] sm:$0xff] }
 0x679   : >> { %2360 = vxpose.xlu1.c.b16.end [4/4] (short) %v2322_v19, 128  ;;  %v12679_v19 = vld [vmem:[#allocation23_spill] sm:$0xff] }
 0x67d   : >> { %7893 = vset.pattern.permute.xlu1 %v12674_v40 }
 0x681   : >> { %7892 = vset.pattern.permute.xlu0 %v12674_v40 }
 0x6d2   : >> { %v2349_v56 = vpop.trf.xlu0 }
 0x6d3   : >> { %7109 = vmatprep.mubr.msk.bf16.mxu0 %vm1129_vm4, %v2349_v56  ;;  %v2365_v36 = vpop.trf.xlu1  ;;  %v12680_v56 = vld [vmem:[#allocation37_spill] sm:$0xff] }
 0x6d6   : >> { %v2350_v6 = vpop.trf.xlu0 }
 0x6d7   : >> { %7110 = vmatmul.mubr.msk.bf16.vlgmr.msra.gmra.mrb[0].mxu0 %vm1129_vm4, %v2350_v6  ;;  %v2366_v3 = vpop.trf.xlu1 }
 0x6da   : >> { %v2351_v30 = vpop.trf.xlu0 }
 0x6db   : >> { %7113 = vmatprep.mubr.msk.bf16.mxu0 %vm1129_vm4, %v2351_v30  ;;  %v2367_v0 = vpop.trf.xlu1 }
 0x6de   : >> { %v2352_v29 = vpop.trf.xlu0 }
 0x6df   : >> { %7114 = vmatmul.mubr.msk.bf16.gmra.mrb[4].mxu0 %vm1129_vm4, %v2352_v29  ;;  %v2368_v63 = vpop.trf.xlu1 }
 0x6e2   : >> { %v2353_v54 = vpop.trf.xlu0 }
 0x6e3   : >> { %7117 = vmatprep.mubr.msk.bf16.mxu0 %vm1129_vm4, %v2353_v54  ;;  %v2369_v50 = vpop.trf.xlu1 }
 0x6e6   : >> { %v2354_v17 = vpop.trf.xlu0 }
 0x6e7   : >> { %7118 = vmatmul.mubr.msk.bf16.gmra.mrb[8].mxu0 %vm1129_vm4, %v2354_v17  ;;  %v2370_v16 = vpop.trf.xlu1 }
 0x6ea   : >> { %v2355_v47 = vpop.trf.xlu0 }
 0x6eb   : >> { %7121 = vmatprep.mubr.msk.bf16.mxu0 %vm1129_vm4, %v2355_v47  ;;  %v2371_v37 = vpop.trf.xlu1  ;;  %v12681_v47 = vld [vmem:[#allocation22_spill] sm:$0xff] }
 0x6ee   : >> { %v2356_v21 = vpop.trf.xlu0 }
 0x6ef   : >> { %7122 = vmatmul.mubr.msk.bf16.gmra.mrb[12].mxu0 %vm1129_vm4, %v2356_v21  ;;  %v2372_v35 = vpop.trf.xlu1 }
 0x6f0   : >> { %7125 = vmatprep.mubr.msk.bf16.mxu0 %vm1129_vm4, %v2365_v36 }
 0x6f7   : >> { %7126 = vmatmul.mubr.msk.bf16.gmra.mrb[16].mxu0 %vm1129_vm4, %v2366_v3 }
 0x6f8   : >> { %7129 = vmatprep.mubr.msk.bf16.mxu0 %vm1129_vm4, %v2367_v0 }
 0x6ff   : >> { %7130 = vmatmul.mubr.msk.bf16.gmra.mrb[20].mxu0 %vm1129_vm4, %v2368_v63 }
 0x700   : >> { %7133 = vmatprep.mubr.msk.bf16.mxu0 %vm1129_vm4, %v2369_v50 }
 0x707   : >> { %7134 = vmatmul.mubr.msk.bf16.gmra.mrb[24].mxu0 %vm1129_vm4, %v2370_v16  ;;  %v12682_v16 = vld [vmem:[#allocation21_spill] sm:$0xff] }
 0x708   : >> { %7137 = vmatprep.mubr.msk.bf16.mxu0 %vm1129_vm4, %v2371_v37 }
 0x70f   : >> { %7138 = vmatmul.mubr.msk.bf16.gmra.mrb[28].mxu0 %vm1129_vm4, %v2372_v35 }
 0x7aa   : >> { %v7111_v14 = vpop.f32.mrb[0].mxu0 }
 0x7ab   : >> { %v2479_v23 = vpop.f32.mrb[1].mxu0  ;;  %v2488_v55 = vadd.f32 %v7111_v14, %v9805_v5 }
 0x7ac   : >> { %v2480_v39 = vadd.f32 %v9805_v5, %v2479_v23  ;;  %v7112_v48 = vpop.f32.mrb[2].mxu0  ;;  %v12683_v23 = vld [vmem:[#allocation36_spill] sm:$0xff] }
 0x7ad   : >> { %v2482_v42 = vpop.f32.mrb[3].mxu0  ;;  %v2491_v59 = vadd.f32 %v7112_v48, %v9805_v5  ;;  %v9849_v44 = vadd.f32 %v12678_v11, %v2488_v55  ;;  %v12686_v55 = vld [vmem:[#allocation19_spill] sm:$0xff] }
 0x7ae   : >> { %v9809_v8 = vadd.f32 %v12675_v1, %v2480_v39  ;;  %v2483_v60 = vadd.f32 %v9805_v5, %v2482_v42  ;;  %v12684_v42 = vld [vmem:[#allocation35_spill] sm:$0xff] }
 0x7af   : >> { %v9858_v6 = vadd.f32 %v12680_v56, %v2491_v59  ;;  %v2644_v3 = vsel %vm1129_vm4, %v9849_v44, 0.0  ;;  %v12687_v59 = vld [vmem:[#allocation34_spill] sm:$0xff] }
 0x7b0   : >> { %v9813_v26 = vadd.f32 %v12676_v18, %v2483_v60  ;;  %v2638_v13 = vsel %vm1129_vm4, %v9809_v8, 0.0  ;;  %v12685_v60 = vld [vmem:[#allocation20_spill] sm:$0xff] }
 0x7b1   : >> { %2639 = vadd.xlane.f32.xlu0 %v2638_v13  ;;  %v2647_v35 = vsel %vm1129_vm4, %v9858_v6, 0.0 }
 0x7b2   : >> { %v7115_v15 = vpop.f32.mrb[4].mxu0  ;;  %v2641_v62 = vsel %vm1129_vm4, %v9813_v26, 0.0 }
 0x7b3   : >> { %2642 = vadd.xlane.f32.xlu1 %v2641_v62  ;;  %v2495_v7 = vpop.f32.mrb[5].mxu0 }
 0x7b4   : >> { %v7116_v27 = vpop.f32.mrb[6].mxu0  ;;  %v2496_v36 = vadd.f32 %v9805_v5, %v2495_v7 }
 0x7b5   : >> { %v2498_v57 = vpop.f32.mrb[7].mxu0 }
 0x7b6   : >> { %v2499_v50 = vadd.f32 %v9805_v5, %v2498_v57  ;;  %v9877_v39 = vadd.f32 %v12683_v23, %v2496_v36  ;;  %v12691_v23 = vld [vmem:[#allocation32_spill] sm:$0xff] }
 0x7b8   : >> { %v9882_v1 = vadd.f32 %v12684_v42, %v2499_v50 }
 0x7ba   : >> { %v7119_v58 = vpop.f32.mrb[8].mxu0 }
 0x7bb   : >> { %v9820_v33 = vadd.f32 %v7119_v58, %v9805_v5  ;;  %v9822_v10 = vpop.f32.mrb[9].mxu0 }
 0x7bc   : >> { %v7120_v51 = vpop.f32.mrb[10].mxu0 }
 0x7bd   : >> { %v9825_v22 = vadd.f32 %v7120_v51, %v9805_v5  ;;  %v9827_v49 = vpop.f32.mrb[11].mxu0  ;;  %v2504_v51 = vadd.f32 %v7115_v15, %v9805_v5 }
 0x7be   : >> { %v2515_v50 = vadd.f32 %v9805_v5, %v9827_v49  ;;  %v12693_v49 = vld [vmem:[#allocation16_spill] sm:$0xff] }
 0x7c2   : >> { %v7123_v46 = vpop.f32.mrb[12].mxu0 }
 0x7c3   : >> { %v9830_v24 = vadd.f32 %v7123_v46, %v9805_v5  ;;  %v2527_v52 = vpop.f32.mrb[13].mxu0  ;;  %v2650_v46 = vsel %vm1129_vm4, %v9877_v39, 0.0 }
 0x7c4   : >> { %v9833_v28 = vadd.f32 %v9805_v5, %v2527_v52  ;;  %v7124_v41 = vpop.f32.mrb[14].mxu0 }
 0x7c5   : >> { %v9836_v12 = vadd.f32 %v7124_v41, %v9805_v5  ;;  %v2530_v32 = vpop.f32.mrb[15].mxu0 }
 0x7c6   : >> { %v9839_v38 = vadd.f32 %v9805_v5, %v2530_v32  ;;  %v2507_v32 = vadd.f32 %v7116_v27, %v9805_v5 }
 0x7ca   : >> { %v7127_v25 = vpop.f32.mrb[16].mxu0 }
 0x7cb   : >> { %v2543_v43 = vpop.f32.mrb[17].mxu0  ;;  %v2552_v34 = vadd.f32 %v7127_v25, %v9805_v5 }
 0x7cc   : >> { %v2544_v31 = vadd.f32 %v9805_v5, %v2543_v43  ;;  %v7128_v2 = vpop.f32.mrb[18].mxu0 }
 0x7cd   : >> { %v2546_v53 = vpop.f32.mrb[19].mxu0  ;;  %v2555_v30 = vadd.f32 %v7128_v2, %v9805_v5  ;;  %v9865_v21 = vadd.f32 %v12681_v47, %v2552_v34  ;;  %v2653_v2 = vsel %vm1129_vm4, %v9882_v1, 0.0 }
 0x7ce   : >> { %v9845_v4 = vadd.f32 %v12677_v9, %v2544_v31  ;;  %v2547_v20 = vadd.f32 %v9805_v5, %v2546_v53  ;;  %v9906_v9 = vadd.f32 %v12687_v59, %v2504_v51 }
 0x7cf   : >> { %v9871_v37 = vadd.f32 %v12682_v16, %v2555_v30  ;;  %v2692_v48 = vsel %vm1129_vm4, %v9865_v21, 0.0  ;;  %v12690_v16 = vld [vmem:[#allocation17_spill] sm:$0xff] }
 0x7d0   : >> { %v9853_v61 = vadd.f32 %v12679_v19, %v2547_v20  ;;  %v2686_v40 = vsel %vm1129_vm4, %v9845_v4, 0.0  ;;  %v12688_v20 = vld [vmem:[#allocation33_spill] sm:$0xff] }
 0x7d1   : >> { %2687 = vadd.xlane.f32.xlu0 %v2686_v40  ;;  %v2695_v62 = vsel %vm1129_vm4, %v9871_v37, 0.0  ;;  %v9910_v11 = vadd.f32 %v12688_v20, %v2507_v32 }
 0x7d2   : >> { %v2689_v29 = vsel %vm1129_vm4, %v9853_v61, 0.0  ;;  %v7131_v54 = vpop.f32.mrb[20].mxu0 }
 0x7d3   : >> { %2690 = vadd.xlane.f32.xlu1 %v2689_v29  ;;  %v2559_v17 = vpop.f32.mrb[21].mxu0  ;;  %v2568_v27 = vadd.f32 %v7131_v54, %v9805_v5  ;;  %v2512_v29 = vadd.f32 %v9805_v5, %v9822_v10  ;;  %v2656_v54 = vsel %vm1129_vm4, %v9906_v9, 0.0  ;;  %v2659_v10 = vsel %vm1129_vm4, %v9910_v11, 0.0 }
 0x7d4   : >> { %v7132_v0 = vpop.f32.mrb[22].mxu0  ;;  %v2560_v14 = vadd.f32 %v9805_v5, %v2559_v17  ;;  %v12689_v17 = vld [vmem:[#allocation18_spill] sm:$0xff] }
 0x7d5   : >> { %2645 = vadd.xlane.f32.xlu0 %v2644_v3  ;;  %v2562_v63 = vpop.f32.mrb[23].mxu0  ;;  %v2571_v34 = vadd.f32 %v7132_v0, %v9805_v5  ;;  %v9919_v36 = vadd.f32 %v12689_v17, %v2568_v27  ;;  %v12698_v27 = vld [vmem:[#allocation13_spill] sm:$0xff] }
 0x7d6   : >> { %v9885_v18 = vadd.f32 %v12685_v60, %v2560_v14  ;;  %v2563_v13 = vadd.f32 %v9805_v5, %v2562_v63  ;;  %v12692_v60 = vld [vmem:[#allocation31_spill] sm:$0xff] }
 0x7d7   : >> { %2648 = vadd.xlane.f32.xlu1 %v2647_v35  ;;  %v9928_v35 = vadd.f32 %v12690_v16, %v2571_v34  ;;  %v2704_v42 = vsel %vm1129_vm4, %v9919_v36, 0.0 }
 0x7d8   : >> { %v9898_v31 = vadd.f32 %v12686_v55, %v2563_v13  ;;  %v2698_v15 = vsel %vm1129_vm4, %v9885_v18, 0.0  ;;  %v9939_v13 = vadd.f32 %v12692_v60, %v2515_v50  ;;  %v12704_v50 = vld [vmem:[#allocation25_spill] sm:$0xff] }
 0x7d9   : >> { %2693 = vadd.xlane.f32.xlu0 %v2692_v48  ;;  %v9934_v48 = vadd.f32 %v12691_v23, %v2512_v29  ;;  %v10005_v16 = vadd.f32 %v12704_v50, %v9836_v12  ;;  %v12706_v60 = vld [vmem:[#allocation9_spill] sm:$0xff] }
 0x7da   : >> { %v7135_v7 = vpop.f32.mrb[24].mxu0  ;;  %v2701_v19 = vsel %vm1129_vm4, %v9898_v31, 0.0 }
 0x7db   : >> { %2696 = vadd.xlane.f32.xlu1 %v2695_v62  ;;  %v2584_v57 = vadd.f32 %v7135_v7, %v9805_v5  ;;  %v2575_v58 = vpop.f32.mrb[25].mxu0  ;;  %v2707_v7 = vsel %vm1129_vm4, %v9928_v35, 0.0 }
 0x7dc   : >> { %v2576_v52 = vadd.f32 %v9805_v5, %v2575_v58  ;;  %v7136_v41 = vpop.f32.mrb[26].mxu0  ;;  %v12694_v58 = vld [vmem:[#allocation15_spill] sm:$0xff] }
 0x7dd   : >> { %2651 = vadd.xlane.f32.xlu0 %v2650_v46  ;;  %v2587_v25 = vadd.f32 %v7136_v41, %v9805_v5  ;;  %v2578_v43 = vpop.f32.mrb[27].mxu0  ;;  %v2665_v46 = vsel %vm1129_vm4, %v9939_v13, 0.0 }
 0x7de   : >> { %v2579_v53 = vadd.f32 %v9805_v5, %v2578_v43  ;;  %v9942_v62 = vadd.f32 %v12693_v49, %v2576_v52  ;;  %v12695_v52 = vld [vmem:[#allocation30_spill] sm:$0xff]  ;;  %v12696_v43 = vld [vmem:[#allocation29_spill] sm:$0xff] }
 0x7df   : >> { %2654 = vadd.xlane.f32.xlu1 %v2653_v2  ;;  %v9957_v32 = vadd.f32 %v12695_v52, %v9820_v33  ;;  %v9961_v55 = vadd.f32 %v12696_v43, %v9825_v22  ;;  %v9971_v20 = vadd.f32 %v12698_v27, %v2587_v25  ;;  %v12699_v22 = vld [vmem:[#allocation28_spill] sm:$0xff] }
 0x7e0   : >> { %v9949_v51 = vadd.f32 %v12694_v58, %v2579_v53  ;;  %v2710_v41 = vsel %vm1129_vm4, %v9942_v62, 0.0  ;;  %v9977_v34 = vadd.f32 %v12699_v22, %v9833_v28  ;;  %v12702_v28 = vld [vmem:[#allocation11_spill] sm:$0xff] }
 0x7e1   : >> { %2699 = vadd.xlane.f32.xlu0 %v2698_v15  ;;  %v12697_v15 = vld [vmem:[#allocation14_spill] sm:$0xff]  ;;  %v2668_v59 = vsel %vm1129_vm4, %v9957_v32, 0.0  ;;  %v2671_v33 = vsel %vm1129_vm4, %v9961_v55, 0.0  ;;  %v2719_v25 = vsel %vm1129_vm4, %v9971_v20, 0.0 }
 0x7e2   : >> { %v7139_v40 = vpop.f32.mrb[28].mxu0  ;;  %v2713_v2 = vsel %vm1129_vm4, %v9949_v51, 0.0  ;;  %v9966_v53 = vadd.f32 %v12697_v15, %v2584_v57  ;;  %v12700_v57 = vld [vmem:[#allocation27_spill] sm:$0xff]  ;;  %v2674_v17 = vsel %vm1129_vm4, %v9977_v34, 0.0 }
 0x7e3   : >> { %2702 = vadd.xlane.f32.xlu1 %v2701_v19  ;;  %v2600_v56 = vadd.f32 %v7139_v40, %v9805_v5  ;;  %v2591_v30 = vpop.f32.mrb[29].mxu0  ;;  %v9983_v40 = vadd.f32 %v12700_v57, %v9839_v38 }
 0x7e4   : >> { %v2592_v47 = vadd.f32 %v9805_v5, %v2591_v30  ;;  %v7140_v3 = vpop.f32.mrb[30].mxu0  ;;  %v2716_v19 = vsel %vm1129_vm4, %v9966_v53, 0.0  ;;  %v12701_v30 = vld [vmem:[#allocation12_spill] sm:$0xff] }
 0x7e5   : >> { %2657 = vadd.xlane.f32.xlu0 %v2656_v54  ;;  %v2603_v0 = vadd.f32 %v7140_v3, %v9805_v5  ;;  %v2594_v63 = vpop.f32.mrb[31].mxu0  ;;  %v2677_v3 = vsel %vm1129_vm4, %v9983_v40, 0.0 }
 0x7e6   : >> { %v2595_v14 = vadd.f32 %v9805_v5, %v2594_v63  ;;  %v2662_v5 = vsel %vm1129_vm4, %v9934_v48, 0.0  ;;  %v9986_v29 = vadd.f32 %v12701_v30, %v2592_v47  ;;  %v12703_v47 = vld [vmem:[#allocation26_spill] sm:$0xff] }
 0x7e7   : >> { %2660 = vadd.xlane.f32.xlu1 %v2659_v10  ;;  %v10001_v63 = vadd.f32 %v12703_v47, %v9830_v24  ;;  %v10015_v49 = vadd.f32 %v12706_v60, %v2603_v0  ;;  %v2683_v24 = vsel %vm1129_vm4, %v10005_v16, 0.0 }
 0x7e8   : >> { %v9993_v54 = vadd.f32 %v12702_v28, %v2595_v14  ;;  %v2722_v38 = vsel %vm1129_vm4, %v9986_v29, 0.0  ;;  %v12705_v14 = vld [vmem:[#allocation10_spill] sm:$0xff] }
 0x7e9   : >> { %2705 = vadd.xlane.f32.xlu0 %v2704_v42  ;;  %v10010_v23 = vadd.f32 %v12705_v14, %v2600_v56  ;;  %v2680_v42 = vsel %vm1129_vm4, %v10001_v63, 0.0 }
 0x7ea   : >> { %v2725_v10 = vsel %vm1129_vm4, %v9993_v54, 0.0 }
 0x7eb   : >> { %2708 = vadd.xlane.f32.xlu1 %v2707_v7  ;;  %v2728_v12 = vsel %vm1129_vm4, %v10010_v23, 0.0  ;;  %v2731_v7 = vsel %vm1129_vm4, %v10015_v49, 0.0 }
 0x7ed   : >> { %2663 = vadd.xlane.f32.xlu0 %v2662_v5 }
 0x7ef   : >> { %2666 = vadd.xlane.f32.xlu1 %v2665_v46 }
 0x7f1   : >> { %2711 = vadd.xlane.f32.xlu0 %v2710_v41 }
 0x7f3   : >> { %2714 = vadd.xlane.f32.xlu1 %v2713_v2 }
 0x7f5   : >> { %2669 = vadd.xlane.f32.xlu0 %v2668_v59 }
 0x7f7   : >> { %2672 = vadd.xlane.f32.xlu1 %v2671_v33 }
 0x7f9   : >> { %2717 = vadd.xlane.f32.xlu0 %v2716_v19 }
 0x7fb   : >> { %2720 = vadd.xlane.f32.xlu1 %v2719_v25 }
 0x7fd   : >> { %2675 = vadd.xlane.f32.xlu0 %v2674_v17 }
 0x7ff   : >> { %2678 = vadd.xlane.f32.xlu1 %v2677_v3 }
 0x801   : >> { %2723 = vadd.xlane.f32.xlu0 %v2722_v38 }
 0x803   : >> { %2726 = vadd.xlane.f32.xlu1 %v2725_v10 }
 0x805   : >> { %2681 = vadd.xlane.f32.xlu0 %v2680_v42 }
 0x807   : >> { %2684 = vadd.xlane.f32.xlu1 %v2683_v24 }
 0x809   : >> { %2729 = vadd.xlane.f32.xlu0 %v2728_v12 }
 0x80b   : >> { %2732 = vadd.xlane.f32.xlu1 %v2731_v7 }
 0x83e   : >> { %v2640_v56 = vpop.xlane.xlu0 %2639 }
 0x83f   : >> { %v2735_v5 = vmul.f32 0.015625, %v2640_v56 }
 0x840   : >> { %v2643_v58 = vpop.xlane.xlu1 %2642 }
 0x841   : >> { %v10024_v46 = vsub.f32 %v9809_v8, %v2735_v5  ;;  %v2736_v0 = vmul.f32 0.015625, %v2643_v58 }
 0x843   : >> { %v10027_v41 = vsub.f32 %v9813_v26, %v2736_v0  ;;  %v2799_v52 = vmul.f32 %v10024_v46, %v10024_v46 }
 0x845   : >> { %v2831_v43 = vsel %vm1129_vm4, %v2799_v52, 0.0  ;;  %v2800_v2 = vmul.f32 %v10027_v41, %v10027_v41 }
 0x846   : >> { %2832 = vadd.xlane.f32.xlu0 %v2831_v43 }
 0x847   : >> { %v2834_v15 = vsel %vm1129_vm4, %v2800_v2, 0.0 }
 0x848   : >> { %2835 = vadd.xlane.f32.xlu1 %v2834_v15 }
 0x85e   : >> { %v2688_v59 = vpop.xlane.xlu0 %2687 }
 0x85f   : >> { %v2751_v27 = vmul.f32 0.015625, %v2688_v59 }
 0x860   : >> { %v2691_v8 = vpop.xlane.xlu1 %2690 }
 0x861   : >> { %v10036_v33 = vsub.f32 %v9845_v4, %v2751_v27  ;;  %v2752_v26 = vmul.f32 0.015625, %v2691_v8 }
 0x862   : >> { %v2646_v22 = vpop.xlane.xlu0 %2645 }
 0x863   : >> { %v10039_v19 = vsub.f32 %v9853_v61, %v2752_v26  ;;  %v2737_v57 = vmul.f32 0.015625, %v2646_v22  ;;  %v2815_v30 = vmul.f32 %v10036_v33, %v10036_v33 }
 0x864   : >> { %v2649_v25 = vpop.xlane.xlu1 %2648 }
 0x865   : >> { %v10044_v17 = vsub.f32 %v9849_v44, %v2737_v57  ;;  %v2738_v28 = vmul.f32 0.015625, %v2649_v25  ;;  %v2879_v3 = vsel %vm1129_vm4, %v2815_v30, 0.0  ;;  %v2816_v4 = vmul.f32 %v10039_v19, %v10039_v19 }
 0x866   : >> { %2880 = vadd.xlane.f32.xlu0 %v2879_v3  ;;  %v2694_v38 = vpop.xlane.xlu0 %2693 }
 0x867   : >> { %v10050_v47 = vsub.f32 %v9858_v6, %v2738_v28  ;;  %v2753_v61 = vmul.f32 0.015625, %v2694_v38  ;;  %v2882_v50 = vsel %vm1129_vm4, %v2816_v4, 0.0  ;;  %v2801_v10 = vmul.f32 %v10044_v17, %v10044_v17 }
 0x868   : >> { %v2697_v14 = vpop.xlane.xlu1 %2696  ;;  %2883 = vadd.xlane.f32.xlu1 %v2882_v50 }
 0x869   : >> { %v10056_v44 = vsub.f32 %v9865_v21, %v2753_v61  ;;  %v2754_v42 = vmul.f32 0.015625, %v2697_v14  ;;  %v2837_v60 = vsel %vm1129_vm4, %v2801_v10, 0.0  ;;  %v2802_v24 = vmul.f32 %v10050_v47, %v10050_v47 }
 0x86a   : >> { %2838 = vadd.xlane.f32.xlu0 %v2837_v60  ;;  %v2652_v6 = vpop.xlane.xlu0 %2651 }
 0x86b   : >> { %v10062_v12 = vsub.f32 %v9871_v37, %v2754_v42  ;;  %v2739_v7 = vmul.f32 0.015625, %v2652_v6  ;;  %v2840_v56 = vsel %vm1129_vm4, %v2802_v24, 0.0  ;;  %v2817_v5 = vmul.f32 %v10056_v44, %v10056_v44 }
 0x86c   : >> { %v2655_v58 = vpop.xlane.xlu1 %2654  ;;  %2841 = vadd.xlane.f32.xlu1 %v2840_v56 }
 0x86d   : >> { %v10068_v21 = vsub.f32 %v9877_v39, %v2739_v7  ;;  %v2740_v0 = vmul.f32 0.015625, %v2655_v58  ;;  %v2885_v52 = vsel %vm1129_vm4, %v2817_v5, 0.0  ;;  %v2818_v43 = vmul.f32 %v10062_v12, %v10062_v12 }
 0x86e   : >> { %2886 = vadd.xlane.f32.xlu0 %v2885_v52  ;;  %v2700_v37 = vpop.xlane.xlu0 %2699 }
 0x86f   : >> { %v10074_v2 = vsub.f32 %v9882_v1, %v2740_v0  ;;  %v2755_v15 = vmul.f32 0.015625, %v2700_v37  ;;  %v2888_v59 = vsel %vm1129_vm4, %v2818_v43, 0.0  ;;  %v2803_v27 = vmul.f32 %v10068_v21, %v10068_v21 }
 0x870   : >> { %v2703_v8 = vpop.xlane.xlu1 %2702  ;;  %2889 = vadd.xlane.f32.xlu1 %v2888_v59 }
 0x871   : >> { %v10080_v39 = vsub.f32 %v9885_v18, %v2755_v15  ;;  %v2756_v26 = vmul.f32 0.015625, %v2703_v8  ;;  %v2843_v22 = vsel %vm1129_vm4, %v2803_v27, 0.0  ;;  %v2804_v57 = vmul.f32 %v10074_v2, %v10074_v2 }
 0x872   : >> { %2844 = vadd.xlane.f32.xlu0 %v2843_v22  ;;  %v2658_v1 = vpop.xlane.xlu0 %2657 }
 0x873   : >> { %v10086_v30 = vsub.f32 %v9898_v31, %v2756_v26  ;;  %v2741_v25 = vmul.f32 0.015625, %v2658_v1  ;;  %v2846_v28 = vsel %vm1129_vm4, %v2804_v57, 0.0  ;;  %v2819_v3 = vmul.f32 %v10080_v39, %v10080_v39 }
 0x874   : >> { %v2661_v4 = vpop.xlane.xlu1 %2660  ;;  %2847 = vadd.xlane.f32.xlu1 %v2846_v28 }
 0x875   : >> { %v10092_v18 = vsub.f32 %v9906_v9, %v2741_v25  ;;  %v2742_v38 = vmul.f32 0.015625, %v2661_v4  ;;  %v2891_v61 = vsel %vm1129_vm4, %v2819_v3, 0.0  ;;  %v2820_v50 = vmul.f32 %v10086_v30, %v10086_v30 }
 0x876   : >> { %2892 = vadd.xlane.f32.xlu0 %v2891_v61  ;;  %v2706_v31 = vpop.xlane.xlu0 %2705 }
 0x877   : >> { %v10098_v10 = vsub.f32 %v9910_v11, %v2742_v38  ;;  %v2757_v14 = vmul.f32 0.015625, %v2706_v31  ;;  %v2894_v42 = vsel %vm1129_vm4, %v2820_v50, 0.0  ;;  %v2805_v60 = vmul.f32 %v10092_v18, %v10092_v18 }
 0x878   : >> { %v2709_v24 = vpop.xlane.xlu1 %2708  ;;  %2895 = vadd.xlane.f32.xlu1 %v2894_v42 }
 0x879   : >> { %v10104_v9 = vsub.f32 %v9919_v36, %v2757_v14  ;;  %v2758_v6 = vmul.f32 0.015625, %v2709_v24  ;;  %v2849_v7 = vsel %vm1129_vm4, %v2805_v60, 0.0  ;;  %v2806_v56 = vmul.f32 %v10098_v10, %v10098_v10 }
 0x87a   : >> { %2850 = vadd.xlane.f32.xlu0 %v2849_v7  ;;  %v2664_v11 = vpop.xlane.xlu0 %2663 }
 0x87b   : >> { %v10110_v5 = vsub.f32 %v9928_v35, %v2758_v6  ;;  %v2743_v58 = vmul.f32 0.015625, %v2664_v11  ;;  %v2852_v0 = vsel %vm1129_vm4, %v2806_v56, 0.0  ;;  %v2821_v52 = vmul.f32 %v10104_v9, %v10104_v9 }
 0x87c   : >> { %v2667_v43 = vpop.xlane.xlu1 %2666  ;;  %2853 = vadd.xlane.f32.xlu1 %v2852_v0 }
 0x87d   : >> { %v10116_v36 = vsub.f32 %v9934_v48, %v2743_v58  ;;  %v2744_v37 = vmul.f32 0.015625, %v2667_v43  ;;  %v2897_v15 = vsel %vm1129_vm4, %v2821_v52, 0.0  ;;  %v2822_v59 = vmul.f32 %v10110_v5, %v10110_v5 }
 0x87e   : >> { %2898 = vadd.xlane.f32.xlu0 %v2897_v15  ;;  %v2712_v35 = vpop.xlane.xlu0 %2711 }
 0x87f   : >> { %v10122_v27 = vsub.f32 %v9939_v13, %v2744_v37  ;;  %v2759_v8 = vmul.f32 0.015625, %v2712_v35  ;;  %v2900_v26 = vsel %vm1129_vm4, %v2822_v59, 0.0  ;;  %v2807_v22 = vmul.f32 %v10116_v36, %v10116_v36 }
 0x880   : >> { %v2715_v57 = vpop.xlane.xlu1 %2714  ;;  %2901 = vadd.xlane.f32.xlu1 %v2900_v26 }
 0x881   : >> { %v10128_v48 = vsub.f32 %v9942_v62, %v2759_v8  ;;  %v2760_v1 = vmul.f32 0.015625, %v2715_v57  ;;  %v2855_v25 = vsel %vm1129_vm4, %v2807_v22, 0.0  ;;  %v2808_v28 = vmul.f32 %v10122_v27, %v10122_v27 }
 0x882   : >> { %2856 = vadd.xlane.f32.xlu0 %v2855_v25  ;;  %v2670_v13 = vpop.xlane.xlu0 %2669 }
 0x883   : >> { %v10134_v3 = vsub.f32 %v9949_v51, %v2760_v1  ;;  %v2745_v4 = vmul.f32 0.015625, %v2670_v13  ;;  %v2858_v38 = vsel %vm1129_vm4, %v2808_v28, 0.0  ;;  %v2823_v61 = vmul.f32 %v10128_v48, %v10128_v48 }
 0x884   : >> { %v2673_v50 = vpop.xlane.xlu1 %2672  ;;  %2859 = vadd.xlane.f32.xlu1 %v2858_v38 }
 0x885   : >> { %v10140_v62 = vsub.f32 %v9957_v32, %v2745_v4  ;;  %v2746_v31 = vmul.f32 0.015625, %v2673_v50  ;;  %v2903_v14 = vsel %vm1129_vm4, %v2823_v61, 0.0  ;;  %v2824_v42 = vmul.f32 %v10134_v3, %v10134_v3 }
 0x886   : >> { %2904 = vadd.xlane.f32.xlu0 %v2903_v14  ;;  %v2718_v51 = vpop.xlane.xlu0 %2717 }
 0x887   : >> { %v10146_v60 = vsub.f32 %v9961_v55, %v2746_v31  ;;  %v2761_v24 = vmul.f32 0.015625, %v2718_v51  ;;  %v2906_v6 = vsel %vm1129_vm4, %v2824_v42, 0.0  ;;  %v2809_v7 = vmul.f32 %v10140_v62, %v10140_v62 }
 0x888   : >> { %v2721_v56 = vpop.xlane.xlu1 %2720  ;;  %2907 = vadd.xlane.f32.xlu1 %v2906_v6 }
 0x889   : >> { %v10152_v32 = vsub.f32 %v9966_v53, %v2761_v24  ;;  %v2762_v11 = vmul.f32 0.015625, %v2721_v56  ;;  %v2861_v58 = vsel %vm1129_vm4, %v2809_v7, 0.0  ;;  %v2810_v0 = vmul.f32 %v10146_v60, %v10146_v60 }
 0x88a   : >> { %2862 = vadd.xlane.f32.xlu0 %v2861_v58  ;;  %v2676_v55 = vpop.xlane.xlu0 %2675 }
 0x88b   : >> { %v10158_v52 = vsub.f32 %v9971_v20, %v2762_v11  ;;  %v2747_v43 = vmul.f32 0.015625, %v2676_v55  ;;  %v2864_v37 = vsel %vm1129_vm4, %v2810_v0, 0.0  ;;  %v2825_v15 = vmul.f32 %v10152_v32, %v10152_v32 }
 0x88c   : >> { %2865 = vadd.xlane.f32.xlu1 %v2864_v37  ;;  %v2679_v53 = vpop.xlane.xlu1 %2678 }
 0x88d   : >> { %v10164_v59 = vsub.f32 %v9977_v34, %v2747_v43  ;;  %v2748_v35 = vmul.f32 0.015625, %v2679_v53  ;;  %v2909_v8 = vsel %vm1129_vm4, %v2825_v15, 0.0  ;;  %v2826_v26 = vmul.f32 %v10158_v52, %v10158_v52 }
 0x88e   : >> { %2910 = vadd.xlane.f32.xlu0 %v2909_v8  ;;  %v2724_v20 = vpop.xlane.xlu0 %2723 }
 0x88f   : >> { %v10170_v22 = vsub.f32 %v9983_v40, %v2748_v35  ;;  %v2763_v57 = vmul.f32 0.015625, %v2724_v20  ;;  %v2912_v1 = vsel %vm1129_vm4, %v2826_v26, 0.0  ;;  %v2811_v25 = vmul.f32 %v10164_v59, %v10164_v59  ;;  %v7899_v20 = vld [vmem:[%s10227_s0 + $0x8] sm:$0xff]  }
 0x890   : >> { %2913 = vadd.xlane.f32.xlu1 %v2912_v1  ;;  %v2727_v34 = vpop.xlane.xlu1 %2726  ;;  %v10217_v26 = vsel %vm1129_vm4, %v12673_v45, 0  ;;  %v7901_v1 = vld [vmem:[%s10227_s0 + $0x18] sm:$0xff]  }
 0x891   : >> { %v10176_v28 = vsub.f32 %v9986_v29, %v2763_v57  ;;  %v2764_v13 = vmul.f32 0.015625, %v2727_v34  ;;  %v2867_v4 = vsel %vm1129_vm4, %v2811_v25, 0.0  ;;  %v2812_v38 = vmul.f32 %v10170_v22, %v10170_v22  ;;  %7142 = vmatpush3.bf16.xpose.msra.mxu0 %v10217_v26  ;;  %v7900_v57 = vld [vmem:[%s10227_s0 + $0x10] sm:$0xff]   ;;  %v7902_v25 = vld [vmem:[%s10227_s0 + $0x20] sm:$0xff]   ;;  %v7903_v34 = vld [vmem:[%s10227_s0 + $0x28] sm:$0xff]  }
 0x892   : >> { %2868 = vadd.xlane.f32.xlu0 %v2867_v4  ;;  %v2682_v40 = vpop.xlane.xlu0 %2681  ;;  %v3156_v4 = vld [vmem:[%s3154_s6 + $0x8] sm:$0xff] }
 0x893   : >> { %v10182_v61 = vsub.f32 %v9993_v54, %v2764_v13  ;;  %v2749_v50 = vmul.f32 0.015625, %v2682_v40  ;;  %v2870_v31 = vsel %vm1129_vm4, %v2812_v38, 0.0  ;;  %v2827_v14 = vmul.f32 %v10176_v28, %v10176_v28  ;;  %v10248_v13 = vld [vmem:[%s10245_s22] sm:$0xff]   ;;  %v3157_v38 = vld [vmem:[%s3154_s6 + $0x10] sm:$0xff]  ;;  %v3158_v40 = vld [vmem:[%s3154_s6 + $0x18] sm:$0xff] }
 0x894   : >> { %2871 = vadd.xlane.f32.xlu1 %v2870_v31  ;;  %v2685_v29 = vpop.xlane.xlu1 %2684  ;;  %6961 = vmatprep.mubr.msk.bf16.mxu1 %vm1129_vm4, %v10248_v13  ;;  %v3160_v31 = vld [vmem:[%s3154_s6 + $0x28] sm:$0xff] }
 0x895   : >> { %v10188_v42 = vsub.f32 %v10001_v63, %v2749_v50  ;;  %v2750_v51 = vmul.f32 0.015625, %v2685_v29  ;;  %v2915_v24 = vsel %vm1129_vm4, %v2827_v14, 0.0  ;;  %v2828_v6 = vmul.f32 %v10182_v61, %v10182_v61  ;;  %v3159_v50 = vld [vmem:[%s3154_s6 + $0x20] sm:$0xff]  ;;  %v3161_v29 = vld [vmem:[%s3154_s6 + $0x30] sm:$0xff] }
 0x896   : >> { %2916 = vadd.xlane.f32.xlu0 %v2915_v24  ;;  %v2730_v54 = vpop.xlane.xlu0 %2729  ;;  %v3162_v24 = vld [vmem:[%s3154_s6 + $0x38] sm:$0xff] }
 0x897   : >> { %v10194_v7 = vsub.f32 %v10005_v16, %v2750_v51  ;;  %v2765_v56 = vmul.f32 0.015625, %v2730_v54  ;;  %v2918_v11 = vsel %vm1129_vm4, %v2828_v6, 0.0  ;;  %v2813_v58 = vmul.f32 %v10188_v42, %v10188_v42 }
 0x898   : >> { %2919 = vadd.xlane.f32.xlu1 %v2918_v11  ;;  %v2733_v63 = vpop.xlane.xlu1 %2732  ;;  %v3155_v11 = vld [vmem:[%s3154_s6] sm:$0xff] }
 0x899   : >> { %v10200_v0 = vsub.f32 %v10010_v23, %v2765_v56  ;;  %v2766_v55 = vmul.f32 0.015625, %v2733_v63  ;;  %v2873_v43 = vsel %vm1129_vm4, %v2813_v58, 0.0  ;;  %v2814_v37 = vmul.f32 %v10194_v7, %v10194_v7  ;;  %v3393_v63 = vld [vmem:[%s10260_s3] sm:$0xff] }
 0x89a   : >> { %2874 = vadd.xlane.f32.xlu0 %v2873_v43  ;;  %v3394_v43 = vld [vmem:[%s10260_s3 + $0x8] sm:$0xff] }
 0x89b   : >> { %v10206_v16 = vsub.f32 %v10015_v49, %v2766_v55  ;;  %v2876_v15 = vsel %vm1129_vm4, %v2814_v37, 0.0  ;;  %v2829_v53 = vmul.f32 %v10200_v0, %v10200_v0  ;;  %v7898_v49 = vld [vmem:[%s10227_s0] sm:$0xff]   ;;  %v3395_v55 = vld [vmem:[%s10260_s3 + $0x10] sm:$0xff] }
 0x89c   : >> { %2877 = vadd.xlane.f32.xlu1 %v2876_v15  ;;  %7143 = vmatprep.mubr.msk.bf16.mxu0 %vm1129_vm4, %v7898_v49  ;;  %v3396_v15 = vld [vmem:[%s10260_s3 + $0x18] sm:$0xff] }
 0x89d   : >> { %v2921_v23 = vsel %vm1129_vm4, %v2829_v53, 0.0  ;;  %v2830_v35 = vmul.f32 %v10206_v16, %v10206_v16  ;;  %7144 = vmatmul.mubr.msk.bf16.vlgmr.msra.gmra.mrb[32].mxu0 %vm1129_vm4, %v7899_v20 }
 0x89e   : >> { %2922 = vadd.xlane.f32.xlu0 %v2921_v23  ;;  %7147 = vmatprep.mubr.msk.bf16.mxu0 %vm1129_vm4, %v7900_v57  ;;  %v3398_v57 = vld [vmem:[%s10260_s3 + $0x28] sm:$0xff] }
 0x89f   : >> { %v2924_v8 = vsel %vm1129_vm4, %v2830_v35, 0.0  ;;  %v3397_v35 = vld [vmem:[%s10260_s3 + $0x20] sm:$0xff] }
 0x8a0   : >> { %2925 = vadd.xlane.f32.xlu1 %v2924_v8 }
 0x8a5   : >> { %7148 = vmatmul.mubr.msk.bf16.gmra.mrb[36].mxu0 %vm1129_vm4, %v7901_v1 }
 0x8a6   : >> { %7151 = vmatprep.mubr.msk.bf16.mxu0 %vm1129_vm4, %v7902_v25 }
 0x8ad   : >> { %7152 = vmatmul.mubr.msk.bf16.gmra.mrb[40].mxu0 %vm1129_vm4, %v7903_v34 }
 0x8b1   : >> { %3170 = vperm.xlu1 %7893, %v3156_v4   ;;  %v3399_v4 = vld [vmem:[%s10260_s3 + $0x30] sm:$0xff] }
 0x8b4   : >> { %3165 = vperm.xlu0 %7892, %v3155_v11  }
 0x8b5   : >> { %3175 = vperm.xlu1 %7893, %v3157_v38  }
 0x8b8   : >> { %3416 = vperm.xlu0 %7892, %v3394_v43   ;;  %v12708_v43 = vld [vmem:[#allocation41_spill] sm:$0xff] }
 0x8b9   : >> { %3180 = vperm.xlu1 %7893, %v3158_v40  }
 0x8bc   : >> { %3426 = vperm.xlu0 %7892, %v3396_v15  }
 0x8bd   : >> { %3185 = vperm.xlu1 %7893, %v3159_v50  }
 0x8c0   : >> { %3436 = vperm.xlu0 %7892, %v3398_v57  }
 0x8c1   : >> { %3190 = vperm.xlu1 %7893, %v3160_v31  }
 0x8c5   : >> { %3195 = vperm.xlu1 %7893, %v3161_v29  }
 0x8c9   : >> { %3200 = vperm.xlu1 %7893, %v3162_v24  }
 0x8cd   : >> { %3411 = vperm.xlu1 %7893, %v3393_v63  }
 0x8d1   : >> { %3421 = vperm.xlu1 %7893, %v3395_v55   ;;  %v12707_v55 = vld [vmem:[#allocation43_spill] sm:$0xff] }
 0x8d3   : >> { %v2833_v51 = vpop.xlane.xlu0 %2832 }
 0x8d4   : >> { %v2927_v54 = vmul.f32 0.015625, %v2833_v51 }
 0x8d5   : >> { %v2836_v14 = vpop.xlane.xlu1 %2835  ;;  %3431 = vperm.xlu1 %7893, %v3397_v35  }
 0x8d6   : >> { %v2928_v6 = vmul.f32 0.015625, %v2836_v14  ;;  %v2959_v58 = vadd.f32 1e-05, %v2927_v54  ;;  %v3400_v14 = vld [vmem:[%s10260_s3 + $0x38] sm:$0xff] }
 0x8d7   : >> { %3446 = vperm.xlu0 %7892, %v3400_v14  }
 0x8d8   : >> { %v2960_v56 = vadd.f32 1e-05, %v2928_v6 }
 0x8d9   : >> { %3441 = vperm.xlu1 %7893, %v3399_v4  }
 0x8da   : >> { %7910 = vrsqrt.f32 %v2960_v56  ;;  %v3401_v56 = vld [vmem:[%s10260_s3 + $0x40] sm:$0xff] }
 0x8db   : >> { %7912 = vrsqrt.f32 %v2959_v58 }
 0x8dd   : >> { %3451 = vperm.xlu1 %7893, %v3401_v56  }
 0x8e4   : >> { %v7911_v38 = vpop.eup %7910 }
 0x8e5   : >> { %v7913_v29 = vpop.eup %7912  ;;  %v3024_v54 = vmul.f32 %v7911_v38, %v10027_v41 }
 0x8e6   : >> { %v3023_v15 = vmul.f32 %v7913_v29, %v10024_v46  ;;  %v12709_v46 = vld [vmem:[#allocation42_spill] sm:$0xff] }
 0x8e7   : >> { %v12710_v4 = vsub.s32 1, %v12709_v46 }
 0x8e9   : >> { %v10284_v38 = vrot.slane %v12708_v43, %v12710_v4 }
 0x8f3   : >> { %v2881_v37 = vpop.xlane.xlu0 %2880 }
 0x8f4   : >> { %v2943_v53 = vmul.f32 0.015625, %v2881_v37  ;;  %v10274_v37 = vrot.slane %v12708_v43, %v12707_v55 }
 0x8f5   : >> { %v2884_v23 = vpop.xlane.xlu1 %2883 }
 0x8f6   : >> { %v2975_v8 = vadd.f32 1e-05, %v2943_v53  ;;  %v2944_v49 = vmul.f32 0.015625, %v2884_v23  ;;  %v3402_v53 = vld [vmem:[%s10260_s3 + $0x48] sm:$0xff] }
 0x8f7   : >> { %v2839_v20 = vpop.xlane.xlu0 %2838  ;;  %3456 = vperm.xlu0 %7892, %v3402_v53  }
 0x8f8   : >> { %7914 = vrsqrt.f32 %v2975_v8  ;;  %v2976_v1 = vadd.f32 1e-05, %v2944_v49  ;;  %v2929_v25 = vmul.f32 0.015625, %v2839_v20  ;;  %v3060_v8 = vmul.f32 %v10274_v37, %v3024_v54  ;;  %v3403_v49 = vld [vmem:[%s10260_s3 + $0x50] sm:$0xff]  ;;  %v3405_v54 = vld [vmem:[%s10260_s3 + $0x60] sm:$0xff] }
 0x8f9   : >> { %v2842_v34 = vpop.xlane.xlu1 %2841  ;;  %3461 = vperm.xlu1 %7893, %v3403_v49  }
 0x8fa   : >> { %7916 = vrsqrt.f32 %v2976_v1  ;;  %v2961_v40 = vadd.f32 1e-05, %v2929_v25  ;;  %v2930_v50 = vmul.f32 0.015625, %v2842_v34 }
 0x8fb   : >> { %v2887_v31 = vpop.xlane.xlu0 %2886 }
 0x8fc   : >> { %7918 = vrsqrt.f32 %v2961_v40  ;;  %v2962_v51 = vadd.f32 1e-05, %v2930_v50  ;;  %v2945_v24 = vmul.f32 0.015625, %v2887_v31  ;;  %v3059_v40 = vmul.f32 %v10274_v37, %v3023_v15  ;;  %v3404_v50 = vld [vmem:[%s10260_s3 + $0x58] sm:$0xff]  ;;  %v3406_v15 = vld [vmem:[%s10260_s3 + $0x68] sm:$0xff] }
 0x8fd   : >> { %v2890_v6 = vpop.xlane.xlu1 %2889  ;;  %3466 = vperm.xlu0 %7892, %v3404_v50   ;;  %3471 = vperm.xlu1 %7893, %v3405_v54  }
 0x8fe   : >> { %7920 = vrsqrt.f32 %v2962_v51  ;;  %v2977_v11 = vadd.f32 1e-05, %v2945_v24  ;;  %v2946_v58 = vmul.f32 0.015625, %v2890_v6  ;;  %v10296_v43 = vadd.f32 %v10284_v38, %v3059_v40 }
 0x8ff   : >> { %v2845_v63 = vpop.xlane.xlu0 %2844 }
 0x900   : >> { %7922 = vrsqrt.f32 %v2977_v11  ;;  %v2978_v23 = vadd.f32 1e-05, %v2946_v58  ;;  %v2931_v35 = vmul.f32 0.015625, %v2845_v63 }
 0x901   : >> { %v2848_v41 = vpop.xlane.xlu1 %2847  ;;  %3476 = vperm.xlu0 %7892, %v3406_v15  }
 0x902   : >> { %v7915_v20 = vpop.eup %7914  ;;  %7924 = vrsqrt.f32 %v2978_v23  ;;  %v2963_v57 = vadd.f32 1e-05, %v2931_v35  ;;  %v2932_v1 = vmul.f32 0.015625, %v2848_v41 }
 0x903   : >> { %v2893_v25 = vpop.xlane.xlu0 %2892  ;;  %v3039_v34 = vmul.f32 %v7915_v20, %v10036_v33  ;;  %v10291_v33 = vadd.f32 %v10284_v38, %v3060_v8 }
 0x904   : >> { %v7917_v31 = vpop.eup %7916  ;;  %7926 = vrsqrt.f32 %v2963_v57  ;;  %v2964_v14 = vadd.f32 1e-05, %v2932_v1  ;;  %v2947_v29 = vmul.f32 0.015625, %v2893_v25 }
 0x905   : >> { %v2896_v51 = vpop.xlane.xlu1 %2895  ;;  %v3040_v24 = vmul.f32 %v7917_v31, %v10039_v19  ;;  %v3075_v6 = vmul.f32 %v10274_v37, %v3039_v34  ;;  %v3127_v20 = vpack.c.bf16 %v10291_v33, %v10296_v43 }
 0x906   : >> { %v7919_v56 = vpop.eup %7918  ;;  %7928 = vrsqrt.f32 %v2964_v14  ;;  %v2979_v11 = vadd.f32 1e-05, %v2947_v29  ;;  %v2948_v58 = vmul.f32 0.015625, %v2896_v51  ;;  %v3408_v14 = vld [vmem:[%s10260_s3 + $0x78] sm:$0xff] }
 0x907   : >> { %v2851_v63 = vpop.xlane.xlu0 %2850  ;;  %v3076_v55 = vmul.f32 %v10274_v37, %v3040_v24  ;;  %v3025_v19 = vmul.f32 %v7919_v56, %v10044_v17  ;;  %v10301_v8 = vadd.f32 %v10284_v38, %v3075_v6  ;;  %v3407_v17 = vld [vmem:[%s10260_s3 + $0x70] sm:$0xff]  ;;  %v3236_v6 = vsel %vm1129_vm4, %v3127_v20, 0  ;;  %3486 = vperm.xlu0 %7892, %v3408_v14  }
 0x908   : >> { %v7921_v53 = vpop.eup %7920  ;;  %7930 = vrsqrt.f32 %v2979_v11  ;;  %v2980_v23 = vadd.f32 1e-05, %v2948_v58  ;;  %v2933_v35 = vmul.f32 0.015625, %v2851_v63  ;;  %3481 = vperm.xlu1 %7893, %v3407_v17  }
 0x909   : >> { %v2854_v41 = vpop.xlane.xlu1 %2853  ;;  %12711 = vst [vmem:[#allocation40_spill] sm:$0xff] %v10301_v8  ;;  %v10304_v49 = vadd.f32 %v10284_v38, %v3076_v55  ;;  %v3026_v57 = vmul.f32 %v7921_v53, %v10050_v47  ;;  %v3061_v50 = vmul.f32 %v10274_v37, %v3025_v19 }
 0x90a   : >> { %v7923_v1 = vpop.eup %7922  ;;  %7932 = vrsqrt.f32 %v2980_v23  ;;  %v2965_v25 = vadd.f32 1e-05, %v2933_v35  ;;  %v2934_v34 = vmul.f32 0.015625, %v2854_v41 }
 0x90b   : >> { %12712 = vst [vmem:[#allocation39_spill] sm:$0xff] %v10304_v49  ;;  %v2899_v46 = vpop.xlane.xlu0 %2898  ;;  %v3135_v4 = vpack.c.bf16 %v10304_v49, %v10301_v8  ;;  %v3041_v40 = vmul.f32 %v7923_v1, %v10056_v44  ;;  %v3062_v31 = vmul.f32 %v10274_v37, %v3026_v57  ;;  %v10325_v15 = vadd.f32 %v10284_v38, %v3061_v50 }
 0x90c   : >> { %v7925_v29 = vpop.eup %7924  ;;  %7934 = vrsqrt.f32 %v2965_v25  ;;  %v2966_v47 = vadd.f32 1e-05, %v2934_v34  ;;  %v2949_v51 = vmul.f32 0.015625, %v2899_v46 }
 0x90d   : >> { %v2902_v24 = vpop.xlane.xlu1 %2901  ;;  %7363 = vmatprep.subr.msk.bf16.mxu1 %vm1129_vm4, %v3135_v4  ;;  %v3042_v54 = vmul.f32 %v7925_v29, %v10062_v12  ;;  %v3077_v56 = vmul.f32 %v10274_v37, %v3041_v40  ;;  %v10321_v44 = vadd.f32 %v10284_v38, %v3062_v31 }
 0x90e   : >> { %v7927_v11 = vpop.eup %7926  ;;  %7936 = vrsqrt.f32 %v2966_v47  ;;  %v2981_v58 = vadd.f32 1e-05, %v2949_v51  ;;  %v2950_v63 = vmul.f32 0.015625, %v2902_v24  ;;  %6946 = vmatpush3.bf16.xpose.msra.mxu1 %v3236_v6 }
 0x90f   : >> { %v2857_v55 = vpop.xlane.xlu0 %2856  ;;  %v3078_v19 = vmul.f32 %v10274_v37, %v3042_v54  ;;  %v3027_v53 = vmul.f32 %v7927_v11, %v10068_v21  ;;  %v10329_v20 = vadd.f32 %v10284_v38, %v3077_v56  ;;  %v3128_v17 = vpack.c.bf16 %v10321_v44, %v10325_v15 }
 0x910   : >> { %v7929_v12 = vpop.eup %7928  ;;  %7938 = vrsqrt.f32 %v2981_v58  ;;  %v2982_v23 = vadd.f32 1e-05, %v2950_v63  ;;  %v2935_v35 = vmul.f32 0.015625, %v2857_v55 }
 0x911   : >> { %v2860_v41 = vpop.xlane.xlu1 %2859  ;;  %12713 = vst [vmem:[#allocation24_spill] sm:$0xff] %v10329_v20  ;;  %v10332_v57 = vadd.f32 %v10284_v38, %v3078_v19  ;;  %v3028_v1 = vmul.f32 %v7929_v12, %v10074_v2  ;;  %v3063_v50 = vmul.f32 %v10274_v37, %v3027_v53  ;;  %v3239_v2 = vsel %vm1129_vm4, %v3128_v17, 0 }
 0x912   : >> { %v7931_v25 = vpop.eup %7930  ;;  %7940 = vrsqrt.f32 %v2982_v23  ;;  %v2967_v34 = vadd.f32 1e-05, %v2935_v35  ;;  %v2936_v21 = vmul.f32 0.015625, %v2860_v41 }
 0x913   : >> { %12714 = vst [vmem:[#allocation38_spill] sm:$0xff] %v10332_v57  ;;  %v2905_v46 = vpop.xlane.xlu0 %2904  ;;  %v3136_v4 = vpack.c.bf16 %v10332_v57, %v10329_v20  ;;  %v3043_v40 = vmul.f32 %v7931_v25, %v10080_v39  ;;  %v3064_v31 = vmul.f32 %v10274_v37, %v3028_v1  ;;  %v10351_v55 = vadd.f32 %v10284_v38, %v3063_v50 }
 0x914   : >> { %v7933_v14 = vpop.eup %7932  ;;  %7942 = vrsqrt.f32 %v2967_v34  ;;  %v2968_v29 = vadd.f32 1e-05, %v2936_v21  ;;  %v2951_v47 = vmul.f32 0.015625, %v2905_v46 }
 0x915   : >> { %v2908_v51 = vpop.xlane.xlu1 %2907  ;;  %7364 = vmatprep.subr.msk.bf16.mxu1 %vm1129_vm4, %v3136_v4  ;;  %v3044_v24 = vmul.f32 %v7933_v14, %v10086_v30  ;;  %v3079_v6 = vmul.f32 %v10274_v37, %v3043_v40  ;;  %v10347_v54 = vadd.f32 %v10284_v38, %v3064_v31 }
 0x916   : >> { %v7935_v39 = vpop.eup %7934  ;;  %7944 = vrsqrt.f32 %v2968_v29  ;;  %v2983_v56 = vadd.f32 1e-05, %v2951_v47  ;;  %v2952_v11 = vmul.f32 0.015625, %v2908_v51  ;;  %6948 = vmatpush3.bf16.xpose.msra.mxu1 %v3239_v2 }
 0x917   : >> { %v2863_v58 = vpop.xlane.xlu0 %2862  ;;  %v3080_v63 = vmul.f32 %v10274_v37, %v3044_v24  ;;  %v3029_v19 = vmul.f32 %v7935_v39, %v10092_v18  ;;  %v10355_v35 = vadd.f32 %v10284_v38, %v3079_v6  ;;  %v3129_v17 = vpack.c.bf16 %v10347_v54, %v10351_v55 }
 0x918   : >> { %v7937_v53 = vpop.eup %7936  ;;  %7946 = vrsqrt.f32 %v2983_v56  ;;  %v2984_v30 = vadd.f32 1e-05, %v2952_v11  ;;  %v2937_v12 = vmul.f32 0.015625, %v2863_v58 }
 0x919   : >> { %v2866_v23 = vpop.xlane.xlu1 %2865  ;;  %12715 = vst [vmem:[#allocation23_spill] sm:$0xff] %v10355_v35  ;;  %v10358_v41 = vadd.f32 %v10284_v38, %v3080_v63  ;;  %v3030_v1 = vmul.f32 %v7937_v53, %v10098_v10  ;;  %v3065_v40 = vmul.f32 %v10274_v37, %v3029_v19  ;;  %v3242_v10 = vsel %vm1129_vm4, %v3129_v17, 0 }
 0x91a   : >> { %v7939_v25 = vpop.eup %7938  ;;  %7948 = vrsqrt.f32 %v2984_v30  ;;  %v2969_v34 = vadd.f32 1e-05, %v2937_v12  ;;  %v2938_v18 = vmul.f32 0.015625, %v2866_v23 }
 0x91b   : >> { %12716 = vst [vmem:[#allocation37_spill] sm:$0xff] %v10358_v41  ;;  %v2911_v21 = vpop.xlane.xlu0 %2910  ;;  %v3137_v46 = vpack.c.bf16 %v10358_v41, %v10355_v35  ;;  %v3045_v4 = vmul.f32 %v7939_v25, %v10104_v9  ;;  %v3066_v50 = vmul.f32 %v10274_v37, %v3030_v1  ;;  %v10377_v58 = vadd.f32 %v10284_v38, %v3065_v40 }
 0x91c   : >> { %v7941_v31 = vpop.eup %7940  ;;  %7950 = vrsqrt.f32 %v2969_v34  ;;  %v2970_v14 = vadd.f32 1e-05, %v2938_v18  ;;  %v2953_v29 = vmul.f32 0.015625, %v2911_v21 }
 0x91d   : >> { %v2914_v47 = vpop.xlane.xlu1 %2913  ;;  %7365 = vmatprep.subr.msk.bf16.mxu1 %vm1129_vm4, %v3137_v46  ;;  %v3046_v51 = vmul.f32 %v7941_v31, %v10110_v5  ;;  %v3081_v2 = vmul.f32 %v10274_v37, %v3045_v4  ;;  %v10373_v24 = vadd.f32 %v10284_v38, %v3066_v50 }
 0x91e   : >> { %v7943_v9 = vpop.eup %7942  ;;  %7952 = vrsqrt.f32 %v2970_v14  ;;  %v2985_v6 = vadd.f32 1e-05, %v2953_v29  ;;  %v2954_v39 = vmul.f32 0.015625, %v2914_v47  ;;  %6950 = vmatpush3.bf16.xpose.msra.mxu1 %v3242_v10 }
 0x91f   : >> { %v2869_v56 = vpop.xlane.xlu0 %2868  ;;  %v3082_v11 = vmul.f32 %v10274_v37, %v3046_v51  ;;  %v3031_v63 = vmul.f32 %v7943_v9, %v10116_v36  ;;  %v10381_v12 = vadd.f32 %v10284_v38, %v3081_v2  ;;  %v3130_v17 = vpack.c.bf16 %v10373_v24, %v10377_v58 }
 0x920   : >> { %v7945_v19 = vpop.eup %7944  ;;  %7954 = vrsqrt.f32 %v2985_v6  ;;  %v2986_v5 = vadd.f32 1e-05, %v2954_v39  ;;  %v2939_v53 = vmul.f32 0.015625, %v2869_v56 }
 0x921   : >> { %v2872_v30 = vpop.xlane.xlu1 %2871  ;;  %12717 = vst [vmem:[#allocation22_spill] sm:$0xff] %v10381_v12  ;;  %v10384_v23 = vadd.f32 %v10284_v38, %v3082_v11  ;;  %v3032_v1 = vmul.f32 %v7945_v19, %v10122_v27  ;;  %v3067_v4 = vmul.f32 %v10274_v37, %v3031_v63  ;;  %v3245_v27 = vsel %vm1129_vm4, %v3130_v17, 0 }
 0x922   : >> { %v7947_v25 = vpop.eup %7946  ;;  %7956 = vrsqrt.f32 %v2986_v5  ;;  %v2971_v34 = vadd.f32 1e-05, %v2939_v53  ;;  %v2940_v36 = vmul.f32 0.015625, %v2872_v30 }
 0x923   : >> { %12718 = vst [vmem:[#allocation21_spill] sm:$0xff] %v10384_v23  ;;  %v2917_v18 = vpop.xlane.xlu0 %2916  ;;  %v3138_v21 = vpack.c.bf16 %v10384_v23, %v10381_v12  ;;  %v3047_v46 = vmul.f32 %v7947_v25, %v10128_v48  ;;  %v3068_v40 = vmul.f32 %v10274_v37, %v3032_v1  ;;  %v10403_v56 = vadd.f32 %v10284_v38, %v3067_v4 }
 0x924   : >> { %v7949_v50 = vpop.eup %7948  ;;  %7958 = vrsqrt.f32 %v2971_v34  ;;  %v2972_v31 = vadd.f32 1e-05, %v2940_v36  ;;  %v2955_v14 = vmul.f32 0.015625, %v2917_v18 }
 0x925   : >> { %v2920_v29 = vpop.xlane.xlu1 %2919  ;;  %7366 = vmatprep.subr.msk.bf16.mxu1 %vm1129_vm4, %v3138_v21  ;;  %v3048_v47 = vmul.f32 %v7949_v50, %v10134_v3  ;;  %v3083_v10 = vmul.f32 %v10274_v37, %v3047_v46  ;;  %v10399_v51 = vadd.f32 %v10284_v38, %v3068_v40 }
 0x926   : >> { %v7951_v48 = vpop.eup %7950  ;;  %7960 = vrsqrt.f32 %v2972_v31  ;;  %v2987_v2 = vadd.f32 1e-05, %v2955_v14  ;;  %v2956_v9 = vmul.f32 0.015625, %v2920_v29  ;;  %6952 = vmatpush3.bf16.xpose.msra.mxu1 %v3245_v27 }
 0x927   : >> { %v2875_v6 = vpop.xlane.xlu0 %2874  ;;  %v3084_v39 = vmul.f32 %v10274_v37, %v3048_v47  ;;  %v3033_v11 = vmul.f32 %v7951_v48, %v10140_v62  ;;  %v10407_v53 = vadd.f32 %v10284_v38, %v3083_v10  ;;  %v3131_v17 = vpack.c.bf16 %v10399_v51, %v10403_v56 }
 0x928   : >> { %v7953_v63 = vpop.eup %7952  ;;  %7962 = vrsqrt.f32 %v2987_v2  ;;  %v2988_v3 = vadd.f32 1e-05, %v2956_v9  ;;  %v2941_v19 = vmul.f32 0.015625, %v2875_v6 }
 0x929   : >> { %v2878_v5 = vpop.xlane.xlu1 %2877  ;;  %12719 = vst [vmem:[#allocation36_spill] sm:$0xff] %v10407_v53  ;;  %v10410_v30 = vadd.f32 %v10284_v38, %v3084_v39  ;;  %v3034_v1 = vmul.f32 %v7953_v63, %v10146_v60  ;;  %v3069_v46 = vmul.f32 %v10274_v37, %v3033_v11  ;;  %v3248_v60 = vsel %vm1129_vm4, %v3131_v17, 0 }
 0x92a   : >> { %v7955_v25 = vpop.eup %7954  ;;  %7964 = vrsqrt.f32 %v2988_v3  ;;  %v2973_v34 = vadd.f32 1e-05, %v2941_v19  ;;  %v2942_v62 = vmul.f32 0.015625, %v2878_v5 }
 0x92b   : >> { %12720 = vst [vmem:[#allocation35_spill] sm:$0xff] %v10410_v30  ;;  %v2923_v36 = vpop.xlane.xlu0 %2922  ;;  %v3139_v18 = vpack.c.bf16 %v10410_v30, %v10407_v53  ;;  %v3049_v21 = vmul.f32 %v7955_v25, %v10152_v32  ;;  %v3070_v4 = vmul.f32 %v10274_v37, %v3034_v1  ;;  %v10429_v9 = vadd.f32 %v10284_v38, %v3069_v46 }
 0x92c   : >> { %v7957_v40 = vpop.eup %7956  ;;  %7966 = vrsqrt.f32 %v2973_v34  ;;  %v2974_v50 = vadd.f32 1e-05, %v2942_v62  ;;  %v2957_v31 = vmul.f32 0.015625, %v2923_v36 }
 0x92d   : >> { %v2926_v14 = vpop.xlane.xlu1 %2925  ;;  %7367 = vmatprep.subr.msk.bf16.mxu1 %vm1129_vm4, %v3139_v18  ;;  %v3050_v29 = vmul.f32 %v7957_v40, %v10158_v52  ;;  %v3085_v27 = vmul.f32 %v10274_v37, %v3049_v21  ;;  %v10425_v47 = vadd.f32 %v10284_v38, %v3070_v4 }
 0x92e   : >> { %v7959_v32 = vpop.eup %7958  ;;  %7968 = vrsqrt.f32 %v2974_v50  ;;  %v2989_v10 = vadd.f32 1e-05, %v2957_v31  ;;  %v2958_v48 = vmul.f32 0.015625, %v2926_v14  ;;  %6954 = vmatpush3.bf16.xpose.msra.mxu1 %v3248_v60 }
 0x92f   : >> { %v3086_v2 = vmul.f32 %v10274_v37, %v3050_v29  ;;  %v3035_v6 = vmul.f32 %v7959_v32, %v10164_v59  ;;  %v10433_v11 = vadd.f32 %v10284_v38, %v3085_v27  ;;  %v3132_v3 = vpack.c.bf16 %v10425_v47, %v10429_v9 }
 0x930   : >> { %v7961_v39 = vpop.eup %7960  ;;  %7970 = vrsqrt.f32 %v2989_v10  ;;  %v2990_v52 = vadd.f32 1e-05, %v2958_v48 }
 0x931   : >> { %12721 = vst [vmem:[#allocation20_spill] sm:$0xff] %v10433_v11  ;;  %v10436_v63 = vadd.f32 %v10284_v38, %v3086_v2  ;;  %v3036_v19 = vmul.f32 %v7961_v39, %v10170_v22  ;;  %v3071_v1 = vmul.f32 %v10274_v37, %v3035_v6  ;;  %v3251_v62 = vsel %vm1129_vm4, %v3132_v3, 0 }
 0x932   : >> { %v7963_v5 = vpop.eup %7962  ;;  %7972 = vrsqrt.f32 %v2990_v52 }
 0x933   : >> { %12722 = vst [vmem:[#allocation19_spill] sm:$0xff] %v10436_v63  ;;  %v3140_v17 = vpack.c.bf16 %v10436_v63, %v10433_v11  ;;  %v3051_v59 = vmul.f32 %v7963_v5, %v10176_v28  ;;  %v3072_v25 = vmul.f32 %v10274_v37, %v3036_v19  ;;  %v10455_v46 = vadd.f32 %v10284_v38, %v3071_v1  ;;  %v7905_v5 = vld [vmem:[%s10245_s22 + $0x8] sm:$0xff]  }
 0x934   : >> { %v7965_v34 = vpop.eup %7964 }
 0x935   : >> { %7368 = vmatprep.subr.msk.bf16.mxu1 %vm1129_vm4, %v3140_v17  ;;  %v3052_v36 = vmul.f32 %v7965_v34, %v10182_v61  ;;  %v3087_v22 = vmul.f32 %v10274_v37, %v3051_v59  ;;  %v10451_v18 = vadd.f32 %v10284_v38, %v3072_v25  ;;  %v7906_v17 = vld [vmem:[%s10245_s22 + $0x10] sm:$0xff]   ;;  %v7907_v25 = vld [vmem:[%s10245_s22 + $0x18] sm:$0xff]  }
 0x936   : >> { %v7967_v21 = vpop.eup %7966  ;;  %6956 = vmatpush3.bf16.xpose.msra.mxu1 %v3251_v62  ;;  %v7908_v34 = vld [vmem:[%s10227_s0 + $0x30] sm:$0xff]  }
 0x937   : >> { %12723 = vst [vmem:[#allocation34_spill] sm:$0xff] %v10451_v18  ;;  %v3088_v28 = vmul.f32 %v10274_v37, %v3052_v36  ;;  %v3037_v4 = vmul.f32 %v7967_v21, %v10188_v42  ;;  %v10459_v50 = vadd.f32 %v10284_v38, %v3087_v22  ;;  %v3133_v31 = vpack.c.bf16 %v10451_v18, %v10455_v46  ;;  %v7909_v36 = vld [vmem:[%s10227_s0 + $0x38] sm:$0xff]   ;;  %v3166_v21 = vpop.permute.xlu0 %3165  ;;  %s10557_s0 = smov 0  }
 0x938   : >> { %v7969_v40 = vpop.eup %7968 }
 0x939   : >> { %12724 = vst [vmem:[#allocation33_spill] sm:$0xff] %v10459_v50  ;;  %v10462_v61 = vadd.f32 %v10284_v38, %v3088_v28  ;;  %v3038_v14 = vmul.f32 %v7969_v40, %v10194_v7  ;;  %v3073_v42 = vmul.f32 %v10274_v37, %v3037_v4  ;;  %v3254_v48 = vsel %vm1129_vm4, %v3133_v31, 0 }
 0x93a   : >> { %v7971_v60 = vpop.eup %7970 }
 0x93b   : >> { %12725 = vst [vmem:[#allocation18_spill] sm:$0xff] %v10462_v61  ;;  %v3141_v29 = vpack.c.bf16 %v10462_v61, %v10459_v50  ;;  %v3053_v27 = vmul.f32 %v7971_v60, %v10200_v0  ;;  %v3074_v32 = vmul.f32 %v10274_v37, %v3038_v14  ;;  %v10481_v39 = vadd.f32 %v10284_v38, %v3073_v42  ;;  %v3417_v4 = vpop.permute.xlu0 %3416 }
 0x93c   : >> { %v7973_v10 = vpop.eup %7972 }
 0x93d   : >> { %7369 = vmatprep.subr.msk.bf16.mxu1 %vm1129_vm4, %v3141_v29  ;;  %v3054_v2 = vmul.f32 %v7973_v10, %v10206_v16  ;;  %v3089_v7 = vmul.f32 %v10274_v37, %v3053_v27  ;;  %v10477_v6 = vadd.f32 %v10284_v38, %v3074_v32  ;;  %12727 = vst [vmem:[#allocation32_spill] sm:$0xff] %v10481_v39 }
 0x93e   : >> { %6958 = vmatpush3.bf16.xpose.msra.mxu1 %v3254_v48 }
 0x93f   : >> { %12726 = vst [vmem:[#allocation17_spill] sm:$0xff] %v10477_v6  ;;  %v3090_v0 = vmul.f32 %v10274_v37, %v3054_v2  ;;  %v10484_v52 = vadd.f32 %v10284_v38, %v3089_v7  ;;  %v3134_v16 = vpack.c.bf16 %v10477_v6, %v10481_v39  ;;  %v3427_v31 = vpop.permute.xlu0 %3426 }
 0x941   : >> { %12728 = vst [vmem:[#allocation31_spill] sm:$0xff] %v10484_v52  ;;  %v10487_v3 = vadd.f32 %v10284_v38, %v3090_v0  ;;  %v3257_v37 = vsel %vm1129_vm4, %v3134_v16, 0  ;;  %v10502_v38 = vpop.permute.xlu1 %3170 }
 0x943   : >> { %12729 = vst [vmem:[#allocation16_spill] sm:$0xff] %v10487_v3  ;;  %v3142_v19 = vpack.c.bf16 %v10487_v3, %v10484_v52  ;;  %v3437_v2 = vpop.permute.xlu0 %3436 }
 0x945   : >> { %7370 = vmatprep.subr.msk.bf16.mxu1 %vm1129_vm4, %v3142_v19  ;;  %v10506_v59 = vpop.permute.xlu1 %3175 }
 0x946   : >> { %6960 = vmatpush3.bf16.xpose.msra.mxu1 %v3257_v37 }
 0x947   : >> { %7372 = vmatprep.subr.msk.bf16.mxu1 %vm1129_vm4, %v12673_v45 }
 0x949   : >> { %v10509_v1 = vpop.permute.xlu1 %3180 }
 0x94d   : >> { %6962 = vmatmul.mubr.msk.bf16.vlgmr.msra.gmra.mrb[0].mxu1 %vm1129_vm4, %v10248_v13  ;;  %v10513_v13 = vpop.permute.xlu1 %3185 }
 0x94e   : >> { %7338 = vmatpush3.bf16.xpose.msra.mxu1 %v10217_v26  ;;  %6963 = vmatprep.mubr.msk.bf16.mxu1 %vm1129_vm4, %v7905_v5 }
 0x951   : >> { %v10516_v26 = vpop.permute.xlu1 %3190 }
 0x955   : >> { %6964 = vmatmul.mubr.msk.bf16.gmra.mrb[4].mxu1 %vm1129_vm4, %v7905_v5  ;;  %v10520_v62 = vpop.permute.xlu1 %3195 }
 0x956   : >> { %6965 = vmatprep.mubr.msk.bf16.mxu1 %vm1129_vm4, %v7906_v17  ;;  %v3447_v5 = vpop.permute.xlu0 %3446 }
 0x959   : >> { %v10524_v22 = vpop.permute.xlu1 %3200 }
 0x95d   : >> { %6966 = vmatmul.mubr.msk.bf16.gmra.mrb[8].mxu1 %vm1129_vm4, %v7906_v17  ;;  %v3412_v28 = vpop.permute.xlu1 %3411 }
 0x95e   : >> { %6967 = vmatprep.mubr.msk.bf16.mxu1 %vm1129_vm4, %v7907_v25 }
 0x961   : >> { %v3422_v40 = vpop.permute.xlu1 %3421 }
 0x965   : >> { %6968 = vmatmul.mubr.msk.bf16.gmra.mrb[12].mxu1 %vm1129_vm4, %v7907_v25  ;;  %v3432_v14 = vpop.permute.xlu1 %3431 }
 0x966   : >> { %7155 = vmatprep.mubr.msk.bf16.mxu1 %vm1129_vm4, %v7908_v34 }
 0x969   : >> { %v3442_v7 = vpop.permute.xlu1 %3441 }
 0x96d   : >> { %7156 = vmatmul.mubr.msk.bf16.vlgmr.msra.gmra.mrb[16].mxu1 %vm1129_vm4, %v7909_v36  ;;  %v3452_v17 = vpop.permute.xlu1 %3451 }
 0x970   : >> { %v7145_v60 = vpop.f32.mrb[32].mxu0 }
 0x971   : >> { %v3599_v29 = vadd.f32 %v7145_v60, %v3422_v40  ;;  %v3590_v27 = vpop.f32.mrb[33].mxu0 }
 0x972   : >> { %v3591_v42 = vadd.f32 %v3590_v27, %v3412_v28  ;;  %v7146_v32 = vpop.f32.mrb[34].mxu0 }
 0x973   : >> { %3656 = vst.msk [vmem:[#allocation3 + $0x10] sm:$0xff] %vm1494_vm5, %v3599_v29  ;;  %v3593_v10 = vpop.f32.mrb[35].mxu0  ;;  %v3602_v48 = vadd.f32 %v7146_v32, %v3427_v31 }
 0x974   : >> { %3654 = vst.msk [vmem:[#allocation3] sm:$0xff] %vm1494_vm5, %v3591_v42  ;;  %v3594_v0 = vadd.f32 %v3593_v10, %v3417_v4 }
 0x975   : >> { %3657 = vst.msk [vmem:[#allocation3 + $0x18] sm:$0xff] %vm1494_vm5, %v3602_v48 }
 0x976   : >> { %3655 = vst.msk [vmem:[#allocation3 + $0x8] sm:$0xff] %vm1494_vm5, %v3594_v0 }
 0x978   : >> { %v7149_v16 = vpop.f32.mrb[36].mxu0  ;;  %v3462_v4 = vpop.permute.xlu1 %3461 }
 0x979   : >> { %v3615_v19 = vadd.f32 %v7149_v16, %v3442_v7  ;;  %v3606_v37 = vpop.f32.mrb[37].mxu0 }
 0x97a   : >> { %v3607_v25 = vadd.f32 %v3606_v37, %v3432_v14  ;;  %v7150_v34 = vpop.f32.mrb[38].mxu0  ;;  %v3457_v14 = vpop.permute.xlu0 %3456 }
 0x97b   : >> { %3660 = vst.msk [vmem:[#allocation3 + $0x30] sm:$0xff] %vm1494_vm5, %v3615_v19  ;;  %v3609_v36 = vpop.f32.mrb[39].mxu0  ;;  %v3618_v28 = vadd.f32 %v7150_v34, %v3447_v5 }
 0x97c   : >> { %3658 = vst.msk [vmem:[#allocation3 + $0x20] sm:$0xff] %vm1494_vm5, %v3607_v25  ;;  %v3610_v40 = vadd.f32 %v3609_v36, %v3437_v2 }
 0x97d   : >> { %3661 = vst.msk [vmem:[#allocation3 + $0x38] sm:$0xff] %vm1494_vm5, %v3618_v28 }
 0x97e   : >> { %3659 = vst.msk [vmem:[#allocation3 + $0x28] sm:$0xff] %vm1494_vm5, %v3610_v40  ;;  %v3467_v32 = vpop.permute.xlu0 %3466 }
 0x980   : >> { %v7153_v31 = vpop.f32.mrb[40].mxu0 }
 0x981   : >> { %v3631_v60 = vadd.f32 %v7153_v31, %v3462_v4  ;;  %v3622_v29 = vpop.f32.mrb[41].mxu0 }
 0x982   : >> { %v3623_v27 = vadd.f32 %v3622_v29, %v3452_v17  ;;  %v7154_v42 = vpop.f32.mrb[42].mxu0 }
 0x983   : >> { %3664 = vst.msk [vmem:[#allocation3 + $0x50] sm:$0xff] %vm1494_vm5, %v3631_v60  ;;  %v3625_v10 = vpop.f32.mrb[43].mxu0  ;;  %v3634_v48 = vadd.f32 %v7154_v42, %v3467_v32 }
 0x984   : >> { %3662 = vst.msk [vmem:[#allocation3 + $0x40] sm:$0xff] %vm1494_vm5, %v3623_v27  ;;  %v3626_v7 = vadd.f32 %v3625_v10, %v3457_v14 }
 0x985   : >> { %3665 = vst.msk [vmem:[#allocation3 + $0x58] sm:$0xff] %vm1494_vm5, %v3634_v48 }
 0x986   : >> { %3663 = vst.msk [vmem:[#allocation3 + $0x48] sm:$0xff] %vm1494_vm5, %v3626_v7 }
 0xa20   : >> { %v3317_v2 = vpop.f32.mrb[0].mxu1 }
 0xa21   : >> { %v3318_v0 = vadd.f32 %v3317_v2, %v3166_v21  ;;  %v3319_v16 = vpop.f32.mrb[1].mxu1  ;;  %v3472_v2 = vpop.permute.xlu1 %3471 }
 0xa22   : >> { %v3320_v19 = vadd.f32 %v3319_v16, %v3166_v21  ;;  %v3321_v37 = vpop.f32.mrb[2].mxu1 }
 0xa23   : >> { %3356 = vst [vmem:[#allocation2] sm:$0xff] %v3318_v0  ;;  %v3322_v5 = vadd.f32 %v3321_v37, %v10502_v38  ;;  %v3323_v17 = vpop.f32.mrb[3].mxu1  ;;  %v3477_v37 = vpop.permute.xlu0 %3476 }
 0xa24   : >> { %3357 = vst [vmem:[#allocation2 + $0x8] sm:$0xff] %v3320_v19  ;;  %v3324_v25 = vadd.f32 %v3323_v17, %v10502_v38 }
 0xa25   : >> { %3358 = vst [vmem:[#allocation2 + $0x10] sm:$0xff] %v3322_v5 }
 0xa26   : >> { %3359 = vst [vmem:[#allocation2 + $0x18] sm:$0xff] %v3324_v25 }
 0xa28   : >> { %v3327_v34 = vpop.f32.mrb[4].mxu1 }
 0xa29   : >> { %v3328_v36 = vadd.f32 %v3327_v34, %v10506_v59  ;;  %v3329_v28 = vpop.f32.mrb[5].mxu1 }
 0xa2a   : >> { %v3330_v40 = vadd.f32 %v3329_v28, %v10506_v59  ;;  %v3331_v4 = vpop.f32.mrb[6].mxu1 }
 0xa2b   : >> { %3360 = vst [vmem:[#allocation2 + $0x20] sm:$0xff] %v3328_v36  ;;  %v3332_v21 = vadd.f32 %v3331_v4, %v10509_v1  ;;  %v3333_v31 = vpop.f32.mrb[7].mxu1  ;;  %v3487_v36 = vpop.permute.xlu0 %3486 }
 0xa2c   : >> { %3361 = vst [vmem:[#allocation2 + $0x28] sm:$0xff] %v3330_v40  ;;  %v3334_v60 = vadd.f32 %v3333_v31, %v10509_v1 }
 0xa2d   : >> { %3362 = vst [vmem:[#allocation2 + $0x30] sm:$0xff] %v3332_v21 }
 0xa2e   : >> { %3363 = vst [vmem:[#allocation2 + $0x38] sm:$0xff] %v3334_v60 }
 0xa30   : >> { %v3337_v29 = vpop.f32.mrb[8].mxu1 }
 0xa31   : >> { %v3338_v38 = vadd.f32 %v3337_v29, %v10513_v13  ;;  %v3339_v27 = vpop.f32.mrb[9].mxu1 }
 0xa32   : >> { %v3340_v14 = vadd.f32 %v3339_v27, %v10513_v13  ;;  %v3341_v42 = vpop.f32.mrb[10].mxu1 }
 0xa33   : >> { %3364 = vst [vmem:[#allocation2 + $0x40] sm:$0xff] %v3338_v38  ;;  %v3342_v59 = vadd.f32 %v3341_v42, %v10516_v26  ;;  %v3343_v32 = vpop.f32.mrb[11].mxu1 }
 0xa34   : >> { %3365 = vst [vmem:[#allocation2 + $0x48] sm:$0xff] %v3340_v14  ;;  %v3344_v10 = vadd.f32 %v3343_v32, %v10516_v26  ;;  %v3482_v26 = vpop.permute.xlu1 %3481 }
 0xa35   : >> { %3366 = vst [vmem:[#allocation2 + $0x50] sm:$0xff] %v3342_v59 }
 0xa36   : >> { %3367 = vst [vmem:[#allocation2 + $0x58] sm:$0xff] %v3344_v10 }
 0xa38   : >> { %v3347_v48 = vpop.f32.mrb[12].mxu1 }
 0xa39   : >> { %v3348_v1 = vadd.f32 %v3347_v48, %v10520_v62  ;;  %v3349_v7 = vpop.f32.mrb[13].mxu1 }
 0xa3a   : >> { %v3350_v0 = vadd.f32 %v3349_v7, %v10520_v62  ;;  %v3351_v16 = vpop.f32.mrb[14].mxu1 }
 0xa3b   : >> { %3368 = vst [vmem:[#allocation2 + $0x60] sm:$0xff] %v3348_v1  ;;  %v3352_v13 = vadd.f32 %v3351_v16, %v10524_v22  ;;  %v3353_v19 = vpop.f32.mrb[15].mxu1 }
 0xa3c   : >> { %3369 = vst [vmem:[#allocation2 + $0x68] sm:$0xff] %v3350_v0  ;;  %v3354_v5 = vadd.f32 %v3353_v19, %v10524_v22 }
 0xa3d   : >> { %3370 = vst [vmem:[#allocation2 + $0x70] sm:$0xff] %v3352_v13 }
 0xa3e   : >> { %3371 = vst [vmem:[#allocation2 + $0x78] sm:$0xff] %v3354_v5 }
 0xa40   : >> { %v7157_v17 = vpop.f32.mrb[16].mxu1 }
 0xa41   : >> { %v3647_v25 = vadd.f32 %v7157_v17, %v3482_v26  ;;  %v3638_v34 = vpop.f32.mrb[17].mxu1 }
 0xa42   : >> { %v3639_v28 = vadd.f32 %v3638_v34, %v3472_v2  ;;  %v7158_v40 = vpop.f32.mrb[18].mxu1 }
 0xa43   : >> { %3668 = vst.msk [vmem:[#allocation3 + $0x70] sm:$0xff] %vm1494_vm5, %v3647_v25  ;;  %v3650_v62 = vadd.f32 %v7158_v40, %v3487_v36  ;;  %v3641_v4 = vpop.f32.mrb[19].mxu1 }
 0xa44   : >> { %3666 = vst.msk [vmem:[#allocation3 + $0x60] sm:$0xff] %vm1494_vm5, %v3639_v28  ;;  %v3642_v21 = vadd.f32 %v3641_v4, %v3477_v37 }
 0xa45   : >> { %3669 = vst.msk [vmem:[#allocation3 + $0x78] sm:$0xff] %vm1494_vm5, %v3650_v62 }
 0xa46   : >> { %3667 = vst.msk [vmem:[#allocation3 + $0x68] sm:$0xff] %vm1494_vm5, %v3642_v21 }
 0xa47 LB: >>> { %s6788_s30 = sshll.u32 %s8533_s0, 3  ;;  %v12730_v34 = vld [vmem:[#allocation7_spill] sm:$0xff]  ;;  %s3675_s0 = sadd.s32 1, %s8533_s0   ;;  %s8533_s0 = sphi %s10557_s0, %s3675_s0  }
 0xa48   : >>> { %s10563_s1 = sshra.s32 %s6788_s30, 3  ;;  %s10566_s2 = scalar_lea.vmem [#allocation3], %s6788_s30  ;;  %v12731_v62 = vmov %v12730_v34 }
 0xa49   : >>> { %s6878_s22 = sshll.u32 %s10563_s1, 4  ;;  %p3672_p5 = scmp.ge.s32.totalorder %s3675_s0, 8  }
 0xa4a   : >>> { %s3681_s5 = scalar_lea.vmem [#allocation2], %s6878_s22  ;;  %s4404_s6 = scalar_lea.vmem [#allocation4], %s6878_s22 }
 0xa4b   : >>> { %v3682_v60 = vld [vmem:[%s3681_s5] sm:$0xff]  ;;  %v3683_v27 = vld [vmem:[%s3681_s5 + $0x8] sm:$0xff]  ;;  %s10988_s25 = scalar_lea.vmem (%p3672_p5), %s12452_s14, %s9775_s26  ;;  %s4441_s30 = scalar_lea.vmem (%p3672_p5), %s12453_s15, %s8525_s4 }
 0xa4c   : >>> { %v3684_v29 = vpack.c.bf16 %v3682_v60, %v3682_v60  ;;  %v3685_v14 = vpack.c.bf16 %v3683_v27, %v3683_v27  ;;  %s5260_s27 = scalar_lea.vmem (%p3672_p5), %s12455_s17, %s8525_s4  ;;  %s5567_s0 = scalar_lea.vmem (%p3672_p5), %s12457_s19, %s8525_s4 }
 0xa4d   : >>> { %v3687_v22 = vld [vmem:[%s10566_s2] sm:$0xff] }
 0xa4e   : >>> { %v3688_v31 = vpack.c.bf16 %v3687_v22, %v3687_v22  ;;  %3699 = vxpose.xlu0.c.b16.start.end [1/1] (short) %v3684_v29, 128 }
 0xa50   : >>> { %7373 = vmatprep.subr.msk.bf16.mxu0 %vm760_vm1, %v3688_v31  ;;  %v3780_v38 = vsel %vm760_vm1, %v3688_v31, 0 }
 0xa51   : >>> { %7160 = vmatpush3.bf16.msra.mxu0 %v3780_v38 }
 0xa6b   : >>> { %3715 = vxpose.xlu0.c.b16.start.end [1/1] (short) %v3685_v14, 128 }
 0xab4   : >>> { %v3707_v42 = vpop.trf.xlu0 }
 0xab5   : >>> { %7161 = vmatprep.mubr.msk.bf16.mxu0 %vm1494_vm5, %v3707_v42 }
 0xab8   : >>> { %v3708_v59 = vpop.trf.xlu0 }
 0xab9   : >>> { %7162 = vmatmul.mubr.msk.bf16.vlgmr.msra.gmra.mrb[0].mxu0 %vm1494_vm5, %v3708_v59 }
 0xabc   : >>> { %v3709_v32 = vpop.trf.xlu0 }
 0xabd   : >>> { %7165 = vmatprep.mubr.msk.bf16.mxu0 %vm1494_vm5, %v3709_v32 }
 0xac0   : >>> { %v3710_v10 = vpop.trf.xlu0 }
 0xac1   : >>> { %7166 = vmatmul.mubr.msk.bf16.gmra.mrb[4].mxu0 %vm1494_vm5, %v3710_v10 }
 0xac4   : >>> { %v3711_v48 = vpop.trf.xlu0 }
 0xac5   : >>> { %7169 = vmatprep.mubr.msk.bf16.mxu0 %vm1494_vm5, %v3711_v48 }
 0xac8   : >>> { %v3712_v1 = vpop.trf.xlu0 }
 0xac9   : >>> { %7170 = vmatmul.mubr.msk.bf16.gmra.mrb[8].mxu0 %vm1494_vm5, %v3712_v1 }
 0xacc   : >>> { %v3713_v7 = vpop.trf.xlu0 }
 0xacd   : >>> { %7173 = vmatprep.mubr.msk.bf16.mxu0 %vm1494_vm5, %v3713_v7 }
 0xad0   : >>> { %v3714_v2 = vpop.trf.xlu0 }
 0xad1   : >>> { %7174 = vmatmul.mubr.msk.bf16.gmra.mrb[12].mxu0 %vm1494_vm5, %v3714_v2 }
 0xad4   : >>> { %v3723_v0 = vpop.trf.xlu0 }
 0xad5   : >>> { %7177 = vmatprep.mubr.msk.bf16.mxu0 %vm1494_vm5, %v3723_v0 }
 0xad8   : >>> { %v3724_v16 = vpop.trf.xlu0 }
 0xad9   : >>> { %7178 = vmatmul.mubr.msk.bf16.gmra.mrb[16].mxu0 %vm1494_vm5, %v3724_v16 }
 0xadc   : >>> { %v3725_v13 = vpop.trf.xlu0 }
 0xadd   : >>> { %7181 = vmatprep.mubr.msk.bf16.mxu0 %vm1494_vm5, %v3725_v13 }
 0xae0   : >>> { %v3726_v19 = vpop.trf.xlu0 }
 0xae1   : >>> { %7182 = vmatmul.mubr.msk.bf16.gmra.mrb[20].mxu0 %vm1494_vm5, %v3726_v19 }
 0xae4   : >>> { %v3727_v37 = vpop.trf.xlu0 }
 0xae5   : >>> { %7185 = vmatprep.mubr.msk.bf16.mxu0 %vm1494_vm5, %v3727_v37 }
 0xae8   : >>> { %v3728_v5 = vpop.trf.xlu0 }
 0xae9   : >>> { %7186 = vmatmul.mubr.msk.bf16.gmra.mrb[24].mxu0 %vm1494_vm5, %v3728_v5 }
 0xaec   : >>> { %v3729_v26 = vpop.trf.xlu0 }
 0xaed   : >>> { %7189 = vmatprep.mubr.msk.bf16.mxu0 %vm1494_vm5, %v3729_v26 }
 0xaf0   : >>> { %v3730_v17 = vpop.trf.xlu0 }
 0xaf1   : >>> { %7190 = vmatmul.mubr.msk.bf16.gmra.mrb[28].mxu0 %vm1494_vm5, %v3730_v17 }
 0xb8c   : >>> { %v7163_v25 = vpop.f32.mrb[0].mxu0 }
 0xb8d   : >>> { %v10590_v36 = vadd.f32 %v7163_v25, %v12730_v34  ;;  %v3816_v28 = vpop.f32.mrb[1].mxu0 }
 0xb8e   : >>> { %v7164_v40 = vpop.f32.mrb[2].mxu0  ;;  %v10593_v4 = vadd.f32 %v12731_v62, %v3816_v28 }
 0xb8f   : >>> { %v3819_v21 = vpop.f32.mrb[3].mxu0  ;;  %v3949_v22 = vsel %vm1494_vm5, %v10590_v36, -inf  ;;  %v10598_v31 = vadd.f32 %v7164_v40, %v12731_v62 }
 0xb90   : >>> { %3950 = vmax.xlane.f32.xlu1 %v3949_v22  ;;  %v3943_v60 = vsel %vm1494_vm5, %v10593_v4, -inf  ;;  %v10603_v14 = vadd.f32 %v12731_v62, %v3819_v21 }
 0xb91   : >>> { %v3952_v59 = vsel %vm1494_vm5, %v10598_v31, -inf }
 0xb92   : >>> { %v3946_v1 = vsel %vm1494_vm5, %v10603_v14, -inf }
 0xb94   : >>> { %3944 = vmax.xlane.f32.xlu1 %v3943_v60  ;;  %v7167_v29 = vpop.f32.mrb[4].mxu0 }
 0xb95   : >>> { %v3832_v38 = vpop.f32.mrb[5].mxu0  ;;  %v10625_v13 = vadd.f32 %v7167_v29, %v12731_v62 }
 0xb96   : >>> { %v7168_v27 = vpop.f32.mrb[6].mxu0  ;;  %v10613_v48 = vadd.f32 %v12731_v62, %v3832_v38 }
 0xb97   : >>> { %v3835_v42 = vpop.f32.mrb[7].mxu0  ;;  %v10634_v26 = vadd.f32 %v7168_v27, %v12731_v62  ;;  %v3961_v17 = vsel %vm1494_vm5, %v10625_v13, -inf }
 0xb98   : >>> { %v10608_v32 = vadd.f32 %v12731_v62, %v3835_v42  ;;  %3953 = vmax.xlane.f32.xlu1 %v3952_v59  ;;  %v3955_v37 = vsel %vm1494_vm5, %v10613_v48, -inf }
 0xb99   : >>> { %v3964_v21 = vsel %vm1494_vm5, %v10634_v26, -inf }
 0xb9a   : >>> { %v3958_v10 = vsel %vm1494_vm5, %v10608_v32, -inf }
 0xb9b   : >>> { %3959 = vmax.xlane.f32.xlu0 %v3958_v10 }
 0xb9c   : >>> { %3947 = vmax.xlane.f32.xlu1 %v3946_v1  ;;  %v7171_v7 = vpop.f32.mrb[8].mxu0 }
 0xb9d   : >>> { %v10618_v2 = vadd.f32 %v7171_v7, %v12731_v62  ;;  %v10620_v0 = vpop.f32.mrb[9].mxu0 }
 0xb9e   : >>> { %v10622_v16 = vpop.f32.mrb[10].mxu0 }
 0xb9f   : >>> { %v10627_v19 = vpop.f32.mrb[11].mxu0  ;;  %v3973_v5 = vsel %vm1494_vm5, %v10618_v2, -inf }
 0xba0   : >>> { %3956 = vmax.xlane.f32.xlu1 %v3955_v37  ;;  %3974 = vmax.xlane.f32.xlu0 %v3973_v5 }
 0xba4   : >>> { %3962 = vmax.xlane.f32.xlu1 %v3961_v17  ;;  %v7175_v25 = vpop.f32.mrb[12].mxu0 }
 0xba5   : >>> { %v3864_v34 = vpop.f32.mrb[13].mxu0  ;;  %v10696_v30 = vadd.f32 %v7175_v25, %v12731_v62 }
 0xba6   : >>> { %v10638_v28 = vpop.f32.mrb[14].mxu0  ;;  %v10673_v52 = vadd.f32 %v12731_v62, %v3864_v34 }
 0xba7   : >>> { %v10640_v40 = vpop.f32.mrb[15].mxu0  ;;  %v3985_v25 = vsel %vm1494_vm5, %v10696_v30, -inf }
 0xba8   : >>> { %3965 = vmax.xlane.f32.xlu1 %v3964_v21  ;;  %v3979_v50 = vsel %vm1494_vm5, %v10673_v52, -inf }
 0xbac   : >>> { %v7179_v22 = vpop.f32.mrb[16].mxu0 }
 0xbad   : >>> { %v10645_v60 = vadd.f32 %v7179_v22, %v12731_v62  ;;  %v3880_v29 = vpop.f32.mrb[17].mxu0 }
 0xbae   : >>> { %v7180_v38 = vpop.f32.mrb[18].mxu0  ;;  %v10648_v27 = vadd.f32 %v12731_v62, %v3880_v29 }
 0xbaf   : >>> { %v3883_v42 = vpop.f32.mrb[19].mxu0  ;;  %v3997_v59 = vsel %vm1494_vm5, %v10645_v60, -inf  ;;  %v10653_v10 = vadd.f32 %v7180_v38, %v12731_v62 }
 0xbb0   : >>> { %3998 = vmax.xlane.f32.xlu1 %v3997_v59  ;;  %v3991_v1 = vsel %vm1494_vm5, %v10648_v27, -inf  ;;  %v10658_v17 = vadd.f32 %v12731_v62, %v3883_v42 }
 0xbb1   : >>> { %v4000_v21 = vsel %vm1494_vm5, %v10653_v10, -inf }
 0xbb2   : >>> { %v3994_v38 = vsel %vm1494_vm5, %v10658_v17, -inf }
 0xbb4   : >>> { %3992 = vmax.xlane.f32.xlu1 %v3991_v1  ;;  %v7183_v7 = vpop.f32.mrb[20].mxu0 }
 0xbb5   : >>> { %v3896_v37 = vpop.f32.mrb[21].mxu0  ;;  %v10663_v29 = vadd.f32 %v7183_v7, %v12731_v62 }
 0xbb6   : >>> { %v7184_v5 = vpop.f32.mrb[22].mxu0 }
 0xbb7   : >>> { %v3899_v22 = vpop.f32.mrb[23].mxu0  ;;  %v4009_v42 = vsel %vm1494_vm5, %v10663_v29, -inf }
 0xbb8   : >>> { %4001 = vmax.xlane.f32.xlu1 %v4000_v21  ;;  %v10676_v21 = vadd.f32 %v12731_v62, %v3896_v37 }
 0xbbc   : >>> { %3995 = vmax.xlane.f32.xlu1 %v3994_v38  ;;  %v7187_v59 = vpop.f32.mrb[24].mxu0  ;;  %v10681_v38 = vadd.f32 %v7184_v5, %v12731_v62 }
 0xbbd   : >>> { %v10668_v1 = vadd.f32 %v7187_v59, %v12731_v62  ;;  %v3912_v45 = vpop.f32.mrb[25].mxu0  ;;  %v4003_v59 = vsel %vm1494_vm5, %v10676_v21, -inf }
 0xbbe   : >>> { %v7188_v3 = vpop.f32.mrb[26].mxu0  ;;  %v4012_v5 = vsel %vm1494_vm5, %v10681_v38, -inf }
 0xbbf   : >>> { %v4021_v7 = vsel %vm1494_vm5, %v10668_v1, -inf  ;;  %v3915_v61 = vpop.f32.mrb[27].mxu0 }
 0xbc0   : >>> { %4010 = vmax.xlane.f32.xlu1 %v4009_v42  ;;  %4022 = vmax.xlane.f32.xlu0 %v4021_v7  ;;  %v10691_v42 = vadd.f32 %v12731_v62, %v3899_v22  ;;  %v10727_v53 = vadd.f32 %v12731_v62, %v3915_v61  ;;  %v10742_v61 = vadd.f32 %v12731_v62, %v10640_v40 }
 0xbc2   : >>> { %v4006_v22 = vsel %vm1494_vm5, %v10691_v42, -inf }
 0xbc4   : >>> { %4004 = vmax.xlane.f32.xlu1 %v4003_v59  ;;  %3980 = vmax.xlane.f32.xlu0 %v3979_v50  ;;  %v7191_v34 = vpop.f32.mrb[28].mxu0 }
 0xbc5   : >>> { %v3928_v37 = vpop.f32.mrb[29].mxu0  ;;  %v10701_v59 = vadd.f32 %v7191_v34, %v12731_v62 }
 0xbc6   : >>> { %v10688_v63 = vadd.f32 %v12731_v62, %v3928_v37  ;;  %v7192_v11 = vpop.f32.mrb[30].mxu0  ;;  %v10705_v37 = vadd.f32 %v12731_v62, %v10620_v0  ;;  %v10720_v0 = vadd.f32 %v12731_v62, %v3912_v45  ;;  %v4018_v45 = vsel %vm1494_vm5, %v10727_v53, -inf }
 0xbc7   : >>> { %v3931_v7 = vpop.f32.mrb[31].mxu0  ;;  %v10758_v40 = vadd.f32 %v7192_v11, %v12731_v62 }
 0xbc8   : >>> { %4013 = vmax.xlane.f32.xlu1 %v4012_v5  ;;  %v4027_v50 = vsel %vm1494_vm5, %v10688_v63, -inf  ;;  %v4033_v5 = vsel %vm1494_vm5, %v10701_v59, -inf  ;;  %v3967_v34 = vsel %vm1494_vm5, %v10705_v37, -inf }
 0xbc9   : >>> { %4028 = vmax.xlane.f32.xlu0 %v4027_v50  ;;  %v10715_v50 = vadd.f32 %v12731_v62, %v10627_v19  ;;  %v10731_v19 = vadd.f32 %v10622_v16, %v12731_v62  ;;  %v10747_v16 = vadd.f32 %v12731_v62, %v3931_v7  ;;  %v4036_v7 = vsel %vm1494_vm5, %v10758_v40, -inf }
 0xbcc   : >>> { %4007 = vmax.xlane.f32.xlu1 %v4006_v22  ;;  %v3970_v22 = vsel %vm1494_vm5, %v10715_v50, -inf }
 0xbcd   : >>> { %3986 = vmax.xlane.f32.xlu0 %v3985_v25  ;;  %v4015_v25 = vsel %vm1494_vm5, %v10720_v0, -inf }
 0xbd0   : >>> { %3968 = vmax.xlane.f32.xlu1 %v3967_v34  ;;  %v3976_v34 = vsel %vm1494_vm5, %v10731_v19, -inf }
 0xbd1   : >>> { %4034 = vmax.xlane.f32.xlu0 %v4033_v5  ;;  %v10736_v5 = vadd.f32 %v7188_v3, %v12731_v62  ;;  %v10753_v3 = vadd.f32 %v10638_v28, %v12731_v62 }
 0xbd4   : >>> { %3971 = vmax.xlane.f32.xlu1 %v3970_v22  ;;  %v4024_v22 = vsel %vm1494_vm5, %v10736_v5, -inf }
 0xbd8   : >>> { %4016 = vmax.xlane.f32.xlu1 %v4015_v25  ;;  %v3982_v25 = vsel %vm1494_vm5, %v10742_v61, -inf }
 0xbdc   : >>> { %4019 = vmax.xlane.f32.xlu1 %v4018_v45  ;;  %v4030_v45 = vsel %vm1494_vm5, %v10747_v16, -inf }
 0xbe0   : >>> { %3977 = vmax.xlane.f32.xlu1 %v3976_v34  ;;  %v3988_v34 = vsel %vm1494_vm5, %v10753_v3, -inf }
 0xbe4   : >>> { %4025 = vmax.xlane.f32.xlu1 %v4024_v22 }
 0xbe8   : >>> { %3983 = vmax.xlane.f32.xlu1 %v3982_v25 }
 0xbec   : >>> { %4031 = vmax.xlane.f32.xlu1 %v4030_v45 }
 0xbf0   : >>> { %3989 = vmax.xlane.f32.xlu1 %v3988_v34 }
 0xbf4   : >>> { %4037 = vmax.xlane.f32.xlu1 %v4036_v7 }
 0xc1d   : >>> { %v3951_v22 = vpop.xlane.xlu1 %3950 }
 0xc21   : >>> { %v3945_v25 = vpop.xlane.xlu1 %3944 }
 0xc22   : >>> { %v4039_v28 = vsub.f32 %v10593_v4, %v3945_v25 }
 0xc24   : >>> { %v4071_v23 = vmul.f32 1.442695, %v4039_v28 }
 0xc25   : >>> { %v3954_v12 = vpop.xlane.xlu1 %3953 }
 0xc26   : >>> { %7974 = vpow2.f32 %v4071_v23 }
 0xc29   : >>> { %v3948_v41 = vpop.xlane.xlu1 %3947 }
 0xc2a   : >>> { %v4040_v45 = vsub.f32 %v10603_v14, %v3948_v41  ;;  %v4041_v41 = vsub.f32 %v10590_v36, %v3951_v22  ;;  %v3960_v36 = vpop.xlane.xlu0 %3959 }
 0xc2c   : >>> { %v4073_v11 = vmul.f32 1.442695, %v4040_v45  ;;  %v4075_v28 = vmul.f32 1.442695, %v4041_v41 }
 0xc2d   : >>> { %v3957_v62 = vpop.xlane.xlu1 %3956 }
 0xc2e   : >>> { %7976 = vpow2.f32 %v4073_v11  ;;  %v4043_v8 = vsub.f32 %v10613_v48, %v3957_v62 }
 0xc30   : >>> { %v10766_v35 = vpop.eup %7974  ;;  %v4079_v22 = vmul.f32 1.442695, %v4043_v8 }
 0xc31   : >>> { %v4135_v34 = vsel %vm1494_vm5, %v10766_v35, 0.0  ;;  %v3963_v7 = vpop.xlane.xlu1 %3962 }
 0xc32   : >>> { %4136 = vadd.xlane.f32.xlu0 %v4135_v34  ;;  %v4042_v34 = vsub.f32 %v10598_v31, %v3954_v12  ;;  %v4045_v62 = vsub.f32 %v10625_v13, %v3963_v7 }
 0xc34   : >>> { %v4077_v39 = vmul.f32 1.442695, %v4042_v34 }
 0xc35   : >>> { %v3966_v20 = vpop.xlane.xlu1 %3965 }
 0xc38   : >>> { %v10770_v57 = vpop.eup %7976 }
 0xc39   : >>> { %v4138_v4 = vsel %vm1494_vm5, %v10770_v57, 0.0 }
 0xc3a   : >>> { %4139 = vadd.xlane.f32.xlu1 %v4138_v4 }
 0xc3d   : >>> { %v3999_v23 = vpop.xlane.xlu1 %3998 }
 0xc3e   : >>> { %v4057_v45 = vsub.f32 %v10645_v60, %v3999_v23  ;;  %v4044_v23 = vsub.f32 %v10608_v32, %v3960_v36 }
 0xc40   : >>> { %v4107_v6 = vmul.f32 1.442695, %v4057_v45  ;;  %v3975_v45 = vpop.xlane.xlu0 %3974 }
 0xc41   : >>> { %v3993_v14 = vpop.xlane.xlu1 %3992 }
 0xc42   : >>> { %v4055_v25 = vsub.f32 %v10648_v27, %v3993_v14 }
 0xc44   : >>> { %v4103_v11 = vmul.f32 1.442695, %v4055_v25 }
 0xc45   : >>> { %v4002_v49 = vpop.xlane.xlu1 %4001 }
 0xc46   : >>> { %7978 = vpow2.f32 %v4103_v11  ;;  %v4058_v27 = vsub.f32 %v10653_v10, %v4002_v49  ;;  %v4083_v10 = vmul.f32 1.442695, %v4045_v62 }
 0xc47   : >>> { %7980 = vpow2.f32 %v4075_v28 }
 0xc48   : >>> { %7982 = vpow2.f32 %v4107_v6  ;;  %v4109_v31 = vmul.f32 1.442695, %v4058_v27  ;;  %v4081_v6 = vmul.f32 1.442695, %v4044_v23 }
 0xc49   : >>> { %v3996_v18 = vpop.xlane.xlu1 %3995 }
 0xc4a   : >>> { %v4056_v4 = vsub.f32 %v10658_v17, %v3996_v18 }
 0xc4c   : >>> { %v4105_v41 = vmul.f32 1.442695, %v4056_v4 }
 0xc4d   : >>> { %v4011_v60 = vpop.xlane.xlu1 %4010  ;;  %v4023_v27 = vpop.xlane.xlu0 %4022 }
 0xc4e   : >>> { %7984 = vpow2.f32 %v4105_v41 }
 0xc4f   : >>> { %7986 = vpow2.f32 %v4077_v39  ;;  %v4061_v39 = vsub.f32 %v10663_v29, %v4011_v60 }
 0xc50   : >>> { %v10782_v12 = vpop.eup %7978  ;;  %7988 = vpow2.f32 %v4079_v22 }
 0xc51   : >>> { %v4005_v48 = vpop.xlane.xlu1 %4004  ;;  %v4183_v18 = vsel %vm1494_vm5, %v10782_v12, 0.0  ;;  %v10787_v8 = vpop.eup %7980  ;;  %7990 = vpow2.f32 %v4109_v31  ;;  %v4115_v25 = vmul.f32 1.442695, %v4061_v39 }
 0xc52   : >>> { %v4059_v49 = vsub.f32 %v10676_v21, %v4005_v48  ;;  %4184 = vadd.xlane.f32.xlu0 %v4183_v18  ;;  %v4141_v13 = vsel %vm1494_vm5, %v10787_v8, 0.0  ;;  %v10793_v7 = vpop.eup %7982  ;;  %v4046_v21 = vsub.f32 %v10634_v26, %v3966_v20 }
 0xc53   : >>> { %v4189_v34 = vsel %vm1494_vm5, %v10793_v7, 0.0 }
 0xc54   : >>> { %v4111_v32 = vmul.f32 1.442695, %v4059_v49  ;;  %v4085_v22 = vmul.f32 1.442695, %v4046_v21 }
 0xc55   : >>> { %v4014_v17 = vpop.xlane.xlu1 %4013 }
 0xc56   : >>> { %7992 = vpow2.f32 %v4111_v32  ;;  %4142 = vadd.xlane.f32.xlu0 %v4141_v13  ;;  %v4062_v20 = vsub.f32 %v10681_v38, %v4014_v17  ;;  %v3981_v32 = vpop.xlane.xlu0 %3980  ;;  %v4049_v17 = vsub.f32 %v10618_v2, %v3975_v45  ;;  %v4065_v2 = vsub.f32 %v10668_v1, %v4023_v27 }
 0xc57   : >>> { %7994 = vpow2.f32 %v4081_v6  ;;  %v4051_v27 = vsub.f32 %v10673_v52, %v3981_v32 }
 0xc58   : >>> { %v10795_v14 = vpop.eup %7984  ;;  %7996 = vpow2.f32 %v4083_v10  ;;  %v4117_v38 = vmul.f32 1.442695, %v4062_v20  ;;  %v4123_v1 = vmul.f32 1.442695, %v4065_v2 }
 0xc59   : >>> { %v10798_v28 = vpop.eup %7986  ;;  %v4008_v29 = vpop.xlane.xlu1 %4007  ;;  %v4186_v11 = vsel %vm1494_vm5, %v10795_v14, 0.0  ;;  %7998 = vpow2.f32 %v4115_v25 }
 0xc5a   : >>> { %v10804_v4 = vpop.eup %7988  ;;  %v4060_v36 = vsub.f32 %v10691_v42, %v4008_v29  ;;  %4187 = vadd.xlane.f32.xlu1 %v4186_v11  ;;  %4190 = vadd.xlane.f32.xlu0 %v4189_v34  ;;  %v4144_v60 = vsel %vm1494_vm5, %v10798_v28, 0.0 }
 0xc5b   : >>> { %v4147_v23 = vsel %vm1494_vm5, %v10804_v4, 0.0  ;;  %v10812_v62 = vpop.eup %7990 }
 0xc5c   : >>> { %v4113_v26 = vmul.f32 1.442695, %v4060_v36  ;;  %v4192_v6 = vsel %vm1494_vm5, %v10812_v62, 0.0  ;;  %v4091_v36 = vmul.f32 1.442695, %v4049_v17 }
 0xc5d   : >>> { %v3969_v41 = vpop.xlane.xlu1 %3968 }
 0xc5e   : >>> { %8000 = vpow2.f32 %v4113_v26  ;;  %v4047_v42 = vsub.f32 %v10705_v37, %v3969_v41  ;;  %4145 = vadd.xlane.f32.xlu1 %v4144_v60  ;;  %4148 = vadd.xlane.f32.xlu0 %v4147_v23 }
 0xc5f   : >>> { %8002 = vpow2.f32 %v4085_v22  ;;  %v4029_v22 = vpop.xlane.xlu0 %4028 }
 0xc60   : >>> { %v10815_v31 = vpop.eup %7992  ;;  %v4087_v48 = vmul.f32 1.442695, %v4047_v42  ;;  %v4067_v52 = vsub.f32 %v10688_v63, %v4029_v22 }
 0xc61   : >>> { %v10817_v18 = vpop.eup %7994  ;;  %v3972_v49 = vpop.xlane.xlu1 %3971  ;;  %v4195_v10 = vsel %vm1494_vm5, %v10815_v31, 0.0 }
 0xc62   : >>> { %v10823_v39 = vpop.eup %7996  ;;  %8004 = vpow2.f32 %v4087_v48  ;;  %v4048_v37 = vsub.f32 %v10715_v50, %v3972_v49  ;;  %4193 = vadd.xlane.f32.xlu1 %v4192_v6  ;;  %4196 = vadd.xlane.f32.xlu0 %v4195_v10  ;;  %v4150_v29 = vsel %vm1494_vm5, %v10817_v18, 0.0 }
 0xc63   : >>> { %8006 = vpow2.f32 %v4117_v38  ;;  %v4153_v25 = vsel %vm1494_vm5, %v10823_v39, 0.0  ;;  %v10831_v11 = vpop.eup %7998  ;;  %v3987_v10 = vpop.xlane.xlu0 %3986 }
 0xc64   : >>> { %v4089_v13 = vmul.f32 1.442695, %v4048_v37  ;;  %v4201_v26 = vsel %vm1494_vm5, %v10831_v11, 0.0  ;;  %v4095_v37 = vmul.f32 1.442695, %v4051_v27 }
 0xc65   : >>> { %v4017_v21 = vpop.xlane.xlu1 %4016 }
 0xc66   : >>> { %v4063_v34 = vsub.f32 %v10720_v0, %v4017_v21  ;;  %4154 = vadd.xlane.f32.xlu0 %v4153_v25  ;;  %4151 = vadd.xlane.f32.xlu1 %v4150_v29  ;;  %8008 = vpow2.f32 %v4089_v13 }
 0xc67   : >>> { %v4035_v2 = vpop.xlane.xlu0 %4034 }
 0xc68   : >>> { %v10834_v50 = vpop.eup %8000  ;;  %v4119_v45 = vmul.f32 1.442695, %v4063_v34  ;;  %v4053_v34 = vsub.f32 %v10696_v30, %v3987_v10 }
 0xc69   : >>> { %v4020_v20 = vpop.xlane.xlu1 %4019  ;;  %v4198_v41 = vsel %vm1494_vm5, %v10834_v50, 0.0  ;;  %v10841_v60 = vpop.eup %8002 }
 0xc6a   : >>> { %8010 = vpow2.f32 %v4119_v45  ;;  %v4064_v0 = vsub.f32 %v10727_v53, %v4020_v20  ;;  %4202 = vadd.xlane.f32.xlu0 %v4201_v26  ;;  %4199 = vadd.xlane.f32.xlu1 %v4198_v41  ;;  %v4156_v49 = vsel %vm1494_vm5, %v10841_v60, 0.0  ;;  %v4099_v30 = vmul.f32 1.442695, %v4053_v34 }
 0xc6b   : >>> { %8012 = vpow2.f32 %v4091_v36  ;;  %v4069_v41 = vsub.f32 %v10701_v59, %v4035_v2 }
 0xc6c   : >>> { %v10844_v23 = vpop.eup %8004  ;;  %v4121_v42 = vmul.f32 1.442695, %v4064_v0 }
 0xc6d   : >>> { %v3978_v38 = vpop.xlane.xlu1 %3977  ;;  %v4159_v48 = vsel %vm1494_vm5, %v10844_v23, 0.0  ;;  %v10851_v6 = vpop.eup %8006 }
 0xc6e   : >>> { %8014 = vpow2.f32 %v4121_v42  ;;  %v4050_v53 = vsub.f32 %v10731_v19, %v3978_v38  ;;  %4160 = vadd.xlane.f32.xlu0 %v4159_v48  ;;  %4157 = vadd.xlane.f32.xlu1 %v4156_v49  ;;  %v4204_v13 = vsel %vm1494_vm5, %v10851_v6, 0.0  ;;  %v4127_v19 = vmul.f32 1.442695, %v4067_v52 }
 0xc6f   : >>> { %8016 = vpow2.f32 %v4123_v1  ;;  %v4131_v49 = vmul.f32 1.442695, %v4069_v41 }
 0xc70   : >>> { %v4093_v32 = vmul.f32 1.442695, %v4050_v53  ;;  %v10857_v21 = vpop.eup %8008 }
 0xc71   : >>> { %v4026_v17 = vpop.xlane.xlu1 %4025  ;;  %v4162_v22 = vsel %vm1494_vm5, %v10857_v21, 0.0 }
 0xc72   : >>> { %8018 = vpow2.f32 %v4093_v32  ;;  %v4066_v25 = vsub.f32 %v10736_v5, %v4026_v17  ;;  %4205 = vadd.xlane.f32.xlu1 %v4204_v13 }
 0xc73   : >>> { %8020 = vpow2.f32 %v4095_v37 }
 0xc74   : >>> { %v10860_v29 = vpop.eup %8010  ;;  %v4125_v36 = vmul.f32 1.442695, %v4066_v25 }
 0xc75   : >>> { %v3984_v63 = vpop.xlane.xlu1 %3983  ;;  %v4207_v45 = vsel %vm1494_vm5, %v10860_v29, 0.0  ;;  %v10867_v20 = vpop.eup %8012 }
 0xc76   : >>> { %8022 = vpow2.f32 %v4125_v36  ;;  %v4052_v5 = vsub.f32 %v10742_v61, %v3984_v63  ;;  %4208 = vadd.xlane.f32.xlu0 %v4207_v45  ;;  %4163 = vadd.xlane.f32.xlu1 %v4162_v22  ;;  %v4165_v42 = vsel %vm1494_vm5, %v10867_v20, 0.0 }
 0xc77   : >>> { %8024 = vpow2.f32 %v4127_v19 }
 0xc78   : >>> { %v10870_v26 = vpop.eup %8014  ;;  %v4097_v0 = vmul.f32 1.442695, %v4052_v5 }
 0xc79   : >>> { %v4032_v1 = vpop.xlane.xlu1 %4031  ;;  %v4210_v27 = vsel %vm1494_vm5, %v10870_v26, 0.0  ;;  %v10877_v38 = vpop.eup %8016 }
 0xc7a   : >>> { %8026 = vpow2.f32 %v4097_v0  ;;  %v4068_v61 = vsub.f32 %v10747_v16, %v4032_v1  ;;  %4211 = vadd.xlane.f32.xlu1 %v4210_v27  ;;  %4166 = vadd.xlane.f32.xlu0 %v4165_v42  ;;  %v4213_v37 = vsel %vm1494_vm5, %v10877_v38, 0.0 }
 0xc7b   : >>> { %8028 = vpow2.f32 %v4099_v30 }
 0xc7c   : >>> { %v10880_v48 = vpop.eup %8018  ;;  %v4129_v59 = vmul.f32 1.442695, %v4068_v61 }
 0xc7d   : >>> { %v3990_v53 = vpop.xlane.xlu1 %3989  ;;  %v4168_v10 = vsel %vm1494_vm5, %v10880_v48, 0.0  ;;  %v10886_v52 = vpop.eup %8020 }
 0xc7e   : >>> { %8030 = vpow2.f32 %v4129_v59  ;;  %v4054_v32 = vsub.f32 %v10753_v3, %v3990_v53  ;;  %4169 = vadd.xlane.f32.xlu1 %v4168_v10  ;;  %4214 = vadd.xlane.f32.xlu0 %v4213_v37  ;;  %v4171_v19 = vsel %vm1494_vm5, %v10886_v52, 0.0 }
 0xc7f   : >>> { %8032 = vpow2.f32 %v4131_v49  ;;  %v6792_v49 = vld [vmem:[%s10566_s2 + $0x40] sm:$0xff]  ;;  %s11245_s2 = scalar_lea.vmem (%p3672_p5), %s12454_s16, %s9775_s26 }
 0xc80   : >>> { %v10889_v16 = vpop.eup %8022  ;;  %v4101_v17 = vmul.f32 1.442695, %v4054_v32  ;;  %v10925_v59 = vpack.c.bf16 %v6792_v49, %v6792_v49 }
 0xc81   : >>> { %v4038_v13 = vpop.xlane.xlu1 %4037  ;;  %v4216_v25 = vsel %vm1494_vm5, %v10889_v16, 0.0  ;;  %v10895_v34 = vpop.eup %8024 }
 0xc82   : >>> { %8034 = vpow2.f32 %v4101_v17  ;;  %v4070_v36 = vsub.f32 %v10758_v40, %v4038_v13  ;;  %4217 = vadd.xlane.f32.xlu1 %v4216_v25  ;;  %4172 = vadd.xlane.f32.xlu0 %v4171_v19  ;;  %v4219_v45 = vsel %vm1494_vm5, %v10895_v34, 0.0 }
 0xc83   : >>> { %7011 = vmatprep.mubr.msk.bf16.mxu1 %vm1494_vm5, %v10925_v59 }
 0xc84   : >>> { %v10898_v3 = vpop.eup %8026  ;;  %v4133_v2 = vmul.f32 1.442695, %v4070_v36 }
 0xc85   : >>> { %v4174_v63 = vsel %vm1494_vm5, %v10898_v3, 0.0  ;;  %v10904_v22 = vpop.eup %8028 }
 0xc86   : >>> { %8036 = vpow2.f32 %v4133_v2  ;;  %4175 = vadd.xlane.f32.xlu1 %v4174_v63  ;;  %4220 = vadd.xlane.f32.xlu0 %v4219_v45  ;;  %v4177_v30 = vsel %vm1494_vm5, %v10904_v22, 0.0 }
 0xc88   : >>> { %v10906_v5 = vpop.eup %8030 }
 0xc89   : >>> { %v4222_v40 = vsel %vm1494_vm5, %v10906_v5, 0.0  ;;  %v10912_v41 = vpop.eup %8032 }
 0xc8a   : >>> { %4223 = vadd.xlane.f32.xlu1 %v4222_v40  ;;  %4178 = vadd.xlane.f32.xlu0 %v4177_v30  ;;  %v4225_v27 = vsel %vm1494_vm5, %v10912_v41, 0.0 }
 0xc8c   : >>> { %v10914_v0 = vpop.eup %8034 }
 0xc8d   : >>> { %v4180_v1 = vsel %vm1494_vm5, %v10914_v0, 0.0 }
 0xc8e   : >>> { %4181 = vadd.xlane.f32.xlu1 %v4180_v1  ;;  %4226 = vadd.xlane.f32.xlu0 %v4225_v27 }
 0xc90   : >>> { %v10920_v42 = vpop.eup %8036 }
 0xc91   : >>> { %v4228_v61 = vsel %vm1494_vm5, %v10920_v42, 0.0 }
 0xc92   : >>> { %4229 = vadd.xlane.f32.xlu1 %v4228_v61 }
 0xcbf   : >>> { %v4137_v53 = vpop.xlane.xlu0 %4136 }
 0xcc7   : >>> { %v4140_v10 = vpop.xlane.xlu1 %4139 }
 0xcc8   : >>> { %8038 = vrcp.f32 %v4140_v10 }
 0xcc9   : >>> { %8040 = vrcp.f32 %v4137_v53 }
 0xcd2   : >>> { %v8039_v36 = vpop.eup %8038 }
 0xcd3   : >>> { %v8041_v2 = vpop.eup %8040  ;;  %v4264_v40 = vmul.f32 %v8039_v36, %v10770_v57 }
 0xcd4   : >>> { %v4263_v1 = vmul.f32 %v8041_v2, %v10766_v35 }
 0xcdf   : >>> { %v4185_v37 = vpop.xlane.xlu0 %4184 }
 0xce0   : >>> { %8042 = vrcp.f32 %v4185_v37  ;;  %v4295_v37 = vpack.c.bf16 %v4264_v40, %v4263_v1 }
 0xce2   : >>> { %v4315_v57 = vsel %vm1494_vm5, %v4295_v37, 0 }
 0xce3   : >>> { %v4143_v32 = vpop.xlane.xlu0 %4142 }
 0xce7   : >>> { %v4188_v17 = vpop.xlane.xlu1 %4187  ;;  %v4191_v13 = vpop.xlane.xlu0 %4190 }
 0xce8   : >>> { %8044 = vrcp.f32 %v4188_v17 }
 0xce9   : >>> { %8046 = vrcp.f32 %v4143_v32 }
 0xcea   : >>> { %v8043_v30 = vpop.eup %8042 }
 0xceb   : >>> { %v4146_v25 = vpop.xlane.xlu1 %4145  ;;  %v4149_v19 = vpop.xlane.xlu0 %4148  ;;  %v4279_v53 = vmul.f32 %v8043_v30, %v10782_v12 }
 0xcec   : >>> { %8048 = vrcp.f32 %v4146_v25 }
 0xced   : >>> { %8050 = vrcp.f32 %v4191_v13 }
 0xcef   : >>> { %v4194_v63 = vpop.xlane.xlu1 %4193  ;;  %v4197_v45 = vpop.xlane.xlu0 %4196 }
 0xcf0   : >>> { %8052 = vrcp.f32 %v4194_v63 }
 0xcf1   : >>> { %8054 = vrcp.f32 %v4149_v19 }
 0xcf2   : >>> { %v8045_v27 = vpop.eup %8044 }
 0xcf3   : >>> { %v4152_v61 = vpop.xlane.xlu1 %4151  ;;  %v4155_v49 = vpop.xlane.xlu0 %4154  ;;  %v4280_v10 = vmul.f32 %v8045_v27, %v10795_v14 }
 0xcf4   : >>> { %8056 = vrcp.f32 %v4152_v61  ;;  %v8047_v32 = vpop.eup %8046 }
 0xcf5   : >>> { %v4303_v17 = vpack.c.bf16 %v4280_v10, %v4279_v53  ;;  %8058 = vrcp.f32 %v4197_v45  ;;  %v4265_v12 = vmul.f32 %v8047_v32, %v10787_v8 }
 0xcf6   : >>> { %v8049_v13 = vpop.eup %8048 }
 0xcf7   : >>> { %v4200_v25 = vpop.xlane.xlu1 %4199  ;;  %7374 = vmatprep.subr.msk.bf16.mxu1 %vm1494_vm5, %v4303_v17  ;;  %v4266_v35 = vmul.f32 %v8049_v13, %v10798_v28  ;;  %v8051_v19 = vpop.eup %8050 }
 0xcf8   : >>> { %8060 = vrcp.f32 %v4200_v25  ;;  %6996 = vmatpush3.bf16.xpose.msra.mxu1 %v4315_v57  ;;  %v4203_v36 = vpop.xlane.xlu0 %4202  ;;  %v4281_v63 = vmul.f32 %v8051_v19, %v10793_v7 }
 0xcf9   : >>> { %8062 = vrcp.f32 %v4155_v49  ;;  %v4296_v40 = vpack.c.bf16 %v4266_v35, %v4265_v12 }
 0xcfa   : >>> { %v8053_v14 = vpop.eup %8052 }
 0xcfb   : >>> { %v4158_v2 = vpop.xlane.xlu1 %4157  ;;  %v4282_v45 = vmul.f32 %v8053_v14, %v10812_v62  ;;  %v8055_v30 = vpop.eup %8054  ;;  %v4318_v53 = vsel %vm1494_vm5, %v4296_v40, 0 }
 0xcfc   : >>> { %8064 = vrcp.f32 %v4158_v2  ;;  %v4161_v28 = vpop.xlane.xlu0 %4160  ;;  %v4267_v7 = vmul.f32 %v8055_v30, %v10804_v4 }
 0xcfd   : >>> { %v4304_v1 = vpack.c.bf16 %v4282_v45, %v4281_v63  ;;  %8066 = vrcp.f32 %v4203_v36 }
 0xcfe   : >>> { %v8057_v27 = vpop.eup %8056 }
 0xcff   : >>> { %v4206_v61 = vpop.xlane.xlu1 %4205  ;;  %7375 = vmatprep.subr.msk.bf16.mxu1 %vm1494_vm5, %v4304_v1  ;;  %v4268_v8 = vmul.f32 %v8057_v27, %v10817_v18  ;;  %v8059_v49 = vpop.eup %8058 }
 0xd00   : >>> { %8068 = vrcp.f32 %v4206_v61  ;;  %6998 = vmatpush3.bf16.xpose.msra.mxu1 %v4318_v53  ;;  %v4283_v32 = vmul.f32 %v8059_v49, %v10815_v31 }
 0xd01   : >>> { %8070 = vrcp.f32 %v4161_v28  ;;  %v4297_v13 = vpack.c.bf16 %v4268_v8, %v4267_v7 }
 0xd02   : >>> { %v8061_v62 = vpop.eup %8060 }
 0xd03   : >>> { %v4164_v10 = vpop.xlane.xlu1 %4163  ;;  %v4209_v37 = vpop.xlane.xlu0 %4208  ;;  %v4284_v17 = vmul.f32 %v8061_v62, %v10834_v50  ;;  %v4321_v4 = vsel %vm1494_vm5, %v4297_v13, 0 }
 0xd04   : >>> { %8072 = vrcp.f32 %v4164_v10  ;;  %v8063_v25 = vpop.eup %8062 }
 0xd05   : >>> { %v4305_v57 = vpack.c.bf16 %v4284_v17, %v4283_v32  ;;  %8074 = vrcp.f32 %v4209_v37  ;;  %v4269_v31 = vmul.f32 %v8063_v25, %v10823_v39 }
 0xd06   : >>> { %v8065_v35 = vpop.eup %8064 }
 0xd07   : >>> { %v4212_v18 = vpop.xlane.xlu1 %4211  ;;  %7376 = vmatprep.subr.msk.bf16.mxu1 %vm1494_vm5, %v4305_v57  ;;  %v4167_v19 = vpop.xlane.xlu0 %4166  ;;  %v4270_v36 = vmul.f32 %v8065_v35, %v10841_v60 }
 0xd08   : >>> { %v8067_v12 = vpop.eup %8066  ;;  %8076 = vrcp.f32 %v4212_v18  ;;  %7000 = vmatpush3.bf16.xpose.msra.mxu1 %v4321_v4 }
 0xd09   : >>> { %8078 = vrcp.f32 %v4167_v19  ;;  %v4285_v63 = vmul.f32 %v8067_v12, %v10831_v11  ;;  %v4298_v40 = vpack.c.bf16 %v4270_v36, %v4269_v31 }
 0xd0a   : >>> { %v8069_v50 = vpop.eup %8068 }
 0xd0b   : >>> { %v4170_v14 = vpop.xlane.xlu1 %4169  ;;  %v4215_v2 = vpop.xlane.xlu0 %4214  ;;  %v4286_v45 = vmul.f32 %v8069_v50, %v10851_v6  ;;  %v4324_v39 = vsel %vm1494_vm5, %v4298_v40, 0 }
 0xd0c   : >>> { %8080 = vrcp.f32 %v4170_v14  ;;  %v8071_v30 = vpop.eup %8070 }
 0xd0d   : >>> { %v4306_v1 = vpack.c.bf16 %v4286_v45, %v4285_v63  ;;  %8082 = vrcp.f32 %v4215_v2  ;;  %v4271_v11 = vmul.f32 %v8071_v30, %v10844_v23 }
 0xd0e   : >>> { %v8073_v27 = vpop.eup %8072 }
 0xd0f   : >>> { %v4218_v60 = vpop.xlane.xlu1 %4217  ;;  %7377 = vmatprep.subr.msk.bf16.mxu1 %vm1494_vm5, %v4306_v1  ;;  %v4173_v28 = vpop.xlane.xlu0 %4172  ;;  %v4272_v61 = vmul.f32 %v8073_v27, %v10857_v21 }
 0xd10   : >>> { %v8075_v53 = vpop.eup %8074  ;;  %8084 = vrcp.f32 %v4218_v60  ;;  %7002 = vmatpush3.bf16.xpose.msra.mxu1 %v4324_v39 }
 0xd11   : >>> { %8086 = vrcp.f32 %v4173_v28  ;;  %v4287_v7 = vmul.f32 %v8075_v53, %v10860_v29  ;;  %v4299_v10 = vpack.c.bf16 %v4272_v61, %v4271_v11 }
 0xd12   : >>> { %v8077_v6 = vpop.eup %8076 }
 0xd13   : >>> { %v4176_v8 = vpop.xlane.xlu1 %4175  ;;  %v4221_v49 = vpop.xlane.xlu0 %4220  ;;  %v4288_v62 = vmul.f32 %v8077_v6, %v10870_v26  ;;  %v4327_v23 = vsel %vm1494_vm5, %v4299_v10, 0 }
 0xd14   : >>> { %8088 = vrcp.f32 %v4176_v8  ;;  %v8079_v37 = vpop.eup %8078 }
 0xd15   : >>> { %v4307_v32 = vpack.c.bf16 %v4288_v62, %v4287_v7  ;;  %8090 = vrcp.f32 %v4221_v49  ;;  %v4273_v29 = vmul.f32 %v8079_v37, %v10867_v20 }
 0xd16   : >>> { %v8081_v17 = vpop.eup %8080 }
 0xd17   : >>> { %v4224_v21 = vpop.xlane.xlu1 %4223  ;;  %7378 = vmatprep.subr.msk.bf16.mxu1 %vm1494_vm5, %v4307_v32  ;;  %v4179_v13 = vpop.xlane.xlu0 %4178  ;;  %v4274_v25 = vmul.f32 %v8081_v17, %v10880_v48 }
 0xd18   : >>> { %v8083_v57 = vpop.eup %8082  ;;  %8092 = vrcp.f32 %v4224_v21  ;;  %7004 = vmatpush3.bf16.xpose.msra.mxu1 %v4327_v23 }
 0xd19   : >>> { %8094 = vrcp.f32 %v4179_v13  ;;  %v4289_v19 = vmul.f32 %v8083_v57, %v10877_v38  ;;  %v4300_v36 = vpack.c.bf16 %v4274_v25, %v4273_v29 }
 0xd1a   : >>> { %v8085_v26 = vpop.eup %8084 }
 0xd1b   : >>> { %v4182_v35 = vpop.xlane.xlu1 %4181  ;;  %v4227_v18 = vpop.xlane.xlu0 %4226  ;;  %v4290_v4 = vmul.f32 %v8085_v26, %v10889_v16  ;;  %v4330_v14 = vsel %vm1494_vm5, %v4300_v36, 0 }
 0xd1c   : >>> { %8096 = vrcp.f32 %v4182_v35  ;;  %v8087_v12 = vpop.eup %8086  ;;  %v8102_v35 = vld [vmem:[%s10988_s25] sm:$0xff] (%p3672_p5)  }
 0xd1d   : >>> { %v4308_v31 = vpack.c.bf16 %v4290_v4, %v4289_v19  ;;  %8098 = vrcp.f32 %v4227_v18  ;;  %v4275_v38 = vmul.f32 %v8087_v12, %v10886_v52  ;;  %v8103_v19 = vld [vmem:[%s10988_s25 + $0x8] sm:$0xff] (%p3672_p5)   ;;  %7193 = vmatprep.subr.bf16.mxu0 (%p3672_p5), %v8102_v35  ;;  %v8104_v12 = vld [vmem:[%s10988_s25 + $0x10] sm:$0xff] (%p3672_p5)  }
 0xd1e   : >>> { %v8089_v50 = vpop.eup %8088  ;;  %7194 = vmatpush3.bf16.msra.mxu0 (%p3672_p5), %v8102_v35 }
 0xd1f   : >>> { %v4230_v48 = vpop.xlane.xlu1 %4229  ;;  %7379 = vmatprep.subr.msk.bf16.mxu1 %vm1494_vm5, %v4308_v31  ;;  %v4276_v20 = vmul.f32 %v8089_v50, %v10898_v3  ;;  %v8091_v2 = vpop.eup %8090  ;;  %7195 = vmatprep.subr.bf16.mxu0 (%p3672_p5), %v8103_v19 }
 0xd20   : >>> { %8100 = vrcp.f32 %v4230_v48  ;;  %7006 = vmatpush3.bf16.xpose.msra.mxu1 %v4330_v14  ;;  %v4291_v16 = vmul.f32 %v8091_v2, %v10895_v34 }
 0xd21   : >>> { %v4301_v40 = vpack.c.bf16 %v4276_v20, %v4275_v38  ;;  %v8105_v20 = vld [vmem:[%s10988_s25 + $0x18] sm:$0xff] (%p3672_p5)  }
 0xd22   : >>> { %v8093_v63 = vpop.eup %8092  ;;  %7196 = vmatpush3.bf16.msra.mxu0 (%p3672_p5), %v8103_v19 }
 0xd23   : >>> { %v4292_v45 = vmul.f32 %v8093_v63, %v10906_v5  ;;  %v8095_v30 = vpop.eup %8094  ;;  %v4333_v60 = vsel %vm1494_vm5, %v4301_v40, 0  ;;  %7197 = vmatprep.subr.bf16.mxu0 (%p3672_p5), %v8104_v12 }
 0xd24   : >>> { %v4277_v52 = vmul.f32 %v8095_v30, %v10904_v22 }
 0xd25   : >>> { %v4309_v1 = vpack.c.bf16 %v4292_v45, %v4291_v16 }
 0xd26   : >>> { %v8097_v27 = vpop.eup %8096  ;;  %7198 = vmatpush3.bf16.msra.mxu0 (%p3672_p5), %v8104_v12 }
 0xd27   : >>> { %7380 = vmatprep.subr.msk.bf16.mxu1 %vm1494_vm5, %v4309_v1  ;;  %v4278_v3 = vmul.f32 %v8097_v27, %v10914_v0  ;;  %v8099_v28 = vpop.eup %8098  ;;  %7199 = vmatprep.subr.bf16.mxu0 (%p3672_p5), %v8105_v20 }
 0xd28   : >>> { %7008 = vmatpush3.bf16.xpose.msra.mxu1 %v4333_v60  ;;  %v4293_v34 = vmul.f32 %v8099_v28, %v10912_v41 }
 0xd29   : >>> { %v4302_v61 = vpack.c.bf16 %v4278_v3, %v4277_v52 }
 0xd2a   : >>> { %v8101_v39 = vpop.eup %8100  ;;  %7200 = vmatpush3.bf16.msra.mxu0 (%p3672_p5), %v8105_v20 }
 0xd2b   : >>> { %v4294_v5 = vmul.f32 %v8101_v39, %v10920_v42  ;;  %v4336_v11 = vsel %vm1494_vm5, %v4302_v61, 0  ;;  %v11014_v61 = vld [vmem:[%s4441_s30] ss:$0 sm:$0xff] (%p3672_p5)  ;;  %s844_s30 = sadd.s32 (%p3672_p5), 1, %s8525_s4  }
 0xd2c   : >> { %p12272_p6 = scmp.ge.s32.totalorder (%p3672_p5), %s844_s30, 6   ;;  %s12820_s4 = smov (%p3672_p5), %s844_s30 }
 0xd2d   : >>> { %v4310_v53 = vpack.c.bf16 %v4294_v5, %v4293_v34 }
 0xd2f   : >>> { %7381 = vmatprep.subr.msk.bf16.mxu1 %vm1494_vm5, %v4310_v53 }
 0xd30   : >>> { %7010 = vmatpush3.bf16.xpose.msra.mxu1 %v4336_v11 }
 0xd31   : >> { %7339 = vmatprep.subr.bf16.mxu1 (%p3672_p5), %v8102_v35 }
 0xd37   : >>> { %7012 = vmatmul.mubr.msk.bf16.vlgmr.msra.gmra.mrb[0].mxu1 %vm1494_vm5, %v10925_v59 }
 0xd38   : >> { %7343 = vmatpush3.bf16.msra.mxu1 (%p3672_p5), %v8102_v35 }
 0xd39   : >> { %7340 = vmatprep.subr.bf16.mxu1 (%p3672_p5), %v8103_v19 }
 0xd3c   : >> { %7344 = vmatpush3.bf16.msra.mxu1 (%p3672_p5), %v8103_v19 }
 0xd3d   : >> { %7341 = vmatprep.subr.bf16.mxu1 (%p3672_p5), %v8104_v12 }
 0xd40   : >> { %7345 = vmatpush3.bf16.msra.mxu1 (%p3672_p5), %v8104_v12 }
 0xd41   : >> { %7342 = vmatprep.subr.bf16.mxu1 (%p3672_p5), %v8105_v20 }
 0xd44   : >> { %7346 = vmatpush3.bf16.msra.mxu1 (%p3672_p5), %v8105_v20 }
 0xe07   : >> { %3674 = sbr.rel (!%p3672_p5) target bundleno = 2631 (0xa47), region = 203 }
 0xe0a   : >>> { %v4396_v0 = vpop.f32.mrb[0].mxu1 }
 0xe0b   : >>> { %4405 = vst [vmem:[%s4404_s6] sm:$0xff] %v4396_v0  ;;  %v4398_v22 = vpop.f32.mrb[1].mxu1 }
 0xe0c   : >>> { %4406 = vst [vmem:[%s4404_s6 + $0x8] sm:$0xff] %v4398_v22  ;;  %v4400_v6 = vpop.f32.mrb[2].mxu1  ;;  %s11447_s6 = scalar_lea.vmem (%p3672_p5), %s12456_s18, %s10221_s7 }
 0xe0d   : >>> { %v4401_v41 = vpop.f32.mrb[3].mxu1 }
 0xe13   : >> { %v4407_v42 = vld [vmem:[#allocation4] sm:$0xff]  ;;  %v4409_v8 = vld [vmem:[#allocation4 + $0x10] sm:$0xff]  ;;  %v4408_v62 = vld [vmem:[#allocation4 + $0x8] sm:$0xff] }
 0xe14   : >> { %v4411_v49 = vld [vmem:[#allocation4 + $0x20] sm:$0xff]  ;;  %v4423_v7 = vpack.c.bf16 %v4409_v8, %v4407_v42  ;;  %v4413_v59 = vld [vmem:[#allocation4 + $0x30] sm:$0xff]  ;;  %v4410_v37 = vld [vmem:[#allocation4 + $0x18] sm:$0xff] }
 0xe15   : >> { %v4425_v10 = vpack.c.bf16 %v4413_v59, %v4411_v49  ;;  %v4412_v32 = vld [vmem:[#allocation4 + $0x28] sm:$0xff]  ;;  %v4414_v17 = vld [vmem:[#allocation4 + $0x38] sm:$0xff]  ;;  %v4415_v21 = vld [vmem:[#allocation4 + $0x40] sm:$0xff]  ;;  %v4424_v23 = vpack.c.bf16 %v4410_v37, %v4408_v62 }
 0xe16   : >> { %4449 = vxpose.xlu0.c.b16.start [1/4] (short) %v4423_v7, 128  ;;  %v4417_v13 = vld [vmem:[#allocation4 + $0x50] sm:$0xff]  ;;  %v4416_v25 = vld [vmem:[#allocation4 + $0x48] sm:$0xff]  ;;  %v4418_v57 = vld [vmem:[#allocation4 + $0x58] sm:$0xff]  ;;  %v4426_v26 = vpack.c.bf16 %v4414_v17, %v4412_v32 }
 0xe17   : >> { %v4419_v29 = vld [vmem:[#allocation4 + $0x60] sm:$0xff]  ;;  %4465 = vxpose.xlu1.c.b16.start [1/4] (short) %v4424_v23, 128  ;;  %v4427_v18 = vpack.c.bf16 %v4417_v13, %v4415_v21  ;;  %v4421_v4 = vld [vmem:[#allocation4 + $0x70] sm:$0xff]  ;;  %v4428_v36 = vpack.c.bf16 %v4418_v57, %v4416_v25  ;;  %v4420_v50 = vld [vmem:[#allocation4 + $0x68] sm:$0xff] }
 0xe18   : >> { %v4429_v31 = vpack.c.bf16 %v4421_v4, %v4419_v29  ;;  %v4422_v48 = vld [vmem:[#allocation4 + $0x78] sm:$0xff] }
 0xe19   : >> { %v4430_v14 = vpack.c.bf16 %v4422_v48, %v4420_v50 }
 0xe1a   : >> { %4450 = vxpose.xlu0.c.b16.cont [2/4] (short) %v4425_v10, 128 }
 0xe1b   : >> { %4466 = vxpose.xlu1.c.b16.cont [2/4] (short) %v4426_v26, 128 }
 0xe1e   : >> { %4451 = vxpose.xlu0.c.b16.cont [3/4] (short) %v4427_v18, 128 }
 0xe1f   : >> { %4467 = vxpose.xlu1.c.b16.cont [3/4] (short) %v4428_v36, 128 }
 0xe22   : >> { %4452 = vxpose.xlu0.c.b16.end [4/4] (short) %v4429_v31, 128 }
 0xe23   : >> { %4468 = vxpose.xlu1.c.b16.end [4/4] (short) %v4430_v14, 128 }
 0xe7c   : >> { %v4457_v2 = vpop.trf.xlu0 }
 0xe7d   : >> { %7201 = vmatprep.mubr.msk.bf16.mxu0 %vm1129_vm4, %v4457_v2  ;;  %v4473_v38 = vpop.trf.xlu1 }
 0xe7e   : >> { %7217 = vmatprep.mubr.msk.bf16.mxu1 %vm1129_vm4, %v4473_v38 }
 0xe80   : >> { %v4458_v63 = vpop.trf.xlu0 }
 0xe81   : >> { %7202 = vmatmul.mubr.msk.bf16.vlgmr.msra.gmra.mrb[0].mxu0 %vm1129_vm4, %v4458_v63  ;;  %v4474_v16 = vpop.trf.xlu1 }
 0xe82   : >> { %7218 = vmatmul.mubr.msk.bf16.vlgmr.msra.gmra.mrb[0].mxu1 %vm1129_vm4, %v4474_v16 }
 0xe84   : >> { %v4459_v45 = vpop.trf.xlu0 }
 0xe85   : >> { %7205 = vmatprep.mubr.msk.bf16.mxu0 %vm1129_vm4, %v4459_v45  ;;  %v4475_v40 = vpop.trf.xlu1 }
 0xe86   : >> { %7221 = vmatprep.mubr.msk.bf16.mxu1 %vm1129_vm4, %v4475_v40 }
 0xe88   : >> { %v4460_v30 = vpop.trf.xlu0 }
 0xe89   : >> { %7206 = vmatmul.mubr.msk.bf16.gmra.mrb[4].mxu0 %vm1129_vm4, %v4460_v30  ;;  %v4476_v1 = vpop.trf.xlu1 }
 0xe8a   : >> { %7222 = vmatmul.mubr.msk.bf16.gmra.mrb[4].mxu1 %vm1129_vm4, %v4476_v1 }
 0xe8c   : >> { %v4461_v27 = vpop.trf.xlu0 }
 0xe8d   : >> { %7209 = vmatprep.mubr.msk.bf16.mxu0 %vm1129_vm4, %v4461_v27  ;;  %v4477_v60 = vpop.trf.xlu1 }
 0xe8e   : >> { %7225 = vmatprep.mubr.msk.bf16.mxu1 %vm1129_vm4, %v4477_v60 }
 0xe90   : >> { %v4462_v3 = vpop.trf.xlu0 }
 0xe91   : >> { %7210 = vmatmul.mubr.msk.bf16.gmra.mrb[8].mxu0 %vm1129_vm4, %v4462_v3  ;;  %v4478_v28 = vpop.trf.xlu1 }
 0xe92   : >> { %7226 = vmatmul.mubr.msk.bf16.gmra.mrb[8].mxu1 %vm1129_vm4, %v4478_v28 }
 0xe94   : >> { %v4463_v52 = vpop.trf.xlu0 }
 0xe95   : >> { %7213 = vmatprep.mubr.msk.bf16.mxu0 %vm1129_vm4, %v4463_v52  ;;  %v4479_v39 = vpop.trf.xlu1 }
 0xe96   : >> { %7229 = vmatprep.mubr.msk.bf16.mxu1 %vm1129_vm4, %v4479_v39 }
 0xe98   : >> { %v4464_v34 = vpop.trf.xlu0 }
 0xe99   : >> { %7214 = vmatmul.mubr.msk.bf16.gmra.mrb[12].mxu0 %vm1129_vm4, %v4464_v34  ;;  %v4480_v5 = vpop.trf.xlu1 }
 0xe9a   : >> { %7230 = vmatmul.mubr.msk.bf16.gmra.mrb[12].mxu1 %vm1129_vm4, %v4480_v5 }
 0xf54   : >> { %v7203_v53 = vpop.f32.mrb[0].mxu0 }
 0xf55   : >> { %v4587_v11 = vpop.f32.mrb[1].mxu0  ;;  %v4596_v0 = vadd.f32 %v7203_v53, %v11014_v61  ;;  %v11018_v42 = vpop.f32.mrb[0].mxu1 }
 0xf56   : >> { %v4588_v22 = vadd.f32 %v11014_v61, %v4587_v11  ;;  %v7204_v6 = vpop.f32.mrb[2].mxu0  ;;  %v11025_v59 = vpop.f32.mrb[1].mxu1 }
 0xf57   : >> { %v4590_v41 = vpop.f32.mrb[3].mxu0  ;;  %v4599_v49 = vadd.f32 %v7204_v6, %v11014_v61  ;;  %v11027_v62 = vpop.f32.mrb[2].mxu1  ;;  %v11030_v10 = vadd.f32 %v4596_v0, %v10325_v15 }
 0xf58   : >> { %v11021_v8 = vadd.f32 %v4588_v22, %v10296_v43  ;;  %v4591_v7 = vadd.f32 %v11014_v61, %v4590_v41  ;;  %v11037_v17 = vpop.f32.mrb[3].mxu1 }
 0xf59   : >> { %v11040_v43 = vadd.f32 %v4599_v49, %v10321_v44  ;;  %v4752_v57 = vsel %vm1129_vm4, %v11030_v10, 0.0 }
 0xf5a   : >> { %v11033_v37 = vadd.f32 %v4591_v7, %v10291_v33  ;;  %v4746_v32 = vsel %vm1129_vm4, %v11021_v8, 0.0 }
 0xf5b   : >> { %4747 = vadd.xlane.f32.xlu0 %v4746_v32  ;;  %v4755_v19 = vsel %vm1129_vm4, %v11040_v43, 0.0 }
 0xf5c   : >> { %v7207_v21 = vpop.f32.mrb[4].mxu0  ;;  %v4749_v13 = vsel %vm1129_vm4, %v11033_v37, 0.0 }
 0xf5d   : >> { %4750 = vadd.xlane.f32.xlu1 %v4749_v13  ;;  %v4603_v23 = vpop.f32.mrb[5].mxu0  ;;  %v4612_v15 = vadd.f32 %v7207_v21, %v11014_v61  ;;  %v11048_v26 = vpop.f32.mrb[4].mxu1 }
 0xf5e   : >> { %v4604_v33 = vadd.f32 %v11014_v61, %v4603_v23  ;;  %v7208_v25 = vpop.f32.mrb[6].mxu0  ;;  %v11057_v4 = vpop.f32.mrb[5].mxu1  ;;  %v12732_v23 = vld [vmem:[#allocation32_spill] sm:$0xff] }
 0xf5f   : >> { %4753 = vadd.xlane.f32.xlu0 %v4752_v57  ;;  %v4606_v29 = vpop.f32.mrb[7].mxu0  ;;  %v4615_v35 = vadd.f32 %v7208_v25, %v11014_v61  ;;  %v11059_v36 = vpop.f32.mrb[6].mxu1  ;;  %v11062_v12 = vadd.f32 %v4612_v15, %v10377_v58  ;;  %v12734_v57 = vld [vmem:[#allocation17_spill] sm:$0xff] }
 0xf60   : >> { %v11051_v44 = vadd.f32 %v4604_v33, %v10351_v55  ;;  %v4607_v18 = vadd.f32 %v11014_v61, %v4606_v29  ;;  %v11069_v50 = vpop.f32.mrb[7].mxu1  ;;  %v12733_v33 = vld [vmem:[#allocation34_spill] sm:$0xff] }
 0xf61   : >> { %4756 = vadd.xlane.f32.xlu1 %v4755_v19  ;;  %v11072_v48 = vadd.f32 %v4615_v35, %v10373_v24  ;;  %v4764_v63 = vsel %vm1129_vm4, %v11062_v12, 0.0  ;;  %v12735_v35 = vld [vmem:[#allocation40_spill] sm:$0xff]  ;;  %v4655_v19 = vadd.f32 %v11014_v61, %v11037_v17 }
 0xf62   : >> { %v11065_v31 = vadd.f32 %v4607_v18, %v10347_v54  ;;  %v4758_v55 = vsel %vm1129_vm4, %v11051_v44, 0.0 }
 0xf63   : >> { %4759 = vadd.xlane.f32.xlu0 %v4758_v55  ;;  %v4767_v1 = vsel %vm1129_vm4, %v11072_v48, 0.0 }
 0xf64   : >> { %v7211_v14 = vpop.f32.mrb[8].mxu0  ;;  %v4761_v20 = vsel %vm1129_vm4, %v11065_v31, 0.0 }
 0xf65   : >> { %4762 = vadd.xlane.f32.xlu1 %v4761_v20  ;;  %v4619_v2 = vpop.f32.mrb[9].mxu0  ;;  %v4628_v58 = vadd.f32 %v7211_v14, %v11014_v61  ;;  %v11080_v45 = vpop.f32.mrb[8].mxu1  ;;  %v4660_v14 = vadd.f32 %v11018_v42, %v11014_v61  ;;  %v12737_v42 = vld [vmem:[#allocation24_spill] sm:$0xff] }
 0xf66   : >> { %v4620_v54 = vadd.f32 %v11014_v61, %v4619_v2  ;;  %v7212_v38 = vpop.f32.mrb[10].mxu0  ;;  %v4683_v27 = vpop.f32.mrb[9].mxu1  ;;  %v4663_v2 = vadd.f32 %v11027_v62, %v11014_v61 }
 0xf67   : >> { %4765 = vadd.xlane.f32.xlu0 %v4764_v63  ;;  %v4622_v16 = vpop.f32.mrb[11].mxu0  ;;  %v4631_v40 = vadd.f32 %v7212_v38, %v11014_v61  ;;  %v11089_v60 = vpop.f32.mrb[10].mxu1  ;;  %v11092_v3 = vadd.f32 %v4628_v58, %v10429_v9  ;;  %v12736_v58 = vld [vmem:[#allocation39_spill] sm:$0xff]  ;;  %v4668_v38 = vadd.f32 %v11014_v61, %v11057_v4 }
 0xf68   : >> { %v11083_v24 = vadd.f32 %v4620_v54, %v10403_v56  ;;  %v4623_v30 = vadd.f32 %v11014_v61, %v4622_v16  ;;  %v4686_v52 = vpop.f32.mrb[11].mxu1  ;;  %v11144_v54 = vadd.f32 %v4655_v19, %v12736_v58  ;;  %v11153_v16 = vadd.f32 %v4660_v14, %v12737_v42  ;;  %v12747_v58 = vld [vmem:[#allocation33_spill] sm:$0xff] }
 0xf69   : >> { %4768 = vadd.xlane.f32.xlu1 %v4767_v1  ;;  %v11100_v39 = vadd.f32 %v4631_v40, %v10425_v47  ;;  %v4776_v0 = vsel %vm1129_vm4, %v11092_v3, 0.0  ;;  %v4652_v47 = vadd.f32 %v11014_v61, %v11025_v59  ;;  %v12738_v40 = vld [vmem:[#allocation38_spill] sm:$0xff] }
 0xf6a   : >> { %v11095_v28 = vadd.f32 %v4623_v30, %v10399_v51  ;;  %v4770_v56 = vsel %vm1129_vm4, %v11083_v24, 0.0  ;;  %v11156_v62 = vadd.f32 %v4663_v2, %v12738_v40  ;;  %v12739_v30 = vld [vmem:[#allocation23_spill] sm:$0xff]  ;;  %v4797_v4 = vsel %vm1129_vm4, %v11144_v54, 0.0  ;;  %v12748_v40 = vld [vmem:[#allocation18_spill] sm:$0xff] }
 0xf6b   : >> { %4771 = vadd.xlane.f32.xlu0 %v4770_v56  ;;  %v4779_v32 = vsel %vm1129_vm4, %v11100_v39, 0.0  ;;  %v11131_v18 = vadd.f32 %v4652_v47, %v12735_v35  ;;  %v11159_v1 = vadd.f32 %v4668_v38, %v12739_v30  ;;  %v4671_v56 = vadd.f32 %v11014_v61, %v11069_v50  ;;  %v12742_v47 = vld [vmem:[#allocation21_spill] sm:$0xff]  ;;  %v12744_v35 = vld [vmem:[#allocation35_spill] sm:$0xff] }
 0xf6c   : >> { %v7215_v34 = vpop.f32.mrb[12].mxu0  ;;  %v4773_v5 = vsel %vm1129_vm4, %v11095_v28, 0.0  ;;  %v4803_v50 = vsel %vm1129_vm4, %v11156_v62, 0.0 }
 0xf6d   : >> { %4774 = vadd.xlane.f32.xlu1 %v4773_v5  ;;  %v4635_v53 = vpop.f32.mrb[13].mxu0  ;;  %v4644_v9 = vadd.f32 %v7215_v34, %v11014_v61  ;;  %v11110_v6 = vpop.f32.mrb[12].mxu1  ;;  %v4794_v63 = vsel %vm1129_vm4, %v11131_v18, 0.0  ;;  %v4676_v34 = vadd.f32 %v11048_v26, %v11014_v61  ;;  %v4800_v5 = vsel %vm1129_vm4, %v11153_v16, 0.0  ;;  %v12741_v26 = vld [vmem:[#allocation22_spill] sm:$0xff] }
 0xf6e   : >> { %v4636_v11 = vadd.f32 %v11014_v61, %v4635_v53  ;;  %v7216_v51 = vpop.f32.mrb[14].mxu0  ;;  %v4699_v21 = vpop.f32.mrb[13].mxu1  ;;  %v4679_v53 = vadd.f32 %v11059_v36, %v11014_v61  ;;  %v12743_v36 = vld [vmem:[#allocation36_spill] sm:$0xff] }
 0xf6f   : >> { %4777 = vadd.xlane.f32.xlu0 %v4776_v0  ;;  %v4638_v22 = vpop.f32.mrb[15].mxu0  ;;  %v4647_v49 = vadd.f32 %v7216_v51, %v11014_v61  ;;  %v7232_v13 = vpop.f32.mrb[14].mxu1  ;;  %v11120_v15 = vadd.f32 %v4644_v9, %v12732_v23  ;;  %v12740_v9 = vld [vmem:[#allocation37_spill] sm:$0xff]  ;;  %v4684_v51 = vadd.f32 %v11014_v61, %v4683_v27  ;;  %v4806_v0 = vsel %vm1129_vm4, %v11159_v1, 0.0 }
 0xf70   : >> { %v11113_v41 = vadd.f32 %v4636_v11, %v10455_v46  ;;  %v4639_v7 = vadd.f32 %v11014_v61, %v4638_v22  ;;  %v4702_v25 = vpop.f32.mrb[15].mxu1  ;;  %v11172_v11 = vadd.f32 %v4671_v56, %v12740_v9  ;;  %v11180_v22 = vadd.f32 %v4676_v34, %v12741_v26  ;;  %v8106_v9 = vld [vmem:[%s11245_s2] sm:$0xff]  }
 0xf71   : >> { %4780 = vadd.xlane.f32.xlu1 %v4779_v32  ;;  %v11128_v29 = vadd.f32 %v4647_v49, %v12734_v57  ;;  %v4788_v20 = vsel %vm1129_vm4, %v11120_v15, 0.0  ;;  %v11183_v49 = vadd.f32 %v4679_v53, %v12742_v47  ;;  %v4687_v32 = vadd.f32 %v11014_v61, %v4686_v52  ;;  %7233 = vmatprep.subr.bf16.mxu1 %v8106_v9 }
 0xf72   : >> { %v11123_v59 = vadd.f32 %v4639_v7, %v12733_v33  ;;  %v4782_v46 = vsel %vm1129_vm4, %v11113_v41, 0.0  ;;  %v11186_v7 = vadd.f32 %v4684_v51, %v12743_v36  ;;  %v4809_v23 = vsel %vm1129_vm4, %v11172_v11, 0.0  ;;  %7234 = vmatpush3.bf16.msra.mxu1 %v8106_v9 }
 0xf73   : >> { %4783 = vadd.xlane.f32.xlu0 %v4782_v46  ;;  %v4791_v17 = vsel %vm1129_vm4, %v11128_v29, 0.0  ;;  %v4692_v27 = vadd.f32 %v11080_v45, %v11014_v61  ;;  %v4812_v33 = vsel %vm1129_vm4, %v11180_v22, 0.0  ;;  %v4815_v46 = vsel %vm1129_vm4, %v11183_v49, 0.0  ;;  %v12745_v45 = vld [vmem:[#allocation20_spill] sm:$0xff] }
 0xf74   : >> { %v4785_v55 = vsel %vm1129_vm4, %v11123_v59, 0.0  ;;  %v4695_v57 = vadd.f32 %v11089_v60, %v11014_v61  ;;  %v11200_v19 = vadd.f32 %v4687_v32, %v12744_v35  ;;  %v4700_v52 = vadd.f32 %v11014_v61, %v4699_v21 }
 0xf75   : >> { %4786 = vadd.xlane.f32.xlu1 %v4785_v55  ;;  %v4818_v55 = vsel %vm1129_vm4, %v11186_v7, 0.0  ;;  %v11206_v14 = vadd.f32 %v4692_v27, %v12745_v45  ;;  %v4703_v60 = vadd.f32 %v11014_v61, %v4702_v25  ;;  %v4708_v21 = vadd.f32 %v11110_v6, %v11014_v61  ;;  %v12750_v6 = vld [vmem:[#allocation16_spill] sm:$0xff] }
 0xf76   : >> { %v4821_v38 = vsel %vm1129_vm4, %v11200_v19, 0.0  ;;  %v4711_v42 = vadd.f32 %v7232_v13, %v11014_v61 }
 0xf77   : >> { %4789 = vadd.xlane.f32.xlu0 %v4788_v20  ;;  %v12746_v20 = vld [vmem:[#allocation19_spill] sm:$0xff]  ;;  %v11223_v30 = vadd.f32 %v4703_v60, %v12748_v40 }
 0xf78   : >> { %v11209_v2 = vadd.f32 %v4695_v57, %v12746_v20 }
 0xf79   : >> { %4792 = vadd.xlane.f32.xlu1 %v4791_v17  ;;  %v11212_v17 = vadd.f32 %v4700_v52, %v12747_v58  ;;  %v4833_v61 = vsel %vm1129_vm4, %v11223_v30, 0.0 }
 0xf7a   : >> { %v4827_v25 = vsel %vm1129_vm4, %v11209_v2, 0.0 }
 0xf7b   : >> { %4795 = vadd.xlane.f32.xlu0 %v4794_v63  ;;  %v4824_v63 = vsel %vm1129_vm4, %v11206_v14, 0.0  ;;  %v4830_v56 = vsel %vm1129_vm4, %v11212_v17, 0.0 }
 0xf7d   : >> { %4798 = vadd.xlane.f32.xlu1 %v4797_v4  ;;  %v12749_v4 = vld [vmem:[#allocation31_spill] sm:$0xff] }
 0xf7e   : >> { %v11230_v34 = vadd.f32 %v4708_v21, %v12749_v4 }
 0xf7f   : >> { %4801 = vadd.xlane.f32.xlu0 %v4800_v5  ;;  %v11233_v5 = vadd.f32 %v4711_v42, %v12750_v6 }
 0xf80   : >> { %v4836_v13 = vsel %vm1129_vm4, %v11230_v34, 0.0 }
 0xf81   : >> { %4804 = vadd.xlane.f32.xlu1 %v4803_v50  ;;  %v4839_v53 = vsel %vm1129_vm4, %v11233_v5, 0.0 }
 0xf83   : >> { %4807 = vadd.xlane.f32.xlu0 %v4806_v0 }
 0xf85   : >> { %4810 = vadd.xlane.f32.xlu1 %v4809_v23 }
 0xf87   : >> { %4813 = vadd.xlane.f32.xlu0 %v4812_v33 }
 0xf89   : >> { %4816 = vadd.xlane.f32.xlu1 %v4815_v46 }
 0xf8b   : >> { %4819 = vadd.xlane.f32.xlu0 %v4818_v55 }
 0xf8d   : >> { %4822 = vadd.xlane.f32.xlu1 %v4821_v38 }
 0xf8f   : >> { %4825 = vadd.xlane.f32.xlu0 %v4824_v63 }
 0xf91   : >> { %4828 = vadd.xlane.f32.xlu1 %v4827_v25 }
 0xf93   : >> { %4831 = vadd.xlane.f32.xlu0 %v4830_v56 }
 0xf95   : >> { %4834 = vadd.xlane.f32.xlu1 %v4833_v61 }
 0xf97   : >> { %4837 = vadd.xlane.f32.xlu0 %v4836_v13 }
 0xf99   : >> { %4840 = vadd.xlane.f32.xlu1 %v4839_v53 }
 0xfe8   : >> { %v4748_v50 = vpop.xlane.xlu0 %4747 }
 0xfe9   : >> { %v4842_v51 = vmul.f32 0.015625, %v4748_v50 }
 0xfea   : >> { %v4751_v0 = vpop.xlane.xlu1 %4750 }
 0xfeb   : >> { %v4843_v26 = vmul.f32 0.015625, %v4751_v0  ;;  %v11249_v47 = vsub.f32 %v11021_v8, %v4842_v51 }
 0xfec   : >> { %v4754_v36 = vpop.xlane.xlu0 %4753 }
 0xfed   : >> { %v4844_v32 = vmul.f32 0.015625, %v4754_v36  ;;  %v4906_v23 = vmul.f32 %v11249_v47, %v11249_v47  ;;  %v11254_v27 = vsub.f32 %v11033_v37, %v4843_v26 }
 0xfee   : >> { %v4757_v33 = vpop.xlane.xlu1 %4756 }
 0xfef   : >> { %v4845_v46 = vmul.f32 0.015625, %v4757_v33  ;;  %v4938_v57 = vsel %vm1129_vm4, %v4906_v23, 0.0  ;;  %v4907_v35 = vmul.f32 %v11254_v27, %v11254_v27  ;;  %v11260_v52 = vsub.f32 %v11030_v10, %v4844_v32 }
 0xff0   : >> { %4939 = vadd.xlane.f32.xlu0 %v4938_v57  ;;  %v4760_v8 = vpop.xlane.xlu0 %4759 }
 0xff1   : >> { %v4846_v55 = vmul.f32 0.015625, %v4760_v8  ;;  %v4941_v45 = vsel %vm1129_vm4, %v4907_v35, 0.0  ;;  %v4908_v20 = vmul.f32 %v11260_v52, %v11260_v52  ;;  %v11266_v37 = vsub.f32 %v11040_v43, %v4845_v46 }
 0xff2   : >> { %v4763_v58 = vpop.xlane.xlu1 %4762  ;;  %4942 = vadd.xlane.f32.xlu1 %v4941_v45 }
 0xff3   : >> { %v4847_v60 = vmul.f32 0.015625, %v4763_v58  ;;  %v4944_v38 = vsel %vm1129_vm4, %v4908_v20, 0.0  ;;  %v4909_v10 = vmul.f32 %v11266_v37, %v11266_v37  ;;  %v11272_v21 = vsub.f32 %v11051_v44, %v4846_v55 }
 0xff4   : >> { %4945 = vadd.xlane.f32.xlu0 %v4944_v38  ;;  %v4766_v63 = vpop.xlane.xlu0 %4765 }
 0xff5   : >> { %v4848_v42 = vmul.f32 0.015625, %v4766_v63  ;;  %v4947_v40 = vsel %vm1129_vm4, %v4909_v10, 0.0  ;;  %v4910_v43 = vmul.f32 %v11272_v21, %v11272_v21  ;;  %v11278_v25 = vsub.f32 %v11065_v31, %v4847_v60 }
 0xff6   : >> { %v4769_v56 = vpop.xlane.xlu1 %4768  ;;  %4948 = vadd.xlane.f32.xlu1 %v4947_v40 }
 0xff7   : >> { %v4849_v4 = vmul.f32 0.015625, %v4769_v56  ;;  %v4950_v6 = vsel %vm1129_vm4, %v4910_v43, 0.0  ;;  %v4911_v44 = vmul.f32 %v11278_v25, %v11278_v25  ;;  %v11284_v61 = vsub.f32 %v11062_v12, %v4848_v42 }
 0xff8   : >> { %4951 = vadd.xlane.f32.xlu0 %v4950_v6  ;;  %v4772_v13 = vpop.xlane.xlu0 %4771 }
 0xff9   : >> { %v4850_v53 = vmul.f32 0.015625, %v4772_v13  ;;  %v4953_v9 = vsel %vm1129_vm4, %v4911_v44, 0.0  ;;  %v4912_v31 = vmul.f32 %v11284_v61, %v11284_v61  ;;  %v11290_v50 = vsub.f32 %v11072_v48, %v4849_v4 }
 0xffa   : >> { %v4775_v51 = vpop.xlane.xlu1 %4774  ;;  %4954 = vadd.xlane.f32.xlu1 %v4953_v9 }
 0xffb   : >> { %v4851_v0 = vmul.f32 0.015625, %v4775_v51  ;;  %v4956_v26 = vsel %vm1129_vm4, %v4912_v31, 0.0  ;;  %v4913_v12 = vmul.f32 %v11290_v50, %v11290_v50  ;;  %v11296_v36 = vsub.f32 %v11083_v24, %v4850_v53 }
 0xffc   : >> { %4957 = vadd.xlane.f32.xlu0 %v4956_v26  ;;  %v4778_v32 = vpop.xlane.xlu0 %4777 }
 0xffd   : >> { %v4852_v23 = vmul.f32 0.015625, %v4778_v32  ;;  %v4959_v33 = vsel %vm1129_vm4, %v4913_v12, 0.0  ;;  %v4914_v48 = vmul.f32 %v11296_v36, %v11296_v36  ;;  %v11302_v46 = vsub.f32 %v11095_v28, %v4851_v0 }
 0xffe   : >> { %v4781_v57 = vpop.xlane.xlu1 %4780  ;;  %4960 = vadd.xlane.f32.xlu1 %v4959_v33 }
 0xfff   : >> { %v4853_v35 = vmul.f32 0.015625, %v4781_v57  ;;  %v4962_v8 = vsel %vm1129_vm4, %v4914_v48, 0.0  ;;  %v4915_v24 = vmul.f32 %v11302_v46, %v11302_v46  ;;  %v11308_v55 = vsub.f32 %v11092_v3, %v4852_v23 }
0x1000   : >> { %4963 = vadd.xlane.f32.xlu0 %v4962_v8  ;;  %v4784_v45 = vpop.xlane.xlu0 %4783  ;;  %v8107_v8 = vld [vmem:[%s11245_s2 + $0x8] sm:$0xff]  }
0x1001   : >> { %v4854_v20 = vmul.f32 0.015625, %v4784_v45  ;;  %v4965_v58 = vsel %vm1129_vm4, %v4915_v24, 0.0  ;;  %v4916_v28 = vmul.f32 %v11308_v55, %v11308_v55  ;;  %v11314_v60 = vsub.f32 %v11100_v39, %v4853_v35  ;;  %7235 = vmatprep.subr.bf16.mxu1 %v8107_v8 }
0x1002   : >> { %4966 = vadd.xlane.f32.xlu1 %v4965_v58  ;;  %v4787_v38 = vpop.xlane.xlu1 %4786  ;;  %7236 = vmatpush3.bf16.msra.mxu1 %v8107_v8 }
0x1003   : >> { %v4855_v10 = vmul.f32 0.015625, %v4787_v38  ;;  %v4968_v63 = vsel %vm1129_vm4, %v4916_v28, 0.0  ;;  %v4917_v3 = vmul.f32 %v11314_v60, %v11314_v60  ;;  %v11320_v42 = vsub.f32 %v11113_v41, %v4854_v20 }
0x1004   : >> { %4969 = vadd.xlane.f32.xlu0 %v4968_v63  ;;  %v4790_v40 = vpop.xlane.xlu0 %4789 }
0x1005   : >> { %v4856_v43 = vmul.f32 0.015625, %v4790_v40  ;;  %v4971_v56 = vsel %vm1129_vm4, %v4917_v3, 0.0  ;;  %v4918_v39 = vmul.f32 %v11320_v42, %v11320_v42  ;;  %v11326_v4 = vsub.f32 %v11123_v59, %v4855_v10  ;;  %v8108_v3 = vld [vmem:[%s11245_s2 + $0x10] sm:$0xff]  }
0x1006   : >> { %4972 = vadd.xlane.f32.xlu1 %v4971_v56  ;;  %v4793_v6 = vpop.xlane.xlu1 %4792  ;;  %7237 = vmatprep.subr.bf16.mxu1 %v8108_v3 }
0x1007   : >> { %v4857_v44 = vmul.f32 0.015625, %v4793_v6  ;;  %v4974_v13 = vsel %vm1129_vm4, %v4918_v39, 0.0  ;;  %v4919_v41 = vmul.f32 %v11326_v4, %v11326_v4  ;;  %v11332_v53 = vsub.f32 %v11120_v15, %v4856_v43  ;;  %7238 = vmatpush3.bf16.msra.mxu1 %v8108_v3 }
0x1008   : >> { %4975 = vadd.xlane.f32.xlu0 %v4974_v13  ;;  %v4796_v9 = vpop.xlane.xlu0 %4795 }
0x1009   : >> { %v4858_v31 = vmul.f32 0.015625, %v4796_v9  ;;  %v4977_v51 = vsel %vm1129_vm4, %v4919_v41, 0.0  ;;  %v4920_v59 = vmul.f32 %v11332_v53, %v11332_v53  ;;  %v11338_v0 = vsub.f32 %v11128_v29, %v4857_v44  ;;  %v8109_v9 = vld [vmem:[%s11245_s2 + $0x18] sm:$0xff]  }
0x100a   : >> { %4978 = vadd.xlane.f32.xlu1 %v4977_v51  ;;  %v4799_v26 = vpop.xlane.xlu1 %4798  ;;  %7239 = vmatprep.subr.bf16.mxu1 %v8109_v9 }
0x100b   : >> { %v4859_v12 = vmul.f32 0.015625, %v4799_v26  ;;  %v4980_v32 = vsel %vm1129_vm4, %v4920_v59, 0.0  ;;  %v4921_v15 = vmul.f32 %v11338_v0, %v11338_v0  ;;  %v11344_v23 = vsub.f32 %v11131_v18, %v4858_v31  ;;  %7240 = vmatpush3.bf16.msra.mxu1 %v8109_v9 }
0x100c   : >> { %4981 = vadd.xlane.f32.xlu0 %v4980_v32  ;;  %v4802_v33 = vpop.xlane.xlu0 %4801 }
0x100d   : >> { %v4860_v48 = vmul.f32 0.015625, %v4802_v33  ;;  %v4983_v57 = vsel %vm1129_vm4, %v4921_v15, 0.0  ;;  %v4922_v29 = vmul.f32 %v11344_v23, %v11344_v23  ;;  %v11350_v35 = vsub.f32 %v11144_v54, %v4859_v12 }
0x100e   : >> { %4984 = vadd.xlane.f32.xlu1 %v4983_v57  ;;  %v4805_v24 = vpop.xlane.xlu1 %4804 }
0x100f   : >> { %v4861_v45 = vmul.f32 0.015625, %v4805_v24  ;;  %v4986_v20 = vsel %vm1129_vm4, %v4922_v29, 0.0  ;;  %v4923_v18 = vmul.f32 %v11350_v35, %v11350_v35  ;;  %v11357_v58 = vsub.f32 %v11153_v16, %v4860_v48 }
0x1010   : >> { %4987 = vadd.xlane.f32.xlu0 %v4986_v20  ;;  %v4808_v28 = vpop.xlane.xlu0 %4807 }
0x1011   : >> { %v4862_v38 = vmul.f32 0.015625, %v4808_v28  ;;  %v4989_v54 = vsel %vm1129_vm4, %v4923_v18, 0.0  ;;  %v4924_v10 = vmul.f32 %v11357_v58, %v11357_v58  ;;  %v11363_v63 = vsub.f32 %v11156_v62, %v4861_v45 }
0x1012   : >> { %4990 = vadd.xlane.f32.xlu1 %v4989_v54  ;;  %v4811_v40 = vpop.xlane.xlu1 %4810 }
0x1013   : >> { %v4863_v43 = vmul.f32 0.015625, %v4811_v40  ;;  %v4992_v16 = vsel %vm1129_vm4, %v4924_v10, 0.0  ;;  %v4925_v56 = vmul.f32 %v11363_v63, %v11363_v63  ;;  %v11370_v39 = vsub.f32 %v11159_v1, %v4862_v38 }
0x1014   : >> { %4993 = vadd.xlane.f32.xlu0 %v4992_v16  ;;  %v4814_v6 = vpop.xlane.xlu0 %4813 }
0x1015   : >> { %v4864_v44 = vmul.f32 0.015625, %v4814_v6  ;;  %v4995_v62 = vsel %vm1129_vm4, %v4925_v56, 0.0  ;;  %v4926_v13 = vmul.f32 %v11370_v39, %v11370_v39  ;;  %v11376_v41 = vsub.f32 %v11172_v11, %v4863_v43 }
0x1016   : >> { %4996 = vadd.xlane.f32.xlu1 %v4995_v62  ;;  %v4817_v31 = vpop.xlane.xlu1 %4816 }
0x1017   : >> { %v4865_v51 = vmul.f32 0.015625, %v4817_v31  ;;  %v4998_v1 = vsel %vm1129_vm4, %v4926_v13, 0.0  ;;  %v4927_v59 = vmul.f32 %v11376_v41, %v11376_v41  ;;  %v11383_v26 = vsub.f32 %v11180_v22, %v4864_v44 }
0x1018   : >> { %4999 = vadd.xlane.f32.xlu0 %v4998_v1  ;;  %v4820_v12 = vpop.xlane.xlu0 %4819 }
0x1019   : >> { %v4866_v32 = vmul.f32 0.015625, %v4820_v12  ;;  %v5001_v11 = vsel %vm1129_vm4, %v4927_v59, 0.0  ;;  %v4928_v15 = vmul.f32 %v11383_v26, %v11383_v26  ;;  %v11389_v33 = vsub.f32 %v11183_v49, %v4865_v51 }
0x101a   : >> { %5002 = vadd.xlane.f32.xlu1 %v5001_v11  ;;  %v4823_v48 = vpop.xlane.xlu1 %4822 }
0x101b   : >> { %v4867_v57 = vmul.f32 0.015625, %v4823_v48  ;;  %v5004_v29 = vsel %vm1129_vm4, %v4928_v15, 0.0  ;;  %v4929_v22 = vmul.f32 %v11389_v33, %v11389_v33  ;;  %v11395_v8 = vsub.f32 %v11186_v7, %v4866_v32 }
0x101c   : >> { %5005 = vadd.xlane.f32.xlu0 %v5004_v29  ;;  %v4826_v24 = vpop.xlane.xlu0 %4825  ;;  %v8111_v29 = vld [vmem:[%s11447_s6 + $0x8] sm:$0xff]  }
0x101d   : >> { %v4868_v45 = vmul.f32 0.015625, %v4826_v24  ;;  %v5007_v20 = vsel %vm1129_vm4, %v4929_v22, 0.0  ;;  %v4930_v49 = vmul.f32 %v11395_v8, %v11395_v8  ;;  %v11401_v18 = vsub.f32 %v11200_v19, %v4867_v57  ;;  %v8112_v22 = vld [vmem:[%s11447_s6 + $0x10] sm:$0xff]   ;;  %v8113_v24 = vld [vmem:[%s11447_s6 + $0x18] sm:$0xff]  }
0x101e   : >> { %5008 = vadd.xlane.f32.xlu1 %v5007_v20  ;;  %v4829_v28 = vpop.xlane.xlu1 %4828  ;;  %v8115_v20 = vld [vmem:[%s11447_s6 + $0x28] sm:$0xff]  }
0x101f   : >> { %v4869_v38 = vmul.f32 0.015625, %v4829_v28  ;;  %v5010_v54 = vsel %vm1129_vm4, %v4930_v49, 0.0  ;;  %v4931_v7 = vmul.f32 %v11401_v18, %v11401_v18  ;;  %v11407_v10 = vsub.f32 %v11206_v14, %v4868_v45  ;;  %v8114_v45 = vld [vmem:[%s11447_s6 + $0x20] sm:$0xff]  }
0x1020   : >> { %5011 = vadd.xlane.f32.xlu0 %v5010_v54  ;;  %v4832_v3 = vpop.xlane.xlu0 %4831 }
0x1021   : >> { %v4870_v40 = vmul.f32 0.015625, %v4832_v3  ;;  %v5013_v43 = vsel %vm1129_vm4, %v4931_v7, 0.0  ;;  %v4932_v19 = vmul.f32 %v11407_v10, %v11407_v10  ;;  %v11413_v16 = vsub.f32 %v11209_v2, %v4869_v38 }
0x1022   : >> { %5014 = vadd.xlane.f32.xlu1 %v5013_v43  ;;  %v4835_v56 = vpop.xlane.xlu1 %4834 }
0x1023   : >> { %v4871_v6 = vmul.f32 0.015625, %v4835_v56  ;;  %v5016_v44 = vsel %vm1129_vm4, %v4932_v19, 0.0  ;;  %v4933_v14 = vmul.f32 %v11413_v16, %v11413_v16  ;;  %v11419_v62 = vsub.f32 %v11212_v17, %v4870_v40 }
0x1024   : >> { %5017 = vadd.xlane.f32.xlu0 %v5016_v44  ;;  %v4838_v13 = vpop.xlane.xlu0 %4837 }
0x1025   : >> { %v4872_v9 = vmul.f32 0.015625, %v4838_v13  ;;  %v5019_v31 = vsel %vm1129_vm4, %v4933_v14, 0.0  ;;  %v4934_v2 = vmul.f32 %v11419_v62, %v11419_v62  ;;  %v11425_v51 = vsub.f32 %v11223_v30, %v4871_v6 }
0x1026   : >> { %5020 = vadd.xlane.f32.xlu1 %v5019_v31  ;;  %v4841_v1 = vpop.xlane.xlu1 %4840 }
0x1027   : >> { %v11428_v59 = vsub.f32 %v11230_v34, %v4872_v9  ;;  %v4873_v12 = vmul.f32 0.015625, %v4841_v1  ;;  %v5022_v17 = vsel %vm1129_vm4, %v4934_v2, 0.0  ;;  %v4935_v32 = vmul.f32 %v11425_v51, %v11425_v51  ;;  %v12751_v9 = vld [vmem:[#allocation42_spill] sm:$0xff] }
0x1028   : >> { %5023 = vadd.xlane.f32.xlu0 %v5022_v17  ;;  %v5164_v31 = vsub.s32 2, %v12751_v9 }
0x1029   : >> { %v11434_v11 = vsub.f32 %v11233_v5, %v4873_v12  ;;  %v5025_v15 = vsel %vm1129_vm4, %v4935_v32, 0.0  ;;  %v4936_v30 = vmul.f32 %v11428_v59, %v11428_v59  ;;  %v8110_v5 = vld [vmem:[%s11447_s6] sm:$0xff]  }
0x102a   : >> { %5026 = vadd.xlane.f32.xlu1 %v5025_v15  ;;  %7273 = vmatprep.subr.bf16.mxu0 %v8110_v5 }
0x102b   : >> { %v5028_v48 = vsel %vm1129_vm4, %v4936_v30, 0.0  ;;  %v4937_v34 = vmul.f32 %v11434_v11, %v11434_v11  ;;  %7274 = vmatpush3.bf16.msra.mxu0 %v8110_v5  ;;  %v12752_v30 = vld [vmem:[#allocation41_spill] sm:$0xff] }
0x102c   : >> { %5029 = vadd.xlane.f32.xlu0 %v5028_v48  ;;  %7275 = vmatprep.subr.bf16.mxu0 %v8111_v29  ;;  %v11457_v48 = vrot.slane %v12752_v30, %v5164_v31 }
0x102d   : >> { %v5031_v57 = vsel %vm1129_vm4, %v4937_v34, 0.0 }
0x102e   : >> { %5032 = vadd.xlane.f32.xlu1 %v5031_v57  ;;  %v5200_v57 = vsub.s32 3, %v12751_v9 }
0x102f   : >> { %7276 = vmatpush3.bf16.msra.mxu0 %v8111_v29 }
0x1030   : >> { %7277 = vmatprep.subr.bf16.mxu0 %v8112_v22 }
0x1033   : >> { %7278 = vmatpush3.bf16.msra.mxu0 %v8112_v22 }
0x1034   : >> { %7279 = vmatprep.subr.bf16.mxu0 %v8113_v24 }
0x1037   : >> { %7280 = vmatpush3.bf16.msra.mxu0 %v8113_v24 }
0x1038   : >> { %7281 = vmatprep.subr.bf16.mxu0 %v8114_v45 }
0x103b   : >> { %7282 = vmatpush3.bf16.msra.mxu0 %v8114_v45 }
0x103c   : >> { %7283 = vmatprep.subr.bf16.mxu0 %v8115_v20 }
0x103f   : >> { %7284 = vmatpush3.bf16.msra.mxu0 %v8115_v20 }
0x107d   : >> { %v4940_v49 = vpop.xlane.xlu0 %4939 }
0x107e   : >> { %v5034_v28 = vmul.f32 0.015625, %v4940_v49 }
0x107f   : >> { %v4943_v38 = vpop.xlane.xlu1 %4942 }
0x1080   : >> { %v5066_v54 = vadd.f32 1e-05, %v5034_v28  ;;  %v5035_v7 = vmul.f32 0.015625, %v4943_v38 }
0x1081   : >> { %v4946_v3 = vpop.xlane.xlu0 %4945 }
0x1082   : >> { %8118 = vrsqrt.f32 %v5066_v54  ;;  %v5067_v40 = vadd.f32 1e-05, %v5035_v7  ;;  %v5036_v43 = vmul.f32 0.015625, %v4946_v3  ;;  %v11464_v3 = vrot.slane %v12752_v30, %v5200_v57 }
0x1083   : >> { %v4949_v19 = vpop.xlane.xlu1 %4948 }
0x1084   : >> { %8120 = vrsqrt.f32 %v5067_v40  ;;  %v5068_v56 = vadd.f32 1e-05, %v5036_v43  ;;  %v5037_v6 = vmul.f32 0.015625, %v4949_v19 }
0x1085   : >> { %v4952_v44 = vpop.xlane.xlu0 %4951 }
0x1086   : >> { %8122 = vrsqrt.f32 %v5068_v56  ;;  %v5069_v14 = vadd.f32 1e-05, %v5037_v6  ;;  %v5038_v13 = vmul.f32 0.015625, %v4952_v44 }
0x1087   : >> { %v4955_v2 = vpop.xlane.xlu1 %4954 }
0x1088   : >> { %8124 = vrsqrt.f32 %v5069_v14  ;;  %v5070_v1 = vadd.f32 1e-05, %v5038_v13  ;;  %v5039_v12 = vmul.f32 0.015625, %v4955_v2 }
0x1089   : >> { %v4958_v17 = vpop.xlane.xlu0 %4957 }
0x108a   : >> { %8126 = vrsqrt.f32 %v5070_v1  ;;  %v5071_v32 = vadd.f32 1e-05, %v5039_v12  ;;  %v5040_v15 = vmul.f32 0.015625, %v4958_v17 }
0x108b   : >> { %v4961_v34 = vpop.xlane.xlu1 %4960 }
0x108c   : >> { %v8119_v5 = vpop.eup %8118  ;;  %8128 = vrsqrt.f32 %v5071_v32  ;;  %v5072_v29 = vadd.f32 1e-05, %v5040_v15  ;;  %v5041_v22 = vmul.f32 0.015625, %v4961_v34 }
0x108d   : >> { %v4964_v24 = vpop.xlane.xlu0 %4963  ;;  %v5130_v45 = vmul.f32 %v8119_v5, %v11249_v47 }
0x108e   : >> { %v8121_v20 = vpop.eup %8120  ;;  %8130 = vrsqrt.f32 %v5072_v29  ;;  %v5073_v49 = vadd.f32 1e-05, %v5041_v22  ;;  %v5042_v28 = vmul.f32 0.015625, %v4964_v24 }
0x108f   : >> { %v4967_v38 = vpop.xlane.xlu1 %4966  ;;  %v5131_v54 = vmul.f32 %v8121_v20, %v11254_v27  ;;  %v5166_v7 = vmul.f32 %v11457_v48, %v5130_v45 }
0x1090   : >> { %v8123_v40 = vpop.eup %8122  ;;  %8132 = vrsqrt.f32 %v5073_v49  ;;  %v5074_v43 = vadd.f32 1e-05, %v5042_v28  ;;  %v5043_v19 = vmul.f32 0.015625, %v4967_v38 }
0x1091   : >> { %v5132_v56 = vmul.f32 %v8123_v40, %v11260_v52  ;;  %v4970_v6 = vpop.xlane.xlu0 %4969  ;;  %v5167_v47 = vmul.f32 %v11457_v48, %v5131_v54  ;;  %v11471_v1 = vadd.f32 %v11464_v3, %v5166_v7 }
0x1092   : >> { %v8125_v44 = vpop.eup %8124  ;;  %8134 = vrsqrt.f32 %v5074_v43  ;;  %v5075_v14 = vadd.f32 1e-05, %v5043_v19  ;;  %v5044_v13 = vmul.f32 0.015625, %v4970_v6 }
0x1093   : >> { %v5168_v27 = vmul.f32 %v11457_v48, %v5132_v56  ;;  %v5133_v31 = vmul.f32 %v8125_v44, %v11266_v37  ;;  %v4973_v2 = vpop.xlane.xlu1 %4972  ;;  %v11474_v12 = vadd.f32 %v11464_v3, %v5167_v47 }
0x1094   : >> { %v8127_v17 = vpop.eup %8126  ;;  %8136 = vrsqrt.f32 %v5075_v14  ;;  %v5076_v52 = vadd.f32 1e-05, %v5044_v13  ;;  %v5045_v32 = vmul.f32 0.015625, %v4973_v2 }
0x1095   : >> { %v5169_v15 = vmul.f32 %v11457_v48, %v5133_v31  ;;  %v4976_v34 = vpop.xlane.xlu0 %4975  ;;  %v5234_v57 = vpack.c.bf16 %v11474_v12, %v11471_v1  ;;  %v5134_v5 = vmul.f32 %v8127_v17, %v11272_v21  ;;  %v11482_v45 = vadd.f32 %v11464_v3, %v5168_v27 }
0x1096   : >> { %v8129_v37 = vpop.eup %8128  ;;  %8138 = vrsqrt.f32 %v5076_v52  ;;  %v5077_v29 = vadd.f32 1e-05, %v5045_v32  ;;  %v5046_v22 = vmul.f32 0.015625, %v4976_v34 }
0x1097   : >> { %v4979_v24 = vpop.xlane.xlu1 %4978  ;;  %7241 = vmatprep.mubr.msk.bf16.mxu1 %vm1129_vm4, %v5234_v57  ;;  %v11485_v20 = vadd.f32 %v11464_v3, %v5169_v15  ;;  %v5135_v49 = vmul.f32 %v8129_v37, %v11278_v25  ;;  %v5170_v28 = vmul.f32 %v11457_v48, %v5134_v5 }
0x1098   : >> { %v8131_v38 = vpop.eup %8130  ;;  %8140 = vrsqrt.f32 %v5077_v29  ;;  %v5078_v21 = vadd.f32 1e-05, %v5046_v22  ;;  %v5047_v54 = vmul.f32 0.015625, %v4979_v24 }
0x1099   : >> { %v4982_v7 = vpop.xlane.xlu0 %4981  ;;  %v5235_v40 = vpack.c.bf16 %v11485_v20, %v11482_v45  ;;  %v5171_v43 = vmul.f32 %v11457_v48, %v5135_v49  ;;  %v5136_v19 = vmul.f32 %v8131_v38, %v11284_v61  ;;  %v11495_v25 = vadd.f32 %v11464_v3, %v5170_v28 }
0x109a   : >> { %v8133_v56 = vpop.eup %8132  ;;  %8142 = vrsqrt.f32 %v5078_v21  ;;  %v5079_v6 = vadd.f32 1e-05, %v5047_v54  ;;  %v5048_v47 = vmul.f32 0.015625, %v4982_v7 }
0x109b   : >> { %v4985_v44 = vpop.xlane.xlu1 %4984  ;;  %7242 = vmatmul.mubr.msk.bf16.vlgmr.msra.gmra.mrb[16].mxu1 %vm1129_vm4, %v5235_v40  ;;  %v11498_v14 = vadd.f32 %v11464_v3, %v5171_v43  ;;  %v5137_v13 = vmul.f32 %v8133_v56, %v11290_v50  ;;  %v5172_v27 = vmul.f32 %v11457_v48, %v5136_v19 }
0x109c   : >> { %v8135_v31 = vpop.eup %8134  ;;  %8144 = vrsqrt.f32 %v5079_v6  ;;  %v5080_v61 = vadd.f32 1e-05, %v5048_v47  ;;  %v5049_v2 = vmul.f32 0.015625, %v4985_v44 }
0x109d   : >> { %v4988_v17 = vpop.xlane.xlu0 %4987  ;;  %v5236_v52 = vpack.c.bf16 %v11498_v14, %v11495_v25  ;;  %v5173_v32 = vmul.f32 %v11457_v48, %v5137_v13  ;;  %v5138_v15 = vmul.f32 %v8135_v31, %v11296_v36  ;;  %v11508_v50 = vadd.f32 %v11464_v3, %v5172_v27 }
0x109e   : >> { %v8137_v34 = vpop.eup %8136  ;;  %8146 = vrsqrt.f32 %v5080_v61  ;;  %v5081_v57 = vadd.f32 1e-05, %v5049_v2  ;;  %v5050_v5 = vmul.f32 0.015625, %v4988_v17 }
0x109f   : >> { %v4991_v37 = vpop.xlane.xlu1 %4990  ;;  %7245 = vmatprep.mubr.msk.bf16.mxu1 %vm1129_vm4, %v5236_v52  ;;  %v11511_v29 = vadd.f32 %v11464_v3, %v5173_v32  ;;  %v5139_v22 = vmul.f32 %v8137_v34, %v11302_v46  ;;  %v5174_v24 = vmul.f32 %v11457_v48, %v5138_v15 }
0x10a0   : >> { %v8139_v49 = vpop.eup %8138  ;;  %8148 = vrsqrt.f32 %v5081_v57  ;;  %v5082_v36 = vadd.f32 1e-05, %v5050_v5  ;;  %v5051_v28 = vmul.f32 0.015625, %v4991_v37 }
0x10a1   : >> { %v4994_v38 = vpop.xlane.xlu0 %4993  ;;  %v5237_v21 = vpack.c.bf16 %v11511_v29, %v11508_v50  ;;  %v5175_v54 = vmul.f32 %v11457_v48, %v5139_v22  ;;  %v5140_v7 = vmul.f32 %v8139_v49, %v11308_v55  ;;  %v11521_v46 = vadd.f32 %v11464_v3, %v5174_v24 }
0x10a2   : >> { %v8141_v40 = vpop.eup %8140  ;;  %8150 = vrsqrt.f32 %v5082_v36  ;;  %v5083_v43 = vadd.f32 1e-05, %v5051_v28  ;;  %v5052_v19 = vmul.f32 0.015625, %v4994_v38 }
0x10a3   : >> { %v4997_v56 = vpop.xlane.xlu1 %4996  ;;  %7246 = vmatmul.mubr.msk.bf16.gmra.mrb[20].mxu1 %vm1129_vm4, %v5237_v21  ;;  %v11524_v6 = vadd.f32 %v11464_v3, %v5175_v54  ;;  %v5141_v47 = vmul.f32 %v8141_v40, %v11314_v60  ;;  %v5176_v44 = vmul.f32 %v11457_v48, %v5140_v7 }
0x10a4   : >> { %v8143_v13 = vpop.eup %8142  ;;  %8152 = vrsqrt.f32 %v5083_v43  ;;  %v5084_v55 = vadd.f32 1e-05, %v5052_v19  ;;  %v5053_v27 = vmul.f32 0.015625, %v4997_v56 }
0x10a5   : >> { %v5000_v31 = vpop.xlane.xlu0 %4999  ;;  %v5238_v61 = vpack.c.bf16 %v11524_v6, %v11521_v46  ;;  %v5177_v2 = vmul.f32 %v11457_v48, %v5141_v47  ;;  %v5142_v17 = vmul.f32 %v8143_v13, %v11320_v42  ;;  %v11534_v60 = vadd.f32 %v11464_v3, %v5176_v44 }
0x10a6   : >> { %v8145_v52 = vpop.eup %8144  ;;  %8154 = vrsqrt.f32 %v5084_v55  ;;  %v5085_v32 = vadd.f32 1e-05, %v5053_v27  ;;  %v5054_v15 = vmul.f32 0.015625, %v5000_v31 }
0x10a7   : >> { %v5003_v34 = vpop.xlane.xlu1 %5002  ;;  %7249 = vmatprep.mubr.msk.bf16.mxu1 %vm1129_vm4, %v5238_v61  ;;  %v11537_v57 = vadd.f32 %v11464_v3, %v5177_v2  ;;  %v5143_v5 = vmul.f32 %v8145_v52, %v11326_v4  ;;  %v5178_v37 = vmul.f32 %v11457_v48, %v5142_v17 }
0x10a8   : >> { %v8147_v22 = vpop.eup %8146  ;;  %8156 = vrsqrt.f32 %v5085_v32  ;;  %v5086_v42 = vadd.f32 1e-05, %v5054_v15  ;;  %v5055_v24 = vmul.f32 0.015625, %v5003_v34 }
0x10a9   : >> { %v5006_v49 = vpop.xlane.xlu0 %5005  ;;  %v5239_v36 = vpack.c.bf16 %v11537_v57, %v11534_v60  ;;  %v5179_v28 = vmul.f32 %v11457_v48, %v5143_v5  ;;  %v5144_v38 = vmul.f32 %v8147_v22, %v11332_v53  ;;  %v11547_v4 = vadd.f32 %v11464_v3, %v5178_v37 }
0x10aa   : >> { %v8149_v21 = vpop.eup %8148  ;;  %8158 = vrsqrt.f32 %v5086_v42  ;;  %v5087_v54 = vadd.f32 1e-05, %v5055_v24  ;;  %v5056_v7 = vmul.f32 0.015625, %v5006_v49 }
0x10ab   : >> { %v5009_v40 = vpop.xlane.xlu1 %5008  ;;  %7250 = vmatmul.mubr.msk.bf16.gmra.mrb[24].mxu1 %vm1129_vm4, %v5239_v36  ;;  %v11550_v43 = vadd.f32 %v11464_v3, %v5179_v28  ;;  %v5145_v19 = vmul.f32 %v8149_v21, %v11338_v0  ;;  %v5180_v56 = vmul.f32 %v11457_v48, %v5144_v38 }
0x10ac   : >> { %v8151_v47 = vpop.eup %8150  ;;  %8160 = vrsqrt.f32 %v5087_v54  ;;  %v5088_v53 = vadd.f32 1e-05, %v5056_v7  ;;  %v5057_v44 = vmul.f32 0.015625, %v5009_v40 }
0x10ad   : >> { %v5012_v13 = vpop.xlane.xlu0 %5011  ;;  %v5240_v55 = vpack.c.bf16 %v11550_v43, %v11547_v4  ;;  %v5181_v27 = vmul.f32 %v11457_v48, %v5145_v19  ;;  %v5146_v31 = vmul.f32 %v8151_v47, %v11344_v23  ;;  %v11560_v0 = vadd.f32 %v11464_v3, %v5180_v56 }
0x10ae   : >> { %v8153_v61 = vpop.eup %8152  ;;  %8162 = vrsqrt.f32 %v5088_v53  ;;  %v5089_v2 = vadd.f32 1e-05, %v5057_v44  ;;  %v5058_v17 = vmul.f32 0.015625, %v5012_v13 }
0x10af   : >> { %v5015_v52 = vpop.xlane.xlu1 %5014  ;;  %7253 = vmatprep.mubr.msk.bf16.mxu1 %vm1129_vm4, %v5240_v55  ;;  %v11563_v32 = vadd.f32 %v11464_v3, %v5181_v27  ;;  %v5147_v15 = vmul.f32 %v8153_v61, %v11350_v35  ;;  %v5182_v34 = vmul.f32 %v11457_v48, %v5146_v31 }
0x10b0   : >> { %v8155_v5 = vpop.eup %8154  ;;  %8164 = vrsqrt.f32 %v5089_v2  ;;  %v5090_v23 = vadd.f32 1e-05, %v5058_v17  ;;  %v5059_v37 = vmul.f32 0.015625, %v5015_v52 }
0x10b1   : >> { %v5018_v22 = vpop.xlane.xlu0 %5017  ;;  %v5241_v42 = vpack.c.bf16 %v11563_v32, %v11560_v0  ;;  %v5183_v24 = vmul.f32 %v11457_v48, %v5147_v15  ;;  %v5148_v49 = vmul.f32 %v8155_v5, %v11357_v58  ;;  %v11573_v35 = vadd.f32 %v11464_v3, %v5182_v34 }
0x10b2   : >> { %v8157_v36 = vpop.eup %8156  ;;  %8166 = vrsqrt.f32 %v5090_v23  ;;  %v5091_v28 = vadd.f32 1e-05, %v5059_v37  ;;  %v5060_v38 = vmul.f32 0.015625, %v5018_v22 }
0x10b3   : >> { %v5021_v21 = vpop.xlane.xlu1 %5020  ;;  %7254 = vmatmul.mubr.msk.bf16.gmra.mrb[28].mxu1 %vm1129_vm4, %v5241_v42  ;;  %v11576_v54 = vadd.f32 %v11464_v3, %v5183_v24  ;;  %v5149_v7 = vmul.f32 %v8157_v36, %v11363_v63  ;;  %v5184_v40 = vmul.f32 %v11457_v48, %v5148_v49 }
0x10b4   : >> { %v8159_v19 = vpop.eup %8158  ;;  %8168 = vrsqrt.f32 %v5091_v28  ;;  %v5092_v58 = vadd.f32 1e-05, %v5060_v38  ;;  %v5061_v56 = vmul.f32 0.015625, %v5021_v21 }
0x10b5   : >> { %v5024_v47 = vpop.xlane.xlu0 %5023  ;;  %v5242_v53 = vpack.c.bf16 %v11576_v54, %v11573_v35  ;;  %v5185_v44 = vmul.f32 %v11457_v48, %v5149_v7  ;;  %v5150_v13 = vmul.f32 %v8159_v19, %v11370_v39  ;;  %v11586_v63 = vadd.f32 %v11464_v3, %v5184_v40 }
0x10b6   : >> { %v8161_v55 = vpop.eup %8160  ;;  %8170 = vrsqrt.f32 %v5092_v58  ;;  %v5093_v27 = vadd.f32 1e-05, %v5061_v56  ;;  %v5062_v31 = vmul.f32 0.015625, %v5024_v47 }
0x10b7   : >> { %v5027_v61 = vpop.xlane.xlu1 %5026  ;;  %7257 = vmatprep.mubr.msk.bf16.mxu1 %vm1129_vm4, %v5242_v53  ;;  %v11589_v2 = vadd.f32 %v11464_v3, %v5185_v44  ;;  %v5151_v17 = vmul.f32 %v8161_v55, %v11376_v41  ;;  %v5186_v52 = vmul.f32 %v11457_v48, %v5150_v13 }
0x10b8   : >> { %v8163_v15 = vpop.eup %8162  ;;  %8172 = vrsqrt.f32 %v5093_v27  ;;  %v5094_v39 = vadd.f32 1e-05, %v5062_v31  ;;  %v5063_v34 = vmul.f32 0.015625, %v5027_v61 }
0x10b9   : >> { %v5030_v5 = vpop.xlane.xlu0 %5029  ;;  %v5243_v23 = vpack.c.bf16 %v11589_v2, %v11586_v63  ;;  %v5187_v37 = vmul.f32 %v11457_v48, %v5151_v17  ;;  %v5152_v22 = vmul.f32 %v8163_v15, %v11383_v26  ;;  %v11599_v41 = vadd.f32 %v11464_v3, %v5186_v52 }
0x10ba   : >> { %v8165_v42 = vpop.eup %8164  ;;  %8174 = vrsqrt.f32 %v5094_v39  ;;  %v5095_v24 = vadd.f32 1e-05, %v5063_v34  ;;  %v5064_v49 = vmul.f32 0.015625, %v5030_v5 }
0x10bb   : >> { %v5033_v36 = vpop.xlane.xlu1 %5032  ;;  %7258 = vmatmul.mubr.msk.bf16.gmra.mrb[32].mxu1 %vm1129_vm4, %v5243_v23  ;;  %v11602_v28 = vadd.f32 %v11464_v3, %v5187_v37  ;;  %v5153_v38 = vmul.f32 %v8165_v42, %v11389_v33  ;;  %v5188_v21 = vmul.f32 %v11457_v48, %v5152_v22 }
0x10bc   : >> { %v8167_v7 = vpop.eup %8166  ;;  %8176 = vrsqrt.f32 %v5095_v24  ;;  %v5096_v26 = vadd.f32 1e-05, %v5064_v49  ;;  %v5065_v40 = vmul.f32 0.015625, %v5033_v36 }
0x10bd   : >> { %v5244_v19 = vpack.c.bf16 %v11602_v28, %v11599_v41  ;;  %v5189_v58 = vmul.f32 %v11457_v48, %v5153_v38  ;;  %v5154_v56 = vmul.f32 %v8167_v7, %v11395_v8  ;;  %v11612_v33 = vadd.f32 %v11464_v3, %v5188_v21 }
0x10be   : >> { %v8169_v47 = vpop.eup %8168  ;;  %8178 = vrsqrt.f32 %v5096_v26  ;;  %v5097_v53 = vadd.f32 1e-05, %v5065_v40 }
0x10bf   : >> { %7261 = vmatprep.mubr.msk.bf16.mxu1 %vm1129_vm4, %v5244_v19  ;;  %v11615_v44 = vadd.f32 %v11464_v3, %v5189_v58  ;;  %v5155_v13 = vmul.f32 %v8169_v47, %v11401_v18  ;;  %v5190_v55 = vmul.f32 %v11457_v48, %v5154_v56 }
0x10c0   : >> { %v8171_v27 = vpop.eup %8170  ;;  %8180 = vrsqrt.f32 %v5097_v53  ;;  %v8117_v53 = vld [vmem:[%s11447_s6 + $0x38] sm:$0xff]  }
0x10c1   : >> { %v5245_v8 = vpack.c.bf16 %v11615_v44, %v11612_v33  ;;  %v5191_v31 = vmul.f32 %v11457_v48, %v5155_v13  ;;  %v5156_v61 = vmul.f32 %v8171_v27, %v11407_v10  ;;  %v11625_v52 = vadd.f32 %v11464_v3, %v5190_v55 }
0x10c2   : >> { %v8173_v17 = vpop.eup %8172 }
0x10c3   : >> { %7262 = vmatmul.mubr.msk.bf16.gmra.mrb[36].mxu1 %vm1129_vm4, %v5245_v8  ;;  %v11628_v15 = vadd.f32 %v11464_v3, %v5191_v31  ;;  %v5157_v18 = vmul.f32 %v8173_v17, %v11413_v16  ;;  %v5192_v39 = vmul.f32 %v11457_v48, %v5156_v61 }
0x10c4   : >> { %v8175_v34 = vpop.eup %8174 }
0x10c5   : >> { %v5246_v5 = vpack.c.bf16 %v11628_v15, %v11625_v52  ;;  %v5193_v23 = vmul.f32 %v11457_v48, %v5157_v18  ;;  %v5158_v10 = vmul.f32 %v8175_v34, %v11419_v62  ;;  %v11638_v22 = vadd.f32 %v11464_v3, %v5192_v39 }
0x10c6   : >> { %v8177_v37 = vpop.eup %8176 }
0x10c7   : >> { %7265 = vmatprep.mubr.msk.bf16.mxu1 %vm1129_vm4, %v5246_v5  ;;  %v11641_v42 = vadd.f32 %v11464_v3, %v5193_v23  ;;  %v5159_v16 = vmul.f32 %v8177_v37, %v11425_v51  ;;  %v5194_v24 = vmul.f32 %v11457_v48, %v5158_v10 }
0x10c8   : >> { %v8179_v49 = vpop.eup %8178 }
0x10c9   : >> { %v5247_v36 = vpack.c.bf16 %v11641_v42, %v11638_v22  ;;  %v5195_v62 = vmul.f32 %v11457_v48, %v5159_v16  ;;  %v5160_v38 = vmul.f32 %v8179_v49, %v11428_v59  ;;  %v11651_v7 = vadd.f32 %v11464_v3, %v5194_v24 }
0x10ca   : >> { %v8181_v21 = vpop.eup %8180 }
0x10cb   : >> { %7266 = vmatmul.mubr.msk.bf16.gmra.mrb[40].mxu1 %vm1129_vm4, %v5247_v36  ;;  %v11654_v51 = vadd.f32 %v11464_v3, %v5195_v62  ;;  %v5161_v26 = vmul.f32 %v8181_v21, %v11434_v11  ;;  %v5196_v40 = vmul.f32 %v11457_v48, %v5160_v38  ;;  %v8116_v11 = vld [vmem:[%s11447_s6 + $0x30] sm:$0xff]  }
0x10cc   : >> { %7285 = vmatprep.subr.bf16.mxu0 %v8116_v11 }
0x10cd   : >> { %v5248_v19 = vpack.c.bf16 %v11654_v51, %v11651_v7  ;;  %v5197_v59 = vmul.f32 %v11457_v48, %v5161_v26  ;;  %v11663_v58 = vadd.f32 %v11464_v3, %v5196_v40  ;;  %7286 = vmatpush3.bf16.msra.mxu0 %v8116_v11  ;;  %v11677_v48 = vld [vmem:[%s5260_s27] ss:$0 sm:$0xff] }
0x10ce   : >> { %7287 = vmatprep.subr.bf16.mxu0 %v8117_v53 }
0x10cf   : >> { %7269 = vmatprep.mubr.msk.bf16.mxu1 %vm1129_vm4, %v5248_v19  ;;  %v11666_v56 = vadd.f32 %v11464_v3, %v5197_v59 }
0x10d1   : >> { %v5249_v47 = vpack.c.bf16 %v11666_v56, %v11663_v58  ;;  %7288 = vmatpush3.bf16.msra.mxu0 %v8117_v53 }
0x10d3   : >> { %7270 = vmatmul.mubr.msk.bf16.gmra.mrb[44].mxu1 %vm1129_vm4, %v5249_v47 }
0x116e   : >> { %v7243_v13 = vpop.f32.mrb[16].mxu1 }
0x116f   : >> { %v5383_v3 = vadd.f32 %v7243_v13, %v11677_v48  ;;  %v5374_v55 = vpop.f32.mrb[17].mxu1 }
0x1170   : >> { %v5375_v27 = vadd.f32 %v11677_v48, %v5374_v55  ;;  %v7244_v8 = vpop.f32.mrb[18].mxu1 }
0x1171   : >> { %v5386_v31 = vadd.f32 %v7244_v8, %v11677_v48  ;;  %v5377_v61 = vpop.f32.mrb[19].mxu1  ;;  %v5503_v18 = vmax.f32 %v5383_v3, 0.0 }
0x1172   : >> { %v5378_v17 = vadd.f32 %v11677_v48, %v5377_v61  ;;  %v5501_v34 = vmax.f32 %v5375_v27, 0.0 }
0x1173   : >> { %v5504_v39 = vmax.f32 %v5386_v31, 0.0 }
0x1174   : >> { %v5502_v5 = vmax.f32 %v5378_v17, 0.0 }
0x1175   : >> { %v5534_v23 = vpack.c.bf16 %v5504_v39, %v5503_v18 }
0x1176   : >> { %v5533_v10 = vpack.c.bf16 %v5502_v5, %v5501_v34  ;;  %v7247_v37 = vpop.f32.mrb[20].mxu1 }
0x1177   : >> { %v5399_v16 = vadd.f32 %v7247_v37, %v11677_v48  ;;  %v5390_v24 = vpop.f32.mrb[21].mxu1 }
0x1178   : >> { %v5391_v49 = vadd.f32 %v11677_v48, %v5390_v24  ;;  %v7248_v36 = vpop.f32.mrb[22].mxu1  ;;  %7289 = vmatprep.mubr.bf16.mxu0 %v5533_v10 }
0x1179   : >> { %v5402_v62 = vadd.f32 %v7248_v36, %v11677_v48  ;;  %v5393_v38 = vpop.f32.mrb[23].mxu1  ;;  %7290 = vmatmul.mubr.bf16.vlgmr.msra.gmra.mrb[16].mxu0 %v5534_v23  ;;  %v5507_v26 = vmax.f32 %v5399_v16, 0.0 }
0x117a   : >> { %v5394_v21 = vadd.f32 %v11677_v48, %v5393_v38  ;;  %v5505_v19 = vmax.f32 %v5391_v49, 0.0 }
0x117b   : >> { %v5508_v40 = vmax.f32 %v5402_v62, 0.0 }
0x117c   : >> { %v5506_v59 = vmax.f32 %v5394_v21, 0.0 }
0x117d   : >> { %v5536_v47 = vpack.c.bf16 %v5508_v40, %v5507_v26 }
0x117e   : >> { %v5535_v11 = vpack.c.bf16 %v5506_v59, %v5505_v19  ;;  %v7251_v53 = vpop.f32.mrb[24].mxu1 }
0x117f   : >> { %v5415_v13 = vadd.f32 %v7251_v53, %v11677_v48  ;;  %v5406_v3 = vpop.f32.mrb[25].mxu1 }
0x1180   : >> { %v5407_v55 = vadd.f32 %v11677_v48, %v5406_v3  ;;  %v7252_v27 = vpop.f32.mrb[26].mxu1  ;;  %7293 = vmatprep.mubr.bf16.mxu0 %v5535_v11 }
0x1181   : >> { %v5418_v8 = vadd.f32 %v7252_v27, %v11677_v48  ;;  %v5409_v31 = vpop.f32.mrb[27].mxu1  ;;  %7294 = vmatmul.mubr.bf16.gmra.mrb[20].mxu0 %v5536_v47  ;;  %v5511_v17 = vmax.f32 %v5415_v13, 0.0 }
0x1182   : >> { %v5410_v61 = vadd.f32 %v11677_v48, %v5409_v31  ;;  %v5509_v39 = vmax.f32 %v5407_v55, 0.0 }
0x1183   : >> { %v5512_v18 = vmax.f32 %v5418_v8, 0.0 }
0x1184   : >> { %v5510_v34 = vmax.f32 %v5410_v61, 0.0 }
0x1185   : >> { %v5538_v5 = vpack.c.bf16 %v5512_v18, %v5511_v17 }
0x1186   : >> { %v5537_v23 = vpack.c.bf16 %v5510_v34, %v5509_v39  ;;  %v7255_v10 = vpop.f32.mrb[28].mxu1 }
0x1187   : >> { %v5431_v37 = vadd.f32 %v7255_v10, %v11677_v48  ;;  %v5422_v16 = vpop.f32.mrb[29].mxu1 }
0x1188   : >> { %v5423_v24 = vadd.f32 %v11677_v48, %v5422_v16  ;;  %v7256_v49 = vpop.f32.mrb[30].mxu1  ;;  %7297 = vmatprep.mubr.bf16.mxu0 %v5537_v23 }
0x1189   : >> { %v5434_v36 = vadd.f32 %v7256_v49, %v11677_v48  ;;  %v5425_v62 = vpop.f32.mrb[31].mxu1  ;;  %7298 = vmatmul.mubr.bf16.gmra.mrb[24].mxu0 %v5538_v5  ;;  %v5515_v21 = vmax.f32 %v5431_v37, 0.0 }
0x118a   : >> { %v5426_v38 = vadd.f32 %v11677_v48, %v5425_v62  ;;  %v5513_v40 = vmax.f32 %v5423_v24, 0.0 }
0x118b   : >> { %v5516_v26 = vmax.f32 %v5434_v36, 0.0 }
0x118c   : >> { %v5514_v19 = vmax.f32 %v5426_v38, 0.0 }
0x118d   : >> { %v5540_v59 = vpack.c.bf16 %v5516_v26, %v5515_v21 }
0x118e   : >> { %v5539_v47 = vpack.c.bf16 %v5514_v19, %v5513_v40  ;;  %v7259_v11 = vpop.f32.mrb[32].mxu1 }
0x118f   : >> { %v5447_v53 = vadd.f32 %v7259_v11, %v11677_v48  ;;  %v5438_v13 = vpop.f32.mrb[33].mxu1 }
0x1190   : >> { %v5439_v3 = vadd.f32 %v11677_v48, %v5438_v13  ;;  %v7260_v55 = vpop.f32.mrb[34].mxu1  ;;  %7301 = vmatprep.mubr.bf16.mxu0 %v5539_v47 }
0x1191   : >> { %v5450_v27 = vadd.f32 %v7260_v55, %v11677_v48  ;;  %v5441_v8 = vpop.f32.mrb[35].mxu1  ;;  %7302 = vmatmul.mubr.bf16.gmra.mrb[28].mxu0 %v5540_v59  ;;  %v5519_v61 = vmax.f32 %v5447_v53, 0.0 }
0x1192   : >> { %v5442_v31 = vadd.f32 %v11677_v48, %v5441_v8  ;;  %v5517_v18 = vmax.f32 %v5439_v3, 0.0 }
0x1193   : >> { %v5520_v17 = vmax.f32 %v5450_v27, 0.0 }
0x1194   : >> { %v5518_v39 = vmax.f32 %v5442_v31, 0.0 }
0x1195   : >> { %v5542_v34 = vpack.c.bf16 %v5520_v17, %v5519_v61 }
0x1196   : >> { %v5541_v5 = vpack.c.bf16 %v5518_v39, %v5517_v18  ;;  %v7263_v23 = vpop.f32.mrb[36].mxu1 }
0x1197   : >> { %v5463_v10 = vadd.f32 %v7263_v23, %v11677_v48  ;;  %v5454_v37 = vpop.f32.mrb[37].mxu1 }
0x1198   : >> { %v5455_v16 = vadd.f32 %v11677_v48, %v5454_v37  ;;  %v7264_v24 = vpop.f32.mrb[38].mxu1  ;;  %7305 = vmatprep.mubr.bf16.mxu0 %v5541_v5 }
0x1199   : >> { %v5466_v49 = vadd.f32 %v7264_v24, %v11677_v48  ;;  %v5457_v36 = vpop.f32.mrb[39].mxu1  ;;  %7306 = vmatmul.mubr.bf16.gmra.mrb[32].mxu0 %v5542_v34  ;;  %v5523_v38 = vmax.f32 %v5463_v10, 0.0 }
0x119a   : >> { %v5458_v62 = vadd.f32 %v11677_v48, %v5457_v36  ;;  %v5521_v26 = vmax.f32 %v5455_v16, 0.0 }
0x119b   : >> { %v5524_v21 = vmax.f32 %v5466_v49, 0.0 }
0x119c   : >> { %v5522_v40 = vmax.f32 %v5458_v62, 0.0 }
0x119d   : >> { %v5544_v19 = vpack.c.bf16 %v5524_v21, %v5523_v38 }
0x119e   : >> { %v5543_v59 = vpack.c.bf16 %v5522_v40, %v5521_v26  ;;  %v7267_v47 = vpop.f32.mrb[40].mxu1 }
0x119f   : >> { %v5479_v11 = vadd.f32 %v7267_v47, %v11677_v48  ;;  %v5470_v53 = vpop.f32.mrb[41].mxu1 }
0x11a0   : >> { %v5471_v13 = vadd.f32 %v11677_v48, %v5470_v53  ;;  %v7268_v3 = vpop.f32.mrb[42].mxu1  ;;  %7309 = vmatprep.mubr.bf16.mxu0 %v5543_v59  ;;  %v11715_v59 = vld [vmem:[%s5567_s0] ss:$0 sm:$0xff] }
0x11a1   : >> { %v5482_v55 = vadd.f32 %v7268_v3, %v11677_v48  ;;  %v5473_v27 = vpop.f32.mrb[43].mxu1  ;;  %7310 = vmatmul.mubr.bf16.gmra.mrb[36].mxu0 %v5544_v19  ;;  %v5527_v31 = vmax.f32 %v5479_v11, 0.0 }
0x11a2   : >> { %v5474_v8 = vadd.f32 %v11677_v48, %v5473_v27  ;;  %v5525_v17 = vmax.f32 %v5471_v13, 0.0 }
0x11a3   : >> { %v5528_v61 = vmax.f32 %v5482_v55, 0.0 }
0x11a4   : >> { %v5526_v18 = vmax.f32 %v5474_v8, 0.0 }
0x11a5   : >> { %v5546_v39 = vpack.c.bf16 %v5528_v61, %v5527_v31 }
0x11a6   : >> { %v5545_v34 = vpack.c.bf16 %v5526_v18, %v5525_v17  ;;  %v7271_v5 = vpop.f32.mrb[44].mxu1 }
0x11a7   : >> { %v5495_v23 = vadd.f32 %v7271_v5, %v11677_v48  ;;  %v5486_v10 = vpop.f32.mrb[45].mxu1 }
0x11a8   : >> { %v5487_v37 = vadd.f32 %v11677_v48, %v5486_v10  ;;  %v7272_v16 = vpop.f32.mrb[46].mxu1  ;;  %7313 = vmatprep.mubr.bf16.mxu0 %v5545_v34 }
0x11a9   : >> { %v5498_v24 = vadd.f32 %v7272_v16, %v11677_v48  ;;  %v5489_v49 = vpop.f32.mrb[47].mxu1  ;;  %7314 = vmatmul.mubr.bf16.gmra.mrb[40].mxu0 %v5546_v39  ;;  %v5531_v62 = vmax.f32 %v5495_v23, 0.0 }
0x11aa   : >> { %v5490_v36 = vadd.f32 %v11677_v48, %v5489_v49  ;;  %v5529_v21 = vmax.f32 %v5487_v37, 0.0 }
0x11ab   : >> { %v5532_v38 = vmax.f32 %v5498_v24, 0.0 }
0x11ac   : >> { %v5530_v26 = vmax.f32 %v5490_v36, 0.0 }
0x11ad   : >> { %v5548_v40 = vpack.c.bf16 %v5532_v38, %v5531_v62 }
0x11ae   : >> { %v5547_v19 = vpack.c.bf16 %v5530_v26, %v5529_v21 }
0x11b0   : >> { %7317 = vmatprep.mubr.bf16.mxu0 %v5547_v19 }
0x11b1   : >> { %7318 = vmatmul.mubr.bf16.gmra.mrb[44].mxu0 %v5548_v40 }
0x124c   : >> { %v7291_v47 = vpop.f32.mrb[16].mxu0 }
0x124d   : >> { %v5666_v11 = vadd.f32 %v7291_v47, %v11715_v59  ;;  %v5657_v53 = vpop.f32.mrb[17].mxu0 }
0x124e   : >> { %v5658_v48 = vadd.f32 %v11715_v59, %v5657_v53  ;;  %v7292_v13 = vpop.f32.mrb[18].mxu0 }
0x124f   : >> { %v5669_v3 = vadd.f32 %v7292_v13, %v11715_v59  ;;  %v5660_v55 = vpop.f32.mrb[19].mxu0  ;;  %v11721_v27 = vadd.f32 %v5666_v11, %v11482_v45 }
0x1250   : >> { %v5661_v8 = vadd.f32 %v11715_v59, %v5660_v55  ;;  %v11730_v17 = vadd.f32 %v5658_v48, %v11471_v1 }
0x1251   : >> { %v5822_v31 = vsel %vm1129_vm4, %v11721_v27, 0.0  ;;  %v11727_v61 = vadd.f32 %v5669_v3, %v11485_v20 }
0x1252   : >> { %5823 = vadd.xlane.f32.xlu0 %v5822_v31  ;;  %v11735_v39 = vadd.f32 %v5661_v8, %v11474_v12  ;;  %v5816_v23 = vsel %vm1129_vm4, %v11730_v17, 0.0 }
0x1253   : >> { %v5825_v18 = vsel %vm1129_vm4, %v11727_v61, 0.0 }
0x1254   : >> { %5826 = vadd.xlane.f32.xlu1 %v5825_v18  ;;  %v7295_v45 = vpop.f32.mrb[20].mxu0  ;;  %v5819_v16 = vsel %vm1129_vm4, %v11735_v39, 0.0 }
0x1255   : >> { %v5682_v34 = vadd.f32 %v7295_v45, %v11715_v59  ;;  %v5673_v5 = vpop.f32.mrb[21].mxu0 }
0x1256   : >> { %v5674_v20 = vadd.f32 %v11715_v59, %v5673_v5  ;;  %5817 = vadd.xlane.f32.xlu0 %v5816_v23  ;;  %v7296_v1 = vpop.f32.mrb[22].mxu0 }
0x1257   : >> { %v5685_v10 = vadd.f32 %v7296_v1, %v11715_v59  ;;  %v5676_v37 = vpop.f32.mrb[23].mxu0  ;;  %v11745_v12 = vadd.f32 %v5682_v34, %v11508_v50 }
0x1258   : >> { %v5677_v24 = vadd.f32 %v11715_v59, %v5676_v37  ;;  %5820 = vadd.xlane.f32.xlu1 %v5819_v16  ;;  %v11754_v62 = vadd.f32 %v5674_v20, %v11495_v25 }
0x1259   : >> { %v5834_v49 = vsel %vm1129_vm4, %v11745_v12, 0.0  ;;  %v11751_v36 = vadd.f32 %v5685_v10, %v11511_v29 }
0x125a   : >> { %5835 = vadd.xlane.f32.xlu0 %v5834_v49  ;;  %v11759_v21 = vadd.f32 %v5677_v24, %v11498_v14  ;;  %v5828_v19 = vsel %vm1129_vm4, %v11754_v62, 0.0 }
0x125b   : >> { %v5837_v38 = vsel %vm1129_vm4, %v11751_v36, 0.0 }
0x125c   : >> { %5838 = vadd.xlane.f32.xlu1 %v5837_v38  ;;  %v7299_v50 = vpop.f32.mrb[24].mxu0  ;;  %v5831_v53 = vsel %vm1129_vm4, %v11759_v21, 0.0 }
0x125d   : >> { %v5698_v26 = vadd.f32 %v7299_v50, %v11715_v59  ;;  %v5689_v40 = vpop.f32.mrb[25].mxu0 }
0x125e   : >> { %v5690_v29 = vadd.f32 %v11715_v59, %v5689_v40  ;;  %5829 = vadd.xlane.f32.xlu0 %v5828_v19  ;;  %v7300_v25 = vpop.f32.mrb[26].mxu0 }
0x125f   : >> { %v5701_v47 = vadd.f32 %v7300_v25, %v11715_v59  ;;  %v5692_v11 = vpop.f32.mrb[27].mxu0  ;;  %v11769_v14 = vadd.f32 %v5698_v26, %v11534_v60 }
0x1260   : >> { %v5693_v48 = vadd.f32 %v11715_v59, %v5692_v11  ;;  %5832 = vadd.xlane.f32.xlu1 %v5831_v53  ;;  %v11778_v55 = vadd.f32 %v5690_v29, %v11521_v46 }
0x1261   : >> { %v5846_v13 = vsel %vm1129_vm4, %v11769_v14, 0.0  ;;  %v11775_v3 = vadd.f32 %v5701_v47, %v11537_v57 }
0x1262   : >> { %5847 = vadd.xlane.f32.xlu0 %v5846_v13  ;;  %v11783_v31 = vadd.f32 %v5693_v48, %v11524_v6  ;;  %v5840_v34 = vsel %vm1129_vm4, %v11778_v55, 0.0 }
0x1263   : >> { %v5849_v8 = vsel %vm1129_vm4, %v11775_v3, 0.0 }
0x1264   : >> { %5850 = vadd.xlane.f32.xlu1 %v5849_v8  ;;  %v7303_v60 = vpop.f32.mrb[28].mxu0  ;;  %v5843_v20 = vsel %vm1129_vm4, %v11783_v31, 0.0 }
0x1265   : >> { %v5714_v18 = vadd.f32 %v7303_v60, %v11715_v59  ;;  %v5705_v45 = vpop.f32.mrb[29].mxu0 }
0x1266   : >> { %v5706_v57 = vadd.f32 %v11715_v59, %v5705_v45  ;;  %5841 = vadd.xlane.f32.xlu0 %v5840_v34  ;;  %v7304_v46 = vpop.f32.mrb[30].mxu0 }
0x1267   : >> { %v5717_v5 = vadd.f32 %v7304_v46, %v11715_v59  ;;  %v5708_v23 = vpop.f32.mrb[31].mxu0  ;;  %v11793_v6 = vadd.f32 %v5714_v18, %v11560_v0 }
0x1268   : >> { %v5709_v1 = vadd.f32 %v11715_v59, %v5708_v23  ;;  %5844 = vadd.xlane.f32.xlu1 %v5843_v20  ;;  %v11802_v16 = vadd.f32 %v5706_v57, %v11547_v4 }
0x1269   : >> { %v5858_v10 = vsel %vm1129_vm4, %v11793_v6, 0.0  ;;  %v11799_v37 = vadd.f32 %v5717_v5, %v11563_v32 }
0x126a   : >> { %5859 = vadd.xlane.f32.xlu0 %v5858_v10  ;;  %v11807_v49 = vadd.f32 %v5709_v1, %v11550_v43  ;;  %v5852_v26 = vsel %vm1129_vm4, %v11802_v16, 0.0 }
0x126b   : >> { %v5861_v24 = vsel %vm1129_vm4, %v11799_v37, 0.0 }
0x126c   : >> { %5862 = vadd.xlane.f32.xlu1 %v5861_v24  ;;  %v7307_v0 = vpop.f32.mrb[32].mxu0  ;;  %v5855_v29 = vsel %vm1129_vm4, %v11807_v49, 0.0 }
0x126d   : >> { %v5730_v38 = vadd.f32 %v7307_v0, %v11715_v59  ;;  %v5721_v50 = vpop.f32.mrb[33].mxu0 }
0x126e   : >> { %v5722_v32 = vadd.f32 %v11715_v59, %v5721_v50  ;;  %5853 = vadd.xlane.f32.xlu0 %v5852_v26  ;;  %v7308_v4 = vpop.f32.mrb[34].mxu0 }
0x126f   : >> { %v5733_v40 = vadd.f32 %v7308_v4, %v11715_v59  ;;  %v5724_v19 = vpop.f32.mrb[35].mxu0  ;;  %v11817_v43 = vadd.f32 %v5730_v38, %v11586_v63 }
0x1270   : >> { %v5725_v25 = vadd.f32 %v11715_v59, %v5724_v19  ;;  %5856 = vadd.xlane.f32.xlu1 %v5855_v29  ;;  %v11821_v47 = vadd.f32 %v5722_v32, %v11573_v35 }
0x1271   : >> { %v5870_v11 = vsel %vm1129_vm4, %v11817_v43, 0.0  ;;  %v11826_v53 = vadd.f32 %v5733_v40, %v11589_v2 }
0x1272   : >> { %5871 = vadd.xlane.f32.xlu0 %v5870_v11  ;;  %v11829_v48 = vadd.f32 %v5725_v25, %v11576_v54  ;;  %v5864_v35 = vsel %vm1129_vm4, %v11821_v47, 0.0 }
0x1273   : >> { %v5873_v63 = vsel %vm1129_vm4, %v11826_v53, 0.0 }
0x1274   : >> { %5874 = vadd.xlane.f32.xlu1 %v5873_v63  ;;  %v7311_v13 = vpop.f32.mrb[36].mxu0  ;;  %v5867_v57 = vsel %vm1129_vm4, %v11829_v48, 0.0 }
0x1275   : >> { %v5746_v8 = vadd.f32 %v7311_v13, %v11715_v59  ;;  %v5737_v60 = vpop.f32.mrb[37].mxu0 }
0x1276   : >> { %v5738_v18 = vadd.f32 %v11715_v59, %v5737_v60  ;;  %5865 = vadd.xlane.f32.xlu0 %v5864_v35  ;;  %v7312_v2 = vpop.f32.mrb[38].mxu0 }
0x1277   : >> { %v11838_v45 = vadd.f32 %v5746_v8, %v11612_v33  ;;  %v5749_v54 = vadd.f32 %v7312_v2, %v11715_v59  ;;  %v5740_v34 = vpop.f32.mrb[39].mxu0 }
0x1278   : >> { %v5741_v46 = vadd.f32 %v11715_v59, %v5740_v34  ;;  %5868 = vadd.xlane.f32.xlu1 %v5867_v57  ;;  %v11845_v5 = vadd.f32 %v5738_v18, %v11599_v41 }
0x1279   : >> { %v11848_v23 = vadd.f32 %v5749_v54, %v11615_v44  ;;  %v5882_v20 = vsel %vm1129_vm4, %v11838_v45, 0.0 }
0x127a   : >> { %5883 = vadd.xlane.f32.xlu0 %v5882_v20  ;;  %v11853_v33 = vadd.f32 %v5741_v46, %v11602_v28  ;;  %v5876_v41 = vsel %vm1129_vm4, %v11845_v5, 0.0 }
0x127b   : >> { %v5885_v1 = vsel %vm1129_vm4, %v11848_v23, 0.0 }
0x127c   : >> { %5886 = vadd.xlane.f32.xlu1 %v5885_v1  ;;  %v7315_v10 = vpop.f32.mrb[40].mxu0  ;;  %v5879_v32 = vsel %vm1129_vm4, %v11853_v33, 0.0 }
0x127d   : >> { %v5762_v24 = vadd.f32 %v7315_v10, %v11715_v59  ;;  %v5753_v0 = vpop.f32.mrb[41].mxu0 }
0x127e   : >> { %v5754_v44 = vadd.f32 %v11715_v59, %v5753_v0  ;;  %5877 = vadd.xlane.f32.xlu0 %v5876_v41  ;;  %v7316_v38 = vpop.f32.mrb[42].mxu0 }
0x127f   : >> { %v11862_v50 = vadd.f32 %v5762_v24, %v11638_v22  ;;  %v5765_v28 = vadd.f32 %v7316_v38, %v11715_v59  ;;  %v5756_v26 = vpop.f32.mrb[43].mxu0 }
0x1280   : >> { %v5757_v4 = vadd.f32 %v11715_v59, %v5756_v26  ;;  %5880 = vadd.xlane.f32.xlu1 %v5879_v32  ;;  %v11869_v40 = vadd.f32 %v5754_v44, %v11625_v52 }
0x1281   : >> { %v11872_v19 = vadd.f32 %v5765_v28, %v11641_v42  ;;  %v5894_v29 = vsel %vm1129_vm4, %v11862_v50, 0.0 }
0x1282   : >> { %5895 = vadd.xlane.f32.xlu0 %v5894_v29  ;;  %v11877_v22 = vadd.f32 %v5757_v4, %v11628_v15  ;;  %v5888_v52 = vsel %vm1129_vm4, %v11869_v40, 0.0 }
0x1283   : >> { %v5897_v25 = vsel %vm1129_vm4, %v11872_v19, 0.0 }
0x1284   : >> { %5898 = vadd.xlane.f32.xlu1 %v5897_v25  ;;  %v7319_v11 = vpop.f32.mrb[44].mxu0  ;;  %v5891_v15 = vsel %vm1129_vm4, %v11877_v22, 0.0 }
0x1285   : >> { %v5769_v63 = vpop.f32.mrb[45].mxu0  ;;  %v5778_v13 = vadd.f32 %v7319_v11, %v11715_v59 }
0x1286   : >> { %v5770_v42 = vadd.f32 %v11715_v59, %v5769_v63  ;;  %5889 = vadd.xlane.f32.xlu0 %v5888_v52  ;;  %v7320_v8 = vpop.f32.mrb[46].mxu0 }
0x1287   : >> { %v5772_v60 = vpop.f32.mrb[47].mxu0  ;;  %v5781_v18 = vadd.f32 %v7320_v8, %v11715_v59  ;;  %v11893_v54 = vadd.f32 %v5778_v13, %v11663_v58 }
0x1288   : >> { %v11888_v35 = vadd.f32 %v5770_v42, %v11651_v7  ;;  %v5773_v2 = vadd.f32 %v11715_v59, %v5772_v60  ;;  %5892 = vadd.xlane.f32.xlu1 %v5891_v15 }
0x1289   : >> { %v11901_v46 = vadd.f32 %v5781_v18, %v11666_v56  ;;  %v5906_v59 = vsel %vm1129_vm4, %v11893_v54, 0.0 }
0x128a   : >> { %v11896_v34 = vadd.f32 %v5773_v2, %v11654_v51  ;;  %v5900_v57 = vsel %vm1129_vm4, %v11888_v35, 0.0 }
0x128b   : >> { %5901 = vadd.xlane.f32.xlu0 %v5900_v57  ;;  %v5909_v58 = vsel %vm1129_vm4, %v11901_v46, 0.0 }
0x128c   : >> { %v5903_v7 = vsel %vm1129_vm4, %v11896_v34, 0.0 }
0x128d   : >> { %5904 = vadd.xlane.f32.xlu1 %v5903_v7 }
0x128f   : >> { %5907 = vadd.xlane.f32.xlu0 %v5906_v59 }
0x1291   : >> { %5910 = vadd.xlane.f32.xlu1 %v5909_v58 }
0x12df   : >> { %v5824_v51 = vpop.xlane.xlu0 %5823 }
0x12e0   : >> { %v5914_v20 = vmul.f32 0.015625, %v5824_v51 }
0x12e1   : >> { %v5827_v1 = vpop.xlane.xlu1 %5826 }
0x12e2   : >> { %v11910_v10 = vsub.f32 %v11721_v27, %v5914_v20  ;;  %v5915_v56 = vmul.f32 0.015625, %v5827_v1 }
0x12e3   : >> { %v5818_v24 = vpop.xlane.xlu0 %5817 }
0x12e4   : >> { %v11913_v0 = vsub.f32 %v11727_v61, %v5915_v56  ;;  %v5912_v41 = vmul.f32 0.015625, %v5818_v24  ;;  %v5978_v44 = vmul.f32 %v11910_v10, %v11910_v10 }
0x12e5   : >> { %v5821_v38 = vpop.xlane.xlu1 %5820 }
0x12e6   : >> { %v11918_v28 = vsub.f32 %v11730_v17, %v5912_v41  ;;  %v5913_v26 = vmul.f32 0.015625, %v5821_v38  ;;  %v6014_v32 = vsel %vm1129_vm4, %v5978_v44, 0.0  ;;  %v5979_v27 = vmul.f32 %v11913_v0, %v11913_v0 }
0x12e7   : >> { %6015 = vadd.xlane.f32.xlu0 %v6014_v32  ;;  %v5836_v4 = vpop.xlane.xlu0 %5835 }
0x12e8   : >> { %v11924_v29 = vsub.f32 %v11735_v39, %v5913_v26  ;;  %v5918_v61 = vmul.f32 0.015625, %v5836_v4  ;;  %v6017_v25 = vsel %vm1129_vm4, %v5979_v27, 0.0  ;;  %v5976_v11 = vmul.f32 %v11918_v28, %v11918_v28 }
0x12e9   : >> { %v5839_v63 = vpop.xlane.xlu1 %5838  ;;  %6018 = vadd.xlane.f32.xlu1 %v6017_v25 }
0x12ea   : >> { %v11930_v17 = vsub.f32 %v11745_v12, %v5918_v61  ;;  %v5919_v52 = vmul.f32 0.015625, %v5839_v63  ;;  %v6008_v13 = vsel %vm1129_vm4, %v5976_v11, 0.0  ;;  %v5977_v42 = vmul.f32 %v11924_v29, %v11924_v29 }
0x12eb   : >> { %6009 = vadd.xlane.f32.xlu0 %v6008_v13  ;;  %v5830_v39 = vpop.xlane.xlu0 %5829 }
0x12ec   : >> { %v11936_v8 = vsub.f32 %v11751_v36, %v5919_v52  ;;  %v5916_v60 = vmul.f32 0.015625, %v5830_v39  ;;  %v6011_v15 = vsel %vm1129_vm4, %v5977_v42, 0.0  ;;  %v5982_v18 = vmul.f32 %v11930_v17, %v11930_v17 }
0x12ed   : >> { %v5833_v2 = vpop.xlane.xlu1 %5832  ;;  %6012 = vadd.xlane.f32.xlu1 %v6011_v15 }
0x12ee   : >> { %v11942_v12 = vsub.f32 %v11754_v62, %v5916_v60  ;;  %v5917_v57 = vmul.f32 0.015625, %v5833_v2  ;;  %v6026_v7 = vsel %vm1129_vm4, %v5982_v18, 0.0  ;;  %v5983_v59 = vmul.f32 %v11936_v8, %v11936_v8 }
0x12ef   : >> { %6027 = vadd.xlane.f32.xlu0 %v6026_v7  ;;  %v5848_v36 = vpop.xlane.xlu0 %5847 }
0x12f0   : >> { %v11948_v58 = vsub.f32 %v11759_v21, %v5917_v57  ;;  %v5922_v51 = vmul.f32 0.015625, %v5848_v36  ;;  %v6029_v20 = vsel %vm1129_vm4, %v5983_v59, 0.0  ;;  %v5980_v1 = vmul.f32 %v11942_v12, %v11942_v12 }
0x12f1   : >> { %v5851_v56 = vpop.xlane.xlu1 %5850  ;;  %6030 = vadd.xlane.f32.xlu1 %v6029_v20 }
0x12f2   : >> { %v11954_v62 = vsub.f32 %v11769_v14, %v5922_v51  ;;  %v5923_v24 = vmul.f32 0.015625, %v5851_v56  ;;  %v6020_v41 = vsel %vm1129_vm4, %v5980_v1, 0.0  ;;  %v5981_v44 = vmul.f32 %v11948_v58, %v11948_v58 }
0x12f3   : >> { %6021 = vadd.xlane.f32.xlu0 %v6020_v41  ;;  %v5842_v21 = vpop.xlane.xlu0 %5841 }
0x12f4   : >> { %v11960_v38 = vsub.f32 %v11775_v3, %v5923_v24  ;;  %v5920_v26 = vmul.f32 0.015625, %v5842_v21  ;;  %v6023_v32 = vsel %vm1129_vm4, %v5981_v44, 0.0  ;;  %v5986_v27 = vmul.f32 %v11954_v62, %v11954_v62 }
0x12f5   : >> { %v5845_v4 = vpop.xlane.xlu1 %5844  ;;  %6024 = vadd.xlane.f32.xlu1 %v6023_v32 }
0x12f6   : >> { %v11966_v14 = vsub.f32 %v11778_v55, %v5920_v26  ;;  %v5921_v61 = vmul.f32 0.015625, %v5845_v4  ;;  %v6038_v25 = vsel %vm1129_vm4, %v5986_v27, 0.0  ;;  %v5987_v11 = vmul.f32 %v11960_v38, %v11960_v38 }
0x12f7   : >> { %6039 = vadd.xlane.f32.xlu0 %v6038_v25  ;;  %v5860_v3 = vpop.xlane.xlu0 %5859 }
0x12f8   : >> { %v11972_v63 = vsub.f32 %v11783_v31, %v5921_v61  ;;  %v5926_v52 = vmul.f32 0.015625, %v5860_v3  ;;  %v6041_v13 = vsel %vm1129_vm4, %v5987_v11, 0.0  ;;  %v5984_v42 = vmul.f32 %v11966_v14, %v11966_v14 }
0x12f9   : >> { %v5863_v39 = vpop.xlane.xlu1 %5862  ;;  %6042 = vadd.xlane.f32.xlu1 %v6041_v13 }
0x12fa   : >> { %v11978_v55 = vsub.f32 %v11793_v6, %v5926_v52  ;;  %v5927_v60 = vmul.f32 0.015625, %v5863_v39  ;;  %v6032_v15 = vsel %vm1129_vm4, %v5984_v42, 0.0  ;;  %v5985_v18 = vmul.f32 %v11972_v63, %v11972_v63 }
0x12fb   : >> { %6033 = vadd.xlane.f32.xlu0 %v6032_v15  ;;  %v5854_v31 = vpop.xlane.xlu0 %5853 }
0x12fc   : >> { %v11984_v2 = vsub.f32 %v11799_v37, %v5927_v60  ;;  %v5924_v57 = vmul.f32 0.015625, %v5854_v31  ;;  %v6035_v7 = vsel %vm1129_vm4, %v5985_v18, 0.0  ;;  %v5990_v59 = vmul.f32 %v11978_v55, %v11978_v55 }
0x12fd   : >> { %v5857_v36 = vpop.xlane.xlu1 %5856  ;;  %6036 = vadd.xlane.f32.xlu1 %v6035_v7 }
0x12fe   : >> { %v11990_v6 = vsub.f32 %v11802_v16, %v5924_v57  ;;  %v5925_v51 = vmul.f32 0.015625, %v5857_v36  ;;  %v6050_v20 = vsel %vm1129_vm4, %v5990_v59, 0.0  ;;  %v5991_v1 = vmul.f32 %v11984_v2, %v11984_v2 }
0x12ff   : >> { %6051 = vadd.xlane.f32.xlu0 %v6050_v20  ;;  %v5872_v37 = vpop.xlane.xlu0 %5871 }
0x1300   : >> { %v11996_v56 = vsub.f32 %v11807_v49, %v5925_v51  ;;  %v5930_v24 = vmul.f32 0.015625, %v5872_v37  ;;  %v6053_v41 = vsel %vm1129_vm4, %v5991_v1, 0.0  ;;  %v5988_v44 = vmul.f32 %v11990_v6, %v11990_v6 }
0x1301   : >> { %v5875_v21 = vpop.xlane.xlu1 %5874  ;;  %6054 = vadd.xlane.f32.xlu1 %v6053_v41 }
0x1302   : >> { %v12002_v16 = vsub.f32 %v11817_v43, %v5930_v24  ;;  %v5931_v26 = vmul.f32 0.015625, %v5875_v21  ;;  %v6044_v32 = vsel %vm1129_vm4, %v5988_v44, 0.0  ;;  %v5989_v27 = vmul.f32 %v11996_v56, %v11996_v56 }
0x1303   : >> { %6045 = vadd.xlane.f32.xlu0 %v6044_v32  ;;  %v5866_v49 = vpop.xlane.xlu0 %5865 }
0x1304   : >> { %v12008_v4 = vsub.f32 %v11826_v53, %v5931_v26  ;;  %v5928_v61 = vmul.f32 0.015625, %v5866_v49  ;;  %v6047_v25 = vsel %vm1129_vm4, %v5989_v27, 0.0  ;;  %v5994_v11 = vmul.f32 %v12002_v16, %v12002_v16 }
0x1305   : >> { %v5869_v3 = vpop.xlane.xlu1 %5868  ;;  %6048 = vadd.xlane.f32.xlu1 %v6047_v25 }
0x1306   : >> { %v12014_v43 = vsub.f32 %v11821_v47, %v5928_v61  ;;  %v5929_v52 = vmul.f32 0.015625, %v5869_v3  ;;  %v6062_v13 = vsel %vm1129_vm4, %v5994_v11, 0.0  ;;  %v5995_v42 = vmul.f32 %v12008_v4, %v12008_v4 }
0x1307   : >> { %6063 = vadd.xlane.f32.xlu0 %v6062_v13  ;;  %v5884_v53 = vpop.xlane.xlu0 %5883 }
0x1308   : >> { %v12020_v39 = vsub.f32 %v11829_v48, %v5929_v52  ;;  %v5934_v60 = vmul.f32 0.015625, %v5884_v53  ;;  %v6065_v15 = vsel %vm1129_vm4, %v5995_v42, 0.0  ;;  %v5992_v18 = vmul.f32 %v12014_v43, %v12014_v43 }
0x1309   : >> { %v5887_v31 = vpop.xlane.xlu1 %5886  ;;  %6066 = vadd.xlane.f32.xlu1 %v6065_v15 }
0x130a   : >> { %v12026_v47 = vsub.f32 %v11838_v45, %v5934_v60  ;;  %v5935_v57 = vmul.f32 0.015625, %v5887_v31  ;;  %v6056_v7 = vsel %vm1129_vm4, %v5992_v18, 0.0  ;;  %v5993_v59 = vmul.f32 %v12020_v39, %v12020_v39 }
0x130b   : >> { %6057 = vadd.xlane.f32.xlu0 %v6056_v7  ;;  %v5878_v48 = vpop.xlane.xlu0 %5877 }
0x130c   : >> { %v12032_v36 = vsub.f32 %v11848_v23, %v5935_v57  ;;  %v5932_v51 = vmul.f32 0.015625, %v5878_v48  ;;  %v6059_v20 = vsel %vm1129_vm4, %v5993_v59, 0.0  ;;  %v5998_v1 = vmul.f32 %v12026_v47, %v12026_v47 }
0x130d   : >> { %v5881_v37 = vpop.xlane.xlu1 %5880  ;;  %6060 = vadd.xlane.f32.xlu1 %v6059_v20 }
0x130e   : >> { %v12038_v45 = vsub.f32 %v11845_v5, %v5932_v51  ;;  %v5933_v24 = vmul.f32 0.015625, %v5881_v37  ;;  %v6074_v41 = vsel %vm1129_vm4, %v5998_v1, 0.0  ;;  %v5999_v44 = vmul.f32 %v12032_v36, %v12032_v36 }
0x130f   : >> { %6075 = vadd.xlane.f32.xlu0 %v6074_v41  ;;  %v5896_v23 = vpop.xlane.xlu0 %5895 }
0x1310   : >> { %v12044_v21 = vsub.f32 %v11853_v33, %v5933_v24  ;;  %v5938_v26 = vmul.f32 0.015625, %v5896_v23  ;;  %v6077_v32 = vsel %vm1129_vm4, %v5999_v44, 0.0  ;;  %v5996_v27 = vmul.f32 %v12038_v45, %v12038_v45 }
0x1311   : >> { %v5899_v49 = vpop.xlane.xlu1 %5898  ;;  %6078 = vadd.xlane.f32.xlu1 %v6077_v32 }
0x1312   : >> { %v12050_v5 = vsub.f32 %v11862_v50, %v5938_v26  ;;  %v5939_v61 = vmul.f32 0.015625, %v5899_v49  ;;  %v6068_v25 = vsel %vm1129_vm4, %v5996_v27, 0.0  ;;  %v5997_v11 = vmul.f32 %v12044_v21, %v12044_v21 }
0x1313   : >> { %6069 = vadd.xlane.f32.xlu0 %v6068_v25  ;;  %v5890_v33 = vpop.xlane.xlu0 %5889 }
0x1314   : >> { %v12056_v3 = vsub.f32 %v11872_v19, %v5939_v61  ;;  %v5936_v52 = vmul.f32 0.015625, %v5890_v33  ;;  %v6071_v13 = vsel %vm1129_vm4, %v5997_v11, 0.0  ;;  %v6002_v42 = vmul.f32 %v12050_v5, %v12050_v5 }
0x1315   : >> { %v5893_v53 = vpop.xlane.xlu1 %5892  ;;  %6072 = vadd.xlane.f32.xlu1 %v6071_v13 }
0x1316   : >> { %v12062_v50 = vsub.f32 %v11869_v40, %v5936_v52  ;;  %v5937_v60 = vmul.f32 0.015625, %v5893_v53  ;;  %v6086_v15 = vsel %vm1129_vm4, %v6002_v42, 0.0  ;;  %v6003_v18 = vmul.f32 %v12056_v3, %v12056_v3 }
0x1317   : >> { %6087 = vadd.xlane.f32.xlu0 %v6086_v15 }
0x1318   : >> { %v12068_v19 = vsub.f32 %v11877_v22, %v5937_v60  ;;  %v5902_v31 = vpop.xlane.xlu0 %5901  ;;  %v6089_v57 = vsel %vm1129_vm4, %v6003_v18, 0.0  ;;  %v6000_v7 = vmul.f32 %v12062_v50, %v12062_v50 }
0x1319   : >> { %v5940_v59 = vmul.f32 0.015625, %v5902_v31  ;;  %6090 = vadd.xlane.f32.xlu1 %v6089_v57 }
0x131a   : >> { %v5905_v40 = vpop.xlane.xlu1 %5904  ;;  %v6080_v48 = vsel %vm1129_vm4, %v6000_v7, 0.0  ;;  %v6001_v51 = vmul.f32 %v12068_v19, %v12068_v19 }
0x131b   : >> { %v12077_v20 = vsub.f32 %v11888_v35, %v5940_v59  ;;  %v5941_v1 = vmul.f32 0.015625, %v5905_v40  ;;  %6081 = vadd.xlane.f32.xlu0 %v6080_v48  ;;  %v6234_v48 = vsub.s32 4, %v12751_v9 }
0x131c   : >> { %v5908_v22 = vpop.xlane.xlu0 %5907  ;;  %v6083_v37 = vsel %vm1129_vm4, %v6001_v51, 0.0 }
0x131d   : >> { %v12081_v24 = vsub.f32 %v11896_v34, %v5941_v1  ;;  %v5942_v41 = vmul.f32 0.015625, %v5908_v22  ;;  %6084 = vadd.xlane.f32.xlu1 %v6083_v37  ;;  %v6004_v44 = vmul.f32 %v12077_v20, %v12077_v20  ;;  %v6270_v37 = vsub.s32 5, %v12751_v9 }
0x131e   : >> { %v5911_v23 = vpop.xlane.xlu1 %5910 }
0x131f   : >> { %v12086_v26 = vsub.f32 %v11893_v54, %v5942_v41  ;;  %v5943_v32 = vmul.f32 0.015625, %v5911_v23  ;;  %v6092_v35 = vsel %vm1129_vm4, %v6004_v44, 0.0  ;;  %v6005_v27 = vmul.f32 %v12081_v24, %v12081_v24 }
0x1320   : >> { %6093 = vadd.xlane.f32.xlu0 %v6092_v35 }
0x1321   : >> { %v12092_v49 = vsub.f32 %v11901_v46, %v5943_v32  ;;  %v6095_v34 = vsel %vm1129_vm4, %v6005_v27, 0.0  ;;  %v6006_v61 = vmul.f32 %v12086_v26, %v12086_v26  ;;  %v12104_v32 = vrot.slane %v12752_v30, %v6234_v48 }
0x1322   : >> { %6096 = vadd.xlane.f32.xlu1 %v6095_v34 }
0x1323   : >> { %v6098_v25 = vsel %vm1129_vm4, %v6006_v61, 0.0  ;;  %v6007_v54 = vmul.f32 %v12092_v49, %v12092_v49 }
0x1324   : >> { %6099 = vadd.xlane.f32.xlu0 %v6098_v25  ;;  %v12107_v25 = vrot.slane %v12752_v30, %v6270_v37 }
0x1325   : >> { %v6101_v11 = vsel %vm1129_vm4, %v6007_v54, 0.0 }
0x1326   : >> { %6102 = vadd.xlane.f32.xlu1 %v6101_v11 }
0x1374   : >> { %v6016_v33 = vpop.xlane.xlu0 %6015 }
0x1375   : >> { %v6106_v52 = vmul.f32 0.015625, %v6016_v33 }
0x1376   : >> { %v6019_v13 = vpop.xlane.xlu1 %6018 }
0x1377   : >> { %v6138_v46 = vadd.f32 1e-05, %v6106_v52  ;;  %v6107_v42 = vmul.f32 0.015625, %v6019_v13 }
0x1378   : >> { %v6010_v53 = vpop.xlane.xlu0 %6009 }
0x1379   : >> { %8182 = vrsqrt.f32 %v6138_v46  ;;  %v6139_v60 = vadd.f32 1e-05, %v6107_v42  ;;  %v6104_v15 = vmul.f32 0.015625, %v6010_v53 }
0x137a   : >> { %v6013_v18 = vpop.xlane.xlu1 %6012 }
0x137b   : >> { %8184 = vrsqrt.f32 %v6139_v60  ;;  %v6136_v31 = vadd.f32 1e-05, %v6104_v15  ;;  %v6105_v57 = vmul.f32 0.015625, %v6013_v18 }
0x137c   : >> { %v6028_v7 = vpop.xlane.xlu0 %6027 }
0x137d   : >> { %8186 = vrsqrt.f32 %v6136_v31  ;;  %v6137_v59 = vadd.f32 1e-05, %v6105_v57  ;;  %v6110_v40 = vmul.f32 0.015625, %v6028_v7 }
0x137e   : >> { %v6031_v51 = vpop.xlane.xlu1 %6030 }
0x137f   : >> { %8188 = vrsqrt.f32 %v6137_v59  ;;  %v6142_v1 = vadd.f32 1e-05, %v6110_v40  ;;  %v6111_v22 = vmul.f32 0.015625, %v6031_v51 }
0x1380   : >> { %v6022_v41 = vpop.xlane.xlu0 %6021 }
0x1381   : >> { %8190 = vrsqrt.f32 %v6142_v1  ;;  %v6143_v44 = vadd.f32 1e-05, %v6111_v22  ;;  %v6108_v23 = vmul.f32 0.015625, %v6022_v41 }
0x1382   : >> { %v6025_v35 = vpop.xlane.xlu1 %6024 }
0x1383   : >> { %v8183_v27 = vpop.eup %8182  ;;  %8192 = vrsqrt.f32 %v6143_v44  ;;  %v6140_v34 = vadd.f32 1e-05, %v6108_v23  ;;  %v6109_v61 = vmul.f32 0.015625, %v6025_v35 }
0x1384   : >> { %v6202_v54 = vmul.f32 %v8183_v27, %v11910_v10  ;;  %v6040_v11 = vpop.xlane.xlu0 %6039 }
0x1385   : >> { %v8185_v33 = vpop.eup %8184  ;;  %8194 = vrsqrt.f32 %v6140_v34  ;;  %v6141_v9 = vadd.f32 1e-05, %v6109_v61  ;;  %v6114_v52 = vmul.f32 0.015625, %v6040_v11 }
0x1386   : >> { %v6238_v13 = vmul.f32 %v12104_v32, %v6202_v54  ;;  %v6203_v46 = vmul.f32 %v8185_v33, %v11913_v0  ;;  %v6043_v42 = vpop.xlane.xlu1 %6042 }
0x1387   : >> { %v8187_v53 = vpop.eup %8186  ;;  %8196 = vrsqrt.f32 %v6141_v9  ;;  %v6146_v60 = vadd.f32 1e-05, %v6114_v52  ;;  %v6115_v15 = vmul.f32 0.015625, %v6043_v42 }
0x1388   : >> { %v12113_v13 = vadd.f32 %v12107_v25, %v6238_v13   ;;  %v6239_v30 = vmul.f32 %v12104_v32, %v6203_v46  ;;  %v6200_v10 = vmul.f32 %v8187_v53, %v11918_v28  ;;  %v6034_v18 = vpop.xlane.xlu0 %6033 }
0x1389   : >> { %v8189_v31 = vpop.eup %8188  ;;  %8198 = vrsqrt.f32 %v6146_v60  ;;  %v6147_v7 = vadd.f32 1e-05, %v6115_v15  ;;  %v6112_v59 = vmul.f32 0.015625, %v6034_v18 }
0x138a   : >> { %v12753_v57 = vmov %v12113_v13  ;;  %v12118_v40 = vadd.f32 %v12107_v25, %v6239_v30   ;;  %v6236_v48 = vmul.f32 %v12104_v32, %v6200_v10  ;;  %v6201_v51 = vmul.f32 %v8189_v31, %v11924_v29  ;;  %v6037_v1 = vpop.xlane.xlu1 %6036 }
0x138b   : >> { %v8191_v22 = vpop.eup %8190  ;;  %8200 = vrsqrt.f32 %v6147_v7  ;;  %v6144_v37 = vadd.f32 1e-05, %v6112_v59  ;;  %v6113_v41 = vmul.f32 0.015625, %v6037_v1 }
0x138c   : >> { %v12754_v0 = vmov %v12118_v40  ;;  %v12123_v9 = vadd.f32 %v12107_v25, %v6236_v48   ;;  %v6237_v28 = vmul.f32 %v12104_v32, %v6201_v51  ;;  %v6206_v23 = vmul.f32 %v8191_v22, %v11930_v17  ;;  %v6052_v35 = vpop.xlane.xlu0 %6051 }
0x138d   : >> { %v8193_v27 = vpop.eup %8192  ;;  %8202 = vrsqrt.f32 %v6144_v37  ;;  %v6145_v34 = vadd.f32 1e-05, %v6113_v41  ;;  %v6118_v61 = vmul.f32 0.015625, %v6052_v35 }
0x138e   : >> { %12755 = vst [vmem:[#allocation59_spill] sm:$0xff] %v12123_v9  ;;  %v12128_v10 = vadd.f32 %v12107_v25, %v6237_v28   ;;  %v6242_v29 = vmul.f32 %v12104_v32, %v6206_v23  ;;  %v6207_v11 = vmul.f32 %v8193_v27, %v11936_v8  ;;  %v6055_v33 = vpop.xlane.xlu1 %6054 }
0x138f   : >> { %v8195_v52 = vpop.eup %8194  ;;  %8204 = vrsqrt.f32 %v6145_v34  ;;  %v6150_v9 = vadd.f32 1e-05, %v6118_v61  ;;  %v6119_v13 = vmul.f32 0.015625, %v6055_v33 }
0x1390   : >> { %v12756_v54 = vmov %v12128_v10  ;;  %v12133_v17 = vadd.f32 %v12107_v25, %v6242_v29   ;;  %v6243_v42 = vmul.f32 %v12104_v32, %v6207_v11  ;;  %v6204_v53 = vmul.f32 %v8195_v52, %v11942_v12  ;;  %v6046_v60 = vpop.xlane.xlu0 %6045 }
0x1391   : >> { %v8197_v15 = vpop.eup %8196  ;;  %8206 = vrsqrt.f32 %v6150_v9  ;;  %v6151_v30 = vadd.f32 1e-05, %v6119_v13  ;;  %v6116_v10 = vmul.f32 0.015625, %v6046_v60 }
0x1392   : >> { %v12757_v46 = vmov %v12133_v17  ;;  %v12138_v18 = vadd.f32 %v12107_v25, %v6243_v42   ;;  %v6240_v31 = vmul.f32 %v12104_v32, %v6204_v53  ;;  %v6205_v7 = vmul.f32 %v8197_v15, %v11948_v58  ;;  %v6049_v59 = vpop.xlane.xlu1 %6048 }
0x1393   : >> { %v8199_v40 = vpop.eup %8198  ;;  %8208 = vrsqrt.f32 %v6151_v30  ;;  %v6148_v17 = vadd.f32 1e-05, %v6116_v10  ;;  %v6117_v48 = vmul.f32 0.015625, %v6049_v59 }
0x1394   : >> { %v12758_v8 = vmov %v12138_v18  ;;  %v12143_v15 = vadd.f32 %v12107_v25, %v6240_v31   ;;  %v6241_v51 = vmul.f32 %v12104_v32, %v6205_v7  ;;  %v6210_v1 = vmul.f32 %v8199_v40, %v11954_v62  ;;  %v6064_v22 = vpop.xlane.xlu0 %6063 }
0x1395   : >> { %v8201_v37 = vpop.eup %8200  ;;  %8210 = vrsqrt.f32 %v6148_v17  ;;  %v6149_v18 = vadd.f32 1e-05, %v6117_v48  ;;  %v6122_v41 = vmul.f32 0.015625, %v6064_v22 }
0x1396   : >> { %v12759_v12 = vmov %v12143_v15  ;;  %v12148_v28 = vadd.f32 %v12107_v25, %v6241_v51   ;;  %v6246_v23 = vmul.f32 %v12104_v32, %v6210_v1  ;;  %v6211_v35 = vmul.f32 %v8201_v37, %v11960_v38  ;;  %v6067_v27 = vpop.xlane.xlu1 %6066 }
0x1397   : >> { %v8203_v34 = vpop.eup %8202  ;;  %8212 = vrsqrt.f32 %v6149_v18  ;;  %v6154_v61 = vadd.f32 1e-05, %v6122_v41  ;;  %v6123_v29 = vmul.f32 0.015625, %v6067_v27 }
0x1398   : >> { %v12760_v58 = vmov %v12148_v28  ;;  %v12153_v11 = vadd.f32 %v12107_v25, %v6246_v23   ;;  %v6247_v62 = vmul.f32 %v12104_v32, %v6211_v35  ;;  %v6208_v33 = vmul.f32 %v8203_v34, %v11966_v14  ;;  %v6058_v52 = vpop.xlane.xlu0 %6057 }
0x1399   : >> { %v8205_v9 = vpop.eup %8204  ;;  %8214 = vrsqrt.f32 %v6154_v61  ;;  %v6155_v13 = vadd.f32 1e-05, %v6123_v29  ;;  %v6120_v42 = vmul.f32 0.015625, %v6058_v52 }
0x139a   : >> { %v12158_v22 = vadd.f32 %v12107_v25, %v6247_v62   ;;  %v6244_v38 = vmul.f32 %v12104_v32, %v6208_v33  ;;  %v6209_v60 = vmul.f32 %v8205_v9, %v11972_v63  ;;  %v6061_v15 = vpop.xlane.xlu1 %6060 }
0x139b   : >> { %v8207_v30 = vpop.eup %8206  ;;  %8216 = vrsqrt.f32 %v6155_v13  ;;  %v6152_v10 = vadd.f32 1e-05, %v6120_v42  ;;  %v6121_v31 = vmul.f32 0.015625, %v6061_v15 }
0x139c   : >> { %v12761_v53 = vmov %v12158_v22  ;;  %v12163_v7 = vadd.f32 %v12107_v25, %v6244_v38   ;;  %v6245_v14 = vmul.f32 %v12104_v32, %v6209_v60  ;;  %v6214_v59 = vmul.f32 %v8207_v30, %v11978_v55  ;;  %v6076_v40 = vpop.xlane.xlu0 %6075 }
0x139d   : >> { %v8209_v17 = vpop.eup %8208  ;;  %8218 = vrsqrt.f32 %v6152_v10  ;;  %v6153_v48 = vadd.f32 1e-05, %v6121_v31  ;;  %v6126_v51 = vmul.f32 0.015625, %v6076_v40 }
0x139e   : >> { %v12168_v1 = vadd.f32 %v12107_v25, %v6245_v14   ;;  %v6250_v63 = vmul.f32 %v12104_v32, %v6214_v59  ;;  %v6215_v22 = vmul.f32 %v8209_v17, %v11984_v2  ;;  %v6079_v37 = vpop.xlane.xlu1 %6078 }
0x139f   : >> { %v8211_v18 = vpop.eup %8210  ;;  %8220 = vrsqrt.f32 %v6153_v48  ;;  %v6158_v41 = vadd.f32 1e-05, %v6126_v51  ;;  %v6127_v28 = vmul.f32 0.015625, %v6079_v37 }
0x13a0   : >> { %v12173_v23 = vadd.f32 %v12107_v25, %v6250_v63   ;;  %v6251_v35 = vmul.f32 %v12104_v32, %v6215_v22  ;;  %v6212_v27 = vmul.f32 %v8211_v18, %v11990_v6  ;;  %v6070_v34 = vpop.xlane.xlu0 %6069 }
0x13a1   : >> { %v8213_v61 = vpop.eup %8212  ;;  %8222 = vrsqrt.f32 %v6158_v41  ;;  %v6159_v29 = vadd.f32 1e-05, %v6127_v28  ;;  %v6124_v62 = vmul.f32 0.015625, %v6070_v34 }
0x13a2   : >> { %12762 = vst [vmem:[#allocation60_spill] sm:$0xff] %v12173_v23  ;;  %v12763_v55 = vmov %v12173_v23  ;;  %v12178_v33 = vadd.f32 %v12107_v25, %v6251_v35   ;;  %v6248_v52 = vmul.f32 %v12104_v32, %v6212_v27  ;;  %v6213_v9 = vmul.f32 %v8213_v61, %v11996_v56  ;;  %v6073_v13 = vpop.xlane.xlu1 %6072 }
0x13a3   : >> { %v8215_v42 = vpop.eup %8214  ;;  %8224 = vrsqrt.f32 %v6159_v29  ;;  %v6156_v38 = vadd.f32 1e-05, %v6124_v62  ;;  %v6125_v60 = vmul.f32 0.015625, %v6073_v13 }
0x13a4   : >> { %12764 = vst [vmem:[#allocation61_spill] sm:$0xff] %v12178_v33  ;;  %v12765_v2 = vmov %v12178_v33  ;;  %v12183_v23 = vadd.f32 %v12107_v25, %v6248_v52   ;;  %v6249_v15 = vmul.f32 %v12104_v32, %v6213_v9  ;;  %v6218_v30 = vmul.f32 %v8215_v42, %v12002_v16  ;;  %v6088_v10 = vpop.xlane.xlu0 %6087 }
0x13a5   : >> { %v8217_v31 = vpop.eup %8216  ;;  %8226 = vrsqrt.f32 %v6156_v38  ;;  %v6157_v14 = vadd.f32 1e-05, %v6125_v60  ;;  %v6130_v59 = vmul.f32 0.015625, %v6088_v10 }
0x13a6   : >> { %v12766_v6 = vmov %v12183_v23  ;;  %v12188_v40 = vadd.f32 %v12107_v25, %v6249_v15   ;;  %v6254_v17 = vmul.f32 %v12104_v32, %v6218_v30  ;;  %v6219_v48 = vmul.f32 %v8217_v31, %v12008_v4  ;;  %v6091_v51 = vpop.xlane.xlu1 %6090 }
0x13a7   : >> { %v8219_v63 = vpop.eup %8218  ;;  %8228 = vrsqrt.f32 %v6157_v14  ;;  %v6162_v22 = vadd.f32 1e-05, %v6130_v59  ;;  %v6131_v37 = vmul.f32 0.015625, %v6091_v51 }
0x13a8   : >> { %v12767_v56 = vmov %v12188_v40  ;;  %v12193_v29 = vadd.f32 %v12107_v25, %v6254_v17   ;;  %v6255_v16 = vmul.f32 %v12104_v32, %v6219_v48  ;;  %v6216_v18 = vmul.f32 %v8219_v63, %v12014_v43  ;;  %v6082_v41 = vpop.xlane.xlu0 %6081 }
0x13a9   : >> { %v8221_v28 = vpop.eup %8220  ;;  %8230 = vrsqrt.f32 %v6162_v22  ;;  %v6163_v23 = vadd.f32 1e-05, %v6131_v37  ;;  %v6128_v35 = vmul.f32 0.015625, %v6082_v41 }
0x13aa   : >> { %v12768_v61 = vmov %v12193_v29  ;;  %v12198_v30 = vadd.f32 %v12107_v25, %v6255_v16   ;;  %v6252_v27 = vmul.f32 %v12104_v32, %v6216_v18  ;;  %v6217_v34 = vmul.f32 %v8221_v28, %v12020_v39  ;;  %v6085_v62 = vpop.xlane.xlu1 %6084 }
0x13ab   : >> { %v8223_v33 = vpop.eup %8222  ;;  %8232 = vrsqrt.f32 %v6163_v23  ;;  %v6160_v29 = vadd.f32 1e-05, %v6128_v35  ;;  %v6129_v52 = vmul.f32 0.015625, %v6085_v62 }
0x13ac   : >> { %v12769_v4 = vmov %v12198_v30  ;;  %v12203_v27 = vadd.f32 %v12107_v25, %v6252_v27   ;;  %v6253_v9 = vmul.f32 %v12104_v32, %v6217_v34  ;;  %v6222_v13 = vmul.f32 %v8223_v33, %v12026_v47 }
0x13ad   : >> { %v8225_v42 = vpop.eup %8224  ;;  %8234 = vrsqrt.f32 %v6160_v29  ;;  %v6161_v38 = vadd.f32 1e-05, %v6129_v52  ;;  %v6094_v60 = vpop.xlane.xlu0 %6093 }
0x13ae   : >> { %v12770_v43 = vmov %v12203_v27  ;;  %v12208_v28 = vadd.f32 %v12107_v25, %v6253_v9   ;;  %v6258_v39 = vmul.f32 %v12104_v32, %v6222_v13  ;;  %v6223_v15 = vmul.f32 %v8225_v42, %v12032_v36 }
0x13af   : >> { %v6132_v30 = vmul.f32 0.015625, %v6094_v60  ;;  %v8227_v10 = vpop.eup %8226  ;;  %8236 = vrsqrt.f32 %v6161_v38  ;;  %v6097_v31 = vpop.xlane.xlu1 %6096 }
0x13b0   : >> { %v12771_v59 = vmov %v12208_v28  ;;  %v12213_v33 = vadd.f32 %v12107_v25, %v6258_v39   ;;  %v6259_v47 = vmul.f32 %v12104_v32, %v6223_v15  ;;  %v6220_v14 = vmul.f32 %v8227_v10, %v12038_v45 }
0x13b1   : >> { %v6164_v40 = vadd.f32 1e-05, %v6132_v30  ;;  %v8229_v17 = vpop.eup %8228  ;;  %v6133_v51 = vmul.f32 0.015625, %v6097_v31  ;;  %v6100_v63 = vpop.xlane.xlu0 %6099 }
0x13b2   : >> { %v12772_v48 = vmov %v12213_v33  ;;  %v12218_v34 = vadd.f32 %v12107_v25, %v6259_v47   ;;  %v6256_v36 = vmul.f32 %v12104_v32, %v6220_v14  ;;  %v6221_v22 = vmul.f32 %v8229_v17, %v12044_v21 }
0x13b3   : >> { %8238 = vrsqrt.f32 %v6164_v40  ;;  %v8231_v37 = vpop.eup %8230  ;;  %v6165_v16 = vadd.f32 1e-05, %v6133_v51  ;;  %v6134_v18 = vmul.f32 0.015625, %v6100_v63  ;;  %v6103_v41 = vpop.xlane.xlu1 %6102 }
0x13b4   : >> { %v12773_v62 = vmov %v12218_v34  ;;  %v12223_v31 = vadd.f32 %v12107_v25, %v6256_v36   ;;  %v6257_v45 = vmul.f32 %v12104_v32, %v6221_v22  ;;  %v6226_v28 = vmul.f32 %v8231_v37, %v12050_v5 }
0x13b5   : >> { %v6135_v23 = vmul.f32 0.015625, %v6103_v41  ;;  %v8233_v35 = vpop.eup %8232  ;;  %8240 = vrsqrt.f32 %v6165_v16  ;;  %v6166_v27 = vadd.f32 1e-05, %v6134_v18  ;;  %v12812_v18 = vmov %v12758_v8 }
0x13b6   : >> { %v12774_v52 = vmov %v12223_v31  ;;  %v12228_v34 = vadd.f32 %v12107_v25, %v6257_v45   ;;  %v6262_v21 = vmul.f32 %v12104_v32, %v6226_v28  ;;  %v6227_v33 = vmul.f32 %v8233_v35, %v12056_v3 }
0x13b7   : >> { %v6167_v29 = vadd.f32 1e-05, %v6135_v23  ;;  %v8235_v9 = vpop.eup %8234  ;;  %8242 = vrsqrt.f32 %v6166_v27  ;;  %v12802_v28 = vmov %v12771_v59  ;;  %v12803_v27 = vmov %v12770_v43 }
0x13b8   : >> { %v12775_v60 = vmov %v12228_v34  ;;  %v12233_v37 = vadd.f32 %v12107_v25, %v6262_v21   ;;  %v6263_v13 = vmul.f32 %v12104_v32, %v6227_v33  ;;  %v6224_v5 = vmul.f32 %v8235_v9, %v12062_v50  ;;  %v12819_v9 = vld [vmem:[#allocation59_spill] sm:$0xff] }
0x13b9   : >> { %8244 = vrsqrt.f32 %v6167_v29  ;;  %v8237_v42 = vpop.eup %8236  ;;  %v12796_v34 = vmov %v12773_v62  ;;  %v12797_v33 = vmov %v12772_v48  ;;  %v12801_v29 = vmov %v12768_v61 }
0x13ba   : >> { %v12776_v47 = vmov %v12233_v37  ;;  %v12238_v38 = vadd.f32 %v12107_v25, %v6263_v13   ;;  %v6260_v39 = vmul.f32 %v12104_v32, %v6224_v5  ;;  %v6225_v15 = vmul.f32 %v8237_v42, %v12068_v19 }
0x13bb   : >> { %v12807_v23 = vmov %v12766_v6  ;;  %v12809_v21 = vmov %v12153_v11  ;;  %v12814_v16 = vmov %v12760_v58  ;;  %v12817_v13 = vmov %v12753_v57 }
0x13bc   : >> { %v12777_v51 = vmov %v12238_v38  ;;  %v12243_v35 = vadd.f32 %v12107_v25, %v6260_v39   ;;  %v6261_v30 = vmul.f32 %v12104_v32, %v6225_v15  ;;  %v12815_v15 = vmov %v12759_v12  ;;  %v12827_v21 = vld [vmem:[#allocation42_spill] sm:$0xff] (%p12272_p6) }
0x13bd   : >> { %v8239_v3 = vpop.eup %8238 }
0x13be   : >> { %v12778_v63 = vmov %v12243_v35  ;;  %v6228_v10 = vmul.f32 %v8239_v3, %v12077_v20  ;;  %v12248_v36 = vadd.f32 %v12107_v25, %v6261_v30   ;;  %v12800_v30 = vmov %v12769_v4 }
0x13bf   : >> { %v8241_v31 = vpop.eup %8240  ;;  %v12795_v35 = vmov %v12778_v63 }
0x13c0   : >> { %v12779_v50 = vmov %v12248_v36  ;;  %v6264_v14 = vmul.f32 %v12104_v32, %v6228_v10  ;;  %v6229_v38 = vmul.f32 %v8241_v31, %v12081_v24  ;;  %v12799_v31 = vmov %v12774_v52 }
0x13c1   : >> { %v8243_v40 = vpop.eup %8242  ;;  %v12806_v24 = vmov %v12767_v56  ;;  %v12818_v10 = vmov %v12756_v54 }
0x13c2   : >> { %v12253_v39 = vadd.f32 %v12107_v25, %v6264_v14   ;;  %v6265_v17 = vmul.f32 %v12104_v32, %v6229_v38  ;;  %v6230_v22 = vmul.f32 %v8243_v40, %v12086_v26  ;;  %v12792_v38 = vmov %v12777_v51 }
0x13c3   : >> { %v8245_v19 = vpop.eup %8244  ;;  %v12804_v26 = vmov %v12765_v2  ;;  %v12816_v14 = vmov %v12754_v0  ;;  %v12821_v2 = vld [vmem:[#allocation59_spill] sm:$0xff] (%p12272_p6)  ;;  %v6306_v24 = vpack.c.bf16 (%p12272_p6), %v12754_v0, %v12753_v57  ;;  %v6316_v57 = vpack.c.bf16 (%p12272_p6), %v12773_v62, %v12772_v48 }
0x13c4   : >> { %v12780_v45 = vmov %v12253_v39  ;;  %v6231_v37 = vmul.f32 %v8245_v19, %v12092_v49  ;;  %v12259_v40 = vadd.f32 %v12107_v25, %v6265_v17   ;;  %v6266_v20 = vmul.f32 %v12104_v32, %v6230_v22  ;;  %v6321_v26 = vld [vmem:[#allocation5] sm:$0x1] (%p12272_p6) }
0x13c5   : >> { %v12791_v39 = vmov %v12780_v45  ;;  %v12808_v22 = vmov %v12761_v53  ;;  %v12811_v19 = vmov %v12163_v7  ;;  %v12813_v17 = vmov %v12757_v46  ;;  %843 = sbr.rel (!%p12272_p6) target bundleno = 251 (0xfb), region = 214 }
0x13c6   : >> { %v12781_v5 = vmov %v12259_v40  ;;  %v6267_v36 = vmul.f32 %v12104_v32, %v6231_v37  ;;  %v12264_v41 = vadd.f32 %v12107_v25, %v6266_v20   ;;  %v12793_v37 = vmov %v12776_v47 }
0x13c7   : >> { %v12790_v40 = vmov %v12781_v5  ;;  %v12798_v32 = vmov %v12775_v60  ;;  %v12810_v20 = vmov %v12168_v1  ;;  %v6313_v49 = vpack.c.bf16 (%p12272_p6), %v12771_v59, %v12770_v43 }
0x13c8   : >> { %12782 = vst [vmem:[#allocation62_spill] sm:$0xff] %v12264_v41  ;;  %v12783_v3 = vmov %v12264_v41  ;;  %v12267_v42 = vadd.f32 %v12107_v25, %v6267_v36   ;;  %v12794_v36 = vmov %v12779_v50  ;;  %v12805_v25 = vmov %v12763_v55 }
0x13c9   : >> { %v12789_v41 = vmov %v12783_v3  ;;  %v6305_v55 = vpack.c.bf16 (%p12272_p6), %v12756_v54, %v12821_v2  ;;  %v6304_v3 = vld [vmem:[%s12459_s21] sm:$0x1] (%p12272_p6)  ;;  %7382 = vmatprep.subr.msk.bf16.mxu0 (%p12272_p6), %vm1129_vm4, %v6313_v49  ;;  %v8540_v32 = vmov (%p12272_p6), 0   ;;  %v6339_v25 = vsel (%p12272_p6), %vm1129_vm4, %v6306_v24, 0 }
0x13ca   : >> { %12784 = vst [vmem:[#allocation63_spill] sm:$0xff] %v12267_v42  ;;  %v12787_v44 = vmov %v12267_v42  ;;  %7093 = vmatprep.mubr.msk.bf16.mxu0 (%p12272_p6), %vm1129_vm4, %v6304_v3  ;;  %8246 = vset.pattern.permute.xlu0 (%p12272_p6), %v8540_v32  ;;  %v6315_v54 = vpack.c.bf16 (%p12272_p6), %v12775_v60, %v12774_v52  ;;  %v6308_v0 = vpack.c.bf16 (%p12272_p6), %v12758_v8, %v12757_v46  ;;  %v8541_v52 = vmov (%p12272_p6), 1966171168  }
0x13cb   : >> { %v12788_v42 = vmov %v12787_v44  ;;  %v6314_v44 = vpack.c.bf16 (%p12272_p6), %v12769_v4, %v12768_v61  ;;  %v6336_v9 = vsel (%p12272_p6), %vm1129_vm4, %v6305_v55, 0  ;;  %6324 = vperm.xlu0 (%p12272_p6), %8246, %v6321_v26   ;;  %v6307_v55 = vpack.c.bf16 (%p12272_p6), %v12760_v58, %v12759_v12 }
0x13cc   : > { %7078 = vmatpush3.bf16.xpose.msra.mxu0 %v6336_v9  ;;  %v6345_v2 = vsel %vm1129_vm4, %v6308_v0, 0  ;;  %v6317_v61 = vpack.c.bf16 %v12779_v50, %v12778_v63  ;;  %v6309_v12 = vpack.c.bf16 %v12168_v1, %v12163_v7  ;;  %v6318_v4 = vpack.c.bf16 %v12777_v51, %v12776_v47 }
0x13cd   : > { %7383 = vmatprep.subr.msk.bf16.mxu0 %vm1129_vm4, %v6314_v44  ;;  %v6342_v44 = vsel %vm1129_vm4, %v6307_v55, 0  ;;  %v6310_v46 = vpack.c.bf16 %v12761_v53, %v12153_v11  ;;  %v6319_v43 = vpack.c.bf16 %v12781_v5, %v12780_v45  ;;  %v6311_v7 = vpack.c.bf16 %v12767_v56, %v12766_v6  ;;  %v12824_v11 = vld [vmem:[#allocation60_spill] sm:$0xff]  ;;  %v12825_v53 = vld [vmem:[#allocation61_spill] sm:$0xff]  ;;  %v12826_v56 = vld [vmem:[#allocation43_spill] sm:$0xff] }
0x13ce   : > { %v6348_v58 = vsel %vm1129_vm4, %v6309_v12, 0  ;;  %v6312_v16 = vpack.c.bf16 %v12825_v53, %v12824_v11  ;;  %v6428_v6 = vunpack.c.l.s4 %v8541_v52  ;;  %v12828_v51 = vlaneseq }
0x13cf   : > { %v6351_v8 = vsel %vm1129_vm4, %v6310_v46, 0  ;;  %v6354_v1 = vsel %vm1129_vm4, %v6311_v7, 0  ;;  %v12822_v59 = vld [vmem:[#allocation62_spill] sm:$0xff] }
0x13d0   : > { %v6357_v18 = vsel %vm1129_vm4, %v6312_v16, 0  ;;  %v6429_v23 = vunpack.c.0.s8 %v6428_v6  ;;  %vm6444_vm6 = vcmp.lt.s32.totalorder %v12828_v51, 256 }
0x13d1   : > { %v12823_v48 = vld [vmem:[#allocation63_spill] sm:$0xff] }
0x13d2   : > { %v6320_v62 = vpack.c.bf16 %v12823_v48, %v12822_v59  ;;  %v6432_v33 = vsub.s32 %v6429_v23, %v12827_v21 }
0x13d4   : > { %7080 = vmatpush3.bf16.xpose.msra.mxu0 %v6339_v25 }
0x13d5   : > { %7384 = vmatprep.subr.msk.bf16.mxu0 %vm1129_vm4, %v6315_v54 }
0x13dc   : > { %7082 = vmatpush3.bf16.xpose.msra.mxu0 %v6342_v44 }
0x13dd   : > { %7385 = vmatprep.subr.msk.bf16.mxu0 %vm1129_vm4, %v6316_v57 }
0x13e4   : > { %7084 = vmatpush3.bf16.xpose.msra.mxu0 %v6345_v2 }
0x13e5   : > { %7386 = vmatprep.subr.msk.bf16.mxu0 %vm1129_vm4, %v6317_v61 }
0x13ec   : > { %7086 = vmatpush3.bf16.xpose.msra.mxu0 %v6348_v58 }
0x13ed   : > { %7387 = vmatprep.subr.msk.bf16.mxu0 %vm1129_vm4, %v6318_v4 }
0x13f4   : > { %7088 = vmatpush3.bf16.xpose.msra.mxu0 %v6351_v8 }
0x13f5   : > { %7388 = vmatprep.subr.msk.bf16.mxu0 %vm1129_vm4, %v6319_v43 }
0x13fc   : > { %7090 = vmatpush3.bf16.xpose.msra.mxu0 %v6354_v1 }
0x13fd   : > { %7389 = vmatprep.subr.msk.bf16.mxu0 %vm1129_vm4, %v6320_v62 }
0x1404   : > { %7092 = vmatpush3.bf16.xpose.msra.mxu0 %v6357_v18 }
0x140b   : > { %7094 = vmatmul.mubr.msk.bf16.vlgmr.msra.gmra.mrb[0].mxu0 %vm1129_vm4, %v6304_v3 }
0x144a   : > { %v6325_v41 = vpop.permute.xlu0 %6324 }
0x144b   : > { %v6330_v28 = vrot.slane %v6325_v41, %v12826_v56 }
0x14de   : > { %v6417_v35 = vpop.f32.mrb[0].mxu0 }
0x14df   : > { %v6418_v27 = vadd.f32 %v6417_v35, %v6330_v28  ;;  %v6419_v34 = vpop.f32.mrb[1].mxu0 }
0x14e0   : > { %v6420_v60 = vadd.f32 %v6419_v34, %v6330_v28  ;;  %v6421_v29 = vpop.f32.mrb[2].mxu0 }
0x14e1   : > { %v6422_v47 = vpop.f32.mrb[3].mxu0 }
0x14e2   : > { %v6426_v13 = vcombine.low %v6418_v27, %v6420_v60 }
0x14e4   : > { %v6433_v42 = vrot.slane %v6426_v13, %v6432_v33 }
0x14e6   : > { %v6440_v39 = vrot.slane %v6433_v42, %v6432_v33 }
0x14e8   : > { %6446 = vst.msk [vmem:[%s8702_s29] sm:$0x3] %vm6444_vm6, %v6440_v39 }
0x14e9 PF: > { %s35_s24 = sadd.s32 1, %s8393_s24  }
0x14ea   : > { %p32_p7 = scmp.ge.s32.totalorder %s35_s24, 4  }
0x14ec   :  { %34 = sbr.rel (!%p32_p7) target bundleno = 9 (0x9), region = 225 }

</bundles_post_ra>
